<compile_context>
chip_gen: v6e
topology: v6e:2x2x1
jax: 0.10.0
libtpu: 0.0.40
codegen_flags: <defaults>
</compile_context>

<pallas_src>
import jax
import jax.numpy as jnp
from jax.experimental import pallas as pl
from jax.experimental.pallas import tpu as pltpu


def _decoder_kernel(x_ref, w1_ref, b1_ref, w2_ref, b2_ref,
                    w3_ref, b3_ref, w4_ref, b4_ref, o_ref):
    """Fused MLP: relu(relu(relu(x@w1+b1)@w2+b2)@w3+b3)@w4+b4 (f32 accum)."""
    x = x_ref[...]
    h = jnp.dot(x, w1_ref[...], preferred_element_type=jnp.float32) + b1_ref[...]
    h = jnp.maximum(h, 0.0).astype(w2_ref.dtype)
    h = jnp.dot(h, w2_ref[...], preferred_element_type=jnp.float32) + b2_ref[...]
    h = jnp.maximum(h, 0.0).astype(w3_ref.dtype)
    h = jnp.dot(h, w3_ref[...], preferred_element_type=jnp.float32) + b3_ref[...]
    h = jnp.maximum(h, 0.0).astype(w4_ref.dtype)
    y = jnp.dot(h, w4_ref[...], preferred_element_type=jnp.float32) + b4_ref[...]
    o_ref[...] = y.astype(o_ref.dtype)


def _round_up(n, m):
    return ((n + m - 1) // m) * m


def _pad_params(params, dtype, align=256):
    """Cast to `dtype` and zero-pad hidden widths (2000->2048, 500->512).

    The MLP's external input/output dims are untouched.  Padded bias entries
    are 0, so padded hidden columns stay exactly 0 after ReLU and contribute
    nothing downstream (bitwise-equivalent math).
    """
    padded = []
    padded_in = params[0][0].shape[0]
    n = len(params)
    for li, (w, b) in enumerate(params):
        fan_in, fan_out = w.shape
        fan_out_p = fan_out if li == n - 1 else _round_up(fan_out, align)
        wp = jnp.zeros((padded_in, fan_out_p), dtype)
        wp = wp.at[:fan_in, :fan_out].set(w.astype(dtype))
        bp = jnp.zeros((1, fan_out_p), dtype)
        bp = bp.at[:, :fan_out].set(b.astype(dtype))
        padded.append((wp, bp))
        padded_in = fan_out_p
    return padded


def _vmem_capacity_bytes():
    try:
        return int(pltpu.get_tpu_info().vmem_capacity_bytes)
    except Exception:
        return 64 << 20  # conservative: v7x per-TC physical VMEM


def decoder_forward(x, params, *, tile_m=512, compute_dtype=jnp.bfloat16):
    """Forward pass of the Decoder MLP.

    x:      (..., feature_dim)
    params: list of 4 (w, b) pairs, w shape (in, out), b shape (out,)
            (torch Linear with weight transposed).
    """
    assert len(params) == 4
    feature_dim = x.shape[-1]
    out_dim = params[-1][0].shape[1]
    lead_shape = x.shape[:-1]
    out_dtype = x.dtype

    x2d = x.reshape(-1, feature_dim).astype(compute_dtype)
    rows = x2d.shape[0]

    # One-time weight preprocessing (precompute/caching recommended when the
    # decoder is called repeatedly): bf16 cast + hidden-width padding.
    pparams = _pad_params(params, compute_dtype)
    weight_bytes = sum(w.size * w.dtype.itemsize + b.size * b.dtype.itemsize
                       for (w, b) in pparams)
    hidden_sum = sum(w.shape[1] for (w, _) in pparams[:-1])

    cdt_size = jnp.dtype(compute_dtype).itemsize
    out_size = jnp.dtype(out_dtype).itemsize

    # ---- Generation-aware VMEM budget and row-tile sizing ------------------
    capacity = _vmem_capacity_bytes()
    vmem_cap = (96 << 20) if capacity >= (100 << 20) else (44 << 20)

    def footprint(tm, weight_bufs):
        return (2 * tm * feature_dim * cdt_size      # x tile, double-buffered
                + 2 * tm * out_dim * out_size        # out tile, double-buffered
                + weight_bufs * weight_bytes         # resident weights/biases
                + tm * hidden_sum * (4 + cdt_size)   # f32 acts + bf16 recasts
                + tm * out_dim * 4                   # final f32 accumulator
                + (6 << 20))                         # pipeline/compiler headroom

    if rows <= tile_m:
        tm = rows                                    # full extent, no padding
    else:
        tm = max(8, tile_m - (tile_m % 8))
    # Never clamp vmem_limit below the real footprint: shrink tm instead.
    while footprint(tm, 1) > vmem_cap and tm > 8:
        tm = max(8, tm // 2)
    grid_m = pl.cdiv(rows, tm)

    vmem_need = footprint(tm, 1)
    vmem_limit = int(min(max(vmem_need, 32 << 20), vmem_cap))
    if vmem_need > vmem_cap:        # pathological case: let the compiler try
        vmem_limit = int(vmem_need)

    # Megacore: only shard the row axis when there is real work to split;
    # otherwise each v7x core would re-DMA its own full weight copy.
    semantics = ("parallel",) if grid_m > 2 else ("arbitrary",)

    flops = 2 * rows * sum(w.shape[0] * w.shape[1] for (w, _) in pparams)
    bytes_accessed = int(x2d.size * cdt_size + weight_bytes
                         + rows * out_dim * out_size)
    cost = pl.CostEstimate(flops=flops, transcendentals=0,
                           bytes_accessed=bytes_accessed)

    def build_inputs(single_buffer_weights):
        flat_args = [x2d]
        in_specs = [pl.BlockSpec((tm, feature_dim), lambda i: (i, 0))]
        for (w, b) in pparams:
            for arr in (w, b):
                flat_args.append(arr)
                if single_buffer_weights:
                    spec = pl.BlockSpec(arr.shape, lambda i: (0, 0),
                                        pipeline_mode=pl.Buffered(1))
                else:
                    spec = pl.BlockSpec(arr.shape, lambda i: (0, 0))
                in_specs.append(spec)
        return flat_args, in_specs

    def run(single_buffer_weights):
        flat_args, in_specs = build_inputs(single_buffer_weights)
        return pl.pallas_call(
            _decoder_kernel,
            out_shape=jax.ShapeDtypeStruct((rows, out_dim), out_dtype),
            grid_spec=pltpu.PrefetchScalarGridSpec(
                num_scalar_prefetch=0,
                grid=(grid_m,),
                in_specs=in_specs,
                out_specs=pl.BlockSpec((tm, out_dim), lambda i: (i, 0)),
            ),
            compiler_params=pltpu.CompilerParams(
                dimension_semantics=semantics,
                vmem_limit_bytes=vmem_limit,
            ),
            cost_estimate=cost,
        )(*flat_args)

    try:
        out = run(single_buffer_weights=True)
    except Exception:
        # Fallback for jax versions where pipeline_mode=pl.Buffered(1) on a
        # constant-index input is unsupported: accept default double buffering.
        out = run(single_buffer_weights=False)

    return out.reshape(*lead_shape, out_dim)


def decoder_ref(x, params):
    """Pure-JAX f32 reference matching the PyTorch Decoder forward."""
    h = x
    for i, (w, b) in enumerate(params):
        h = h @ w + b
        if i < len(params) - 1:
            h = jnp.maximum(h, 0.0)
    return h


if __name__ == "__main__":
    key = jax.random.PRNGKey(0)

    # Small test shapes; hidden widths (2000, 500, 500) are fixed by the module.
    batch, feature_dim, input_dim = 2, 32, 64
    dims = [feature_dim, 2000, 500, 500, input_dim]

    keys = jax.random.split(key, 1 + 2 * 4)
    x = jax.random.normal(keys[0], (batch, feature_dim), dtype=jnp.float32)

    # torch.nn.Linear-style init: U(-1/sqrt(fan_in), 1/sqrt(fan_in)).
    params = []
    kidx = 1
    for layer in range(4):
        fan_in, fan_out = dims[layer], dims[layer + 1]
        bound = 1.0 / (fan_in ** 0.5)
        w = jax.random.uniform(keys[kidx], (fan_in, fan_out), jnp.float32,
                               minval=-bound, maxval=bound)
        kidx += 1
        b = jax.random.uniform(keys[kidx], (fan_out,), jnp.float32,
                               minval=-bound, maxval=bound)
        kidx += 1
        params.append((w, b))

    out = decoder_forward(x, params)
    out = jax.block_until_ready(out)

    ref = decoder_ref(x, params)
    assert out.shape == (batch, input_dim)
    # bf16 inputs/weights with f32 accumulation: ~1% relative error budget,
    # still catches wrong layer order / missing bias / missing ReLU.
    assert jnp.allclose(out, ref, atol=3e-2, rtol=3e-2), float(
        jnp.max(jnp.abs(out - ref)))

    print("KERNEL_OK")
</pallas_src>

<mosaic_0001>
module attributes {stable_mosaic.version = 11 : i64} {
  func.func @_decoder_kernel(%arg0: i32, %arg1: memref<2x32xbf16, #tpu.memory_space<vmem>>, %arg2: memref<32x2048xbf16, #tpu.memory_space<vmem>>, %arg3: memref<1x2048xbf16, #tpu.memory_space<vmem>>, %arg4: memref<2048x512xbf16, #tpu.memory_space<vmem>>, %arg5: memref<1x512xbf16, #tpu.memory_space<vmem>>, %arg6: memref<512x512xbf16, #tpu.memory_space<vmem>>, %arg7: memref<1x512xbf16, #tpu.memory_space<vmem>>, %arg8: memref<512x64xbf16, #tpu.memory_space<vmem>>, %arg9: memref<1x64xbf16, #tpu.memory_space<vmem>>, %arg10: memref<2x64xf32, #tpu.memory_space<vmem>>) attributes {dimension_semantics = [#tpu.dimension_semantics<arbitrary>], iteration_bounds = array<i64: 1>, scalar_prefetch = 0 : i64, scratch_operands = 0 : i64, tpu.core_type = #tpu.core_type<tc>, window_params = [{transform_indices = @transform_0, window_bounds = array<i64: 2, 32>}, {pipeline_mode = #tpu.pipeline_mode<synchronous>, transform_indices = @transform_1, window_bounds = array<i64: 32, 2048>}, {pipeline_mode = #tpu.pipeline_mode<synchronous>, transform_indices = @transform_2, window_bounds = array<i64: 1, 2048>}, {pipeline_mode = #tpu.pipeline_mode<synchronous>, transform_indices = @transform_3, window_bounds = array<i64: 2048, 512>}, {pipeline_mode = #tpu.pipeline_mode<synchronous>, transform_indices = @transform_4, window_bounds = array<i64: 1, 512>}, {pipeline_mode = #tpu.pipeline_mode<synchronous>, transform_indices = @transform_5, window_bounds = array<i64: 512, 512>}, {pipeline_mode = #tpu.pipeline_mode<synchronous>, transform_indices = @transform_6, window_bounds = array<i64: 1, 512>}, {pipeline_mode = #tpu.pipeline_mode<synchronous>, transform_indices = @transform_7, window_bounds = array<i64: 512, 64>}, {pipeline_mode = #tpu.pipeline_mode<synchronous>, transform_indices = @transform_8, window_bounds = array<i64: 1, 64>}, {transform_indices = @transform_9, window_bounds = array<i64: 2, 64>}]} {
    %c0 = arith.constant 0 : index
    %c0_0 = arith.constant 0 : index
    %0 = vector.load %arg1[%c0, %c0_0] : memref<2x32xbf16, #tpu.memory_space<vmem>>, vector<2x32xbf16>
    %c0_1 = arith.constant 0 : index
    %c0_2 = arith.constant 0 : index
    %1 = vector.load %arg2[%c0_1, %c0_2] : memref<32x2048xbf16, #tpu.memory_space<vmem>>, vector<32x2048xbf16>
    %cst = arith.constant dense<0.000000e+00> : vector<2x2048xf32>
    %2 = tpu.matmul %0, %1, %cst {dimension_numbers = #tpu.dot_dimension_numbers<[1], [0], [0], [1], [0, 0, 1, 1], [], []>} : vector<2x32xbf16>, vector<32x2048xbf16>, vector<2x2048xf32> -> vector<2x2048xf32>
    %c0_3 = arith.constant 0 : index
    %c0_4 = arith.constant 0 : index
    %3 = vector.load %arg3[%c0_3, %c0_4] : memref<1x2048xbf16, #tpu.memory_space<vmem>>, vector<1x2048xbf16>
    %4 = arith.extf %3 : vector<1x2048xbf16> to vector<1x2048xf32>
    %5 = vector.broadcast %4 : vector<1x2048xf32> to vector<2x2048xf32>
    %6 = arith.addf %2, %5 : vector<2x2048xf32>
    %cst_5 = arith.constant 0.000000e+00 : f32
    %7 = vector.broadcast %cst_5 : f32 to vector<2x2048xf32>
    %8 = arith.maximumf %6, %7 : vector<2x2048xf32>
    %9 = arith.truncf %8 : vector<2x2048xf32> to vector<2x2048xbf16>
    %c0_6 = arith.constant 0 : index
    %c0_7 = arith.constant 0 : index
    %10 = vector.load %arg4[%c0_6, %c0_7] : memref<2048x512xbf16, #tpu.memory_space<vmem>>, vector<2048x512xbf16>
    %cst_8 = arith.constant dense<0.000000e+00> : vector<2x512xf32>
    %11 = tpu.matmul %9, %10, %cst_8 {dimension_numbers = #tpu.dot_dimension_numbers<[1], [0], [0], [1], [0, 0, 1, 1], [], []>} : vector<2x2048xbf16>, vector<2048x512xbf16>, vector<2x512xf32> -> vector<2x512xf32>
    %c0_9 = arith.constant 0 : index
    %c0_10 = arith.constant 0 : index
    %12 = vector.load %arg5[%c0_9, %c0_10] : memref<1x512xbf16, #tpu.memory_space<vmem>>, vector<1x512xbf16>
    %13 = arith.extf %12 : vector<1x512xbf16> to vector<1x512xf32>
    %14 = vector.broadcast %13 : vector<1x512xf32> to vector<2x512xf32>
    %15 = arith.addf %11, %14 : vector<2x512xf32>
    %cst_11 = arith.constant 0.000000e+00 : f32
    %16 = vector.broadcast %cst_11 : f32 to vector<2x512xf32>
    %17 = arith.maximumf %15, %16 : vector<2x512xf32>
    %18 = arith.truncf %17 : vector<2x512xf32> to vector<2x512xbf16>
    %c0_12 = arith.constant 0 : index
    %c0_13 = arith.constant 0 : index
    %19 = vector.load %arg6[%c0_12, %c0_13] : memref<512x512xbf16, #tpu.memory_space<vmem>>, vector<512x512xbf16>
    %cst_14 = arith.constant dense<0.000000e+00> : vector<2x512xf32>
    %20 = tpu.matmul %18, %19, %cst_14 {dimension_numbers = #tpu.dot_dimension_numbers<[1], [0], [0], [1], [0, 0, 1, 1], [], []>} : vector<2x512xbf16>, vector<512x512xbf16>, vector<2x512xf32> -> vector<2x512xf32>
    %c0_15 = arith.constant 0 : index
    %c0_16 = arith.constant 0 : index
    %21 = vector.load %arg7[%c0_15, %c0_16] : memref<1x512xbf16, #tpu.memory_space<vmem>>, vector<1x512xbf16>
    %22 = arith.extf %21 : vector<1x512xbf16> to vector<1x512xf32>
    %23 = vector.broadcast %22 : vector<1x512xf32> to vector<2x512xf32>
    %24 = arith.addf %20, %23 : vector<2x512xf32>
    %cst_17 = arith.constant 0.000000e+00 : f32
    %25 = vector.broadcast %cst_17 : f32 to vector<2x512xf32>
    %26 = arith.maximumf %24, %25 : vector<2x512xf32>
    %27 = arith.truncf %26 : vector<2x512xf32> to vector<2x512xbf16>
    %c0_18 = arith.constant 0 : index
    %c0_19 = arith.constant 0 : index
    %28 = vector.load %arg8[%c0_18, %c0_19] : memref<512x64xbf16, #tpu.memory_space<vmem>>, vector<512x64xbf16>
    %cst_20 = arith.constant dense<0.000000e+00> : vector<2x64xf32>
    %29 = tpu.matmul %27, %28, %cst_20 {dimension_numbers = #tpu.dot_dimension_numbers<[1], [0], [0], [1], [0, 0, 1, 1], [], []>} : vector<2x512xbf16>, vector<512x64xbf16>, vector<2x64xf32> -> vector<2x64xf32>
    %c0_21 = arith.constant 0 : index
    %c0_22 = arith.constant 0 : index
    %30 = vector.load %arg9[%c0_21, %c0_22] : memref<1x64xbf16, #tpu.memory_space<vmem>>, vector<1x64xbf16>
    %31 = arith.extf %30 : vector<1x64xbf16> to vector<1x64xf32>
    %32 = vector.broadcast %31 : vector<1x64xf32> to vector<2x64xf32>
    %33 = arith.addf %29, %32 : vector<2x64xf32>
    %c0_23 = arith.constant 0 : index
    %c0_24 = arith.constant 0 : index
    %34 = vector.load %arg10[%c0_23, %c0_24] : memref<2x64xf32, #tpu.memory_space<vmem>>, vector<2x64xf32>
    tpu.vector_store %arg10[%c0_23, %c0_24], %33 {strides = array<i32>} : memref<2x64xf32, #tpu.memory_space<vmem>>, vector<2x64xf32>,
    return
  }
  func.func @transform_0(%arg0: i32) -> (i32, i32) {
    %c0_i32 = arith.constant 0 : i32
    %c0_i32_0 = arith.constant 0 : i32
    return %arg0, %c0_i32 : i32, i32
  }
  func.func @transform_1(%arg0: i32) -> (i32, i32) {
    %c0_i32 = arith.constant 0 : i32
    %c0_i32_0 = arith.constant 0 : i32
    %c0_i32_1 = arith.constant 0 : i32
    return %c0_i32, %c0_i32_0 : i32, i32
  }
  func.func @transform_2(%arg0: i32) -> (i32, i32) {
    %c0_i32 = arith.constant 0 : i32
    %c0_i32_0 = arith.constant 0 : i32
    %c0_i32_1 = arith.constant 0 : i32
    return %c0_i32, %c0_i32_0 : i32, i32
  }
  func.func @transform_3(%arg0: i32) -> (i32, i32) {
    %c0_i32 = arith.constant 0 : i32
    %c0_i32_0 = arith.constant 0 : i32
    %c0_i32_1 = arith.constant 0 : i32
    return %c0_i32, %c0_i32_0 : i32, i32
  }
  func.func @transform_4(%arg0: i32) -> (i32, i32) {
    %c0_i32 = arith.constant 0 : i32
    %c0_i32_0 = arith.constant 0 : i32
    %c0_i32_1 = arith.constant 0 : i32
    return %c0_i32, %c0_i32_0 : i32, i32
  }
  func.func @transform_5(%arg0: i32) -> (i32, i32) {
    %c0_i32 = arith.constant 0 : i32
    %c0_i32_0 = arith.constant 0 : i32
    %c0_i32_1 = arith.constant 0 : i32
    return %c0_i32, %c0_i32_0 : i32, i32
  }
  func.func @transform_6(%arg0: i32) -> (i32, i32) {
    %c0_i32 = arith.constant 0 : i32
    %c0_i32_0 = arith.constant 0 : i32
    %c0_i32_1 = arith.constant 0 : i32
    return %c0_i32, %c0_i32_0 : i32, i32
  }
  func.func @transform_7(%arg0: i32) -> (i32, i32) {
    %c0_i32 = arith.constant 0 : i32
    %c0_i32_0 = arith.constant 0 : i32
    %c0_i32_1 = arith.constant 0 : i32
    return %c0_i32, %c0_i32_0 : i32, i32
  }
  func.func @transform_8(%arg0: i32) -> (i32, i32) {
    %c0_i32 = arith.constant 0 : i32
    %c0_i32_0 = arith.constant 0 : i32
    %c0_i32_1 = arith.constant 0 : i32
    return %c0_i32, %c0_i32_0 : i32, i32
  }
  func.func @transform_9(%arg0: i32) -> (i32, i32) {
    %c0_i32 = arith.constant 0 : i32
    %c0_i32_0 = arith.constant 0 : i32
    return %arg0, %c0_i32 : i32, i32
  }
}

module attributes {stable_mosaic.version = 11 : i64} {
  func.func @_decoder_kernel(%arg0: i32, %arg1: memref<2x32xbf16, #tpu.memory_space<vmem>>, %arg2: memref<32x2048xbf16, #tpu.memory_space<vmem>>, %arg3: memref<1x2048xbf16, #tpu.memory_space<vmem>>, %arg4: memref<2048x512xbf16, #tpu.memory_space<vmem>>, %arg5: memref<1x512xbf16, #tpu.memory_space<vmem>>, %arg6: memref<512x512xbf16, #tpu.memory_space<vmem>>, %arg7: memref<1x512xbf16, #tpu.memory_space<vmem>>, %arg8: memref<512x64xbf16, #tpu.memory_space<vmem>>, %arg9: memref<1x64xbf16, #tpu.memory_space<vmem>>, %arg10: memref<2x64xf32, #tpu.memory_space<vmem>>) attributes {dimension_semantics = [#tpu.dimension_semantics<arbitrary>], iteration_bounds = array<i64: 1>, scalar_prefetch = 0 : i64, scratch_operands = 0 : i64, tpu.core_type = #tpu.core_type<tc>, window_params = [{transform_indices = @transform_0, window_bounds = array<i64: 2, 32>}, {pipeline_mode = #tpu.pipeline_mode<synchronous>, transform_indices = @transform_1, window_bounds = array<i64: 32, 2048>}, {pipeline_mode = #tpu.pipeline_mode<synchronous>, transform_indices = @transform_2, window_bounds = array<i64: 1, 2048>}, {pipeline_mode = #tpu.pipeline_mode<synchronous>, transform_indices = @transform_3, window_bounds = array<i64: 2048, 512>}, {pipeline_mode = #tpu.pipeline_mode<synchronous>, transform_indices = @transform_4, window_bounds = array<i64: 1, 512>}, {pipeline_mode = #tpu.pipeline_mode<synchronous>, transform_indices = @transform_5, window_bounds = array<i64: 512, 512>}, {pipeline_mode = #tpu.pipeline_mode<synchronous>, transform_indices = @transform_6, window_bounds = array<i64: 1, 512>}, {pipeline_mode = #tpu.pipeline_mode<synchronous>, transform_indices = @transform_7, window_bounds = array<i64: 512, 64>}, {pipeline_mode = #tpu.pipeline_mode<synchronous>, transform_indices = @transform_8, window_bounds = array<i64: 1, 64>}, {transform_indices = @transform_9, window_bounds = array<i64: 2, 64>}]} {
    %c0 = arith.constant 0 : index
    %c0_0 = arith.constant 0 : index
    %0 = vector.load %arg1[%c0, %c0_0] : memref<2x32xbf16, #tpu.memory_space<vmem>>, vector<2x32xbf16>
    %c0_1 = arith.constant 0 : index
    %c0_2 = arith.constant 0 : index
    %1 = vector.load %arg2[%c0_1, %c0_2] : memref<32x2048xbf16, #tpu.memory_space<vmem>>, vector<32x2048xbf16>
    %cst = arith.constant dense<0.000000e+00> : vector<2x2048xf32>
    %2 = tpu.matmul %0, %1, %cst {dimension_numbers = #tpu.dot_dimension_numbers<[1], [0], [0], [1], [0, 0, 1, 1], [], []>} : vector<2x32xbf16>, vector<32x2048xbf16>, vector<2x2048xf32> -> vector<2x2048xf32>
    %c0_3 = arith.constant 0 : index
    %c0_4 = arith.constant 0 : index
    %3 = vector.load %arg3[%c0_3, %c0_4] : memref<1x2048xbf16, #tpu.memory_space<vmem>>, vector<1x2048xbf16>
    %4 = arith.extf %3 : vector<1x2048xbf16> to vector<1x2048xf32>
    %5 = vector.broadcast %4 : vector<1x2048xf32> to vector<2x2048xf32>
    %6 = arith.addf %2, %5 : vector<2x2048xf32>
    %cst_5 = arith.constant 0.000000e+00 : f32
    %7 = vector.broadcast %cst_5 : f32 to vector<2x2048xf32>
    %8 = arith.maximumf %6, %7 : vector<2x2048xf32>
    %9 = arith.truncf %8 : vector<2x2048xf32> to vector<2x2048xbf16>
    %c0_6 = arith.constant 0 : index
    %c0_7 = arith.constant 0 : index
    %10 = vector.load %arg4[%c0_6, %c0_7] : memref<2048x512xbf16, #tpu.memory_space<vmem>>, vector<2048x512xbf16>
    %cst_8 = arith.constant dense<0.000000e+00> : vector<2x512xf32>
    %11 = tpu.matmul %9, %10, %cst_8 {dimension_numbers = #tpu.dot_dimension_numbers<[1], [0], [0], [1], [0, 0, 1, 1], [], []>} : vector<2x2048xbf16>, vector<2048x512xbf16>, vector<2x512xf32> -> vector<2x512xf32>
    %c0_9 = arith.constant 0 : index
    %c0_10 = arith.constant 0 : index
    %12 = vector.load %arg5[%c0_9, %c0_10] : memref<1x512xbf16, #tpu.memory_space<vmem>>, vector<1x512xbf16>
    %13 = arith.extf %12 : vector<1x512xbf16> to vector<1x512xf32>
    %14 = vector.broadcast %13 : vector<1x512xf32> to vector<2x512xf32>
    %15 = arith.addf %11, %14 : vector<2x512xf32>
    %cst_11 = arith.constant 0.000000e+00 : f32
    %16 = vector.broadcast %cst_11 : f32 to vector<2x512xf32>
    %17 = arith.maximumf %15, %16 : vector<2x512xf32>
    %18 = arith.truncf %17 : vector<2x512xf32> to vector<2x512xbf16>
    %c0_12 = arith.constant 0 : index
    %c0_13 = arith.constant 0 : index
    %19 = vector.load %arg6[%c0_12, %c0_13] : memref<512x512xbf16, #tpu.memory_space<vmem>>, vector<512x512xbf16>
    %cst_14 = arith.constant dense<0.000000e+00> : vector<2x512xf32>
    %20 = tpu.matmul %18, %19, %cst_14 {dimension_numbers = #tpu.dot_dimension_numbers<[1], [0], [0], [1], [0, 0, 1, 1], [], []>} : vector<2x512xbf16>, vector<512x512xbf16>, vector<2x512xf32> -> vector<2x512xf32>
    %c0_15 = arith.constant 0 : index
    %c0_16 = arith.constant 0 : index
    %21 = vector.load %arg7[%c0_15, %c0_16] : memref<1x512xbf16, #tpu.memory_space<vmem>>, vector<1x512xbf16>
    %22 = arith.extf %21 : vector<1x512xbf16> to vector<1x512xf32>
    %23 = vector.broadcast %22 : vector<1x512xf32> to vector<2x512xf32>
    %24 = arith.addf %20, %23 : vector<2x512xf32>
    %cst_17 = arith.constant 0.000000e+00 : f32
    %25 = vector.broadcast %cst_17 : f32 to vector<2x512xf32>
    %26 = arith.maximumf %24, %25 : vector<2x512xf32>
    %27 = arith.truncf %26 : vector<2x512xf32> to vector<2x512xbf16>
    %c0_18 = arith.constant 0 : index
    %c0_19 = arith.constant 0 : index
    %28 = vector.load %arg8[%c0_18, %c0_19] : memref<512x64xbf16, #tpu.memory_space<vmem>>, vector<512x64xbf16>
    %cst_20 = arith.constant dense<0.000000e+00> : vector<2x64xf32>
    %29 = tpu.matmul %27, %28, %cst_20 {dimension_numbers = #tpu.dot_dimension_numbers<[1], [0], [0], [1], [0, 0, 1, 1], [], []>} : vector<2x512xbf16>, vector<512x64xbf16>, vector<2x64xf32> -> vector<2x64xf32>
    %c0_21 = arith.constant 0 : index
    %c0_22 = arith.constant 0 : index
    %30 = vector.load %arg9[%c0_21, %c0_22] : memref<1x64xbf16, #tpu.memory_space<vmem>>, vector<1x64xbf16>
    %31 = arith.extf %30 : vector<1x64xbf16> to vector<1x64xf32>
    %32 = vector.broadcast %31 : vector<1x64xf32> to vector<2x64xf32>
    %33 = arith.addf %29, %32 : vector<2x64xf32>
    %c0_23 = arith.constant 0 : index
    %c0_24 = arith.constant 0 : index
    %34 = vector.load %arg10[%c0_23, %c0_24] : memref<2x64xf32, #tpu.memory_space<vmem>>, vector<2x64xf32>
    tpu.vector_store %arg10[%c0_23, %c0_24], %33 {strides = array<i32>} : memref<2x64xf32, #tpu.memory_space<vmem>>, vector<2x64xf32>,
    return
  }
  func.func @transform_0(%arg0: i32) -> (i32, i32) {
    %c0_i32 = arith.constant 0 : i32
    %c0_i32_0 = arith.constant 0 : i32
    return %arg0, %c0_i32 : i32, i32
  }
  func.func @transform_1(%arg0: i32) -> (i32, i32) {
    %c0_i32 = arith.constant 0 : i32
    %c0_i32_0 = arith.constant 0 : i32
    %c0_i32_1 = arith.constant 0 : i32
    return %c0_i32, %c0_i32_0 : i32, i32
  }
  func.func @transform_2(%arg0: i32) -> (i32, i32) {
    %c0_i32 = arith.constant 0 : i32
    %c0_i32_0 = arith.constant 0 : i32
    %c0_i32_1 = arith.constant 0 : i32
    return %c0_i32, %c0_i32_0 : i32, i32
  }
  func.func @transform_3(%arg0: i32) -> (i32, i32) {
    %c0_i32 = arith.constant 0 : i32
    %c0_i32_0 = arith.constant 0 : i32
    %c0_i32_1 = arith.constant 0 : i32
    return %c0_i32, %c0_i32_0 : i32, i32
  }
  func.func @transform_4(%arg0: i32) -> (i32, i32) {
    %c0_i32 = arith.constant 0 : i32
    %c0_i32_0 = arith.constant 0 : i32
    %c0_i32_1 = arith.constant 0 : i32
    return %c0_i32, %c0_i32_0 : i32, i32
  }
  func.func @transform_5(%arg0: i32) -> (i32, i32) {
    %c0_i32 = arith.constant 0 : i32
    %c0_i32_0 = arith.constant 0 : i32
    %c0_i32_1 = arith.constant 0 : i32
    return %c0_i32, %c0_i32_0 : i32, i32
  }
  func.func @transform_6(%arg0: i32) -> (i32, i32) {
    %c0_i32 = arith.constant 0 : i32
    %c0_i32_0 = arith.constant 0 : i32
    %c0_i32_1 = arith.constant 0 : i32
    return %c0_i32, %c0_i32_0 : i32, i32
  }
  func.func @transform_7(%arg0: i32) -> (i32, i32) {
    %c0_i32 = arith.constant 0 : i32
    %c0_i32_0 = arith.constant 0 : i32
    %c0_i32_1 = arith.constant 0 : i32
    return %c0_i32, %c0_i32_0 : i32, i32
  }
  func.func @transform_8(%arg0: i32) -> (i32, i32) {
    %c0_i32 = arith.constant 0 : i32
    %c0_i32_0 = arith.constant 0 : i32
    %c0_i32_1 = arith.constant 0 : i32
    return %c0_i32, %c0_i32_0 : i32, i32
  }
  func.func @transform_9(%arg0: i32) -> (i32, i32) {
    %c0_i32 = arith.constant 0 : i32
    %c0_i32_0 = arith.constant 0 : i32
    return %arg0, %c0_i32 : i32, i32
  }
}

</mosaic_0001>

<bundles_post_ra>
// kernel: tpu_custom_call.1
= control target key start
LH: loop header
LB: loop body
LE: loop exit
PB: predicated region body
PF: predicated region fallthrough
CT: control target
= control target key end

     0   :  { %14 = vsyncpa [#allocation3], 0  ;;  %s8355_s0 = inlined_call_operand.hbm [shape: bf16[2,32], index: 0, kind: input, shape index: {}]   ;;  %s8356_s1 = inlined_call_operand.hbm [shape: bf16[32,2048], index: 1, kind: input, shape index: {}]   ;;  %s8357_s2 = inlined_call_operand.hbm [shape: bf16[1,2048], index: 2, kind: input, shape index: {}]   ;;  %s8358_s3 = inlined_call_operand.hbm [shape: bf16[2048,512], index: 3, kind: input, shape index: {}]   ;;  %s8359_s4 = inlined_call_operand.hbm [shape: bf16[1,512], index: 4, kind: input, shape index: {}]   ;;  %s8360_s5 = inlined_call_operand.hbm [shape: bf16[512,512], index: 5, kind: input, shape index: {}]   ;;  %s8361_s6 = inlined_call_operand.hbm [shape: bf16[1,512], index: 6, kind: input, shape index: {}]   ;;  %s8362_s7 = inlined_call_operand.vmem [shape: bf16[512,64], index: 7, kind: input, shape index: {}]   ;;  %s8363_s8 = inlined_call_operand.hbm [shape: bf16[1,64], index: 8, kind: input, shape index: {}]   ;;  %s8364_s9 = inlined_call_operand.hbm [shape: f32[2,64], index: 9, kind: output, shape index: {}]  }
   0x1   :  { %15 = vsyncpa [#allocation6], 0 }
   0x2   :  { %16 = vsyncpa [#allocation9], 0 }
   0x3   :  { %17 = vsyncpa [#allocation12], 0 }
   0x4   :  { %18 = vsyncpa [#allocation15], 0 }
   0x5   :  { %19 = vsyncpa [#allocation4], 0  ;;  %s7915_s30 = smov [#allocation5]  }
   0x6   :  { %s35_s10 = sshll.u32 %s7915_s30, 4  ;;  %s36_s10 = int_to_ptr.vmem [resolvable:$true] %s35_s10 }
   0x7   :  { %s7731_s11 = scalar_lea.vmem %s36_s10, 4096  ;;  %p7736_p1 = scmp.lt.s32.totalorder %s36_s10, %s36_s10 }
   0x8   :  { %p7732_p0 = scmp.ne.s32.totalorder %s36_s10, %s7731_s11  ;;  %p7737_p2 = scmp.lt.s32.totalorder %s7731_s11, %s7731_s11 }
   0xa   :  { %p7738_p3 = por %p7737_p2, %p7736_p1 }
   0xc   :  { %p7739_p4 = pnand %p7738_p3, %p7732_p0 }
   0xe   :  { %7742 = shalt.err (!%p7739_p4)
}
   0xf   :  { %s7916_s12 = smov 1024   ;;  %s7917_s13 = smov 64  }
  0x10   :  { %41 = dma.hbm_to_vmem [thread:$0]  %s8356_s1, 4096, %s36_s10, [#allocation6], %s7916_s12, %s7916_s12, %s7917_s13  }
  0x11   :  { %s7918_s16 = smov [#allocation8]  }
  0x12   :  { %s57_s17 = sshll.u32 %s7918_s16, 4  ;;  %s58_s17 = int_to_ptr.vmem [resolvable:$true] %s57_s17 }
  0x13   :  { %s7751_s18 = scalar_lea.vmem %s58_s17, 65536  ;;  %p7756_p6 = scmp.lt.s32.totalorder %s58_s17, %s58_s17 }
  0x14   :  { %p7752_p5 = scmp.ne.s32.totalorder %s58_s17, %s7751_s18  ;;  %p7757_p7 = scmp.lt.s32.totalorder %s7751_s18, %s7751_s18 }
  0x16   :  { %p7758_p8 = por %p7757_p7, %p7756_p6 }
  0x18   :  { %p7759_p9 = pnand %p7758_p8, %p7752_p5 }
  0x1a   :  { %7762 = shalt.err (!%p7759_p9)
}
  0x1b   :  { %s7919_s19 = smov 256   ;;  %s7920_s20 = smov 16  }
  0x1c   :  { %63 = dma.hbm_to_vmem [thread:$0]  %s8358_s3, 65536, %s58_s17, [#allocation9], %s7919_s19, %s7919_s19, %s7920_s20  }
  0x1d   :  { %s7921_s23 = smov [#allocation11]   ;;  %s7922_s25 = smov [#allocation2]  }
  0x1e   :  { %s79_s24 = sshll.u32 %s7921_s23, 4  ;;  %s26_s1 = sshll.u32 %s7922_s25, 4  ;;  %s80_s24 = int_to_ptr.vmem [resolvable:$true] %s79_s24  ;;  %s27_s1 = int_to_ptr.vmem [resolvable:$true] %s26_s1 }
  0x1f   :  { %s7771_s26 = scalar_lea.vmem %s80_s24, 16384  ;;  %p7776_p11 = scmp.lt.s32.totalorder %s80_s24, %s80_s24 }
  0x20   :  { %p7772_p10 = scmp.ne.s32.totalorder %s80_s24, %s7771_s26  ;;  %p7777_p12 = scmp.lt.s32.totalorder %s7771_s26, %s7771_s26 }
  0x22   :  { %p7778_p13 = por %p7777_p12, %p7776_p11 }
  0x24   :  { %p7779_p0 = pnand %p7778_p13, %p7772_p10 }
  0x26   :  { %7782 = shalt.err (!%p7779_p0)
}
  0x27   :  { %85 = dma.hbm_to_vmem [thread:$0]  %s8360_s5, 16384, %s80_s24, [#allocation12], %s7919_s19, %s7919_s19, %s7920_s20  }
  0x28   :  { %s7791_s29 = scalar_lea.vmem %s27_s1, 16  ;;  %s7795_s3 = scalar_lea.vmem %s27_s1, 32 }
  0x29   :  { %p7792_p1 = scmp.ne.s32.totalorder %s27_s1, %s7791_s29  ;;  %p7796_p2 = scmp.lt.s32.totalorder %s27_s1, %s27_s1 }
  0x2a   :  { %p7797_p3 = scmp.lt.s32.totalorder %s7795_s3, %s7791_s29 }
  0x2c   :  { %p7798_p4 = por %p7797_p3, %p7796_p2 }
  0x2e   :  { %p7799_p5 = pnand %p7798_p4, %p7792_p1 }
  0x30   :  { %7802 = shalt.err (!%p7799_p5)
}
  0x31   :  { %29 = dma.hbm_to_vmem [thread:$0]  %s8355_s0, 16, %s27_s1, [#allocation3]  }
  0x32   :  { %s7923_s11 = smov [#allocation7]   ;;  %s7924_s13 = smov [#allocation10]  }
  0x33   :  { %s48_s12 = sshll.u32 %s7923_s11, 4  ;;  %s70_s14 = sshll.u32 %s7924_s13, 4  ;;  %s49_s12 = int_to_ptr.vmem [resolvable:$true] %s48_s12  ;;  %s71_s14 = int_to_ptr.vmem [resolvable:$true] %s70_s14 }
  0x34   :  { %s7811_s15 = scalar_lea.vmem %s49_s12, 256  ;;  %p7816_p7 = scmp.lt.s32.totalorder %s49_s12, %s49_s12 }
  0x35   :  { %p7812_p6 = scmp.ne.s32.totalorder %s49_s12, %s7811_s15  ;;  %p7817_p8 = scmp.lt.s32.totalorder %s7811_s15, %s7811_s15 }
  0x37   :  { %p7818_p9 = por %p7817_p8, %p7816_p7 }
  0x39   :  { %p7819_p10 = pnand %p7818_p9, %p7812_p6 }
  0x3b   :  { %7822 = shalt.err (!%p7819_p10)
}
  0x3c   :  { %51 = dma.hbm_to_vmem [thread:$0]  %s8357_s2, 256, %s49_s12, [#allocation6]  }
  0x3d   :  { %s7831_s17 = scalar_lea.vmem %s71_s14, 64  ;;  %p7836_p12 = scmp.lt.s32.totalorder %s71_s14, %s71_s14 }
  0x3e   :  { %p7832_p11 = scmp.ne.s32.totalorder %s71_s14, %s7831_s17  ;;  %p7837_p13 = scmp.lt.s32.totalorder %s7831_s17, %s7831_s17 }
  0x40   :  { %p7838_p0 = por %p7837_p13, %p7836_p12 }
  0x42   :  { %p7839_p1 = pnand %p7838_p0, %p7832_p11 }
  0x44   :  { %7842 = shalt.err (!%p7839_p1)
}
  0x45   :  { %73 = dma.hbm_to_vmem [thread:$0]  %s8359_s4, 64, %s71_s14, [#allocation9]  }
  0x46   :  { %s7925_s19 = smov [#allocation13]   ;;  %s7926_s21 = smov [#allocation14]  }
  0x47   :  { %s92_s20 = sshll.u32 %s7925_s19, 4  ;;  %s104_s22 = sshll.u32 %s7926_s21, 4  ;;  %s93_s20 = int_to_ptr.vmem [resolvable:$true] %s92_s20  ;;  %s105_s22 = int_to_ptr.vmem [resolvable:$true] %s104_s22 }
  0x48   :  { %s7851_s23 = scalar_lea.vmem %s93_s20, 64  ;;  %p7856_p3 = scmp.lt.s32.totalorder %s93_s20, %s93_s20 }
  0x49   :  { %p7852_p2 = scmp.ne.s32.totalorder %s93_s20, %s7851_s23  ;;  %p7857_p4 = scmp.lt.s32.totalorder %s7851_s23, %s7851_s23 }
  0x4b   :  { %p7858_p5 = por %p7857_p4, %p7856_p3 }
  0x4d   :  { %p7859_p6 = pnand %p7858_p5, %p7852_p2 }
  0x4f   :  { %7862 = shalt.err (!%p7859_p6)
}
  0x50   :  { %95 = dma.hbm_to_vmem [thread:$0]  %s8361_s6, 64, %s93_s20, [#allocation12]  }
  0x51   :  { %s7871_s25 = scalar_lea.vmem %s105_s22, 16  ;;  %s7875_s4 = scalar_lea.vmem %s105_s22, 32 }
  0x52   :  { %p7872_p7 = scmp.ne.s32.totalorder %s105_s22, %s7871_s25  ;;  %p7876_p8 = scmp.lt.s32.totalorder %s105_s22, %s105_s22 }
  0x53   :  { %p7877_p9 = scmp.lt.s32.totalorder %s7875_s4, %s7871_s25 }
  0x55   :  { %p7878_p10 = por %p7877_p9, %p7876_p8 }
  0x57   :  { %p7879_p11 = pnand %p7878_p10, %p7872_p7 }
  0x59   :  { %7882 = shalt.err (!%p7879_p11)
}
  0x5a   :  { %107 = dma.hbm_to_vmem [thread:$0]  %s8363_s8, 16, %s105_s22, [#allocation15]  }
  0x5b   :  { %7903 = dma.done.wait [#allocation3], 16  }
  0x5c   :  { %7904 = vsyncadd [#allocation3], 4294967280 }
  0x5d   :  { %7905 = dma.done.wait [#allocation6], 4352  }
  0x5e   :  { %7906 = vsyncadd [#allocation6], 4294962944 }
  0x5f   :  { %7907 = dma.done.wait [#allocation9], 65600  }
  0x60   :  { %7908 = vsyncadd [#allocation9], 4294901696 }
  0x61   :  { %7909 = dma.done.wait [#allocation12], 16448  }
  0x62   :  { %7910 = vsyncadd [#allocation12], 4294950848 }
  0x63   :  { %7911 = dma.done.wait [#allocation15], 16  }
  0x64   :  { %7912 = vsyncadd [#allocation15], 4294967280  ;;  %v7927_v0 = vmov 0   ;;  %v150_v1 = vld [vmem:[#allocation5 + $0x80] sm:$0xff]  ;;  %v151_v3 = vld [vmem:[#allocation5 + $0x88] sm:$0xff]  ;;  %vm480_vm0 = vcmask 261120  }
  0x65   :  { %516 = vmatprep.mubr.bf16.mxu0 %v7927_v0  ;;  %557 = vmatprep.mubr.bf16.mxu1 %v7927_v0  ;;  %v158_v2 = vld [vmem:[#allocation5 + $0xc0] sm:$0xff]  ;;  %v159_v5 = vld [vmem:[#allocation5 + $0xc8] sm:$0xff]  ;;  %v152_v15 = vld [vmem:[#allocation5 + $0x90] sm:$0xff]  ;;  %vm5940_vm1 = vcmask 517120  }
  0x66   :  { %v5978_v4 = vcombine.high %v150_v1, %v158_v2  ;;  %v5977_v6 = vcombine.low %v150_v1, %v158_v2  ;;  %v134_v7 = vld [vmem:[#allocation5] sm:$0xff]  ;;  %v5980_v9 = vcombine.high %v151_v3, %v159_v5  ;;  %v5979_v10 = vcombine.low %v151_v3, %v159_v5  ;;  %v135_v12 = vld [vmem:[#allocation5 + $0x8] sm:$0xff]  ;;  %v160_v16 = vld [vmem:[#allocation5 + $0xd0] sm:$0xff] }
  0x67   :  { %v142_v8 = vld [vmem:[#allocation5 + $0x40] sm:$0xff]  ;;  %v143_v13 = vld [vmem:[#allocation5 + $0x48] sm:$0xff]  ;;  %v153_v17 = vld [vmem:[#allocation5 + $0x98] sm:$0xff]  ;;  %v5982_v21 = vcombine.high %v152_v15, %v160_v16  ;;  %v5981_v28 = vcombine.low %v152_v15, %v160_v16 }
  0x68   :  { %v5962_v11 = vcombine.high %v134_v7, %v142_v8  ;;  %496 = vmatprep.subr.bf16.mxu0 %v5978_v4  ;;  %v5964_v14 = vcombine.high %v135_v12, %v143_v13  ;;  %537 = vmatprep.subr.bf16.mxu1 %v5980_v9  ;;  %v5961_v18 = vcombine.low %v134_v7, %v142_v8  ;;  %v161_v19 = vld [vmem:[#allocation5 + $0xd8] sm:$0xff]  ;;  %v136_v23 = vld [vmem:[#allocation5 + $0x10] sm:$0xff]  ;;  %v154_v32 = vld [vmem:[#allocation5 + $0xa0] sm:$0xff] }
  0x69   :  { %497 = vmatpush1.bf16.msra.mxu0 %v5977_v6  ;;  %538 = vmatpush1.bf16.msra.mxu1 %v5979_v10  ;;  %v5963_v20 = vcombine.low %v135_v12, %v143_v13  ;;  %v5984_v22 = vcombine.high %v153_v17, %v161_v19  ;;  %v144_v24 = vld [vmem:[#allocation5 + $0x50] sm:$0xff]  ;;  %v137_v25 = vld [vmem:[#allocation5 + $0x18] sm:$0xff]  ;;  %v5983_v29 = vcombine.low %v153_v17, %v161_v19  ;;  %v162_v33 = vld [vmem:[#allocation5 + $0xe0] sm:$0xff] }
  0x6a   :  { %498 = vmatprep.subr.bf16.mxu0 %v5962_v11  ;;  %539 = vmatprep.subr.bf16.mxu1 %v5964_v14  ;;  %v145_v26 = vld [vmem:[#allocation5 + $0x58] sm:$0xff]  ;;  %v5966_v30 = vcombine.high %v136_v23, %v144_v24  ;;  %v155_v34 = vld [vmem:[#allocation5 + $0xa8] sm:$0xff]  ;;  %v5965_v36 = vcombine.low %v136_v23, %v144_v24  ;;  %v5986_v38 = vcombine.high %v154_v32, %v162_v33  ;;  %v138_v39 = vld [vmem:[#allocation5 + $0x20] sm:$0xff] }
  0x6b   :  { %v8005_v27 = vld [vmem:[#allocation2] sm:$0x1]  ;;  %v5968_v31 = vcombine.high %v137_v25, %v145_v26  ;;  %v163_v35 = vld [vmem:[#allocation5 + $0xe8] sm:$0xff]  ;;  %v5967_v37 = vcombine.low %v137_v25, %v145_v26  ;;  %v146_v41 = vld [vmem:[#allocation5 + $0x60] sm:$0xff]  ;;  %v5985_v44 = vcombine.low %v154_v32, %v162_v33 }
  0x6c   :  { %v5988_v40 = vcombine.high %v155_v34, %v163_v35  ;;  %v139_v42 = vld [vmem:[#allocation5 + $0x28] sm:$0xff]  ;;  %v5987_v45 = vcombine.low %v155_v34, %v163_v35  ;;  %v5970_v46 = vcombine.high %v138_v39, %v146_v41  ;;  %v156_v47 = vld [vmem:[#allocation5 + $0xb0] sm:$0xff]  ;;  %v157_v50 = vld [vmem:[#allocation5 + $0xb8] sm:$0xff]  ;;  %v5969_v52 = vcombine.low %v138_v39, %v146_v41 }
  0x6d   :  { %499 = vmatpush1.bf16.msra.mxu0 %v5961_v18  ;;  %540 = vmatpush1.bf16.msra.mxu1 %v5963_v20  ;;  %v147_v43 = vld [vmem:[#allocation5 + $0x68] sm:$0xff]  ;;  %v164_v49 = vld [vmem:[#allocation5 + $0xf0] sm:$0xff]  ;;  %v165_v51 = vld [vmem:[#allocation5 + $0xf8] sm:$0xff] }
  0x6e   :  { %578 = vmatprep.subr.bf16.mxu0 %v5982_v21  ;;  %619 = vmatprep.subr.bf16.mxu1 %v5984_v22  ;;  %v5972_v48 = vcombine.high %v139_v42, %v147_v43  ;;  %v5971_v53 = vcombine.low %v139_v42, %v147_v43  ;;  %v5990_v54 = vcombine.high %v156_v47, %v164_v49  ;;  %v140_v55 = vld [vmem:[#allocation5 + $0x30] sm:$0xff]  ;;  %v141_v58 = vld [vmem:[#allocation5 + $0x38] sm:$0xff] }
  0x6f   :  { %v5992_v56 = vcombine.high %v157_v50, %v165_v51  ;;  %v148_v57 = vld [vmem:[#allocation5 + $0x70] sm:$0xff]  ;;  %v149_v59 = vld [vmem:[#allocation5 + $0x78] sm:$0xff]  ;;  %v5989_v60 = vcombine.low %v156_v47, %v164_v49  ;;  %v5991_v61 = vcombine.low %v157_v50, %v165_v51 }
  0x70   :  { %5993 = vmatmul.mubr.msk.bf16.vlgmr.msra.gmra.mxu0 %vm480_vm0, %v8005_v27  ;;  %5994 = vmatmul.mubr.msk.bf16.vlgmr.msra.gmra.mxu1 %vm480_vm0, %v8005_v27  ;;  %v5974_v62 = vcombine.high %v140_v55, %v148_v57  ;;  %v5976_v63 = vcombine.high %v141_v58, %v149_v59  ;;  %v5973_v1 = vcombine.low %v140_v55, %v148_v57  ;;  %v6733_v3 = vld [vmem:[#allocation8 + $0xe4] ss:$16 sps:$4 sm:$0xff]   ;;  %v6731_v5 = vld [vmem:[#allocation8 + $0xe0] ss:$16 sps:$4 sm:$0xff]  }
  0x71   :  { %579 = vmatpush1.bf16.msra.mxu0 %v5981_v28  ;;  %620 = vmatpush1.bf16.msra.mxu1 %v5983_v29  ;;  %v5975_v2 = vcombine.low %v141_v58, %v149_v59  ;;  %v6736_v4 = vld [vmem:[#allocation8 + $0x2e4] ss:$16 sps:$4 sm:$0xff]   ;;  %v6734_v6 = vld [vmem:[#allocation8 + $0x2e0] ss:$16 sps:$4 sm:$0xff]  }
  0x72   :  { %580 = vmatprep.subr.bf16.mxu0 %v5966_v30  ;;  %621 = vmatprep.subr.bf16.mxu1 %v5968_v31  ;;  %v6739_v7 = vld [vmem:[#allocation8 + $0xc4] ss:$16 sps:$4 sm:$0xff]   ;;  %v6737_v9 = vld [vmem:[#allocation8 + $0xc0] ss:$16 sps:$4 sm:$0xff]  }
  0x73   :  { %598 = vmatprep.mubr.bf16.mxu0 %v7927_v0  ;;  %639 = vmatprep.mubr.bf16.mxu1 %v7927_v0  ;;  %v6742_v8 = vld [vmem:[#allocation8 + $0x2c4] ss:$16 sps:$4 sm:$0xff]   ;;  %v6740_v10 = vld [vmem:[#allocation8 + $0x2c0] ss:$16 sps:$4 sm:$0xff]  }
  0x74   :  { %v6748_v11 = vld [vmem:[#allocation8 + $0x2a4] ss:$16 sps:$4 sm:$0xff]   ;;  %v6743_v12 = vld [vmem:[#allocation8 + $0xa0] ss:$16 sps:$4 sm:$0xff]  }
  0x75   :  { %581 = vmatpush1.bf16.msra.mxu0 %v5965_v36  ;;  %622 = vmatpush1.bf16.msra.mxu1 %v5967_v37  ;;  %v6746_v13 = vld [vmem:[#allocation8 + $0x2a0] ss:$16 sps:$4 sm:$0xff]   ;;  %v6751_v14 = vld [vmem:[#allocation8 + $0x84] ss:$16 sps:$4 sm:$0xff]  }
  0x76   :  { %660 = vmatprep.subr.bf16.mxu0 %v5986_v38  ;;  %701 = vmatprep.subr.bf16.mxu1 %v5988_v40  ;;  %v6754_v15 = vld [vmem:[#allocation8 + $0x284] ss:$16 sps:$4 sm:$0xff]   ;;  %v6749_v16 = vld [vmem:[#allocation8 + $0x80] ss:$16 sps:$4 sm:$0xff]  }
  0x77   :  { %v6752_v17 = vld [vmem:[#allocation8 + $0x280] ss:$16 sps:$4 sm:$0xff]   ;;  %v6757_v18 = vld [vmem:[#allocation8 + $0x64] ss:$16 sps:$4 sm:$0xff]  }
  0x78   :  { %5995 = vmatmul.mubr.msk.bf16.vlgmr.msra.gmra.mxu0 %vm480_vm0, %v8005_v27  ;;  %5996 = vmatmul.mubr.msk.bf16.vlgmr.msra.gmra.mxu1 %vm480_vm0, %v8005_v27  ;;  %v6755_v19 = vld [vmem:[#allocation8 + $0x60] ss:$16 sps:$4 sm:$0xff]   ;;  %v6760_v20 = vld [vmem:[#allocation8 + $0x264] ss:$16 sps:$4 sm:$0xff]  }
  0x79   :  { %661 = vmatpush1.bf16.msra.mxu0 %v5985_v44  ;;  %702 = vmatpush1.bf16.msra.mxu1 %v5987_v45  ;;  %v6758_v21 = vld [vmem:[#allocation8 + $0x260] ss:$16 sps:$4 sm:$0xff]   ;;  %v6763_v22 = vld [vmem:[#allocation8 + $0x44] ss:$16 sps:$4 sm:$0xff]  }
  0x7a   :  { %662 = vmatprep.subr.bf16.mxu0 %v5970_v46  ;;  %703 = vmatprep.subr.bf16.mxu1 %v5972_v48  ;;  %v6766_v23 = vld [vmem:[#allocation8 + $0x244] ss:$16 sps:$4 sm:$0xff]   ;;  %v6761_v24 = vld [vmem:[#allocation8 + $0x40] ss:$16 sps:$4 sm:$0xff]  }
  0x7b   :  { %680 = vmatprep.mubr.bf16.mxu0 %v7927_v0  ;;  %721 = vmatprep.mubr.bf16.mxu1 %v7927_v0  ;;  %v6764_v25 = vld [vmem:[#allocation8 + $0x240] ss:$16 sps:$4 sm:$0xff]   ;;  %v6769_v26 = vld [vmem:[#allocation8 + $0x24] ss:$16 sps:$4 sm:$0xff]  }
  0x7c   :  { %v6767_v28 = vld [vmem:[#allocation8 + $0x20] ss:$16 sps:$4 sm:$0xff]   ;;  %v6775_v30 = vld [vmem:[#allocation8 + $0x4] ss:$16 sps:$4 sm:$0xff]  }
  0x7d   :  { %663 = vmatpush1.bf16.msra.mxu0 %v5969_v52  ;;  %704 = vmatpush1.bf16.msra.mxu1 %v5971_v53  ;;  %v6770_v29 = vld [vmem:[#allocation8 + $0x220] ss:$16 sps:$4 sm:$0xff]   ;;  %v6778_v31 = vld [vmem:[#allocation8 + $0x204] ss:$16 sps:$4 sm:$0xff]  }
  0x7e   :  { %742 = vmatprep.subr.bf16.mxu0 %v5990_v54  ;;  %783 = vmatprep.subr.bf16.mxu1 %v5992_v56  ;;  %v6773_v32 = vld [vmem:[#allocation8] ss:$16 sps:$4 sm:$0xff]   ;;  %v6781_v34 = vld [vmem:[#allocation8 + $0x1e4] ss:$16 sps:$4 sm:$0xff]  }
  0x7f   :  { %v6776_v33 = vld [vmem:[#allocation8 + $0x200] ss:$16 sps:$4 sm:$0xff]   ;;  %v6784_v35 = vld [vmem:[#allocation8 + $0x3e4] ss:$16 sps:$4 sm:$0xff]  }
  0x80   :  { %5997 = vmatmul.mubr.msk.bf16.vlgmr.msra.gmra.mxu0 %vm480_vm0, %v8005_v27  ;;  %5998 = vmatmul.mubr.msk.bf16.vlgmr.msra.gmra.mxu1 %vm480_vm0, %v8005_v27  ;;  %v6779_v36 = vld [vmem:[#allocation8 + $0x1e0] ss:$16 sps:$4 sm:$0xff]   ;;  %v6787_v38 = vld [vmem:[#allocation8 + $0x1c4] ss:$16 sps:$4 sm:$0xff]  }
  0x81   :  { %743 = vmatpush1.bf16.msra.mxu0 %v5989_v60  ;;  %784 = vmatpush1.bf16.msra.mxu1 %v5991_v61  ;;  %v6782_v37 = vld [vmem:[#allocation8 + $0x3e0] ss:$16 sps:$4 sm:$0xff]   ;;  %v6790_v39 = vld [vmem:[#allocation8 + $0x3c4] ss:$16 sps:$4 sm:$0xff]  }
  0x82   :  { %744 = vmatprep.subr.bf16.mxu0 %v5974_v62  ;;  %785 = vmatprep.subr.bf16.mxu1 %v5976_v63  ;;  %v6785_v40 = vld [vmem:[#allocation8 + $0x1c0] ss:$16 sps:$4 sm:$0xff]   ;;  %v6793_v42 = vld [vmem:[#allocation8 + $0x1a4] ss:$16 sps:$4 sm:$0xff]  }
  0x83   :  { %762 = vmatprep.mubr.bf16.mxu0 %v7927_v0  ;;  %803 = vmatprep.mubr.bf16.mxu1 %v7927_v0  ;;  %v6745_v0 = vld [vmem:[#allocation8 + $0xa4] ss:$16 sps:$4 sm:$0xff]   ;;  %v6788_v41 = vld [vmem:[#allocation8 + $0x3c0] ss:$16 sps:$4 sm:$0xff]  }
  0x84   :  { %v6796_v43 = vld [vmem:[#allocation8 + $0x3a4] ss:$16 sps:$4 sm:$0xff]   ;;  %v6791_v44 = vld [vmem:[#allocation8 + $0x1a0] ss:$16 sps:$4 sm:$0xff]  }
  0x85   :  { %745 = vmatpush1.bf16.msra.mxu0 %v5973_v1  ;;  %786 = vmatpush1.bf16.msra.mxu1 %v5975_v2  ;;  %v6794_v45 = vld [vmem:[#allocation8 + $0x3a0] ss:$16 sps:$4 sm:$0xff]   ;;  %v6799_v46 = vld [vmem:[#allocation8 + $0x184] ss:$16 sps:$4 sm:$0xff]  }
  0x86   :  { %3955 = vmatprep.subr.bf16.mxu0 %v6733_v3  ;;  %3996 = vmatprep.subr.bf16.mxu1 %v6736_v4  ;;  %v6802_v47 = vld [vmem:[#allocation8 + $0x384] ss:$16 sps:$4 sm:$0xff]   ;;  %v6797_v48 = vld [vmem:[#allocation8 + $0x180] ss:$16 sps:$4 sm:$0xff]  }
  0x87   :  { %v6800_v49 = vld [vmem:[#allocation8 + $0x380] ss:$16 sps:$4 sm:$0xff]   ;;  %v6805_v50 = vld [vmem:[#allocation8 + $0x164] ss:$16 sps:$4 sm:$0xff]  }
  0x88   :  { %5999 = vmatmul.mubr.msk.bf16.vlgmr.msra.gmra.mxu0 %vm480_vm0, %v8005_v27  ;;  %6000 = vmatmul.mubr.msk.bf16.vlgmr.msra.gmra.mxu1 %vm480_vm0, %v8005_v27  ;;  %v6772_v27 = vld [vmem:[#allocation8 + $0x224] ss:$16 sps:$4 sm:$0xff]   ;;  %v6803_v52 = vld [vmem:[#allocation8 + $0x160] ss:$16 sps:$4 sm:$0xff]  }
  0x89   :  { %3956 = vmatpush1.bf16.msra.mxu0 %v6731_v5  ;;  %3997 = vmatpush1.bf16.msra.mxu1 %v6734_v6  ;;  %v6808_v51 = vld [vmem:[#allocation8 + $0x364] ss:$16 sps:$4 sm:$0xff]   ;;  %v6806_v53 = vld [vmem:[#allocation8 + $0x360] ss:$16 sps:$4 sm:$0xff]   ;;  %v176_v5 = vlaneseq }
  0x8a   :  { %3957 = vmatprep.subr.bf16.mxu0 %v6739_v7  ;;  %3998 = vmatprep.subr.bf16.mxu1 %v6742_v8  ;;  %v6811_v54 = vld [vmem:[#allocation8 + $0x144] ss:$16 sps:$4 sm:$0xff]   ;;  %v6809_v56 = vld [vmem:[#allocation8 + $0x140] ss:$16 sps:$4 sm:$0xff]  }
  0x8b   :  { %v6814_v55 = vld [vmem:[#allocation8 + $0x344] ss:$16 sps:$4 sm:$0xff]   ;;  %v6812_v57 = vld [vmem:[#allocation8 + $0x340] ss:$16 sps:$4 sm:$0xff]   ;;  %v177_v7 = vshrl.u32 %v176_v5, 7 }
  0x8c   :  { %v6817_v58 = vld [vmem:[#allocation8 + $0x124] ss:$16 sps:$4 sm:$0xff]   ;;  %v6815_v60 = vld [vmem:[#allocation8 + $0x120] ss:$16 sps:$4 sm:$0xff]  }
  0x8d   :  { %3958 = vmatpush1.bf16.msra.mxu0 %v6737_v9  ;;  %3999 = vmatpush1.bf16.msra.mxu1 %v6740_v10  ;;  %v6820_v59 = vld [vmem:[#allocation8 + $0x324] ss:$16 sps:$4 sm:$0xff]   ;;  %v6818_v61 = vld [vmem:[#allocation8 + $0x320] ss:$16 sps:$4 sm:$0xff]   ;;  %v8029_v9 = vsub.s32 0, %v177_v7  ;;  %v8031_v10 = vsub.s32 4, %v177_v7 }
  0x8e   :  { %3959 = vmatprep.subr.bf16.mxu0 %v6745_v0  ;;  %4000 = vmatprep.subr.bf16.mxu1 %v6748_v11  ;;  %v6823_v62 = vld [vmem:[#allocation8 + $0x104] ss:$16 sps:$4 sm:$0xff]   ;;  %v6821_v1 = vld [vmem:[#allocation8 + $0x100] ss:$16 sps:$4 sm:$0xff]   ;;  %v8033_v0 = vsub.s32 2, %v177_v7  ;;  %v8035_v11 = vsub.s32 6, %v177_v7 }
  0x8f   :  { %v6826_v63 = vld [vmem:[#allocation8 + $0x304] ss:$16 sps:$4 sm:$0xff]   ;;  %v6824_v2 = vld [vmem:[#allocation8 + $0x300] ss:$16 sps:$4 sm:$0xff]  }
  0x90   :  { %v6829_v3 = vld [vmem:[#allocation8 + $0x4e4] ss:$16 sps:$4 sm:$0xff]  }
  0x91   :  { %3960 = vmatpush1.bf16.msra.mxu0 %v6743_v12  ;;  %4001 = vmatpush1.bf16.msra.mxu1 %v6746_v13  ;;  %v6832_v4 = vld [vmem:[#allocation8 + $0x6e4] ss:$16 sps:$4 sm:$0xff]  }
  0x92   :  { %3961 = vmatprep.subr.bf16.mxu0 %v6751_v14  ;;  %4002 = vmatprep.subr.bf16.mxu1 %v6754_v15  ;;  %v166_v6 = vld [vmem:[#allocation7] sm:$0xff] }
  0x93   :  { %v168_v8 = vunpack.c.l.bf16 %v166_v6  ;;  %v6847_v7 = vld [vmem:[#allocation8 + $0x484] ss:$16 sps:$4 sm:$0xff]  }
  0x95   :  { %3962 = vmatpush1.bf16.msra.mxu0 %v6749_v16  ;;  %4003 = vmatpush1.bf16.msra.mxu1 %v6752_v17  ;;  %v179_v12 = vrot.slane %v168_v8, %v8029_v9  ;;  %v187_v13 = vrot.slane %v168_v8, %v8031_v10  ;;  %v183_v14 = vrot.slane %v168_v8, %v8033_v0 }
  0x96   :  { %3963 = vmatprep.subr.bf16.mxu0 %v6757_v18  ;;  %4004 = vmatprep.subr.bf16.mxu1 %v6760_v20  ;;  %v191_v15 = vrot.slane %v168_v8, %v8035_v11 }
  0x97   :  { %v259_v16 = vrot.slane %v179_v12, %v8029_v9  ;;  %v267_v17 = vrot.slane %v187_v13, %v8029_v9  ;;  %v263_v18 = vrot.slane %v183_v14, %v8029_v9  ;;  %v6845_v13 = vld [vmem:[#allocation8 + $0x480] ss:$16 sps:$4 sm:$0xff]   ;;  %v6850_v14 = vld [vmem:[#allocation8 + $0x684] ss:$16 sps:$4 sm:$0xff]  }
  0x99   :  { %3964 = vmatpush1.bf16.msra.mxu0 %v6755_v19  ;;  %4005 = vmatpush1.bf16.msra.mxu1 %v6758_v21  ;;  %v8044_v19 = vunpack.c.h.bf16 %v166_v6  ;;  %v271_v21 = vrot.slane %v191_v15, %v8029_v9  ;;  %v6842_v6 = vld [vmem:[#allocation8 + $0x6a0] ss:$16 sps:$4 sm:$0xff]  }
  0x9a   :  { %3965 = vmatprep.subr.bf16.mxu0 %v6763_v22  ;;  %4006 = vmatprep.subr.bf16.mxu1 %v6766_v23 }
  0x9d   :  { %3966 = vmatpush1.bf16.msra.mxu0 %v6761_v24  ;;  %4007 = vmatpush1.bf16.msra.mxu1 %v6764_v25 }
  0x9e   :  { %3967 = vmatprep.subr.bf16.mxu0 %v6769_v26  ;;  %4008 = vmatprep.subr.bf16.mxu1 %v6772_v27 }
  0xa1   :  { %3968 = vmatpush1.bf16.msra.mxu0 %v6767_v28  ;;  %4009 = vmatpush1.bf16.msra.mxu1 %v6770_v29  ;;  %v199_v28 = vrot.slane %v8044_v19, %v8033_v0 }
  0xa2   :  { %3969 = vmatprep.subr.bf16.mxu0 %v6775_v30  ;;  %4010 = vmatprep.subr.bf16.mxu1 %v6778_v31 }
  0xa5   :  { %3970 = vmatpush1.bf16.msra.mxu0 %v6773_v32  ;;  %4011 = vmatpush1.bf16.msra.mxu1 %v6776_v33  ;;  %v207_v33 = vrot.slane %v8044_v19, %v8035_v11 }
  0xa6   :  { %3971 = vmatprep.subr.bf16.mxu0 %v6781_v34  ;;  %4012 = vmatprep.subr.bf16.mxu1 %v6784_v35 }
  0xa9   :  { %3972 = vmatpush2.bf16.msra.mxu0 %v6779_v36  ;;  %4013 = vmatpush2.bf16.msra.mxu1 %v6782_v37  ;;  %v6827_v36 = vld [vmem:[#allocation8 + $0x4e0] ss:$16 sps:$4 sm:$0xff]  }
  0xaa   :  { %3973 = vmatprep.subr.bf16.mxu0 %v6787_v38  ;;  %4014 = vmatprep.subr.bf16.mxu1 %v6790_v39  ;;  %v6830_v39 = vld [vmem:[#allocation8 + $0x6e0] ss:$16 sps:$4 sm:$0xff]  }
  0xad   :  { %3974 = vmatpush2.bf16.msra.mxu0 %v6785_v40  ;;  %4015 = vmatpush2.bf16.msra.mxu1 %v6788_v41  ;;  %v6835_v40 = vld [vmem:[#allocation8 + $0x4c4] ss:$16 sps:$4 sm:$0xff]  }
  0xae   :  { %3975 = vmatprep.subr.bf16.mxu0 %v6793_v42  ;;  %4016 = vmatprep.subr.bf16.mxu1 %v6796_v43 }
  0xb1   :  { %3976 = vmatpush2.bf16.msra.mxu0 %v6791_v44  ;;  %4017 = vmatpush2.bf16.msra.mxu1 %v6794_v45  ;;  %v279_v44 = vrot.slane %v199_v28, %v8029_v9 }
  0xb2   :  { %3977 = vmatprep.subr.bf16.mxu0 %v6799_v46  ;;  %4018 = vmatprep.subr.bf16.mxu1 %v6802_v47 }
  0xb5   :  { %3978 = vmatpush2.bf16.msra.mxu0 %v6797_v48  ;;  %4019 = vmatpush2.bf16.msra.mxu1 %v6800_v49  ;;  %v287_v48 = vrot.slane %v207_v33, %v8029_v9  ;;  %v6838_v49 = vld [vmem:[#allocation8 + $0x6c4] ss:$16 sps:$4 sm:$0xff]  }
  0xb6   :  { %3979 = vmatprep.subr.bf16.mxu0 %v6805_v50  ;;  %4020 = vmatprep.subr.bf16.mxu1 %v6808_v51  ;;  %v6833_v51 = vld [vmem:[#allocation8 + $0x4c0] ss:$16 sps:$4 sm:$0xff]  }
  0xb9   :  { %3980 = vmatpush2.bf16.msra.mxu0 %v6803_v52  ;;  %4021 = vmatpush2.bf16.msra.mxu1 %v6806_v53  ;;  %v6836_v52 = vld [vmem:[#allocation8 + $0x6c0] ss:$16 sps:$4 sm:$0xff]  }
  0xba   :  { %3981 = vmatprep.subr.bf16.mxu0 %v6811_v54  ;;  %4022 = vmatprep.subr.bf16.mxu1 %v6814_v55 }
  0xbd   :  { %3982 = vmatpush2.bf16.msra.mxu0 %v6809_v56  ;;  %4023 = vmatpush2.bf16.msra.mxu1 %v6812_v57  ;;  %v6841_v56 = vld [vmem:[#allocation8 + $0x4a4] ss:$16 sps:$4 sm:$0xff]  }
  0xbe   :  { %3983 = vmatprep.subr.bf16.mxu0 %v6817_v58  ;;  %4024 = vmatprep.subr.bf16.mxu1 %v6820_v59  ;;  %v8069_v59 = vld [vmem:[#allocation7 + $0x8] sm:$0xff] }
  0xc1   :  { %3984 = vmatpush2.bf16.msra.mxu0 %v6815_v60  ;;  %4025 = vmatpush2.bf16.msra.mxu1 %v6818_v61  ;;  %v6839_v60 = vld [vmem:[#allocation8 + $0x4a0] ss:$16 sps:$4 sm:$0xff]   ;;  %v6844_v61 = vld [vmem:[#allocation8 + $0x6a4] ss:$16 sps:$4 sm:$0xff]  }
  0xc2   :  { %3985 = vmatprep.subr.bf16.mxu0 %v6823_v62  ;;  %4026 = vmatprep.subr.bf16.mxu1 %v6826_v63 }
  0xc5   :  { %3986 = vmatpush2.bf16.msra.mxu0 %v6821_v1  ;;  %4027 = vmatpush2.bf16.msra.mxu1 %v6824_v2  ;;  %v171_v1 = vunpack.c.h.bf16 %v8069_v59 }
  0xc6   :  { %4037 = vmatprep.subr.bf16.mxu0 %v6829_v3  ;;  %4078 = vmatprep.subr.bf16.mxu1 %v6832_v4 }
 0x130   :  { %v518_v20 = vpop.f32.mrf.mxu0  ;;  %v559_v23 = vpop.f32.mrf.mxu1 }
 0x131   :  { %v519_v22 = vadd.f32 %v518_v20, %v259_v16  ;;  %v560_v24 = vadd.f32 %v559_v23, %v267_v17  ;;  %v227_v16 = vrot.slane %v171_v1, %v8029_v9  ;;  %v6853_v23 = vld [vmem:[#allocation8 + $0x464] ss:$16 sps:$4 sm:$0xff]  }
 0x132   :  { %v520_v25 = vpop.f32.mrf.mxu0  ;;  %v561_v27 = vpop.f32.mrf.mxu1 }
 0x133   :  { %v521_v26 = vadd.f32 %v520_v25, %v263_v18  ;;  %v812_v29 = vmax.f32 %v519_v22, 0.0  ;;  %v814_v30 = vmax.f32 %v560_v24, 0.0  ;;  %v562_v31 = vadd.f32 %v561_v27, %v271_v21  ;;  %v6848_v22 = vld [vmem:[#allocation8 + $0x680] ss:$16 sps:$4 sm:$0xff]   ;;  %v6856_v27 = vld [vmem:[#allocation8 + $0x664] ss:$16 sps:$4 sm:$0xff]  }
 0x134   :  { %v522_v32 = vpop.f32.mrf.mxu0  ;;  %v563_v35 = vpop.f32.mrf.mxu1  ;;  %v235_v18 = vrot.slane %v171_v1, %v8031_v10  ;;  %v231_v21 = vrot.slane %v171_v1, %v8033_v0  ;;  %v239_v25 = vrot.slane %v171_v1, %v8035_v11  ;;  %v6869_v1 = vld [vmem:[#allocation8 + $0x400] ss:$16 sps:$4 sm:$0xff]  }
 0x135   :  { %v813_v34 = vmax.f32 %v521_v26, 0.0  ;;  %v815_v37 = vmax.f32 %v562_v31, 0.0  ;;  %v8051_v41 = vpack.c.bf16 %v814_v30, %v814_v30  ;;  %v8056_v45 = vpack.c.bf16 %v812_v29, %v812_v29  ;;  %v6851_v26 = vld [vmem:[#allocation8 + $0x460] ss:$16 sps:$4 sm:$0xff]   ;;  %v6859_v35 = vld [vmem:[#allocation8 + $0x444] ss:$16 sps:$4 sm:$0xff]  }
 0x136   :  { %v523_v38 = vpop.f32.mrf.mxu0  ;;  %v564_v43 = vpop.f32.mrf.mxu1  ;;  %v307_v29 = vrot.slane %v227_v16, %v8029_v9  ;;  %v315_v31 = vrot.slane %v235_v18, %v8029_v9  ;;  %v311_v33 = vrot.slane %v231_v21, %v8029_v9  ;;  %v6881_v16 = vld [vmem:[#allocation8 + $0x5c0] ss:$16 sps:$4 sm:$0xff]   ;;  %v6886_v18 = vld [vmem:[#allocation8 + $0x7c4] ss:$16 sps:$4 sm:$0xff]  }
 0x137   :  { %v8053_v42 = vpack.c.bf16 %v813_v34, %v813_v34  ;;  %v8058_v46 = vpack.c.bf16 %v815_v37, %v815_v37  ;;  %v6854_v34 = vld [vmem:[#allocation8 + $0x660] ss:$16 sps:$4 sm:$0xff]   ;;  %v319_v37 = vrot.slane %v239_v25, %v8029_v9 }
 0x138   :  { %v8060_v47 = vpop.f32.mrf.mxu0  ;;  %v8064_v50 = vpop.f32.mrf.mxu1  ;;  %v6857_v38 = vld [vmem:[#allocation8 + $0x440] ss:$16 sps:$4 sm:$0xff]  }
 0x139   :  { %3987 = vmatprep.mubr.bf16.mxu0 %v8053_v42  ;;  %4028 = vmatprep.mubr.bf16.mxu1 %v8058_v46  ;;  %v6884_v21 = vld [vmem:[#allocation8 + $0x7c0] ss:$16 sps:$4 sm:$0xff]  }
 0x13a   :  { %3988 = vmatmul.mubr.bf16.vlgmr.msra.gmra.mxu0 %v8056_v45  ;;  %v602_v53 = vpop.f32.mrf.mxu0  ;;  %4029 = vmatmul.mubr.bf16.vlgmr.msra.gmra.mxu1 %v8051_v41  ;;  %v643_v55 = vpop.f32.mrf.mxu1  ;;  %v6890_v25 = vld [vmem:[#allocation8 + $0x7a0] ss:$16 sps:$4 sm:$0xff]  }
 0x13b   :  { %4038 = vmatpush1.bf16.msra.mxu0 %v6827_v36  ;;  %v603_v54 = vadd.f32 %v602_v53, %v279_v44  ;;  %4079 = vmatpush1.bf16.msra.mxu1 %v6830_v39  ;;  %v644_v58 = vadd.f32 %v643_v55, %v287_v48  ;;  %v6862_v39 = vld [vmem:[#allocation8 + $0x644] ss:$16 sps:$4 sm:$0xff]  }
 0x13c   :  { %4039 = vmatprep.subr.bf16.mxu0 %v6835_v40  ;;  %v604_v57 = vpop.f32.mrf.mxu0  ;;  %4080 = vmatprep.subr.bf16.mxu1 %v6838_v49  ;;  %v645_v63 = vpop.f32.mrf.mxu1  ;;  %v6865_v53 = vld [vmem:[#allocation8 + $0x424] ss:$16 sps:$4 sm:$0xff]  }
 0x13d   :  { %v817_v62 = vmax.f32 %v603_v54, 0.0  ;;  %v819_v2 = vmax.f32 %v644_v58, 0.0  ;;  %v6868_v57 = vld [vmem:[#allocation8 + $0x624] ss:$16 sps:$4 sm:$0xff]  }
 0x13e   :  { %v605_v3 = vpop.f32.mrf.mxu0  ;;  %v646_v5 = vpop.f32.mrf.mxu1  ;;  %v6871_v63 = vld [vmem:[#allocation8 + $0x404] ss:$16 sps:$4 sm:$0xff]  }
 0x13f   :  { %4040 = vmatpush1.bf16.msra.mxu0 %v6833_v51  ;;  %v8072_v4 = vpack.c.bf16 %v817_v62, %v817_v62  ;;  %4081 = vmatpush1.bf16.msra.mxu1 %v6836_v52  ;;  %v8074_v8 = vpack.c.bf16 %v819_v2, %v819_v2  ;;  %v6860_v52 = vld [vmem:[#allocation8 + $0x640] ss:$16 sps:$4 sm:$0xff]   ;;  %v6874_v2 = vld [vmem:[#allocation8 + $0x604] ss:$16 sps:$4 sm:$0xff]  }
 0x140   :  { %4041 = vmatprep.subr.bf16.mxu0 %v6841_v56  ;;  %v8076_v12 = vpop.f32.mrf.mxu0  ;;  %4082 = vmatprep.subr.bf16.mxu1 %v6844_v61  ;;  %v8079_v15 = vpop.f32.mrf.mxu1  ;;  %v6863_v56 = vld [vmem:[#allocation8 + $0x420] ss:$16 sps:$4 sm:$0xff]   ;;  %v6877_v5 = vld [vmem:[#allocation8 + $0x5e4] ss:$16 sps:$4 sm:$0xff]  }
 0x141   :  { %4069 = vmatprep.mubr.bf16.mxu0 %v8072_v4  ;;  %4110 = vmatprep.mubr.bf16.mxu1 %v8074_v8  ;;  %v6866_v62 = vld [vmem:[#allocation8 + $0x620] ss:$16 sps:$4 sm:$0xff]  }
 0x142   :  { %v8083_v17 = vpop.f32.mrf.mxu0  ;;  %v8086_v20 = vpop.f32.mrf.mxu1  ;;  %v6872_v3 = vld [vmem:[#allocation8 + $0x600] ss:$16 sps:$4 sm:$0xff]  }
 0x143   :  { %4042 = vmatpush1.bf16.msra.mxu0 %v6839_v60  ;;  %4083 = vmatpush1.bf16.msra.mxu1 %v6842_v6  ;;  %v6875_v6 = vld [vmem:[#allocation8 + $0x5e0] ss:$16 sps:$4 sm:$0xff]  }
 0x144   :  { %4043 = vmatprep.subr.bf16.mxu0 %v6847_v7  ;;  %v686_v24 = vpop.f32.mrf.mxu0  ;;  %4084 = vmatprep.subr.bf16.mxu1 %v6850_v14  ;;  %v727_v28 = vpop.f32.mrf.mxu1  ;;  %v6880_v7 = vld [vmem:[#allocation8 + $0x7e4] ss:$16 sps:$4 sm:$0xff]  }
 0x145   :  { %v6883_v14 = vld [vmem:[#allocation8 + $0x5c4] ss:$16 sps:$4 sm:$0xff]  }
 0x146   :  { %v687_v30 = vpop.f32.mrf.mxu0  ;;  %v728_v32 = vpop.f32.mrf.mxu1  ;;  %v6892_v24 = vld [vmem:[#allocation8 + $0x7a4] ss:$16 sps:$4 sm:$0xff]  }
 0x147   :  { %4044 = vmatpush1.bf16.msra.mxu0 %v6845_v13  ;;  %4085 = vmatpush1.bf16.msra.mxu1 %v6848_v22  ;;  %v6878_v13 = vld [vmem:[#allocation8 + $0x7e0] ss:$16 sps:$4 sm:$0xff]   ;;  %v6889_v22 = vld [vmem:[#allocation8 + $0x5a4] ss:$16 sps:$4 sm:$0xff]  }
 0x148   :  { %4045 = vmatprep.subr.bf16.mxu0 %v6853_v23  ;;  %v764_v36 = vpop.f32.mrf.mxu0  ;;  %4086 = vmatprep.subr.bf16.mxu1 %v6856_v27  ;;  %v805_v43 = vpop.f32.mrf.mxu1  ;;  %v6887_v23 = vld [vmem:[#allocation8 + $0x5a0] ss:$16 sps:$4 sm:$0xff]   ;;  %v6898_v28 = vld [vmem:[#allocation8 + $0x784] ss:$16 sps:$4 sm:$0xff]  }
 0x149   :  { %v8094_v40 = vadd.f32 %v764_v36, %v307_v29  ;;  %v8096_v48 = vadd.f32 %v805_v43, %v315_v31  ;;  %v6893_v27 = vld [vmem:[#allocation8 + $0x580] ss:$16 sps:$4 sm:$0xff]   ;;  %v6901_v30 = vld [vmem:[#allocation8 + $0x564] ss:$16 sps:$4 sm:$0xff]   ;;  %v195_v36 = vrot.slane %v8044_v19, %v8029_v9 }
 0x14a   :  { %v766_v44 = vpop.f32.mrf.mxu0  ;;  %v807_v51 = vpop.f32.mrf.mxu1  ;;  %v6896_v29 = vld [vmem:[#allocation8 + $0x780] ss:$16 sps:$4 sm:$0xff]   ;;  %v6904_v32 = vld [vmem:[#allocation8 + $0x764] ss:$16 sps:$4 sm:$0xff]  }
 0x14b   :  { %4046 = vmatpush1.bf16.msra.mxu0 %v6851_v26  ;;  %v8098_v49 = vadd.f32 %v766_v44, %v311_v33  ;;  %4087 = vmatpush1.bf16.msra.mxu1 %v6854_v34  ;;  %v8100_v55 = vadd.f32 %v807_v51, %v319_v37  ;;  %v6895_v26 = vld [vmem:[#allocation8 + $0x584] ss:$16 sps:$4 sm:$0xff]   ;;  %v6899_v31 = vld [vmem:[#allocation8 + $0x560] ss:$16 sps:$4 sm:$0xff]   ;;  %v8103_v33 = vunpack.c.l.bf16 %v8069_v59  ;;  %v203_v34 = vrot.slane %v8044_v19, %v8031_v10 }
 0x14c   :  { %4047 = vmatprep.subr.bf16.mxu0 %v6859_v35  ;;  %v768_v54 = vpop.f32.mrf.mxu0  ;;  %4088 = vmatprep.subr.bf16.mxu1 %v6862_v39  ;;  %v809_v58 = vpop.f32.mrf.mxu1  ;;  %v6902_v35 = vld [vmem:[#allocation8 + $0x760] ss:$16 sps:$4 sm:$0xff]   ;;  %v6907_v37 = vld [vmem:[#allocation8 + $0x544] ss:$16 sps:$4 sm:$0xff]   ;;  %v275_v51 = vrot.slane %v195_v36, %v8029_v9 }
 0x14d   :  { %v6910_v39 = vld [vmem:[#allocation8 + $0x744] ss:$16 sps:$4 sm:$0xff]   ;;  %v215_v43 = vrot.slane %v8103_v33, %v8033_v0  ;;  %v223_v59 = vrot.slane %v8103_v33, %v8035_v11  ;;  %v283_v44 = vrot.slane %v203_v34, %v8029_v9  ;;  %v6911_v19 = vld [vmem:[#allocation8 + $0x520] ss:$16 sps:$4 sm:$0xff]  }
 0x14e   :  { %v769_v60 = vpop.f32.mrf.mxu0  ;;  %v810_v61 = vpop.f32.mrf.mxu1  ;;  %v6916_v54 = vld [vmem:[#allocation8 + $0x724] ss:$16 sps:$4 sm:$0xff]   ;;  %v6941_v34 = vld [vmem:[#allocation8 + $0x880] ss:$16 sps:$4 sm:$0xff]  }
 0x14f   :  { %4048 = vmatpush1.bf16.msra.mxu0 %v6857_v38  ;;  %4089 = vmatpush1.bf16.msra.mxu1 %v6860_v52  ;;  %v6905_v38 = vld [vmem:[#allocation8 + $0x540] ss:$16 sps:$4 sm:$0xff]   ;;  %v642_v58 = vadd.f32 %v8064_v50, %v283_v44  ;;  %v601_v60 = vadd.f32 %v8060_v47, %v275_v51  ;;  %v6925_v50 = vld [vmem:[#allocation8 + $0x8e4] ss:$16 sps:$4 sm:$0xff]  }
 0x150   :  { %4049 = vmatprep.subr.bf16.mxu0 %v6865_v53  ;;  %4090 = vmatprep.subr.bf16.mxu1 %v6868_v57  ;;  %v6908_v52 = vld [vmem:[#allocation8 + $0x740] ss:$16 sps:$4 sm:$0xff]   ;;  %v6913_v53 = vld [vmem:[#allocation8 + $0x524] ss:$16 sps:$4 sm:$0xff]   ;;  %v303_v57 = vrot.slane %v223_v59, %v8029_v9 }
 0x151   :  { %v6914_v61 = vld [vmem:[#allocation8 + $0x720] ss:$16 sps:$4 sm:$0xff]   ;;  %v6949_v36 = vld [vmem:[#allocation8 + $0x864] ss:$16 sps:$4 sm:$0xff]  }
 0x152   :  { %v6923_v47 = vld [vmem:[#allocation8 + $0x8e0] ss:$16 sps:$4 sm:$0xff]   ;;  %v6958_v44 = vld [vmem:[#allocation8 + $0xa44] ss:$16 sps:$4 sm:$0xff]  }
 0x153   :  { %4050 = vmatpush1.bf16.msra.mxu0 %v6863_v56  ;;  %4091 = vmatpush1.bf16.msra.mxu1 %v6866_v62  ;;  %v295_v56 = vrot.slane %v215_v43, %v8029_v9  ;;  %v6919_v62 = vld [vmem:[#allocation8 + $0x504] ss:$16 sps:$4 sm:$0xff]   ;;  %v6953_v59 = vld [vmem:[#allocation8 + $0x840] ss:$16 sps:$4 sm:$0xff]  }
 0x154   :  { %4051 = vmatprep.subr.bf16.mxu0 %v6871_v63  ;;  %4092 = vmatprep.subr.bf16.mxu1 %v6874_v2  ;;  %v6917_v63 = vld [vmem:[#allocation8 + $0x500] ss:$16 sps:$4 sm:$0xff]   ;;  %v6955_v43 = vld [vmem:[#allocation8 + $0x844] ss:$16 sps:$4 sm:$0xff]  }
 0x155   :  { %v685_v2 = vadd.f32 %v8083_v17, %v295_v56  ;;  %v6956_v51 = vld [vmem:[#allocation8 + $0xa40] ss:$16 sps:$4 sm:$0xff]   ;;  %v6967_v56 = vld [vmem:[#allocation8 + $0x804] ss:$16 sps:$4 sm:$0xff]  }
 0x157   :  { %4052 = vmatpush1.bf16.msra.mxu0 %v6869_v1  ;;  %4093 = vmatpush1.bf16.msra.mxu1 %v6872_v3  ;;  %v6922_v1 = vld [vmem:[#allocation8 + $0x704] ss:$16 sps:$4 sm:$0xff]   ;;  %v6920_v3 = vld [vmem:[#allocation8 + $0x700] ss:$16 sps:$4 sm:$0xff]  }
 0x158   :  { %4053 = vmatprep.subr.bf16.mxu0 %v6877_v5  ;;  %4094 = vmatprep.subr.bf16.mxu1 %v6880_v7  ;;  %v726_v5 = vadd.f32 %v8086_v20, %v303_v57  ;;  %v816_v7 = vmax.f32 %v601_v60, 0.0  ;;  %v6929_v20 = vld [vmem:[#allocation8 + $0x8c0] ss:$16 sps:$4 sm:$0xff]  }
 0x159   :  { %v6965_v57 = vld [vmem:[#allocation8 + $0x800] ss:$16 sps:$4 sm:$0xff]  }
 0x15a   :  { %v8123_v17 = vpack.c.bf16 %v816_v7, %v816_v7  ;;  %v6968_v60 = vld [vmem:[#allocation8 + $0xa00] ss:$16 sps:$4 sm:$0xff]   ;;  %v6985_v7 = vld [vmem:[#allocation8 + $0x9a4] ss:$16 sps:$4 sm:$0xff]  }
 0x15b   :  { %4054 = vmatpush2.bf16.msra.mxu0 %v6875_v6  ;;  %4095 = vmatpush2.bf16.msra.mxu1 %v6878_v13  ;;  %v818_v6 = vmax.f32 %v642_v58, 0.0  ;;  %v6928_v13 = vld [vmem:[#allocation8 + $0xae4] ss:$16 sps:$4 sm:$0xff]  }
 0x15c   :  { %4055 = vmatprep.subr.bf16.mxu0 %v6883_v14  ;;  %4096 = vmatprep.subr.bf16.mxu1 %v6886_v18  ;;  %v821_v14 = vmax.f32 %v685_v2, 0.0  ;;  %v6931_v18 = vld [vmem:[#allocation8 + $0x8c4] ss:$16 sps:$4 sm:$0xff]  }
 0x15d   :  { %v6970_v58 = vld [vmem:[#allocation8 + $0xa04] ss:$16 sps:$4 sm:$0xff]  }
 0x15e   :  { %v6979_v2 = vld [vmem:[#allocation8 + $0x9c4] ss:$16 sps:$4 sm:$0xff]  }
 0x15f   :  { %4056 = vmatpush2.bf16.msra.mxu0 %v6881_v16  ;;  %4097 = vmatpush2.bf16.msra.mxu1 %v6884_v21  ;;  %v6926_v16 = vld [vmem:[#allocation8 + $0xae0] ss:$16 sps:$4 sm:$0xff]   ;;  %v823_v21 = vmax.f32 %v726_v5, 0.0  ;;  %v6982_v5 = vld [vmem:[#allocation8 + $0xbc4] ss:$16 sps:$4 sm:$0xff]  }
 0x160   :  { %4057 = vmatprep.subr.bf16.mxu0 %v6889_v22  ;;  %4098 = vmatprep.subr.bf16.mxu1 %v6892_v24  ;;  %v8121_v22 = vpack.c.bf16 %v818_v6, %v818_v6  ;;  %v8125_v24 = vpack.c.bf16 %v821_v14, %v821_v14  ;;  %v6980_v6 = vld [vmem:[#allocation8 + $0xbc0] ss:$16 sps:$4 sm:$0xff]   ;;  %v6991_v14 = vld [vmem:[#allocation8 + $0x984] ss:$16 sps:$4 sm:$0xff]  }
 0x163   :  { %4058 = vmatpush2.bf16.msra.mxu0 %v6887_v23  ;;  %4099 = vmatpush2.bf16.msra.mxu1 %v6890_v25  ;;  %v6934_v23 = vld [vmem:[#allocation8 + $0xac4] ss:$16 sps:$4 sm:$0xff]   ;;  %v6932_v25 = vld [vmem:[#allocation8 + $0xac0] ss:$16 sps:$4 sm:$0xff]  }
 0x164   :  { %4059 = vmatprep.subr.bf16.mxu0 %v6895_v26  ;;  %4100 = vmatprep.subr.bf16.mxu1 %v6898_v28  ;;  %v6937_v26 = vld [vmem:[#allocation8 + $0x8a4] ss:$16 sps:$4 sm:$0xff]  }
 0x165   :  { %v6940_v28 = vld [vmem:[#allocation8 + $0xaa4] ss:$16 sps:$4 sm:$0xff]  }
 0x167   :  { %4060 = vmatpush2.bf16.msra.mxu0 %v6893_v27  ;;  %4101 = vmatpush2.bf16.msra.mxu1 %v6896_v29  ;;  %v8128_v27 = vpack.c.bf16 %v823_v21, %v823_v21  ;;  %v6935_v29 = vld [vmem:[#allocation8 + $0x8a0] ss:$16 sps:$4 sm:$0xff]  }
 0x168   :  { %4061 = vmatprep.subr.bf16.mxu0 %v6901_v30  ;;  %4102 = vmatprep.subr.bf16.mxu1 %v6904_v32  ;;  %v6938_v30 = vld [vmem:[#allocation8 + $0xaa0] ss:$16 sps:$4 sm:$0xff]   ;;  %v6946_v32 = vld [vmem:[#allocation8 + $0xa84] ss:$16 sps:$4 sm:$0xff]  }
 0x169   :  { %v6992_v21 = vld [vmem:[#allocation8 + $0xb80] ss:$16 sps:$4 sm:$0xff]  }
 0x16b   :  { %4062 = vmatpush2.bf16.msra.mxu0 %v6899_v31  ;;  %4103 = vmatpush2.bf16.msra.mxu1 %v6902_v35  ;;  %v6943_v31 = vld [vmem:[#allocation8 + $0x884] ss:$16 sps:$4 sm:$0xff]   ;;  %v6944_v35 = vld [vmem:[#allocation8 + $0xa80] ss:$16 sps:$4 sm:$0xff]  }
 0x16c   :  { %4063 = vmatprep.subr.bf16.mxu0 %v6907_v37  ;;  %4104 = vmatprep.subr.bf16.mxu1 %v6910_v39  ;;  %v6947_v37 = vld [vmem:[#allocation8 + $0x860] ss:$16 sps:$4 sm:$0xff]  }
 0x16d   :  { %v6950_v39 = vld [vmem:[#allocation8 + $0xa60] ss:$16 sps:$4 sm:$0xff]  }
 0x16f   :  { %4064 = vmatpush2.bf16.msra.mxu0 %v6905_v38  ;;  %4105 = vmatpush2.bf16.msra.mxu1 %v6908_v52  ;;  %v6952_v38 = vld [vmem:[#allocation8 + $0xa64] ss:$16 sps:$4 sm:$0xff]  }
 0x170   :  { %4065 = vmatprep.subr.bf16.mxu0 %v6913_v53  ;;  %4106 = vmatprep.subr.bf16.mxu1 %v6916_v54  ;;  %v6961_v52 = vld [vmem:[#allocation8 + $0x824] ss:$16 sps:$4 sm:$0xff]   ;;  %v6959_v53 = vld [vmem:[#allocation8 + $0x820] ss:$16 sps:$4 sm:$0xff]  }
 0x171   :  { %v6962_v54 = vld [vmem:[#allocation8 + $0xa20] ss:$16 sps:$4 sm:$0xff]  }
 0x173   :  { %4066 = vmatpush2.bf16.msra.mxu0 %v6911_v19  ;;  %4107 = vmatpush2.bf16.msra.mxu1 %v6914_v61  ;;  %v6964_v19 = vld [vmem:[#allocation8 + $0xa24] ss:$16 sps:$4 sm:$0xff]  }
 0x174   :  { %4067 = vmatprep.subr.bf16.mxu0 %v6919_v62  ;;  %4108 = vmatprep.subr.bf16.mxu1 %v6922_v1  ;;  %v6973_v61 = vld [vmem:[#allocation8 + $0x9e4] ss:$16 sps:$4 sm:$0xff]   ;;  %v6971_v62 = vld [vmem:[#allocation8 + $0x9e0] ss:$16 sps:$4 sm:$0xff]  }
 0x175   :  { %v6974_v1 = vld [vmem:[#allocation8 + $0xbe0] ss:$16 sps:$4 sm:$0xff]  }
 0x177   :  { %4068 = vmatpush2.bf16.msra.mxu0 %v6917_v63  ;;  %4109 = vmatpush2.bf16.msra.mxu1 %v6920_v3  ;;  %v6976_v63 = vld [vmem:[#allocation8 + $0xbe4] ss:$16 sps:$4 sm:$0xff]   ;;  %v6977_v3 = vld [vmem:[#allocation8 + $0x9c0] ss:$16 sps:$4 sm:$0xff]  }
 0x178   :  { %4119 = vmatprep.subr.bf16.mxu0 %v6925_v50  ;;  %4160 = vmatprep.subr.bf16.mxu1 %v6928_v13  ;;  %v6983_v50 = vld [vmem:[#allocation8 + $0x9a0] ss:$16 sps:$4 sm:$0xff]   ;;  %v6988_v13 = vld [vmem:[#allocation8 + $0xba4] ss:$16 sps:$4 sm:$0xff]  }
 0x17a   :  { %4070 = vmatmul.mubr.bf16.vlgmr.msra.gmra.mxu0 %v8123_v17  ;;  %4111 = vmatmul.mubr.bf16.vlgmr.msra.gmra.mxu1 %v8121_v22 }
 0x17b   :  { %4120 = vmatpush1.bf16.msra.mxu0 %v6923_v47  ;;  %4161 = vmatpush1.bf16.msra.mxu1 %v6926_v16  ;;  %v6986_v47 = vld [vmem:[#allocation8 + $0xba0] ss:$16 sps:$4 sm:$0xff]  }
 0x17c   :  { %4121 = vmatprep.subr.bf16.mxu0 %v6931_v18  ;;  %4162 = vmatprep.subr.bf16.mxu1 %v6934_v23  ;;  %v6989_v16 = vld [vmem:[#allocation8 + $0x980] ss:$16 sps:$4 sm:$0xff]   ;;  %v6994_v18 = vld [vmem:[#allocation8 + $0xb84] ss:$16 sps:$4 sm:$0xff]  }
 0x17d   :  { %4151 = vmatprep.mubr.bf16.mxu0 %v8125_v24  ;;  %4192 = vmatprep.mubr.bf16.mxu1 %v8128_v27  ;;  %v6995_v23 = vld [vmem:[#allocation8 + $0x960] ss:$16 sps:$4 sm:$0xff]  }
 0x17f   :  { %4122 = vmatpush1.bf16.msra.mxu0 %v6929_v20  ;;  %4163 = vmatpush1.bf16.msra.mxu1 %v6932_v25  ;;  %v6997_v20 = vld [vmem:[#allocation8 + $0x964] ss:$16 sps:$4 sm:$0xff]  }
 0x180   :  { %4123 = vmatprep.subr.bf16.mxu0 %v6937_v26  ;;  %4164 = vmatprep.subr.bf16.mxu1 %v6940_v28  ;;  %v7000_v25 = vld [vmem:[#allocation8 + $0xb64] ss:$16 sps:$4 sm:$0xff]   ;;  %v219_v26 = vrot.slane %v8103_v33, %v8031_v10  ;;  %v6998_v28 = vld [vmem:[#allocation8 + $0xb60] ss:$16 sps:$4 sm:$0xff]  }
 0x183   :  { %4124 = vmatpush1.bf16.msra.mxu0 %v6935_v29  ;;  %4165 = vmatpush1.bf16.msra.mxu1 %v6938_v30  ;;  %v211_v29 = vrot.slane %v8103_v33, %v8029_v9  ;;  %v7003_v30 = vld [vmem:[#allocation8 + $0x944] ss:$16 sps:$4 sm:$0xff]  }
 0x184   :  { %4125 = vmatprep.subr.bf16.mxu0 %v6943_v31  ;;  %4166 = vmatprep.subr.bf16.mxu1 %v6946_v32  ;;  %v299_v31 = vrot.slane %v219_v26, %v8029_v9  ;;  %v7001_v32 = vld [vmem:[#allocation8 + $0x940] ss:$16 sps:$4 sm:$0xff]  }
 0x185   :  { %v7049_v26 = vld [vmem:[#allocation8 + $0xc40] ss:$16 sps:$4 sm:$0xff]  }
 0x187   :  { %4126 = vmatpush1.bf16.msra.mxu0 %v6941_v34  ;;  %4167 = vmatpush1.bf16.msra.mxu1 %v6944_v35  ;;  %v7006_v34 = vld [vmem:[#allocation8 + $0xb44] ss:$16 sps:$4 sm:$0xff]   ;;  %v291_v35 = vrot.slane %v211_v29, %v8029_v9  ;;  %v7052_v29 = vld [vmem:[#allocation8 + $0xe40] ss:$16 sps:$4 sm:$0xff]  }
 0x188   :  { %4127 = vmatprep.subr.bf16.mxu0 %v6949_v36  ;;  %4168 = vmatprep.subr.bf16.mxu1 %v6952_v38  ;;  %v7004_v36 = vld [vmem:[#allocation8 + $0xb40] ss:$16 sps:$4 sm:$0xff]   ;;  %v724_v38 = vadd.f32 %v8079_v15, %v299_v31  ;;  %v7021_v15 = vld [vmem:[#allocation8 + $0xce4] ss:$16 sps:$4 sm:$0xff]  }
 0x189   :  { %v683_v33 = vadd.f32 %v8076_v12, %v291_v35  ;;  %v827_v12 = vmax.f32 %v8100_v55, 0.0  ;;  %v7028_v55 = vld [vmem:[#allocation8 + $0xec0] ss:$16 sps:$4 sm:$0xff]   ;;  %v7060_v31 = vld [vmem:[#allocation8 + $0xe24] ss:$16 sps:$4 sm:$0xff]  }
 0x18a   :  { %v7063_v35 = vld [vmem:[#allocation8 + $0xc04] ss:$16 sps:$4 sm:$0xff]  }
 0x18b   :  { %4128 = vmatpush1.bf16.msra.mxu0 %v6947_v37  ;;  %4169 = vmatpush1.bf16.msra.mxu1 %v6950_v39  ;;  %v7009_v37 = vld [vmem:[#allocation8 + $0x924] ss:$16 sps:$4 sm:$0xff]   ;;  %v7007_v39 = vld [vmem:[#allocation8 + $0x920] ss:$16 sps:$4 sm:$0xff]  }
 0x18c   :  { %4129 = vmatprep.subr.bf16.mxu0 %v6955_v43  ;;  %4170 = vmatprep.subr.bf16.mxu1 %v6958_v44  ;;  %v7012_v43 = vld [vmem:[#allocation8 + $0xb24] ss:$16 sps:$4 sm:$0xff]  }
 0x18d   :  { %v7015_v44 = vld [vmem:[#allocation8 + $0x904] ss:$16 sps:$4 sm:$0xff]  }
 0x18f   :  { %4130 = vmatpush1.bf16.msra.mxu0 %v6953_v59  ;;  %4171 = vmatpush1.bf16.msra.mxu1 %v6956_v51  ;;  %v7010_v59 = vld [vmem:[#allocation8 + $0xb20] ss:$16 sps:$4 sm:$0xff]   ;;  %v7018_v51 = vld [vmem:[#allocation8 + $0xb04] ss:$16 sps:$4 sm:$0xff]  }
 0x190   :  { %4131 = vmatprep.subr.bf16.mxu0 %v6961_v52  ;;  %4172 = vmatprep.subr.bf16.mxu1 %v6964_v19  ;;  %v822_v52 = vmax.f32 %v724_v38, 0.0  ;;  %v7016_v19 = vld [vmem:[#allocation8 + $0xb00] ss:$16 sps:$4 sm:$0xff]  }
 0x191   :  { %v7064_v38 = vld [vmem:[#allocation8 + $0xe00] ss:$16 sps:$4 sm:$0xff]  }
 0x193   :  { %4132 = vmatpush1.bf16.msra.mxu0 %v6959_v53  ;;  %4173 = vmatpush1.bf16.msra.mxu1 %v6962_v54  ;;  %v7013_v53 = vld [vmem:[#allocation8 + $0x900] ss:$16 sps:$4 sm:$0xff]   ;;  %v820_v54 = vmax.f32 %v683_v33, 0.0 }
 0x194   :  { %4133 = vmatprep.subr.bf16.mxu0 %v6967_v56  ;;  %4174 = vmatprep.subr.bf16.mxu1 %v6970_v58  ;;  %v7024_v56 = vld [vmem:[#allocation8 + $0xee4] ss:$16 sps:$4 sm:$0xff]   ;;  %v7019_v58 = vld [vmem:[#allocation8 + $0xce0] ss:$16 sps:$4 sm:$0xff]  }
 0x195   :  { %v7067_v33 = vld [vmem:[#allocation8 + $0xde0] ss:$16 sps:$4 sm:$0xff]  }
 0x197   :  { %4134 = vmatpush1.bf16.msra.mxu0 %v6965_v57  ;;  %4175 = vmatpush1.bf16.msra.mxu1 %v6968_v60  ;;  %v825_v57 = vmax.f32 %v8098_v49, 0.0  ;;  %v7022_v60 = vld [vmem:[#allocation8 + $0xee0] ss:$16 sps:$4 sm:$0xff]  }
 0x198   :  { %4135 = vmatprep.subr.bf16.mxu0 %v6973_v61  ;;  %4176 = vmatprep.subr.bf16.mxu1 %v6976_v63  ;;  %v7027_v61 = vld [vmem:[#allocation8 + $0xcc4] ss:$16 sps:$4 sm:$0xff]   ;;  %v7025_v49 = vld [vmem:[#allocation8 + $0xcc0] ss:$16 sps:$4 sm:$0xff]  }
 0x199   :  { %v7030_v63 = vld [vmem:[#allocation8 + $0xec4] ss:$16 sps:$4 sm:$0xff]  }
 0x19b   :  { %4136 = vmatpush2.bf16.msra.mxu0 %v6971_v62  ;;  %4177 = vmatpush2.bf16.msra.mxu1 %v6974_v1  ;;  %v8143_v62 = vpack.c.bf16 %v822_v52, %v822_v52  ;;  %v8145_v1 = vpack.c.bf16 %v820_v54, %v820_v54  ;;  %v7073_v52 = vld [vmem:[#allocation8 + $0xdc0] ss:$16 sps:$4 sm:$0xff]   ;;  %v7084_v54 = vld [vmem:[#allocation8 + $0xfa4] ss:$16 sps:$4 sm:$0xff]  }
 0x19c   :  { %4137 = vmatprep.subr.bf16.mxu0 %v6979_v2  ;;  %4178 = vmatprep.subr.bf16.mxu1 %v6982_v5  ;;  %v8147_v2 = vpack.c.bf16 %v825_v57, %v825_v57  ;;  %v7033_v5 = vld [vmem:[#allocation8 + $0xca4] ss:$16 sps:$4 sm:$0xff]  }
 0x19d   :  { %v7087_v57 = vld [vmem:[#allocation8 + $0xd84] ss:$16 sps:$4 sm:$0xff]  }
 0x19f   :  { %4138 = vmatpush2.bf16.msra.mxu0 %v6977_v3  ;;  %4179 = vmatpush2.bf16.msra.mxu1 %v6980_v6  ;;  %v8149_v3 = vpack.c.bf16 %v827_v12, %v827_v12  ;;  %v7036_v6 = vld [vmem:[#allocation8 + $0xea4] ss:$16 sps:$4 sm:$0xff]  }
 0x1a0   :  { %4139 = vmatprep.subr.bf16.mxu0 %v6985_v7  ;;  %4180 = vmatprep.subr.bf16.mxu1 %v6988_v13  ;;  %v7031_v7 = vld [vmem:[#allocation8 + $0xca0] ss:$16 sps:$4 sm:$0xff]   ;;  %v7039_v13 = vld [vmem:[#allocation8 + $0xc84] ss:$16 sps:$4 sm:$0xff]  }
 0x1a1   :  { %v7090_v12 = vld [vmem:[#allocation8 + $0xf84] ss:$16 sps:$4 sm:$0xff]  }
 0x1a3   :  { %4140 = vmatpush2.bf16.msra.mxu0 %v6983_v50  ;;  %4181 = vmatpush2.bf16.msra.mxu1 %v6986_v47  ;;  %v7034_v50 = vld [vmem:[#allocation8 + $0xea0] ss:$16 sps:$4 sm:$0xff]   ;;  %v7042_v47 = vld [vmem:[#allocation8 + $0xe84] ss:$16 sps:$4 sm:$0xff]  }
 0x1a4   :  { %4141 = vmatprep.subr.bf16.mxu0 %v6991_v14  ;;  %4182 = vmatprep.subr.bf16.mxu1 %v6994_v18  ;;  %v7037_v14 = vld [vmem:[#allocation8 + $0xc80] ss:$16 sps:$4 sm:$0xff]   ;;  %v7045_v18 = vld [vmem:[#allocation8 + $0xc64] ss:$16 sps:$4 sm:$0xff]  }
 0x1a7   :  { %4142 = vmatpush2.bf16.msra.mxu0 %v6989_v16  ;;  %4183 = vmatpush2.bf16.msra.mxu1 %v6992_v21  ;;  %v7040_v16 = vld [vmem:[#allocation8 + $0xe80] ss:$16 sps:$4 sm:$0xff]  }
 0x1a8   :  { %4143 = vmatprep.subr.bf16.mxu0 %v6997_v20  ;;  %4184 = vmatprep.subr.bf16.mxu1 %v7000_v25  ;;  %v7043_v21 = vld [vmem:[#allocation8 + $0xc60] ss:$16 sps:$4 sm:$0xff]   ;;  %v7048_v20 = vld [vmem:[#allocation8 + $0xe64] ss:$16 sps:$4 sm:$0xff]  }
 0x1a9   :  { %v7051_v25 = vld [vmem:[#allocation8 + $0xc44] ss:$16 sps:$4 sm:$0xff]  }
 0x1ab   :  { %4144 = vmatpush2.bf16.msra.mxu0 %v6995_v23  ;;  %4185 = vmatpush2.bf16.msra.mxu1 %v6998_v28  ;;  %v7046_v23 = vld [vmem:[#allocation8 + $0xe60] ss:$16 sps:$4 sm:$0xff]   ;;  %v7054_v28 = vld [vmem:[#allocation8 + $0xe44] ss:$16 sps:$4 sm:$0xff]  }
 0x1ac   :  { %4145 = vmatprep.subr.bf16.mxu0 %v7003_v30  ;;  %4186 = vmatprep.subr.bf16.mxu1 %v7006_v34  ;;  %v7057_v30 = vld [vmem:[#allocation8 + $0xc24] ss:$16 sps:$4 sm:$0xff]   ;;  %v7058_v34 = vld [vmem:[#allocation8 + $0xe20] ss:$16 sps:$4 sm:$0xff]  }
 0x1af   :  { %4146 = vmatpush2.bf16.msra.mxu0 %v7001_v32  ;;  %4187 = vmatpush2.bf16.msra.mxu1 %v7004_v36  ;;  %v7055_v32 = vld [vmem:[#allocation8 + $0xc20] ss:$16 sps:$4 sm:$0xff]   ;;  %v7066_v36 = vld [vmem:[#allocation8 + $0xe04] ss:$16 sps:$4 sm:$0xff]  }
 0x1b0   :  { %4147 = vmatprep.subr.bf16.mxu0 %v7009_v37  ;;  %4188 = vmatprep.subr.bf16.mxu1 %v7012_v43  ;;  %v7061_v37 = vld [vmem:[#allocation8 + $0xc00] ss:$16 sps:$4 sm:$0xff]   ;;  %v7072_v43 = vld [vmem:[#allocation8 + $0xfe4] ss:$16 sps:$4 sm:$0xff]  }
 0x1b3   :  { %4148 = vmatpush2.bf16.msra.mxu0 %v7007_v39  ;;  %4189 = vmatpush2.bf16.msra.mxu1 %v7010_v59  ;;  %v7069_v39 = vld [vmem:[#allocation8 + $0xde4] ss:$16 sps:$4 sm:$0xff]   ;;  %v7070_v59 = vld [vmem:[#allocation8 + $0xfe0] ss:$16 sps:$4 sm:$0xff]  }
 0x1b4   :  { %4149 = vmatprep.subr.bf16.mxu0 %v7015_v44  ;;  %4190 = vmatprep.subr.bf16.mxu1 %v7018_v51  ;;  %v7075_v44 = vld [vmem:[#allocation8 + $0xdc4] ss:$16 sps:$4 sm:$0xff]  }
 0x1b5   :  { %v7078_v51 = vld [vmem:[#allocation8 + $0xfc4] ss:$16 sps:$4 sm:$0xff]  }
 0x1b7   :  { %4150 = vmatpush2.bf16.msra.mxu0 %v7013_v53  ;;  %4191 = vmatpush2.bf16.msra.mxu1 %v7016_v19  ;;  %v7076_v53 = vld [vmem:[#allocation8 + $0xfc0] ss:$16 sps:$4 sm:$0xff]   ;;  %v7081_v19 = vld [vmem:[#allocation8 + $0xda4] ss:$16 sps:$4 sm:$0xff]  }
 0x1b8   :  { %4201 = vmatprep.subr.bf16.mxu0 %v7021_v15  ;;  %4242 = vmatprep.subr.bf16.mxu1 %v7024_v56  ;;  %v7079_v15 = vld [vmem:[#allocation8 + $0xda0] ss:$16 sps:$4 sm:$0xff]  }
 0x1b9   :  { %v7082_v56 = vld [vmem:[#allocation8 + $0xfa0] ss:$16 sps:$4 sm:$0xff]  }
 0x1ba   :  { %4152 = vmatmul.mubr.bf16.vlgmr.msra.gmra.mxu0 %v8145_v1  ;;  %4193 = vmatmul.mubr.bf16.vlgmr.msra.gmra.mxu1 %v8143_v62 }
 0x1bb   :  { %4202 = vmatpush1.bf16.msra.mxu0 %v7019_v58  ;;  %4243 = vmatpush1.bf16.msra.mxu1 %v7022_v60  ;;  %v7085_v58 = vld [vmem:[#allocation8 + $0xd80] ss:$16 sps:$4 sm:$0xff]  }
 0x1bc   :  { %4203 = vmatprep.subr.bf16.mxu0 %v7027_v61  ;;  %4244 = vmatprep.subr.bf16.mxu1 %v7030_v63  ;;  %v7088_v60 = vld [vmem:[#allocation8 + $0xf80] ss:$16 sps:$4 sm:$0xff]   ;;  %v7093_v61 = vld [vmem:[#allocation8 + $0xd64] ss:$16 sps:$4 sm:$0xff]  }
 0x1bd   :  { %4233 = vmatprep.mubr.bf16.mxu0 %v8147_v2  ;;  %4274 = vmatprep.mubr.bf16.mxu1 %v8149_v3  ;;  %v7096_v63 = vld [vmem:[#allocation8 + $0xf64] ss:$16 sps:$4 sm:$0xff]  }
 0x1bf   :  { %4204 = vmatpush1.bf16.msra.mxu0 %v7025_v49  ;;  %4245 = vmatpush1.bf16.msra.mxu1 %v7028_v55  ;;  %v7091_v49 = vld [vmem:[#allocation8 + $0xd60] ss:$16 sps:$4 sm:$0xff]  }
 0x1c0   :  { %4205 = vmatprep.subr.bf16.mxu0 %v7033_v5  ;;  %4246 = vmatprep.subr.bf16.mxu1 %v7036_v6  ;;  %v7094_v55 = vld [vmem:[#allocation8 + $0xf60] ss:$16 sps:$4 sm:$0xff]   ;;  %v7099_v5 = vld [vmem:[#allocation8 + $0xd44] ss:$16 sps:$4 sm:$0xff]  }
 0x1c1   :  { %v7102_v6 = vld [vmem:[#allocation8 + $0xf44] ss:$16 sps:$4 sm:$0xff]  }
 0x1c3   :  { %4206 = vmatpush1.bf16.msra.mxu0 %v7031_v7  ;;  %4247 = vmatpush1.bf16.msra.mxu1 %v7034_v50  ;;  %v7097_v7 = vld [vmem:[#allocation8 + $0xd40] ss:$16 sps:$4 sm:$0xff]  }
 0x1c4   :  { %4207 = vmatprep.subr.bf16.mxu0 %v7039_v13  ;;  %4248 = vmatprep.subr.bf16.mxu1 %v7042_v47  ;;  %v7100_v50 = vld [vmem:[#allocation8 + $0xf40] ss:$16 sps:$4 sm:$0xff]   ;;  %v7105_v13 = vld [vmem:[#allocation8 + $0xd24] ss:$16 sps:$4 sm:$0xff]  }
 0x1c5   :  { %v1356_v47 = vld [vmem:[#allocation10] sm:$0xf] }
 0x1c7   :  { %4208 = vmatpush1.bf16.msra.mxu0 %v7037_v14  ;;  %4249 = vmatpush1.bf16.msra.mxu1 %v7040_v16  ;;  %v7108_v14 = vld [vmem:[#allocation8 + $0xf24] ss:$16 sps:$4 sm:$0xff]   ;;  %v7103_v16 = vld [vmem:[#allocation8 + $0xd20] ss:$16 sps:$4 sm:$0xff]  }
 0x1c8   :  { %4209 = vmatprep.subr.bf16.mxu0 %v7045_v18  ;;  %4250 = vmatprep.subr.bf16.mxu1 %v7048_v20  ;;  %v8155_v18 = vunpack.c.l.bf16 %v1356_v47  ;;  %v7111_v20 = vld [vmem:[#allocation8 + $0xd04] ss:$16 sps:$4 sm:$0xff]   ;;  %v7142_v47 = vld [vmem:[#allocation8 + $0x268] ss:$16 sps:$4 sm:$0xff]  }
 0x1cb   :  { %4210 = vmatpush1.bf16.msra.mxu0 %v7043_v21  ;;  %4251 = vmatpush1.bf16.msra.mxu1 %v7046_v23  ;;  %v7106_v21 = vld [vmem:[#allocation8 + $0xf20] ss:$16 sps:$4 sm:$0xff]   ;;  %v7114_v23 = vld [vmem:[#allocation8 + $0xf04] ss:$16 sps:$4 sm:$0xff]  }
 0x1cc   :  { %4211 = vmatprep.subr.bf16.mxu0 %v7051_v25  ;;  %4252 = vmatprep.subr.bf16.mxu1 %v7054_v28  ;;  %v7109_v25 = vld [vmem:[#allocation8 + $0xd00] ss:$16 sps:$4 sm:$0xff]   ;;  %v824_v28 = vmax.f32 %v8094_v40, 0.0  ;;  %v7118_v40 = vld [vmem:[#allocation8 + $0x2e8] ss:$16 sps:$4 sm:$0xff]  }
 0x1cf   :  { %4212 = vmatpush1.bf16.msra.mxu0 %v7049_v26  ;;  %4253 = vmatpush1.bf16.msra.mxu1 %v7052_v29  ;;  %v1362_v26 = vrot.slane %v8155_v18, %v8029_v9  ;;  %v7112_v29 = vld [vmem:[#allocation8 + $0xf00] ss:$16 sps:$4 sm:$0xff]  }
 0x1d0   :  { %4213 = vmatprep.subr.bf16.mxu0 %v7057_v30  ;;  %4254 = vmatprep.subr.bf16.mxu1 %v7060_v31  ;;  %v7117_v30 = vld [vmem:[#allocation8 + $0xec] ss:$16 sps:$4 sm:$0xff]   ;;  %v826_v31 = vmax.f32 %v8096_v48, 0.0 }
 0x1d1   :  { %v7123_v48 = vld [vmem:[#allocation8 + $0xcc] ss:$16 sps:$4 sm:$0xff]  }
 0x1d3   :  { %4214 = vmatpush1.bf16.msra.mxu0 %v7055_v32  ;;  %4255 = vmatpush1.bf16.msra.mxu1 %v7058_v34  ;;  %v7120_v32 = vld [vmem:[#allocation8 + $0x2ec] ss:$16 sps:$4 sm:$0xff]   ;;  %v1366_v34 = vrot.slane %v8155_v18, %v8033_v0 }
 0x1d4   :  { %4215 = vmatprep.subr.bf16.mxu0 %v7063_v35  ;;  %4256 = vmatprep.subr.bf16.mxu1 %v7066_v36  ;;  %v7115_v35 = vld [vmem:[#allocation8 + $0xe8] ss:$16 sps:$4 sm:$0xff]   ;;  %v1382_v36 = vrot.slane %v1362_v26, %v8029_v9 }
 0x1d5   :  { %v7151_v26 = vld [vmem:[#allocation8 + $0x28] ss:$16 sps:$4 sm:$0xff]  }
 0x1d7   :  { %4216 = vmatpush1.bf16.msra.mxu0 %v7061_v37  ;;  %4257 = vmatpush1.bf16.msra.mxu1 %v7064_v38  ;;  %v8164_v37 = vpack.c.bf16 %v824_v28, %v824_v28  ;;  %v8166_v38 = vpack.c.bf16 %v826_v31, %v826_v31  ;;  %v7154_v28 = vld [vmem:[#allocation8 + $0x228] ss:$16 sps:$4 sm:$0xff]  }
 0x1d8   :  { %4217 = vmatprep.subr.bf16.mxu0 %v7069_v39  ;;  %4258 = vmatprep.subr.bf16.mxu1 %v7072_v43  ;;  %v1386_v39 = vrot.slane %v1366_v34, %v8029_v9  ;;  %v7157_v31 = vld [vmem:[#allocation8 + $0x8] ss:$16 sps:$4 sm:$0xff]   ;;  %v7165_v34 = vld [vmem:[#allocation8 + $0x1ec] ss:$16 sps:$4 sm:$0xff]  }
 0x1db   :  { %4218 = vmatpush2.bf16.msra.mxu0 %v7067_v33  ;;  %4259 = vmatpush2.bf16.msra.mxu1 %v7070_v59  ;;  %v7126_v33 = vld [vmem:[#allocation8 + $0x2cc] ss:$16 sps:$4 sm:$0xff]  }
 0x1dc   :  { %4219 = vmatprep.subr.bf16.mxu0 %v7075_v44  ;;  %4260 = vmatprep.subr.bf16.mxu1 %v7078_v51  ;;  %v7121_v51 = vld [vmem:[#allocation8 + $0xc8] ss:$16 sps:$4 sm:$0xff]  }
 0x1df   :  { %4220 = vmatpush2.bf16.msra.mxu0 %v7073_v52  ;;  %4261 = vmatpush2.bf16.msra.mxu1 %v7076_v53  ;;  %v7124_v53 = vld [vmem:[#allocation8 + $0x2c8] ss:$16 sps:$4 sm:$0xff]  }
 0x1e0   :  { %4221 = vmatprep.subr.bf16.mxu0 %v7081_v19  ;;  %4262 = vmatprep.subr.bf16.mxu1 %v7084_v54  ;;  %v7129_v19 = vld [vmem:[#allocation8 + $0xac] ss:$16 sps:$4 sm:$0xff]  }
 0x1e3   :  { %4222 = vmatpush2.bf16.msra.mxu0 %v7079_v15  ;;  %4263 = vmatpush2.bf16.msra.mxu1 %v7082_v56 }
 0x1e4   :  { %4223 = vmatprep.subr.bf16.mxu0 %v7087_v57  ;;  %4264 = vmatprep.subr.bf16.mxu1 %v7090_v12  ;;  %v7132_v57 = vld [vmem:[#allocation8 + $0x2ac] ss:$16 sps:$4 sm:$0xff]  }
 0x1e7   :  { %4224 = vmatpush2.bf16.msra.mxu0 %v7085_v58  ;;  %4265 = vmatpush2.bf16.msra.mxu1 %v7088_v60 }
 0x1e8   :  { %4225 = vmatprep.subr.bf16.mxu0 %v7093_v61  ;;  %4266 = vmatprep.subr.bf16.mxu1 %v7096_v63  ;;  %v7127_v61 = vld [vmem:[#allocation8 + $0xa8] ss:$16 sps:$4 sm:$0xff]  }
 0x1e9   :  { %v7130_v63 = vld [vmem:[#allocation8 + $0x2a8] ss:$16 sps:$4 sm:$0xff]  }
 0x1eb   :  { %4226 = vmatpush2.bf16.msra.mxu0 %v7091_v49  ;;  %4267 = vmatpush2.bf16.msra.mxu1 %v7094_v55  ;;  %v7135_v49 = vld [vmem:[#allocation8 + $0x8c] ss:$16 sps:$4 sm:$0xff]  }
 0x1ec   :  { %4227 = vmatprep.subr.bf16.mxu0 %v7099_v5  ;;  %4268 = vmatprep.subr.bf16.mxu1 %v7102_v6  ;;  %v7138_v5 = vld [vmem:[#allocation8 + $0x28c] ss:$16 sps:$4 sm:$0xff]   ;;  %v7136_v6 = vld [vmem:[#allocation8 + $0x288] ss:$16 sps:$4 sm:$0xff]  }
 0x1ef   :  { %4228 = vmatpush2.bf16.msra.mxu0 %v7097_v7  ;;  %4269 = vmatpush2.bf16.msra.mxu1 %v7100_v50  ;;  %v7141_v7 = vld [vmem:[#allocation8 + $0x6c] ss:$16 sps:$4 sm:$0xff]  }
 0x1f0   :  { %4229 = vmatprep.subr.bf16.mxu0 %v7105_v13  ;;  %4270 = vmatprep.subr.bf16.mxu1 %v7108_v14  ;;  %v7144_v50 = vld [vmem:[#allocation8 + $0x26c] ss:$16 sps:$4 sm:$0xff]   ;;  %v7139_v13 = vld [vmem:[#allocation8 + $0x68] ss:$16 sps:$4 sm:$0xff]  }
 0x1f1   :  { %v7147_v14 = vld [vmem:[#allocation8 + $0x4c] ss:$16 sps:$4 sm:$0xff]  }
 0x1f3   :  { %4230 = vmatpush2.bf16.msra.mxu0 %v7103_v16  ;;  %4271 = vmatpush2.bf16.msra.mxu1 %v7106_v21  ;;  %v7150_v16 = vld [vmem:[#allocation8 + $0x24c] ss:$16 sps:$4 sm:$0xff]   ;;  %v7145_v21 = vld [vmem:[#allocation8 + $0x48] ss:$16 sps:$4 sm:$0xff]  }
 0x1f4   :  { %4231 = vmatprep.subr.bf16.mxu0 %v7111_v20  ;;  %4272 = vmatprep.subr.bf16.mxu1 %v7114_v23  ;;  %v7148_v20 = vld [vmem:[#allocation8 + $0x248] ss:$16 sps:$4 sm:$0xff]   ;;  %v7153_v23 = vld [vmem:[#allocation8 + $0x2c] ss:$16 sps:$4 sm:$0xff]  }
 0x1f7   :  { %4232 = vmatpush2.bf16.msra.mxu0 %v7109_v25  ;;  %4273 = vmatpush2.bf16.msra.mxu1 %v7112_v29  ;;  %v7156_v25 = vld [vmem:[#allocation8 + $0x22c] ss:$16 sps:$4 sm:$0xff]  }
 0x1f8   :  { %4283 = vmatprep.subr.bf16.mxu0 %v7117_v30  ;;  %4324 = vmatprep.subr.bf16.mxu1 %v7120_v32  ;;  %v7159_v29 = vld [vmem:[#allocation8 + $0xc] ss:$16 sps:$4 sm:$0xff]   ;;  %v7160_v32 = vld [vmem:[#allocation8 + $0x208] ss:$16 sps:$4 sm:$0xff]  }
 0x1f9   :  { %v7162_v30 = vld [vmem:[#allocation8 + $0x20c] ss:$16 sps:$4 sm:$0xff]  }
 0x1fa   :  { %4234 = vmatmul.mubr.bf16.vlgmr.msra.gmra.mxu0 %v8164_v37  ;;  %v3989_v43 = vpop.f32.mrf.mxu0  ;;  %4275 = vmatmul.mubr.bf16.vlgmr.msra.gmra.mxu1 %v8166_v38  ;;  %v4030_v44 = vpop.f32.mrf.mxu1 }
 0x1fb   :  { %v3990_v59 = vadd.f32 %v3989_v43, %v1382_v36  ;;  %4284 = vmatpush1.bf16.msra.mxu0 %v7115_v35  ;;  %4315 = vmatprep.mubr.bf16.mxu0 %v8053_v42  ;;  %v7168_v35 = vld [vmem:[#allocation8 + $0x3ec] ss:$16 sps:$4 sm:$0xff]   ;;  %v7163_v36 = vld [vmem:[#allocation8 + $0x1e8] ss:$16 sps:$4 sm:$0xff]  }
 0x1fc   :  { %4325 = vmatpush1.bf16.msra.mxu1 %v7118_v40  ;;  %v3991_v52 = vpop.f32.mrf.mxu0  ;;  %4356 = vmatprep.mubr.bf16.mxu1 %v8058_v46  ;;  %v4032_v56 = vpop.f32.mrf.mxu1  ;;  %v7133_v46 = vld [vmem:[#allocation8 + $0x88] ss:$16 sps:$4 sm:$0xff]  }
 0x1fd   :  { %v8172_v54 = vadd.f32 %v4030_v44, %v3990_v59  ;;  %v3992_v15 = vadd.f32 %v3991_v52, %v1386_v39  ;;  %4285 = vmatprep.subr.bf16.mxu0 %v7123_v48  ;;  %4326 = vmatprep.subr.bf16.mxu1 %v7126_v33  ;;  %v7166_v40 = vld [vmem:[#allocation8 + $0x3e8] ss:$16 sps:$4 sm:$0xff]   ;;  %v7171_v39 = vld [vmem:[#allocation8 + $0x1cc] ss:$16 sps:$4 sm:$0xff]  }
 0x1fe   :  { %v3993_v12 = vpop.f32.mrf.mxu0  ;;  %v4034_v60 = vpop.f32.mrf.mxu1  ;;  %v7174_v48 = vld [vmem:[#allocation8 + $0x3cc] ss:$16 sps:$4 sm:$0xff]   ;;  %v7169_v43 = vld [vmem:[#allocation8 + $0x1c8] ss:$16 sps:$4 sm:$0xff]  }
 0x1ff   :  { %v8175_v58 = vadd.f32 %v4032_v56, %v3992_v15  ;;  %4286 = vmatpush1.bf16.msra.mxu0 %v7121_v51  ;;  %v7172_v33 = vld [vmem:[#allocation8 + $0x3c8] ss:$16 sps:$4 sm:$0xff]   ;;  %v7177_v59 = vld [vmem:[#allocation8 + $0x1ac] ss:$16 sps:$4 sm:$0xff]  }
 0x200   :  { %4327 = vmatpush1.bf16.msra.mxu1 %v7124_v53  ;;  %v3994_v42 = vpop.f32.mrf.mxu0  ;;  %4287 = vmatprep.subr.bf16.mxu0 %v7129_v19  ;;  %v4035_v55 = vpop.f32.mrf.mxu1  ;;  %v7180_v44 = vld [vmem:[#allocation8 + $0x3ac] ss:$16 sps:$4 sm:$0xff]   ;;  %v7175_v51 = vld [vmem:[#allocation8 + $0x1a8] ss:$16 sps:$4 sm:$0xff]  }
 0x201   :  { %4328 = vmatprep.subr.bf16.mxu1 %v7132_v57  ;;  %v7178_v52 = vld [vmem:[#allocation8 + $0x3a8] ss:$16 sps:$4 sm:$0xff]   ;;  %v7183_v53 = vld [vmem:[#allocation8 + $0x18c] ss:$16 sps:$4 sm:$0xff]  }
 0x202   :  { %v7186_v19 = vld [vmem:[#allocation8 + $0x38c] ss:$16 sps:$4 sm:$0xff]   ;;  %v7181_v15 = vld [vmem:[#allocation8 + $0x188] ss:$16 sps:$4 sm:$0xff]  }
 0x203   :  { %4288 = vmatpush1.bf16.msra.mxu0 %v7127_v61  ;;  %v7184_v56 = vld [vmem:[#allocation8 + $0x388] ss:$16 sps:$4 sm:$0xff]   ;;  %v7189_v57 = vld [vmem:[#allocation8 + $0x16c] ss:$16 sps:$4 sm:$0xff]  }
 0x204   :  { %4329 = vmatpush1.bf16.msra.mxu1 %v7130_v63  ;;  %4289 = vmatprep.subr.bf16.mxu0 %v7135_v49  ;;  %v7192_v12 = vld [vmem:[#allocation8 + $0x36c] ss:$16 sps:$4 sm:$0xff]   ;;  %v7187_v60 = vld [vmem:[#allocation8 + $0x168] ss:$16 sps:$4 sm:$0xff]  }
 0x205   :  { %4330 = vmatprep.subr.bf16.mxu1 %v7138_v5  ;;  %v7190_v61 = vld [vmem:[#allocation8 + $0x368] ss:$16 sps:$4 sm:$0xff]   ;;  %v7195_v42 = vld [vmem:[#allocation8 + $0x14c] ss:$16 sps:$4 sm:$0xff]  }
 0x206   :  { %v7198_v63 = vld [vmem:[#allocation8 + $0x34c] ss:$16 sps:$4 sm:$0xff]   ;;  %v7193_v49 = vld [vmem:[#allocation8 + $0x148] ss:$16 sps:$4 sm:$0xff]  }
 0x207   :  { %4290 = vmatpush1.bf16.msra.mxu0 %v7133_v46  ;;  %v7196_v55 = vld [vmem:[#allocation8 + $0x348] ss:$16 sps:$4 sm:$0xff]   ;;  %v7201_v5 = vld [vmem:[#allocation8 + $0x12c] ss:$16 sps:$4 sm:$0xff]  }
 0x208   :  { %4331 = vmatpush1.bf16.msra.mxu1 %v7136_v6  ;;  %4291 = vmatprep.subr.bf16.mxu0 %v7141_v7  ;;  %v7204_v46 = vld [vmem:[#allocation8 + $0x32c] ss:$16 sps:$4 sm:$0xff]   ;;  %v7199_v6 = vld [vmem:[#allocation8 + $0x128] ss:$16 sps:$4 sm:$0xff]  }
 0x209   :  { %4332 = vmatprep.subr.bf16.mxu1 %v7144_v50  ;;  %v7202_v7 = vld [vmem:[#allocation8 + $0x328] ss:$16 sps:$4 sm:$0xff]   ;;  %v7207_v50 = vld [vmem:[#allocation8 + $0x10c] ss:$16 sps:$4 sm:$0xff]  }
 0x20b   :  { %4292 = vmatpush1.bf16.msra.mxu0 %v7139_v13  ;;  %v7210_v13 = vld [vmem:[#allocation8 + $0x30c] ss:$16 sps:$4 sm:$0xff]  }
 0x20c   :  { %4333 = vmatpush1.bf16.msra.mxu1 %v7142_v47  ;;  %4293 = vmatprep.subr.bf16.mxu0 %v7147_v14  ;;  %v7205_v47 = vld [vmem:[#allocation8 + $0x108] ss:$16 sps:$4 sm:$0xff]  }
 0x20d   :  { %4334 = vmatprep.subr.bf16.mxu1 %v7150_v16  ;;  %v7208_v14 = vld [vmem:[#allocation8 + $0x308] ss:$16 sps:$4 sm:$0xff]   ;;  %v7213_v16 = vld [vmem:[#allocation8 + $0x4ec] ss:$16 sps:$4 sm:$0xff]  }
 0x20f   :  { %4294 = vmatpush1.bf16.msra.mxu0 %v7145_v21  ;;  %v7216_v21 = vld [vmem:[#allocation8 + $0x6ec] ss:$16 sps:$4 sm:$0xff]  }
 0x210   :  { %4335 = vmatpush1.bf16.msra.mxu1 %v7148_v20  ;;  %4295 = vmatprep.subr.bf16.mxu0 %v7153_v23  ;;  %v7211_v20 = vld [vmem:[#allocation8 + $0x4e8] ss:$16 sps:$4 sm:$0xff]  }
 0x211   :  { %4336 = vmatprep.subr.bf16.mxu1 %v7156_v25  ;;  %v7214_v23 = vld [vmem:[#allocation8 + $0x6e8] ss:$16 sps:$4 sm:$0xff]   ;;  %v7219_v25 = vld [vmem:[#allocation8 + $0x4cc] ss:$16 sps:$4 sm:$0xff]  }
 0x213   :  { %4296 = vmatpush1.bf16.msra.mxu0 %v7151_v26 }
 0x214   :  { %4337 = vmatpush1.bf16.msra.mxu1 %v7154_v28  ;;  %4297 = vmatprep.subr.bf16.mxu0 %v7159_v29  ;;  %v7222_v28 = vld [vmem:[#allocation8 + $0x6cc] ss:$16 sps:$4 sm:$0xff]  }
 0x215   :  { %4338 = vmatprep.subr.bf16.mxu1 %v7162_v30 }
 0x217   :  { %4298 = vmatpush1.bf16.msra.mxu0 %v7157_v31  ;;  %v7217_v31 = vld [vmem:[#allocation8 + $0x4c8] ss:$16 sps:$4 sm:$0xff]  }
 0x218   :  { %4339 = vmatpush1.bf16.msra.mxu1 %v7160_v32  ;;  %4299 = vmatprep.subr.bf16.mxu0 %v7165_v34  ;;  %v7220_v34 = vld [vmem:[#allocation8 + $0x6c8] ss:$16 sps:$4 sm:$0xff]  }
 0x219   :  { %4340 = vmatprep.subr.bf16.mxu1 %v7168_v35  ;;  %v7225_v35 = vld [vmem:[#allocation8 + $0x4ac] ss:$16 sps:$4 sm:$0xff]  }
 0x21b   :  { %4300 = vmatpush2.bf16.msra.mxu0 %v7163_v36 }
 0x21c   :  { %4341 = vmatpush2.bf16.msra.mxu1 %v7166_v40  ;;  %4301 = vmatprep.subr.bf16.mxu0 %v7171_v39 }
 0x21d   :  { %4342 = vmatprep.subr.bf16.mxu1 %v7174_v48 }
 0x21f   :  { %4302 = vmatpush2.bf16.msra.mxu0 %v7169_v43 }
 0x220   :  { %4343 = vmatpush2.bf16.msra.mxu1 %v7172_v33  ;;  %4303 = vmatprep.subr.bf16.mxu0 %v7177_v59  ;;  %v7226_v33 = vld [vmem:[#allocation8 + $0x6a8] ss:$16 sps:$4 sm:$0xff]   ;;  %v7231_v59 = vld [vmem:[#allocation8 + $0x48c] ss:$16 sps:$4 sm:$0xff]  }
 0x221   :  { %4344 = vmatprep.subr.bf16.mxu1 %v7180_v44 }
 0x223   :  { %4304 = vmatpush2.bf16.msra.mxu0 %v7175_v51  ;;  %v7232_v51 = vld [vmem:[#allocation8 + $0x688] ss:$16 sps:$4 sm:$0xff]  }
 0x224   :  { %4345 = vmatpush2.bf16.msra.mxu1 %v7178_v52  ;;  %4305 = vmatprep.subr.bf16.mxu0 %v7183_v53  ;;  %v7237_v52 = vld [vmem:[#allocation8 + $0x46c] ss:$16 sps:$4 sm:$0xff]  }
 0x225   :  { %4346 = vmatprep.subr.bf16.mxu1 %v7186_v19  ;;  %v7240_v53 = vld [vmem:[#allocation8 + $0x66c] ss:$16 sps:$4 sm:$0xff]   ;;  %v7235_v19 = vld [vmem:[#allocation8 + $0x468] ss:$16 sps:$4 sm:$0xff]  }
 0x227   :  { %4306 = vmatpush2.bf16.msra.mxu0 %v7181_v15  ;;  %v7238_v15 = vld [vmem:[#allocation8 + $0x668] ss:$16 sps:$4 sm:$0xff]  }
 0x228   :  { %4347 = vmatpush2.bf16.msra.mxu1 %v7184_v56  ;;  %4307 = vmatprep.subr.bf16.mxu0 %v7189_v57  ;;  %v7243_v56 = vld [vmem:[#allocation8 + $0x44c] ss:$16 sps:$4 sm:$0xff]  }
 0x229   :  { %4348 = vmatprep.subr.bf16.mxu1 %v7192_v12  ;;  %v7246_v57 = vld [vmem:[#allocation8 + $0x64c] ss:$16 sps:$4 sm:$0xff]   ;;  %v7241_v12 = vld [vmem:[#allocation8 + $0x448] ss:$16 sps:$4 sm:$0xff]  }
 0x22b   :  { %4308 = vmatpush2.bf16.msra.mxu0 %v7187_v60  ;;  %v7244_v60 = vld [vmem:[#allocation8 + $0x648] ss:$16 sps:$4 sm:$0xff]  }
 0x22c   :  { %4349 = vmatpush2.bf16.msra.mxu1 %v7190_v61  ;;  %4309 = vmatprep.subr.bf16.mxu0 %v7195_v42  ;;  %v7249_v61 = vld [vmem:[#allocation8 + $0x42c] ss:$16 sps:$4 sm:$0xff]  }
 0x22d   :  { %4350 = vmatprep.subr.bf16.mxu1 %v7198_v63  ;;  %v7252_v42 = vld [vmem:[#allocation8 + $0x62c] ss:$16 sps:$4 sm:$0xff]   ;;  %v7247_v63 = vld [vmem:[#allocation8 + $0x428] ss:$16 sps:$4 sm:$0xff]  }
 0x22f   :  { %4310 = vmatpush2.bf16.msra.mxu0 %v7193_v49  ;;  %v7250_v49 = vld [vmem:[#allocation8 + $0x628] ss:$16 sps:$4 sm:$0xff]  }
 0x230   :  { %4351 = vmatpush2.bf16.msra.mxu1 %v7196_v55  ;;  %4311 = vmatprep.subr.bf16.mxu0 %v7201_v5  ;;  %v7255_v55 = vld [vmem:[#allocation8 + $0x40c] ss:$16 sps:$4 sm:$0xff]  }
 0x231   :  { %4352 = vmatprep.subr.bf16.mxu1 %v7204_v46  ;;  %v7258_v5 = vld [vmem:[#allocation8 + $0x60c] ss:$16 sps:$4 sm:$0xff]   ;;  %v7253_v46 = vld [vmem:[#allocation8 + $0x408] ss:$16 sps:$4 sm:$0xff]  }
 0x233   :  { %4312 = vmatpush2.bf16.msra.mxu0 %v7199_v6  ;;  %v7256_v6 = vld [vmem:[#allocation8 + $0x608] ss:$16 sps:$4 sm:$0xff]  }
 0x234   :  { %4353 = vmatpush2.bf16.msra.mxu1 %v7202_v7  ;;  %4313 = vmatprep.subr.bf16.mxu0 %v7207_v50  ;;  %v7261_v7 = vld [vmem:[#allocation8 + $0x5ec] ss:$16 sps:$4 sm:$0xff]  }
 0x235   :  { %4354 = vmatprep.subr.bf16.mxu1 %v7210_v13  ;;  %v7264_v50 = vld [vmem:[#allocation8 + $0x7ec] ss:$16 sps:$4 sm:$0xff]   ;;  %v7259_v13 = vld [vmem:[#allocation8 + $0x5e8] ss:$16 sps:$4 sm:$0xff]  }
 0x237   :  { %4314 = vmatpush2.bf16.msra.mxu0 %v7205_v47  ;;  %v7262_v47 = vld [vmem:[#allocation8 + $0x7e8] ss:$16 sps:$4 sm:$0xff]  }
 0x238   :  { %4355 = vmatpush2.bf16.msra.mxu1 %v7208_v14  ;;  %4365 = vmatprep.subr.bf16.mxu0 %v7213_v16  ;;  %v7267_v14 = vld [vmem:[#allocation8 + $0x5cc] ss:$16 sps:$4 sm:$0xff]  }
 0x239   :  { %4406 = vmatprep.subr.bf16.mxu1 %v7216_v21  ;;  %v7270_v16 = vld [vmem:[#allocation8 + $0x7cc] ss:$16 sps:$4 sm:$0xff]   ;;  %v7265_v21 = vld [vmem:[#allocation8 + $0x5c8] ss:$16 sps:$4 sm:$0xff]  }
 0x23a   :  { %v4071_v26 = vpop.f32.mrf.mxu0  ;;  %4316 = vmatmul.mubr.bf16.vlgmr.msra.gmra.mxu0 %v8056_v45  ;;  %v4112_v30 = vpop.f32.mrf.mxu1 }
 0x23b   :  { %v4072_v29 = vadd.f32 %v4071_v26, %v8172_v54  ;;  %4357 = vmatmul.mubr.bf16.vlgmr.msra.gmra.mxu1 %v8051_v41  ;;  %4366 = vmatpush1.bf16.msra.mxu0 %v7211_v20  ;;  %v7228_v54 = vld [vmem:[#allocation8 + $0x6ac] ss:$16 sps:$4 sm:$0xff]   ;;  %v7268_v20 = vld [vmem:[#allocation8 + $0x7c8] ss:$16 sps:$4 sm:$0xff]  }
 0x23c   :  { %4397 = vmatprep.mubr.bf16.mxu0 %v8072_v4  ;;  %4407 = vmatpush1.bf16.msra.mxu1 %v7214_v23  ;;  %v4073_v32 = vpop.f32.mrf.mxu0  ;;  %v4114_v40 = vpop.f32.mrf.mxu1  ;;  %v7223_v4 = vld [vmem:[#allocation8 + $0x4a8] ss:$16 sps:$4 sm:$0xff]   ;;  %v7273_v23 = vld [vmem:[#allocation8 + $0x5ac] ss:$16 sps:$4 sm:$0xff]  }
 0x23d   :  { %v8181_v36 = vadd.f32 %v4112_v30, %v4072_v29  ;;  %4438 = vmatprep.mubr.bf16.mxu1 %v8074_v8  ;;  %v4074_v45 = vadd.f32 %v4073_v32, %v8175_v58  ;;  %4367 = vmatprep.subr.bf16.mxu0 %v7219_v25  ;;  %v7234_v8 = vld [vmem:[#allocation8 + $0x68c] ss:$16 sps:$4 sm:$0xff]   ;;  %v7229_v58 = vld [vmem:[#allocation8 + $0x488] ss:$16 sps:$4 sm:$0xff]  }
 0x23e   :  { %v4075_v39 = vpop.f32.mrf.mxu0  ;;  %4408 = vmatprep.subr.bf16.mxu1 %v7222_v28  ;;  %v4116_v48 = vpop.f32.mrf.mxu1  ;;  %v7276_v25 = vld [vmem:[#allocation8 + $0x7ac] ss:$16 sps:$4 sm:$0xff]   ;;  %v7271_v26 = vld [vmem:[#allocation8 + $0x5a8] ss:$16 sps:$4 sm:$0xff]  }
 0x23f   :  { %v8185_v41 = vadd.f32 %v4114_v40, %v4074_v45  ;;  %4368 = vmatpush1.bf16.msra.mxu0 %v7217_v31  ;;  %v7274_v28 = vld [vmem:[#allocation8 + $0x7a8] ss:$16 sps:$4 sm:$0xff]   ;;  %v7279_v29 = vld [vmem:[#allocation8 + $0x58c] ss:$16 sps:$4 sm:$0xff]  }
 0x240   :  { %4409 = vmatpush1.bf16.msra.mxu1 %v7220_v34  ;;  %v4076_v43 = vpop.f32.mrf.mxu0  ;;  %4369 = vmatprep.subr.bf16.mxu0 %v7225_v35  ;;  %v4117_v44 = vpop.f32.mrf.mxu1  ;;  %v7282_v30 = vld [vmem:[#allocation8 + $0x78c] ss:$16 sps:$4 sm:$0xff]   ;;  %v7277_v31 = vld [vmem:[#allocation8 + $0x588] ss:$16 sps:$4 sm:$0xff]  }
 0x241   :  { %4410 = vmatprep.subr.bf16.mxu1 %v7228_v54  ;;  %v7280_v32 = vld [vmem:[#allocation8 + $0x788] ss:$16 sps:$4 sm:$0xff]   ;;  %v7285_v34 = vld [vmem:[#allocation8 + $0x56c] ss:$16 sps:$4 sm:$0xff]  }
 0x242   :  { %v7288_v35 = vld [vmem:[#allocation8 + $0x76c] ss:$16 sps:$4 sm:$0xff]   ;;  %v7283_v45 = vld [vmem:[#allocation8 + $0x568] ss:$16 sps:$4 sm:$0xff]  }
 0x243   :  { %4370 = vmatpush1.bf16.msra.mxu0 %v7223_v4  ;;  %v7286_v40 = vld [vmem:[#allocation8 + $0x768] ss:$16 sps:$4 sm:$0xff]   ;;  %v7291_v54 = vld [vmem:[#allocation8 + $0x54c] ss:$16 sps:$4 sm:$0xff]  }
 0x244   :  { %4411 = vmatpush1.bf16.msra.mxu1 %v7226_v33  ;;  %4371 = vmatprep.subr.bf16.mxu0 %v7231_v59  ;;  %v7294_v39 = vld [vmem:[#allocation8 + $0x74c] ss:$16 sps:$4 sm:$0xff]   ;;  %v7289_v48 = vld [vmem:[#allocation8 + $0x548] ss:$16 sps:$4 sm:$0xff]  }
 0x245   :  { %4412 = vmatprep.subr.bf16.mxu1 %v7234_v8  ;;  %v7292_v4 = vld [vmem:[#allocation8 + $0x748] ss:$16 sps:$4 sm:$0xff]   ;;  %v7297_v43 = vld [vmem:[#allocation8 + $0x52c] ss:$16 sps:$4 sm:$0xff]  }
 0x246   :  { %v7300_v33 = vld [vmem:[#allocation8 + $0x72c] ss:$16 sps:$4 sm:$0xff]   ;;  %v7295_v59 = vld [vmem:[#allocation8 + $0x528] ss:$16 sps:$4 sm:$0xff]  }
 0x247   :  { %4372 = vmatpush1.bf16.msra.mxu0 %v7229_v58  ;;  %v7298_v44 = vld [vmem:[#allocation8 + $0x728] ss:$16 sps:$4 sm:$0xff]   ;;  %v7303_v8 = vld [vmem:[#allocation8 + $0x50c] ss:$16 sps:$4 sm:$0xff]  }
 0x248   :  { %4413 = vmatpush1.bf16.msra.mxu1 %v7232_v51  ;;  %4373 = vmatprep.subr.bf16.mxu0 %v7237_v52  ;;  %v7306_v58 = vld [vmem:[#allocation8 + $0x70c] ss:$16 sps:$4 sm:$0xff]   ;;  %v7301_v51 = vld [vmem:[#allocation8 + $0x508] ss:$16 sps:$4 sm:$0xff]  }
 0x249   :  { %4414 = vmatprep.subr.bf16.mxu1 %v7240_v53  ;;  %v7304_v52 = vld [vmem:[#allocation8 + $0x708] ss:$16 sps:$4 sm:$0xff]   ;;  %v7309_v53 = vld [vmem:[#allocation8 + $0x8ec] ss:$16 sps:$4 sm:$0xff]  }
 0x24b   :  { %4374 = vmatpush1.bf16.msra.mxu0 %v7235_v19  ;;  %v7312_v19 = vld [vmem:[#allocation8 + $0xaec] ss:$16 sps:$4 sm:$0xff]  }
 0x24c   :  { %4415 = vmatpush1.bf16.msra.mxu1 %v7238_v15  ;;  %4375 = vmatprep.subr.bf16.mxu0 %v7243_v56  ;;  %v7307_v15 = vld [vmem:[#allocation8 + $0x8e8] ss:$16 sps:$4 sm:$0xff]  }
 0x24d   :  { %4416 = vmatprep.subr.bf16.mxu1 %v7246_v57  ;;  %v7310_v56 = vld [vmem:[#allocation8 + $0xae8] ss:$16 sps:$4 sm:$0xff]   ;;  %v7315_v57 = vld [vmem:[#allocation8 + $0x8cc] ss:$16 sps:$4 sm:$0xff]  }
 0x24f   :  { %4376 = vmatpush1.bf16.msra.mxu0 %v7241_v12 }
 0x250   :  { %4417 = vmatpush1.bf16.msra.mxu1 %v7244_v60  ;;  %4377 = vmatprep.subr.bf16.mxu0 %v7249_v61  ;;  %v7318_v60 = vld [vmem:[#allocation8 + $0xacc] ss:$16 sps:$4 sm:$0xff]  }
 0x251   :  { %4418 = vmatprep.subr.bf16.mxu1 %v7252_v42 }
 0x253   :  { %4378 = vmatpush1.bf16.msra.mxu0 %v7247_v63  ;;  %v7313_v63 = vld [vmem:[#allocation8 + $0x8c8] ss:$16 sps:$4 sm:$0xff]  }
 0x254   :  { %4419 = vmatpush1.bf16.msra.mxu1 %v7250_v49  ;;  %4379 = vmatprep.subr.bf16.mxu0 %v7255_v55  ;;  %v7316_v55 = vld [vmem:[#allocation8 + $0xac8] ss:$16 sps:$4 sm:$0xff]  }
 0x255   :  { %4420 = vmatprep.subr.bf16.mxu1 %v7258_v5  ;;  %v7321_v5 = vld [vmem:[#allocation8 + $0x8ac] ss:$16 sps:$4 sm:$0xff]  }
 0x257   :  { %4380 = vmatpush1.bf16.msra.mxu0 %v7253_v46 }
 0x258   :  { %4421 = vmatpush1.bf16.msra.mxu1 %v7256_v6  ;;  %4381 = vmatprep.subr.bf16.mxu0 %v7261_v7 }
 0x259   :  { %4422 = vmatprep.subr.bf16.mxu1 %v7264_v50 }
 0x25b   :  { %4382 = vmatpush2.bf16.msra.mxu0 %v7259_v13 }
 0x25c   :  { %4423 = vmatpush2.bf16.msra.mxu1 %v7262_v47  ;;  %4383 = vmatprep.subr.bf16.mxu0 %v7267_v14  ;;  %v7322_v47 = vld [vmem:[#allocation8 + $0xaa8] ss:$16 sps:$4 sm:$0xff]   ;;  %v7327_v14 = vld [vmem:[#allocation8 + $0x88c] ss:$16 sps:$4 sm:$0xff]  }
 0x25d   :  { %4424 = vmatprep.subr.bf16.mxu1 %v7270_v16 }
 0x25f   :  { %4384 = vmatpush2.bf16.msra.mxu0 %v7265_v21  ;;  %v7328_v21 = vld [vmem:[#allocation8 + $0xa88] ss:$16 sps:$4 sm:$0xff]  }
 0x260   :  { %4425 = vmatpush2.bf16.msra.mxu1 %v7268_v20  ;;  %4385 = vmatprep.subr.bf16.mxu0 %v7273_v23  ;;  %v7333_v20 = vld [vmem:[#allocation8 + $0x86c] ss:$16 sps:$4 sm:$0xff]  }
 0x261   :  { %4426 = vmatprep.subr.bf16.mxu1 %v7276_v25  ;;  %v7336_v23 = vld [vmem:[#allocation8 + $0xa6c] ss:$16 sps:$4 sm:$0xff]   ;;  %v7331_v25 = vld [vmem:[#allocation8 + $0x868] ss:$16 sps:$4 sm:$0xff]  }
 0x263   :  { %4386 = vmatpush2.bf16.msra.mxu0 %v7271_v26  ;;  %v7334_v26 = vld [vmem:[#allocation8 + $0xa68] ss:$16 sps:$4 sm:$0xff]  }
 0x264   :  { %4427 = vmatpush2.bf16.msra.mxu1 %v7274_v28  ;;  %4387 = vmatprep.subr.bf16.mxu0 %v7279_v29  ;;  %v7339_v28 = vld [vmem:[#allocation8 + $0x84c] ss:$16 sps:$4 sm:$0xff]  }
 0x265   :  { %4428 = vmatprep.subr.bf16.mxu1 %v7282_v30  ;;  %v7342_v29 = vld [vmem:[#allocation8 + $0xa4c] ss:$16 sps:$4 sm:$0xff]   ;;  %v7337_v30 = vld [vmem:[#allocation8 + $0x848] ss:$16 sps:$4 sm:$0xff]  }
 0x267   :  { %4388 = vmatpush2.bf16.msra.mxu0 %v7277_v31  ;;  %v7340_v31 = vld [vmem:[#allocation8 + $0xa48] ss:$16 sps:$4 sm:$0xff]  }
 0x268   :  { %4429 = vmatpush2.bf16.msra.mxu1 %v7280_v32  ;;  %4389 = vmatprep.subr.bf16.mxu0 %v7285_v34  ;;  %v7345_v32 = vld [vmem:[#allocation8 + $0x82c] ss:$16 sps:$4 sm:$0xff]  }
 0x269   :  { %4430 = vmatprep.subr.bf16.mxu1 %v7288_v35  ;;  %v7348_v34 = vld [vmem:[#allocation8 + $0xa2c] ss:$16 sps:$4 sm:$0xff]   ;;  %v7343_v35 = vld [vmem:[#allocation8 + $0x828] ss:$16 sps:$4 sm:$0xff]  }
 0x26b   :  { %4390 = vmatpush2.bf16.msra.mxu0 %v7283_v45  ;;  %v7346_v45 = vld [vmem:[#allocation8 + $0xa28] ss:$16 sps:$4 sm:$0xff]  }
 0x26c   :  { %4431 = vmatpush2.bf16.msra.mxu1 %v7286_v40  ;;  %4391 = vmatprep.subr.bf16.mxu0 %v7291_v54  ;;  %v7351_v40 = vld [vmem:[#allocation8 + $0x80c] ss:$16 sps:$4 sm:$0xff]  }
 0x26d   :  { %4432 = vmatprep.subr.bf16.mxu1 %v7294_v39  ;;  %v7354_v54 = vld [vmem:[#allocation8 + $0xa0c] ss:$16 sps:$4 sm:$0xff]   ;;  %v7349_v39 = vld [vmem:[#allocation8 + $0x808] ss:$16 sps:$4 sm:$0xff]  }
 0x26f   :  { %4392 = vmatpush2.bf16.msra.mxu0 %v7289_v48  ;;  %v7352_v48 = vld [vmem:[#allocation8 + $0xa08] ss:$16 sps:$4 sm:$0xff]  }
 0x270   :  { %4433 = vmatpush2.bf16.msra.mxu1 %v7292_v4  ;;  %4393 = vmatprep.subr.bf16.mxu0 %v7297_v43  ;;  %v7357_v4 = vld [vmem:[#allocation8 + $0x9ec] ss:$16 sps:$4 sm:$0xff]  }
 0x271   :  { %4434 = vmatprep.subr.bf16.mxu1 %v7300_v33  ;;  %v7360_v43 = vld [vmem:[#allocation8 + $0xbec] ss:$16 sps:$4 sm:$0xff]   ;;  %v7355_v33 = vld [vmem:[#allocation8 + $0x9e8] ss:$16 sps:$4 sm:$0xff]  }
 0x273   :  { %4394 = vmatpush2.bf16.msra.mxu0 %v7295_v59  ;;  %v7358_v59 = vld [vmem:[#allocation8 + $0xbe8] ss:$16 sps:$4 sm:$0xff]  }
 0x274   :  { %4435 = vmatpush2.bf16.msra.mxu1 %v7298_v44  ;;  %4395 = vmatprep.subr.bf16.mxu0 %v7303_v8  ;;  %v7363_v44 = vld [vmem:[#allocation8 + $0x9cc] ss:$16 sps:$4 sm:$0xff]  }
 0x275   :  { %4436 = vmatprep.subr.bf16.mxu1 %v7306_v58  ;;  %v7366_v8 = vld [vmem:[#allocation8 + $0xbcc] ss:$16 sps:$4 sm:$0xff]   ;;  %v7361_v58 = vld [vmem:[#allocation8 + $0x9c8] ss:$16 sps:$4 sm:$0xff]  }
 0x277   :  { %4396 = vmatpush2.bf16.msra.mxu0 %v7301_v51  ;;  %v7364_v51 = vld [vmem:[#allocation8 + $0xbc8] ss:$16 sps:$4 sm:$0xff]  }
 0x278   :  { %4437 = vmatpush2.bf16.msra.mxu1 %v7304_v52  ;;  %4447 = vmatprep.subr.bf16.mxu0 %v7309_v53  ;;  %v7369_v52 = vld [vmem:[#allocation8 + $0x9ac] ss:$16 sps:$4 sm:$0xff]  }
 0x279   :  { %4488 = vmatprep.subr.bf16.mxu1 %v7312_v19  ;;  %v7372_v53 = vld [vmem:[#allocation8 + $0xbac] ss:$16 sps:$4 sm:$0xff]   ;;  %v7367_v19 = vld [vmem:[#allocation8 + $0x9a8] ss:$16 sps:$4 sm:$0xff]  }
 0x27a   :  { %v4153_v12 = vpop.f32.mrf.mxu0  ;;  %4398 = vmatmul.mubr.bf16.vlgmr.msra.gmra.mxu0 %v8123_v17  ;;  %v4194_v42 = vpop.f32.mrf.mxu1 }
 0x27b   :  { %v4154_v61 = vadd.f32 %v4153_v12, %v8181_v36  ;;  %4439 = vmatmul.mubr.bf16.vlgmr.msra.gmra.mxu1 %v8121_v22  ;;  %4448 = vmatpush1.bf16.msra.mxu0 %v7307_v15  ;;  %v7324_v36 = vld [vmem:[#allocation8 + $0xaac] ss:$16 sps:$4 sm:$0xff]   ;;  %v7370_v15 = vld [vmem:[#allocation8 + $0xba8] ss:$16 sps:$4 sm:$0xff]  }
 0x27c   :  { %4479 = vmatprep.mubr.bf16.mxu0 %v8125_v24  ;;  %4489 = vmatpush1.bf16.msra.mxu1 %v7310_v56  ;;  %v4155_v49 = vpop.f32.mrf.mxu0  ;;  %v4196_v6 = vpop.f32.mrf.mxu1  ;;  %v7319_v24 = vld [vmem:[#allocation8 + $0x8a8] ss:$16 sps:$4 sm:$0xff]   ;;  %v7375_v56 = vld [vmem:[#allocation8 + $0x98c] ss:$16 sps:$4 sm:$0xff]  }
 0x27d   :  { %v8191_v46 = vadd.f32 %v4194_v42, %v4154_v61  ;;  %4520 = vmatprep.mubr.bf16.mxu1 %v8128_v27  ;;  %v4156_v17 = vadd.f32 %v4155_v49, %v8185_v41  ;;  %4449 = vmatprep.subr.bf16.mxu0 %v7315_v57  ;;  %v7330_v27 = vld [vmem:[#allocation8 + $0xa8c] ss:$16 sps:$4 sm:$0xff]   ;;  %v7325_v41 = vld [vmem:[#allocation8 + $0x888] ss:$16 sps:$4 sm:$0xff]  }
 0x27e   :  { %v4157_v7 = vpop.f32.mrf.mxu0  ;;  %4490 = vmatprep.subr.bf16.mxu1 %v7318_v60  ;;  %v4198_v50 = vpop.f32.mrf.mxu1  ;;  %v7378_v57 = vld [vmem:[#allocation8 + $0xb8c] ss:$16 sps:$4 sm:$0xff]   ;;  %v7373_v12 = vld [vmem:[#allocation8 + $0x988] ss:$16 sps:$4 sm:$0xff]  }
 0x27f   :  { %v8195_v22 = vadd.f32 %v4196_v6, %v4156_v17  ;;  %4450 = vmatpush1.bf16.msra.mxu0 %v7313_v63  ;;  %v7376_v60 = vld [vmem:[#allocation8 + $0xb88] ss:$16 sps:$4 sm:$0xff]   ;;  %v7381_v61 = vld [vmem:[#allocation8 + $0x96c] ss:$16 sps:$4 sm:$0xff]  }
 0x280   :  { %4491 = vmatpush1.bf16.msra.mxu1 %v7316_v55  ;;  %v4158_v13 = vpop.f32.mrf.mxu0  ;;  %4451 = vmatprep.subr.bf16.mxu0 %v7321_v5  ;;  %v4199_v16 = vpop.f32.mrf.mxu1  ;;  %v7384_v42 = vld [vmem:[#allocation8 + $0xb6c] ss:$16 sps:$4 sm:$0xff]   ;;  %v7379_v63 = vld [vmem:[#allocation8 + $0x968] ss:$16 sps:$4 sm:$0xff]  }
 0x281   :  { %4492 = vmatprep.subr.bf16.mxu1 %v7324_v36  ;;  %v7382_v49 = vld [vmem:[#allocation8 + $0xb68] ss:$16 sps:$4 sm:$0xff]   ;;  %v7387_v55 = vld [vmem:[#allocation8 + $0x94c] ss:$16 sps:$4 sm:$0xff]  }
 0x282   :  { %v7390_v5 = vld [vmem:[#allocation8 + $0xb4c] ss:$16 sps:$4 sm:$0xff]   ;;  %v7385_v17 = vld [vmem:[#allocation8 + $0x948] ss:$16 sps:$4 sm:$0xff]  }
 0x283   :  { %4452 = vmatpush1.bf16.msra.mxu0 %v7319_v24  ;;  %v7388_v6 = vld [vmem:[#allocation8 + $0xb48] ss:$16 sps:$4 sm:$0xff]   ;;  %v7393_v36 = vld [vmem:[#allocation8 + $0x92c] ss:$16 sps:$4 sm:$0xff]  }
 0x284   :  { %4493 = vmatpush1.bf16.msra.mxu1 %v7322_v47  ;;  %4453 = vmatprep.subr.bf16.mxu0 %v7327_v14  ;;  %v7396_v7 = vld [vmem:[#allocation8 + $0xb2c] ss:$16 sps:$4 sm:$0xff]   ;;  %v7391_v50 = vld [vmem:[#allocation8 + $0x928] ss:$16 sps:$4 sm:$0xff]  }
 0x285   :  { %4494 = vmatprep.subr.bf16.mxu1 %v7330_v27  ;;  %v7394_v24 = vld [vmem:[#allocation8 + $0xb28] ss:$16 sps:$4 sm:$0xff]   ;;  %v7399_v13 = vld [vmem:[#allocation8 + $0x90c] ss:$16 sps:$4 sm:$0xff]  }
 0x286   :  { %v7402_v47 = vld [vmem:[#allocation8 + $0xb0c] ss:$16 sps:$4 sm:$0xff]   ;;  %v7397_v14 = vld [vmem:[#allocation8 + $0x908] ss:$16 sps:$4 sm:$0xff]  }
 0x287   :  { %4454 = vmatpush1.bf16.msra.mxu0 %v7325_v41  ;;  %v7400_v16 = vld [vmem:[#allocation8 + $0xb08] ss:$16 sps:$4 sm:$0xff]   ;;  %v7405_v27 = vld [vmem:[#allocation8 + $0xcec] ss:$16 sps:$4 sm:$0xff]  }
 0x288   :  { %4495 = vmatpush1.bf16.msra.mxu1 %v7328_v21  ;;  %4455 = vmatprep.subr.bf16.mxu0 %v7333_v20  ;;  %v7408_v41 = vld [vmem:[#allocation8 + $0xeec] ss:$16 sps:$4 sm:$0xff]   ;;  %v7403_v21 = vld [vmem:[#allocation8 + $0xce8] ss:$16 sps:$4 sm:$0xff]  }
 0x289   :  { %4496 = vmatprep.subr.bf16.mxu1 %v7336_v23  ;;  %v7406_v20 = vld [vmem:[#allocation8 + $0xee8] ss:$16 sps:$4 sm:$0xff]   ;;  %v7411_v23 = vld [vmem:[#allocation8 + $0xccc] ss:$16 sps:$4 sm:$0xff]  }
 0x28b   :  { %4456 = vmatpush1.bf16.msra.mxu0 %v7331_v25 }
 0x28c   :  { %4497 = vmatpush1.bf16.msra.mxu1 %v7334_v26  ;;  %4457 = vmatprep.subr.bf16.mxu0 %v7339_v28  ;;  %v7414_v26 = vld [vmem:[#allocation8 + $0xecc] ss:$16 sps:$4 sm:$0xff]  }
 0x28d   :  { %4498 = vmatprep.subr.bf16.mxu1 %v7342_v29 }
 0x28f   :  { %4458 = vmatpush1.bf16.msra.mxu0 %v7337_v30  ;;  %v7409_v30 = vld [vmem:[#allocation8 + $0xcc8] ss:$16 sps:$4 sm:$0xff]  }
 0x290   :  { %4499 = vmatpush1.bf16.msra.mxu1 %v7340_v31  ;;  %4459 = vmatprep.subr.bf16.mxu0 %v7345_v32  ;;  %v7412_v32 = vld [vmem:[#allocation8 + $0xec8] ss:$16 sps:$4 sm:$0xff]  }
 0x291   :  { %4500 = vmatprep.subr.bf16.mxu1 %v7348_v34  ;;  %v7417_v34 = vld [vmem:[#allocation8 + $0xcac] ss:$16 sps:$4 sm:$0xff]  }
 0x293   :  { %4460 = vmatpush1.bf16.msra.mxu0 %v7343_v35 }
 0x294   :  { %4501 = vmatpush1.bf16.msra.mxu1 %v7346_v45  ;;  %4461 = vmatprep.subr.bf16.mxu0 %v7351_v40  ;;  %v7415_v40 = vld [vmem:[#allocation8 + $0xca8] ss:$16 sps:$4 sm:$0xff]  }
 0x295   :  { %4502 = vmatprep.subr.bf16.mxu1 %v7354_v54  ;;  %v7418_v54 = vld [vmem:[#allocation8 + $0xea8] ss:$16 sps:$4 sm:$0xff]  }
 0x297   :  { %4462 = vmatpush1.bf16.msra.mxu0 %v7349_v39  ;;  %v7423_v39 = vld [vmem:[#allocation8 + $0xc8c] ss:$16 sps:$4 sm:$0xff]  }
 0x298   :  { %4503 = vmatpush1.bf16.msra.mxu1 %v7352_v48  ;;  %4463 = vmatprep.subr.bf16.mxu0 %v7357_v4  ;;  %v7426_v4 = vld [vmem:[#allocation8 + $0xe8c] ss:$16 sps:$4 sm:$0xff]  }
 0x299   :  { %4504 = vmatprep.subr.bf16.mxu1 %v7360_v43  ;;  %v7421_v43 = vld [vmem:[#allocation8 + $0xc88] ss:$16 sps:$4 sm:$0xff]  }
 0x29b   :  { %4464 = vmatpush2.bf16.msra.mxu0 %v7355_v33  ;;  %v7429_v33 = vld [vmem:[#allocation8 + $0xc6c] ss:$16 sps:$4 sm:$0xff]  }
 0x29c   :  { %4505 = vmatpush2.bf16.msra.mxu1 %v7358_v59  ;;  %4465 = vmatprep.subr.bf16.mxu0 %v7363_v44  ;;  %v7432_v59 = vld [vmem:[#allocation8 + $0xe6c] ss:$16 sps:$4 sm:$0xff]   ;;  %v7427_v44 = vld [vmem:[#allocation8 + $0xc68] ss:$16 sps:$4 sm:$0xff]  }
 0x29d   :  { %4506 = vmatprep.subr.bf16.mxu1 %v7366_v8  ;;  %v7430_v8 = vld [vmem:[#allocation8 + $0xe68] ss:$16 sps:$4 sm:$0xff]  }
 0x29f   :  { %4466 = vmatpush2.bf16.msra.mxu0 %v7361_v58  ;;  %v7435_v58 = vld [vmem:[#allocation8 + $0xc4c] ss:$16 sps:$4 sm:$0xff]  }
 0x2a0   :  { %4507 = vmatpush2.bf16.msra.mxu1 %v7364_v51  ;;  %4467 = vmatprep.subr.bf16.mxu0 %v7369_v52  ;;  %v7438_v51 = vld [vmem:[#allocation8 + $0xe4c] ss:$16 sps:$4 sm:$0xff]   ;;  %v7433_v52 = vld [vmem:[#allocation8 + $0xc48] ss:$16 sps:$4 sm:$0xff]  }
 0x2a1   :  { %4508 = vmatprep.subr.bf16.mxu1 %v7372_v53  ;;  %v7436_v53 = vld [vmem:[#allocation8 + $0xe48] ss:$16 sps:$4 sm:$0xff]  }
 0x2a3   :  { %4468 = vmatpush2.bf16.msra.mxu0 %v7367_v19  ;;  %v7441_v19 = vld [vmem:[#allocation8 + $0xc2c] ss:$16 sps:$4 sm:$0xff]  }
 0x2a4   :  { %4509 = vmatpush2.bf16.msra.mxu1 %v7370_v15  ;;  %4469 = vmatprep.subr.bf16.mxu0 %v7375_v56  ;;  %v7444_v15 = vld [vmem:[#allocation8 + $0xe2c] ss:$16 sps:$4 sm:$0xff]   ;;  %v7439_v56 = vld [vmem:[#allocation8 + $0xc28] ss:$16 sps:$4 sm:$0xff]  }
 0x2a5   :  { %4510 = vmatprep.subr.bf16.mxu1 %v7378_v57  ;;  %v7442_v57 = vld [vmem:[#allocation8 + $0xe28] ss:$16 sps:$4 sm:$0xff]  }
 0x2a7   :  { %4470 = vmatpush2.bf16.msra.mxu0 %v7373_v12  ;;  %v7447_v12 = vld [vmem:[#allocation8 + $0xc0c] ss:$16 sps:$4 sm:$0xff]  }
 0x2a8   :  { %4511 = vmatpush2.bf16.msra.mxu1 %v7376_v60  ;;  %4471 = vmatprep.subr.bf16.mxu0 %v7381_v61  ;;  %v7450_v60 = vld [vmem:[#allocation8 + $0xe0c] ss:$16 sps:$4 sm:$0xff]   ;;  %v7445_v61 = vld [vmem:[#allocation8 + $0xc08] ss:$16 sps:$4 sm:$0xff]  }
 0x2a9   :  { %4512 = vmatprep.subr.bf16.mxu1 %v7384_v42  ;;  %v7448_v42 = vld [vmem:[#allocation8 + $0xe08] ss:$16 sps:$4 sm:$0xff]  }
 0x2ab   :  { %4472 = vmatpush2.bf16.msra.mxu0 %v7379_v63  ;;  %v7453_v63 = vld [vmem:[#allocation8 + $0xdec] ss:$16 sps:$4 sm:$0xff]  }
 0x2ac   :  { %4513 = vmatpush2.bf16.msra.mxu1 %v7382_v49  ;;  %4473 = vmatprep.subr.bf16.mxu0 %v7387_v55  ;;  %v7456_v49 = vld [vmem:[#allocation8 + $0xfec] ss:$16 sps:$4 sm:$0xff]   ;;  %v7451_v55 = vld [vmem:[#allocation8 + $0xde8] ss:$16 sps:$4 sm:$0xff]  }
 0x2ad   :  { %4514 = vmatprep.subr.bf16.mxu1 %v7390_v5  ;;  %v7454_v5 = vld [vmem:[#allocation8 + $0xfe8] ss:$16 sps:$4 sm:$0xff]  }
 0x2af   :  { %4474 = vmatpush2.bf16.msra.mxu0 %v7385_v17  ;;  %v7459_v17 = vld [vmem:[#allocation8 + $0xdcc] ss:$16 sps:$4 sm:$0xff]  }
 0x2b0   :  { %4515 = vmatpush2.bf16.msra.mxu1 %v7388_v6  ;;  %4475 = vmatprep.subr.bf16.mxu0 %v7393_v36  ;;  %v7462_v6 = vld [vmem:[#allocation8 + $0xfcc] ss:$16 sps:$4 sm:$0xff]   ;;  %v7457_v36 = vld [vmem:[#allocation8 + $0xdc8] ss:$16 sps:$4 sm:$0xff]  }
 0x2b1   :  { %4516 = vmatprep.subr.bf16.mxu1 %v7396_v7  ;;  %v7460_v7 = vld [vmem:[#allocation8 + $0xfc8] ss:$16 sps:$4 sm:$0xff]  }
 0x2b3   :  { %4476 = vmatpush2.bf16.msra.mxu0 %v7391_v50  ;;  %v7465_v50 = vld [vmem:[#allocation8 + $0xdac] ss:$16 sps:$4 sm:$0xff]  }
 0x2b4   :  { %4517 = vmatpush2.bf16.msra.mxu1 %v7394_v24  ;;  %4477 = vmatprep.subr.bf16.mxu0 %v7399_v13  ;;  %v7468_v24 = vld [vmem:[#allocation8 + $0xfac] ss:$16 sps:$4 sm:$0xff]   ;;  %v7463_v13 = vld [vmem:[#allocation8 + $0xda8] ss:$16 sps:$4 sm:$0xff]  }
 0x2b5   :  { %4518 = vmatprep.subr.bf16.mxu1 %v7402_v47  ;;  %v7466_v47 = vld [vmem:[#allocation8 + $0xfa8] ss:$16 sps:$4 sm:$0xff]  }
 0x2b7   :  { %4478 = vmatpush2.bf16.msra.mxu0 %v7397_v14  ;;  %v7471_v14 = vld [vmem:[#allocation8 + $0xd8c] ss:$16 sps:$4 sm:$0xff]  }
 0x2b8   :  { %4519 = vmatpush2.bf16.msra.mxu1 %v7400_v16  ;;  %4529 = vmatprep.subr.bf16.mxu0 %v7405_v27  ;;  %v7474_v16 = vld [vmem:[#allocation8 + $0xf8c] ss:$16 sps:$4 sm:$0xff]   ;;  %v7469_v27 = vld [vmem:[#allocation8 + $0xd88] ss:$16 sps:$4 sm:$0xff]  }
 0x2b9   :  { %4570 = vmatprep.subr.bf16.mxu1 %v7408_v41  ;;  %v7472_v41 = vld [vmem:[#allocation8 + $0xf88] ss:$16 sps:$4 sm:$0xff]  }
 0x2ba   :  { %v4235_v25 = vpop.f32.mrf.mxu0  ;;  %4480 = vmatmul.mubr.bf16.vlgmr.msra.gmra.mxu0 %v8145_v1  ;;  %v4276_v29 = vpop.f32.mrf.mxu1 }
 0x2bb   :  { %v4236_v28 = vadd.f32 %v4235_v25, %v8191_v46  ;;  %4521 = vmatmul.mubr.bf16.vlgmr.msra.gmra.mxu1 %v8143_v62  ;;  %4530 = vmatpush1.bf16.msra.mxu0 %v7403_v21  ;;  %v7420_v46 = vld [vmem:[#allocation8 + $0xeac] ss:$16 sps:$4 sm:$0xff]   ;;  %v7478_v25 = vld [vmem:[#allocation8 + $0xf68] ss:$16 sps:$4 sm:$0xff]  }
 0x2bc   :  { %4561 = vmatprep.mubr.bf16.mxu0 %v8147_v2  ;;  %4571 = vmatpush1.bf16.msra.mxu1 %v7406_v20  ;;  %v8201_v31 = vpop.f32.mrf.mxu0  ;;  %v8206_v1 = vpop.f32.mrf.mxu1  ;;  %v7477_v21 = vld [vmem:[#allocation8 + $0xd6c] ss:$16 sps:$4 sm:$0xff]  }
 0x2bd   :  { %v8203_v35 = vadd.f32 %v4276_v29, %v4236_v28  ;;  %4602 = vmatprep.mubr.bf16.mxu1 %v8149_v3  ;;  %4531 = vmatprep.subr.bf16.mxu0 %v7411_v23  ;;  %v7424_v3 = vld [vmem:[#allocation8 + $0xe88] ss:$16 sps:$4 sm:$0xff]   ;;  %v7480_v20 = vld [vmem:[#allocation8 + $0xf6c] ss:$16 sps:$4 sm:$0xff]  }
 0x2be   :  { %v4239_v45 = vpop.f32.mrf.mxu0  ;;  %4572 = vmatprep.subr.bf16.mxu1 %v7414_v26  ;;  %v4280_v62 = vpop.f32.mrf.mxu1  ;;  %v7475_v23 = vld [vmem:[#allocation8 + $0xd68] ss:$16 sps:$4 sm:$0xff]   ;;  %v7483_v26 = vld [vmem:[#allocation8 + $0xd4c] ss:$16 sps:$4 sm:$0xff]  }
 0x2bf   :  { %4532 = vmatpush1.bf16.msra.mxu0 %v7409_v30  ;;  %v7486_v28 = vld [vmem:[#allocation8 + $0xf4c] ss:$16 sps:$4 sm:$0xff]   ;;  %v7481_v29 = vld [vmem:[#allocation8 + $0xd48] ss:$16 sps:$4 sm:$0xff]  }
 0x2c0   :  { %4573 = vmatpush1.bf16.msra.mxu1 %v7412_v32  ;;  %v4240_v2 = vpop.f32.mrf.mxu0  ;;  %4533 = vmatprep.subr.bf16.mxu0 %v7417_v34  ;;  %v4281_v48 = vpop.f32.mrf.mxu1  ;;  %v7484_v30 = vld [vmem:[#allocation8 + $0xf48] ss:$16 sps:$4 sm:$0xff]   ;;  %v7489_v32 = vld [vmem:[#allocation8 + $0xd2c] ss:$16 sps:$4 sm:$0xff]  }
 0x2c1   :  { %4574 = vmatprep.subr.bf16.mxu1 %v7420_v46  ;;  %v7492_v34 = vld [vmem:[#allocation8 + $0xf2c] ss:$16 sps:$4 sm:$0xff]   ;;  %v4238_v46 = vadd.f32 %v8201_v31, %v8195_v22  ;;  %v7487_v45 = vld [vmem:[#allocation8 + $0xd28] ss:$16 sps:$4 sm:$0xff]   ;;  %v1370_v48 = vrot.slane %v8155_v18, %v8031_v10  ;;  %v1374_v22 = vrot.slane %v8155_v18, %v8035_v11  ;;  %v7502_v18 = vld [vmem:[#allocation11 + $0xc0] ss:$16 sps:$4 sm:$0xff]  }
 0x2c2   :  { %v7490_v62 = vld [vmem:[#allocation8 + $0xf28] ss:$16 sps:$4 sm:$0xff]   ;;  %v7498_v2 = vld [vmem:[#allocation8 + $0xf0c] ss:$16 sps:$4 sm:$0xff]  }
 0x2c3   :  { %4534 = vmatpush1.bf16.msra.mxu0 %v7415_v40  ;;  %v7495_v40 = vld [vmem:[#allocation8 + $0xd0c] ss:$16 sps:$4 sm:$0xff]  }
 0x2c4   :  { %4575 = vmatpush1.bf16.msra.mxu1 %v7418_v54  ;;  %4535 = vmatprep.subr.bf16.mxu0 %v7423_v39  ;;  %v4279_v54 = vadd.f32 %v8206_v1, %v4238_v46  ;;  %v7493_v39 = vld [vmem:[#allocation8 + $0xd08] ss:$16 sps:$4 sm:$0xff]  }
 0x2c5   :  { %4576 = vmatprep.subr.bf16.mxu1 %v7426_v4  ;;  %v7496_v4 = vld [vmem:[#allocation8 + $0xf08] ss:$16 sps:$4 sm:$0xff]  }
 0x2c6   :  { %v4612_v31 = vmax.f32 %v4279_v54, 0.0  ;;  %v7504_v1 = vld [vmem:[#allocation11 + $0xc4] ss:$16 sps:$4 sm:$0xff]   ;;  %v7529_v54 = vld [vmem:[#allocation11 + $0x1a0] ss:$16 sps:$4 sm:$0xff]  }
 0x2c7   :  { %4536 = vmatpush1.bf16.msra.mxu0 %v7421_v43  ;;  %v7501_v43 = vld [vmem:[#allocation11 + $0xe4] ss:$16 sps:$4 sm:$0xff]  }
 0x2c8   :  { %4577 = vmatpush1.bf16.msra.mxu1 %v7424_v3  ;;  %4537 = vmatprep.subr.bf16.mxu0 %v7429_v33  ;;  %v1390_v3 = vrot.slane %v1370_v48, %v8029_v9  ;;  %v7499_v33 = vld [vmem:[#allocation11 + $0xe0] ss:$16 sps:$4 sm:$0xff]   ;;  %v7618_v46 = vld [vmem:[#allocation11 + $0x204] ss:$16 sps:$4 sm:$0xff]  }
 0x2c9   :  { %4578 = vmatprep.subr.bf16.mxu1 %v7432_v59  ;;  %v1394_v59 = vrot.slane %v1374_v22, %v8029_v9  ;;  %v7619_v48 = vld [vmem:[#allocation11 + $0x3e0] ss:$16 sps:$4 sm:$0xff]   ;;  %v7537_v22 = vld [vmem:[#allocation11 + $0x164] ss:$16 sps:$4 sm:$0xff]  }
 0x2cb   :  { %4538 = vmatpush1.bf16.msra.mxu0 %v7427_v44  ;;  %v8217_v44 = vpack.c.bf16 %v4612_v31, %v4612_v31  ;;  %v7622_v31 = vld [vmem:[#allocation11 + $0x3c0] ss:$16 sps:$4 sm:$0xff]  }
 0x2cc   :  { %4579 = vmatpush1.bf16.msra.mxu1 %v7430_v8  ;;  %4539 = vmatprep.subr.bf16.mxu0 %v7435_v58 }
 0x2cd   :  { %4580 = vmatprep.subr.bf16.mxu1 %v7438_v51 }
 0x2cf   :  { %4540 = vmatpush1.bf16.msra.mxu0 %v7433_v52 }
 0x2d0   :  { %4581 = vmatpush1.bf16.msra.mxu1 %v7436_v53  ;;  %4541 = vmatprep.subr.bf16.mxu0 %v7441_v19  ;;  %v7507_v53 = vld [vmem:[#allocation11 + $0xa4] ss:$16 sps:$4 sm:$0xff]  }
 0x2d1   :  { %4582 = vmatprep.subr.bf16.mxu1 %v7444_v15 }
 0x2d3   :  { %4542 = vmatpush1.bf16.msra.mxu0 %v7439_v56 }
 0x2d4   :  { %4583 = vmatpush1.bf16.msra.mxu1 %v7442_v57  ;;  %4543 = vmatprep.subr.bf16.mxu0 %v7447_v12 }
 0x2d5   :  { %4584 = vmatprep.subr.bf16.mxu1 %v7450_v60 }
 0x2d7   :  { %4544 = vmatpush1.bf16.msra.mxu0 %v7445_v61 }
 0x2d8   :  { %4585 = vmatpush1.bf16.msra.mxu1 %v7448_v42  ;;  %4545 = vmatprep.subr.bf16.mxu0 %v7453_v63  ;;  %v7595_v63 = vld [vmem:[#allocation11 + $0x2e0] ss:$16 sps:$4 sm:$0xff]  }
 0x2d9   :  { %4586 = vmatprep.subr.bf16.mxu1 %v7456_v49  ;;  %v7597_v49 = vld [vmem:[#allocation11 + $0x2e4] ss:$16 sps:$4 sm:$0xff]  }
 0x2db   :  { %4546 = vmatpush2.bf16.msra.mxu0 %v7451_v55  ;;  %v7600_v55 = vld [vmem:[#allocation11 + $0x2c4] ss:$16 sps:$4 sm:$0xff]  }
 0x2dc   :  { %4587 = vmatpush2.bf16.msra.mxu1 %v7454_v5  ;;  %4547 = vmatprep.subr.bf16.mxu0 %v7459_v17  ;;  %v7508_v5 = vld [vmem:[#allocation11 + $0x80] ss:$16 sps:$4 sm:$0xff]   ;;  %v7513_v17 = vld [vmem:[#allocation11 + $0x64] ss:$16 sps:$4 sm:$0xff]  }
 0x2dd   :  { %4588 = vmatprep.subr.bf16.mxu1 %v7462_v6  ;;  %v7598_v6 = vld [vmem:[#allocation11 + $0x2c0] ss:$16 sps:$4 sm:$0xff]  }
 0x2df   :  { %4548 = vmatpush2.bf16.msra.mxu0 %v7457_v36  ;;  %v7603_v36 = vld [vmem:[#allocation11 + $0x2a4] ss:$16 sps:$4 sm:$0xff]  }
 0x2e0   :  { %4589 = vmatpush2.bf16.msra.mxu1 %v7460_v7  ;;  %4549 = vmatprep.subr.bf16.mxu0 %v7465_v50  ;;  %v7511_v7 = vld [vmem:[#allocation11 + $0x60] ss:$16 sps:$4 sm:$0xff]   ;;  %v7516_v50 = vld [vmem:[#allocation11 + $0x44] ss:$16 sps:$4 sm:$0xff]  }
 0x2e1   :  { %4590 = vmatprep.subr.bf16.mxu1 %v7468_v24  ;;  %v7601_v24 = vld [vmem:[#allocation11 + $0x2a0] ss:$16 sps:$4 sm:$0xff]  }
 0x2e3   :  { %4550 = vmatpush2.bf16.msra.mxu0 %v7463_v13  ;;  %v7606_v13 = vld [vmem:[#allocation11 + $0x284] ss:$16 sps:$4 sm:$0xff]  }
 0x2e4   :  { %4591 = vmatpush2.bf16.msra.mxu1 %v7466_v47  ;;  %4551 = vmatprep.subr.bf16.mxu0 %v7471_v14  ;;  %v7514_v47 = vld [vmem:[#allocation11 + $0x40] ss:$16 sps:$4 sm:$0xff]   ;;  %v7519_v14 = vld [vmem:[#allocation11 + $0x24] ss:$16 sps:$4 sm:$0xff]  }
 0x2e5   :  { %4592 = vmatprep.subr.bf16.mxu1 %v7474_v16  ;;  %v7604_v16 = vld [vmem:[#allocation11 + $0x280] ss:$16 sps:$4 sm:$0xff]  }
 0x2e7   :  { %4552 = vmatpush2.bf16.msra.mxu0 %v7469_v27  ;;  %v7609_v27 = vld [vmem:[#allocation11 + $0x264] ss:$16 sps:$4 sm:$0xff]  }
 0x2e8   :  { %4593 = vmatpush2.bf16.msra.mxu1 %v7472_v41  ;;  %4553 = vmatprep.subr.bf16.mxu0 %v7477_v21  ;;  %v7517_v41 = vld [vmem:[#allocation11 + $0x20] ss:$16 sps:$4 sm:$0xff]   ;;  %v7522_v21 = vld [vmem:[#allocation11 + $0x4] ss:$16 sps:$4 sm:$0xff]  }
 0x2e9   :  { %4594 = vmatprep.subr.bf16.mxu1 %v7480_v20  ;;  %v7607_v20 = vld [vmem:[#allocation11 + $0x260] ss:$16 sps:$4 sm:$0xff]  }
 0x2eb   :  { %4554 = vmatpush2.bf16.msra.mxu0 %v7475_v23  ;;  %v7612_v23 = vld [vmem:[#allocation11 + $0x244] ss:$16 sps:$4 sm:$0xff]  }
 0x2ec   :  { %4595 = vmatpush2.bf16.msra.mxu1 %v7478_v25  ;;  %4555 = vmatprep.subr.bf16.mxu0 %v7483_v26  ;;  %v7520_v25 = vld [vmem:[#allocation11] ss:$16 sps:$4 sm:$0xff]   ;;  %v7525_v26 = vld [vmem:[#allocation11 + $0x1e4] ss:$16 sps:$4 sm:$0xff]  }
 0x2ed   :  { %4596 = vmatprep.subr.bf16.mxu1 %v7486_v28  ;;  %v7610_v28 = vld [vmem:[#allocation11 + $0x240] ss:$16 sps:$4 sm:$0xff]  }
 0x2ef   :  { %4556 = vmatpush2.bf16.msra.mxu0 %v7481_v29  ;;  %v7615_v29 = vld [vmem:[#allocation11 + $0x224] ss:$16 sps:$4 sm:$0xff]  }
 0x2f0   :  { %4597 = vmatpush2.bf16.msra.mxu1 %v7484_v30  ;;  %4557 = vmatprep.subr.bf16.mxu0 %v7489_v32  ;;  %v7523_v30 = vld [vmem:[#allocation11 + $0x1e0] ss:$16 sps:$4 sm:$0xff]   ;;  %v7528_v32 = vld [vmem:[#allocation11 + $0x1c4] ss:$16 sps:$4 sm:$0xff]  }
 0x2f1   :  { %4598 = vmatprep.subr.bf16.mxu1 %v7492_v34  ;;  %v7613_v34 = vld [vmem:[#allocation11 + $0x220] ss:$16 sps:$4 sm:$0xff]  }
 0x2f3   :  { %4558 = vmatpush2.bf16.msra.mxu0 %v7487_v45  ;;  %v7526_v45 = vld [vmem:[#allocation11 + $0x1c0] ss:$16 sps:$4 sm:$0xff]  }
 0x2f4   :  { %4599 = vmatpush2.bf16.msra.mxu1 %v7490_v62  ;;  %4559 = vmatprep.subr.bf16.mxu0 %v7495_v40  ;;  %v7531_v62 = vld [vmem:[#allocation11 + $0x1a4] ss:$16 sps:$4 sm:$0xff]   ;;  %v7616_v40 = vld [vmem:[#allocation11 + $0x200] ss:$16 sps:$4 sm:$0xff]  }
 0x2f5   :  { %4600 = vmatprep.subr.bf16.mxu1 %v7498_v2  ;;  %v7621_v2 = vld [vmem:[#allocation11 + $0x3e4] ss:$16 sps:$4 sm:$0xff]  }
 0x2f7   :  { %4560 = vmatpush2.bf16.msra.mxu0 %v7493_v39  ;;  %v7534_v39 = vld [vmem:[#allocation11 + $0x184] ss:$16 sps:$4 sm:$0xff]  }
 0x2f8   :  { %4601 = vmatpush2.bf16.msra.mxu1 %v7496_v4  ;;  %5426 = vmatprep.subr.bf16.mxu0 %v7501_v43  ;;  %v7624_v4 = vld [vmem:[#allocation11 + $0x3c4] ss:$16 sps:$4 sm:$0xff]   ;;  %v7532_v43 = vld [vmem:[#allocation11 + $0x180] ss:$16 sps:$4 sm:$0xff]  }
 0x2f9   :  { %5467 = vmatprep.subr.bf16.mxu1 %v7597_v49  ;;  %v7552_v49 = vld [vmem:[#allocation11 + $0xcc] ss:$16 sps:$4 sm:$0xff]  }
 0x2fa   :  { %v4317_v8 = vpop.f32.mrf.mxu0  ;;  %4562 = vmatmul.mubr.bf16.vlgmr.msra.gmra.mxu0 %v8164_v37  ;;  %v7505_v37 = vld [vmem:[#allocation11 + $0xa0] ss:$16 sps:$4 sm:$0xff]  }
 0x2fb   :  { %v4318_v58 = vadd.f32 %v4317_v8, %v1390_v3  ;;  %v4358_v51 = vpop.f32.mrf.mxu1  ;;  %4603 = vmatmul.mubr.bf16.vlgmr.msra.gmra.mxu1 %v8166_v38  ;;  %5427 = vmatpush1.bf16.msra.mxu0 %v7499_v33  ;;  %v7510_v38 = vld [vmem:[#allocation11 + $0x84] ss:$16 sps:$4 sm:$0xff]   ;;  %v7535_v33 = vld [vmem:[#allocation11 + $0x160] ss:$16 sps:$4 sm:$0xff]  }
 0x2fc   :  { %5458 = vmatprep.mubr.bf16.mxu0 %v8217_v44  ;;  %v4319_v52 = vpop.f32.mrf.mxu0  ;;  %5428 = vmatprep.subr.bf16.mxu0 %v7504_v1  ;;  %v7627_v3 = vld [vmem:[#allocation11 + $0x3a4] ss:$16 sps:$4 sm:$0xff]  }
 0x2fd   :  { %v8222_v19 = vadd.f32 %v4358_v51, %v4318_v58  ;;  %v4320_v15 = vadd.f32 %v4319_v52, %v1394_v59  ;;  %v4360_v56 = vpop.f32.mrf.mxu1  ;;  %5468 = vmatpush1.bf16.msra.mxu1 %v7595_v63  ;;  %v7540_v1 = vld [vmem:[#allocation11 + $0x144] ss:$16 sps:$4 sm:$0xff]   ;;  %v7625_v59 = vld [vmem:[#allocation11 + $0x3a0] ss:$16 sps:$4 sm:$0xff]  }
 0x2fe   :  { %v4321_v57 = vpop.f32.mrf.mxu0  ;;  %5469 = vmatprep.subr.bf16.mxu1 %v7600_v55  ;;  %v7630_v8 = vld [vmem:[#allocation11 + $0x384] ss:$16 sps:$4 sm:$0xff]   ;;  %v7538_v58 = vld [vmem:[#allocation11 + $0x140] ss:$16 sps:$4 sm:$0xff]  }
 0x2ff   :  { %v8224_v12 = vadd.f32 %v4360_v56, %v4320_v15  ;;  %v4362_v60 = vpop.f32.mrf.mxu1  ;;  %5429 = vmatpush1.bf16.msra.mxu0 %v7502_v18  ;;  %v7543_v51 = vld [vmem:[#allocation11 + $0x124] ss:$16 sps:$4 sm:$0xff]   ;;  %v7628_v18 = vld [vmem:[#allocation11 + $0x380] ss:$16 sps:$4 sm:$0xff]  }
 0x300   :  { %v4322_v61 = vpop.f32.mrf.mxu0  ;;  %5430 = vmatprep.subr.bf16.mxu0 %v7507_v53  ;;  %v7633_v52 = vld [vmem:[#allocation11 + $0x364] ss:$16 sps:$4 sm:$0xff]   ;;  %v7541_v53 = vld [vmem:[#allocation11 + $0x120] ss:$16 sps:$4 sm:$0xff]  }
 0x301   :  { %v4363_v42 = vpop.f32.mrf.mxu1  ;;  %5470 = vmatpush1.bf16.msra.mxu1 %v7598_v6  ;;  %v7546_v15 = vld [vmem:[#allocation11 + $0x104] ss:$16 sps:$4 sm:$0xff]   ;;  %v7631_v56 = vld [vmem:[#allocation11 + $0x360] ss:$16 sps:$4 sm:$0xff]   ;;  %v7549_v61 = vld [vmem:[#allocation11 + $0xec] ss:$16 sps:$4 sm:$0xff]  }
 0x302   :  { %5471 = vmatprep.subr.bf16.mxu1 %v7603_v36  ;;  %v7636_v57 = vld [vmem:[#allocation11 + $0x344] ss:$16 sps:$4 sm:$0xff]   ;;  %v7544_v60 = vld [vmem:[#allocation11 + $0x100] ss:$16 sps:$4 sm:$0xff]   ;;  %v7547_v42 = vld [vmem:[#allocation11 + $0xe8] ss:$16 sps:$4 sm:$0xff]  }
 0x303   :  { %5431 = vmatpush1.bf16.msra.mxu0 %v7505_v37  ;;  %v4611_v37 = vmax.f32 %v8203_v35, 0.0  ;;  %v7550_v35 = vld [vmem:[#allocation11 + $0xc8] ss:$16 sps:$4 sm:$0xff]   ;;  %v7555_v36 = vld [vmem:[#allocation11 + $0xac] ss:$16 sps:$4 sm:$0xff]  }
 0x304   :  { %5432 = vmatprep.subr.bf16.mxu0 %v7510_v38  ;;  %v7634_v38 = vld [vmem:[#allocation11 + $0x340] ss:$16 sps:$4 sm:$0xff]  }
 0x305   :  { %5472 = vmatpush1.bf16.msra.mxu1 %v7601_v24  ;;  %v8227_v63 = vpack.c.bf16 %v4611_v37, %v4611_v37 }
 0x306   :  { %5473 = vmatprep.subr.bf16.mxu1 %v7606_v13  ;;  %v7639_v13 = vld [vmem:[#allocation11 + $0x324] ss:$16 sps:$4 sm:$0xff]  }
 0x307   :  { %5433 = vmatpush1.bf16.msra.mxu0 %v7508_v5 }
 0x308   :  { %5434 = vmatprep.subr.bf16.mxu0 %v7513_v17 }
 0x309   :  { %5474 = vmatpush1.bf16.msra.mxu1 %v7604_v16 }
 0x30a   :  { %5475 = vmatprep.subr.bf16.mxu1 %v7609_v27 }
 0x30b   :  { %5435 = vmatpush1.bf16.msra.mxu0 %v7511_v7 }
 0x30c   :  { %5436 = vmatprep.subr.bf16.mxu0 %v7516_v50 }
 0x30d   :  { %5476 = vmatpush1.bf16.msra.mxu1 %v7607_v20  ;;  %v7642_v20 = vld [vmem:[#allocation11 + $0x304] ss:$16 sps:$4 sm:$0xff]  }
 0x30e   :  { %5477 = vmatprep.subr.bf16.mxu1 %v7612_v23  ;;  %v7640_v23 = vld [vmem:[#allocation11 + $0x300] ss:$16 sps:$4 sm:$0xff]  }
 0x30f   :  { %5437 = vmatpush1.bf16.msra.mxu0 %v7514_v47 }
 0x310   :  { %5438 = vmatprep.subr.bf16.mxu0 %v7519_v14  ;;  %v7637_v14 = vld [vmem:[#allocation11 + $0x320] ss:$16 sps:$4 sm:$0xff]  }
 0x311   :  { %5478 = vmatpush1.bf16.msra.mxu1 %v7610_v28  ;;  %v7559_v28 = vld [vmem:[#allocation11 + $0x68] ss:$16 sps:$4 sm:$0xff]  }
 0x312   :  { %5479 = vmatprep.subr.bf16.mxu1 %v7615_v29  ;;  %v7564_v29 = vld [vmem:[#allocation11 + $0x4c] ss:$16 sps:$4 sm:$0xff]  }
 0x313   :  { %5439 = vmatpush1.bf16.msra.mxu0 %v7517_v41 }
 0x314   :  { %5440 = vmatprep.subr.bf16.mxu0 %v7522_v21 }
 0x315   :  { %5480 = vmatpush1.bf16.msra.mxu1 %v7613_v34  ;;  %v7565_v34 = vld [vmem:[#allocation11 + $0x28] ss:$16 sps:$4 sm:$0xff]  }
 0x316   :  { %5481 = vmatprep.subr.bf16.mxu1 %v7618_v46  ;;  %v7570_v46 = vld [vmem:[#allocation11 + $0xc] ss:$16 sps:$4 sm:$0xff]  }
 0x317   :  { %5441 = vmatpush1.bf16.msra.mxu0 %v7520_v25  ;;  %v7556_v25 = vld [vmem:[#allocation11 + $0x88] ss:$16 sps:$4 sm:$0xff]  }
 0x318   :  { %5442 = vmatprep.subr.bf16.mxu0 %v7525_v26  ;;  %v7645_v26 = vld [vmem:[#allocation11 + $0x2ec] ss:$16 sps:$4 sm:$0xff]  }
 0x319   :  { %5482 = vmatpush1.bf16.msra.mxu1 %v7616_v40  ;;  %v7571_v40 = vld [vmem:[#allocation11 + $0x1e8] ss:$16 sps:$4 sm:$0xff]  }
 0x31a   :  { %5483 = vmatprep.subr.bf16.mxu1 %v7621_v2  ;;  %v7576_v2 = vld [vmem:[#allocation11 + $0x1cc] ss:$16 sps:$4 sm:$0xff]  }
 0x31b   :  { %5443 = vmatpush2.bf16.msra.mxu0 %v7523_v30  ;;  %v7562_v30 = vld [vmem:[#allocation11 + $0x48] ss:$16 sps:$4 sm:$0xff]  }
 0x31c   :  { %5444 = vmatprep.subr.bf16.mxu0 %v7528_v32  ;;  %v7567_v32 = vld [vmem:[#allocation11 + $0x2c] ss:$16 sps:$4 sm:$0xff]  }
 0x31d   :  { %5484 = vmatpush2.bf16.msra.mxu1 %v7619_v48  ;;  %v7577_v48 = vld [vmem:[#allocation11 + $0x1a8] ss:$16 sps:$4 sm:$0xff]  }
 0x31e   :  { %5485 = vmatprep.subr.bf16.mxu1 %v7624_v4  ;;  %v7582_v4 = vld [vmem:[#allocation11 + $0x18c] ss:$16 sps:$4 sm:$0xff]  }
 0x31f   :  { %5445 = vmatpush2.bf16.msra.mxu0 %v7526_v45  ;;  %v7568_v45 = vld [vmem:[#allocation11 + $0x8] ss:$16 sps:$4 sm:$0xff]  }
 0x320   :  { %5446 = vmatprep.subr.bf16.mxu0 %v7531_v62  ;;  %v7573_v62 = vld [vmem:[#allocation11 + $0x1ec] ss:$16 sps:$4 sm:$0xff]  }
 0x321   :  { %5486 = vmatpush2.bf16.msra.mxu1 %v7622_v31  ;;  %v7583_v31 = vld [vmem:[#allocation11 + $0x168] ss:$16 sps:$4 sm:$0xff]  }
 0x322   :  { %5487 = vmatprep.subr.bf16.mxu1 %v7627_v3  ;;  %v7588_v3 = vld [vmem:[#allocation11 + $0x14c] ss:$16 sps:$4 sm:$0xff]  }
 0x323   :  { %5447 = vmatpush2.bf16.msra.mxu0 %v7529_v54  ;;  %v7574_v54 = vld [vmem:[#allocation11 + $0x1c8] ss:$16 sps:$4 sm:$0xff]  }
 0x324   :  { %5448 = vmatprep.subr.bf16.mxu0 %v7534_v39  ;;  %v7579_v39 = vld [vmem:[#allocation11 + $0x1ac] ss:$16 sps:$4 sm:$0xff]  }
 0x325   :  { %5488 = vmatpush2.bf16.msra.mxu1 %v7625_v59  ;;  %v7589_v59 = vld [vmem:[#allocation11 + $0x128] ss:$16 sps:$4 sm:$0xff]  }
 0x326   :  { %5489 = vmatprep.subr.bf16.mxu1 %v7630_v8  ;;  %v7594_v8 = vld [vmem:[#allocation11 + $0x10c] ss:$16 sps:$4 sm:$0xff]  }
 0x327   :  { %5449 = vmatpush2.bf16.msra.mxu0 %v7532_v43  ;;  %v7580_v43 = vld [vmem:[#allocation11 + $0x188] ss:$16 sps:$4 sm:$0xff]  }
 0x328   :  { %5450 = vmatprep.subr.bf16.mxu0 %v7537_v22  ;;  %v7585_v22 = vld [vmem:[#allocation11 + $0x16c] ss:$16 sps:$4 sm:$0xff]  }
 0x329   :  { %5490 = vmatpush2.bf16.msra.mxu1 %v7628_v18 }
 0x32a   :  { %5491 = vmatprep.subr.bf16.mxu1 %v7633_v52 }
 0x32b   :  { %5451 = vmatpush2.bf16.msra.mxu0 %v7535_v33  ;;  %v7586_v33 = vld [vmem:[#allocation11 + $0x148] ss:$16 sps:$4 sm:$0xff]  }
 0x32c   :  { %5452 = vmatprep.subr.bf16.mxu0 %v7540_v1  ;;  %v7591_v1 = vld [vmem:[#allocation11 + $0x12c] ss:$16 sps:$4 sm:$0xff]  }
 0x32d   :  { %5492 = vmatpush2.bf16.msra.mxu1 %v7631_v56 }
 0x32e   :  { %5493 = vmatprep.subr.bf16.mxu1 %v7636_v57 }
 0x32f   :  { %5453 = vmatpush2.bf16.msra.mxu0 %v7538_v58  ;;  %v7592_v58 = vld [vmem:[#allocation11 + $0x108] ss:$16 sps:$4 sm:$0xff]  }
 0x330   :  { %5454 = vmatprep.subr.bf16.mxu0 %v7543_v51 }
 0x331   :  { %5494 = vmatpush2.bf16.msra.mxu1 %v7634_v38 }
 0x332   :  { %5495 = vmatprep.subr.bf16.mxu1 %v7639_v13 }
 0x333   :  { %5455 = vmatpush2.bf16.msra.mxu0 %v7541_v53 }
 0x334   :  { %5456 = vmatprep.subr.bf16.mxu0 %v7546_v15 }
 0x335   :  { %5496 = vmatpush2.bf16.msra.mxu1 %v7637_v14  ;;  %v7692_v14 = vld [vmem:[%s8362_s7 + $0x38] sm:$0xff]  }
 0x336   :  { %5497 = vmatprep.subr.bf16.mxu1 %v7642_v20  ;;  %v7648_v20 = vld [vmem:[#allocation11 + $0x2cc] ss:$16 sps:$4 sm:$0xff]  }
 0x337   :  { %5457 = vmatpush2.bf16.msra.mxu0 %v7544_v60 }
 0x338   :  { %5508 = vmatprep.subr.bf16.mxu0 %v7549_v61 }
 0x339   :  { %5498 = vmatpush2.bf16.msra.mxu1 %v7640_v23  ;;  %v7694_v23 = vld [vmem:[%s8362_s7 + $0x30] sm:$0xff]  }
 0x33a   :  { %v4399_v55 = vpop.f32.mrf.mxu0  ;;  %5459 = vmatmul.mubr.bf16.vlgmr.msra.gmra.mxu0 %v8227_v63  ;;  %5549 = vmatprep.subr.bf16.mxu1 %v7645_v26  ;;  %v7651_v26 = vld [vmem:[#allocation11 + $0x2ac] ss:$16 sps:$4 sm:$0xff]  }
 0x33b   :  { %v4400_v5 = vadd.f32 %v4399_v55, %v8222_v19  ;;  %v4440_v17 = vpop.f32.mrf.mxu1  ;;  %5509 = vmatpush1.bf16.msra.mxu0 %v7547_v42  ;;  %5540 = vmatprep.mubr.bf16.mxu0 %v8217_v44  ;;  %v7553_v19 = vld [vmem:[#allocation11 + $0xa8] ss:$16 sps:$4 sm:$0xff]   ;;  %v7558_v44 = vld [vmem:[#allocation11 + $0x8c] ss:$16 sps:$4 sm:$0xff]  }
 0x33c   :  { %v4401_v6 = vpop.f32.mrf.mxu0  ;;  %5510 = vmatprep.subr.bf16.mxu0 %v7552_v49 }
 0x33d   :  { %v8232_v7 = vadd.f32 %v4440_v17, %v4400_v5  ;;  %v4402_v50 = vadd.f32 %v4401_v6, %v8224_v12  ;;  %v4442_v24 = vpop.f32.mrf.mxu1  ;;  %v7561_v12 = vld [vmem:[#allocation11 + $0x6c] ss:$16 sps:$4 sm:$0xff]  }
 0x33e   :  { %v4403_v47 = vpop.f32.mrf.mxu0 }
 0x33f   :  { %v8235_v16 = vadd.f32 %v4442_v24, %v4402_v50  ;;  %v4444_v27 = vpop.f32.mrf.mxu1  ;;  %5511 = vmatpush1.bf16.msra.mxu0 %v7550_v35  ;;  %v7691_v47 = vld [vmem:[%s8362_s7 + $0x78] sm:$0xff]  }
 0x340   :  { %v4404_v41 = vpop.f32.mrf.mxu0  ;;  %5512 = vmatprep.subr.bf16.mxu0 %v7555_v36 }
 0x341   :  { %v4445_v21 = vpop.f32.mrf.mxu1 }
 0x343   :  { %5513 = vmatpush1.bf16.msra.mxu0 %v7553_v19 }
 0x344   :  { %5514 = vmatprep.subr.bf16.mxu0 %v7558_v44  ;;  %v7643_v44 = vld [vmem:[#allocation11 + $0x2e8] ss:$16 sps:$4 sm:$0xff]  }
 0x347   :  { %5515 = vmatpush1.bf16.msra.mxu0 %v7556_v25  ;;  %v7695_v25 = vld [vmem:[%s8362_s7 + $0x68] sm:$0xff]  }
 0x348   :  { %5516 = vmatprep.subr.bf16.mxu0 %v7561_v12  ;;  %v7646_v12 = vld [vmem:[#allocation11 + $0x2c8] ss:$16 sps:$4 sm:$0xff]  }
 0x34b   :  { %5517 = vmatpush1.bf16.msra.mxu0 %v7559_v28  ;;  %v7696_v28 = vld [vmem:[%s8362_s7 + $0x28] sm:$0xff]  }
 0x34c   :  { %5518 = vmatprep.subr.bf16.mxu0 %v7564_v29  ;;  %v7697_v29 = vld [vmem:[%s8362_s7 + $0x60] sm:$0xff]  }
 0x34f   :  { %5519 = vmatpush1.bf16.msra.mxu0 %v7562_v30  ;;  %v7649_v30 = vld [vmem:[#allocation11 + $0x2a8] ss:$16 sps:$4 sm:$0xff]  }
 0x350   :  { %5520 = vmatprep.subr.bf16.mxu0 %v7567_v32  ;;  %v7654_v32 = vld [vmem:[#allocation11 + $0x28c] ss:$16 sps:$4 sm:$0xff]  }
 0x353   :  { %5521 = vmatpush1.bf16.msra.mxu0 %v7565_v34  ;;  %v7698_v34 = vld [vmem:[%s8362_s7 + $0x20] sm:$0xff]  }
 0x354   :  { %5522 = vmatprep.subr.bf16.mxu0 %v7570_v46  ;;  %v7699_v46 = vld [vmem:[%s8362_s7 + $0x58] sm:$0xff]  }
 0x357   :  { %5523 = vmatpush1.bf16.msra.mxu0 %v7568_v45  ;;  %v7652_v45 = vld [vmem:[#allocation11 + $0x288] ss:$16 sps:$4 sm:$0xff]  }
 0x358   :  { %5524 = vmatprep.subr.bf16.mxu0 %v7573_v62  ;;  %v7657_v62 = vld [vmem:[#allocation11 + $0x26c] ss:$16 sps:$4 sm:$0xff]  }
 0x35b   :  { %5525 = vmatpush2.bf16.msra.mxu0 %v7571_v40  ;;  %v7700_v40 = vld [vmem:[%s8362_s7 + $0x18] sm:$0xff]  }
 0x35c   :  { %5526 = vmatprep.subr.bf16.mxu0 %v7576_v2  ;;  %v7701_v2 = vld [vmem:[%s8362_s7 + $0x50] sm:$0xff]  }
 0x35f   :  { %5527 = vmatpush2.bf16.msra.mxu0 %v7574_v54  ;;  %v7655_v54 = vld [vmem:[#allocation11 + $0x268] ss:$16 sps:$4 sm:$0xff]  }
 0x360   :  { %5528 = vmatprep.subr.bf16.mxu0 %v7579_v39  ;;  %v7660_v39 = vld [vmem:[#allocation11 + $0x24c] ss:$16 sps:$4 sm:$0xff]  }
 0x363   :  { %5529 = vmatpush2.bf16.msra.mxu0 %v7577_v48  ;;  %v7702_v48 = vld [vmem:[%s8362_s7 + $0x10] sm:$0xff]  }
 0x364   :  { %5530 = vmatprep.subr.bf16.mxu0 %v7582_v4  ;;  %v7658_v4 = vld [vmem:[#allocation11 + $0x248] ss:$16 sps:$4 sm:$0xff]  }
 0x367   :  { %5531 = vmatpush2.bf16.msra.mxu0 %v7580_v43  ;;  %v7663_v43 = vld [vmem:[#allocation11 + $0x22c] ss:$16 sps:$4 sm:$0xff]  }
 0x368   :  { %5532 = vmatprep.subr.bf16.mxu0 %v7585_v22  ;;  %v7661_v22 = vld [vmem:[#allocation11 + $0x228] ss:$16 sps:$4 sm:$0xff]  }
 0x36b   :  { %5533 = vmatpush2.bf16.msra.mxu0 %v7583_v31  ;;  %v7666_v31 = vld [vmem:[#allocation11 + $0x20c] ss:$16 sps:$4 sm:$0xff]  }
 0x36c   :  { %5534 = vmatprep.subr.bf16.mxu0 %v7588_v3  ;;  %v7664_v3 = vld [vmem:[#allocation11 + $0x208] ss:$16 sps:$4 sm:$0xff]  }
 0x36f   :  { %5535 = vmatpush2.bf16.msra.mxu0 %v7586_v33  ;;  %v7669_v33 = vld [vmem:[#allocation11 + $0x3ec] ss:$16 sps:$4 sm:$0xff]  }
 0x370   :  { %5536 = vmatprep.subr.bf16.mxu0 %v7591_v1  ;;  %v7667_v1 = vld [vmem:[#allocation11 + $0x3e8] ss:$16 sps:$4 sm:$0xff]  }
 0x373   :  { %5537 = vmatpush2.bf16.msra.mxu0 %v7589_v59  ;;  %v7672_v59 = vld [vmem:[#allocation11 + $0x3cc] ss:$16 sps:$4 sm:$0xff]  }
 0x374   :  { %5538 = vmatprep.subr.bf16.mxu0 %v7594_v8  ;;  %v7670_v8 = vld [vmem:[#allocation11 + $0x3c8] ss:$16 sps:$4 sm:$0xff]  }
 0x377   :  { %5539 = vmatpush2.bf16.msra.mxu0 %v7592_v58  ;;  %v7675_v58 = vld [vmem:[#allocation11 + $0x3ac] ss:$16 sps:$4 sm:$0xff]  }
 0x378   :  { %6673 = vmatprep.subr.bf16.mxu0 %v7691_v47  ;;  %v7712_v47 = vld [vmem:[%s8362_s7 + $0xa8] sm:$0xff]  }
 0x37a   :  { %v4481_v51 = vpop.f32.mrf.mxu0  ;;  %5541 = vmatmul.mubr.bf16.vlgmr.msra.gmra.mxu0 %v8227_v63 }
 0x37b   :  { %v4482_v18 = vadd.f32 %v4481_v51, %v8232_v7  ;;  %v4522_v52 = vpop.f32.mrf.mxu1  ;;  %6674 = vmatpush3.bf16.msra.mxu0 %v7692_v14  ;;  %v7673_v51 = vld [vmem:[#allocation11 + $0x3a8] ss:$16 sps:$4 sm:$0xff]  }
 0x37c   :  { %v4483_v53 = vpop.f32.mrf.mxu0  ;;  %v7713_v14 = vld [vmem:[%s8362_s7 + $0xe0] sm:$0xff]  }
 0x37d   :  { %v4523_v15 = vadd.f32 %v4522_v52, %v4482_v18  ;;  %v4524_v56 = vpop.f32.mrf.mxu1  ;;  %v4484_v38 = vadd.f32 %v4483_v53, %v8235_v16  ;;  %v7693_v16 = vld [vmem:[%s8362_s7 + $0x70] sm:$0xff]  }
 0x37e   :  { %v4485_v57 = vpop.f32.mrf.mxu0  ;;  %6675 = vmatprep.subr.bf16.mxu0 %v7693_v16  ;;  %v7678_v18 = vld [vmem:[#allocation11 + $0x38c] ss:$16 sps:$4 sm:$0xff]   ;;  %v7676_v52 = vld [vmem:[#allocation11 + $0x388] ss:$16 sps:$4 sm:$0xff]  }
 0x37f   :  { %v4526_v60 = vpop.f32.mrf.mxu1  ;;  %v4525_v49 = vadd.f32 %v4524_v56, %v4484_v38  ;;  %6676 = vmatpush3.bf16.msra.mxu0 %v7694_v23  ;;  %v7681_v53 = vld [vmem:[#allocation11 + $0x36c] ss:$16 sps:$4 sm:$0xff]   ;;  %v7682_v57 = vld [vmem:[#allocation11 + $0x348] ss:$16 sps:$4 sm:$0xff]  }
 0x380   :  { %v4486_v37 = vpop.f32.mrf.mxu0  ;;  %6677 = vmatprep.subr.bf16.mxu0 %v7695_v25  ;;  %v7684_v56 = vld [vmem:[#allocation11 + $0x34c] ss:$16 sps:$4 sm:$0xff]  }
 0x381   :  { %v4527_v61 = vpop.f32.mrf.mxu1  ;;  %v7687_v60 = vld [vmem:[#allocation11 + $0x32c] ss:$16 sps:$4 sm:$0xff]  }
 0x382   :  { %v7685_v61 = vld [vmem:[#allocation11 + $0x328] ss:$16 sps:$4 sm:$0xff]  }
 0x383   :  { %6678 = vmatpush3.bf16.msra.mxu0 %v7696_v28  ;;  %v7714_v16 = vld [vmem:[%s8362_s7 + $0xa0] sm:$0xff]  }
 0x384   :  { %6679 = vmatprep.subr.bf16.mxu0 %v7697_v29  ;;  %v7721_v28 = vld [vmem:[%s8362_s7 + $0xc0] sm:$0xff]  }
 0x385   :  { %v7722_v29 = vld [vmem:[%s8362_s7 + $0x80] sm:$0xff]  }
 0x387   :  { %6680 = vmatpush3.bf16.msra.mxu0 %v7698_v34 }
 0x388   :  { %6681 = vmatprep.subr.bf16.mxu0 %v7699_v46 }
 0x38b   :  { %6682 = vmatpush3.bf16.msra.mxu0 %v7700_v40 }
 0x38c   :  { %6683 = vmatprep.subr.bf16.mxu0 %v7701_v2 }
 0x38f   :  { %6684 = vmatpush3.bf16.msra.mxu0 %v7702_v48 }
 0x3ba   :  { %v4563_v42 = vpop.f32.mrf.mxu0 }
 0x3bb   :  { %v4564_v55 = vadd.f32 %v4563_v42, %v4523_v15  ;;  %v4604_v5 = vpop.f32.mrf.mxu1  ;;  %v7679_v15 = vld [vmem:[#allocation11 + $0x368] ss:$16 sps:$4 sm:$0xff]   ;;  %v7690_v42 = vld [vmem:[#allocation11 + $0x30c] ss:$16 sps:$4 sm:$0xff]  }
 0x3bc   :  { %v4565_v17 = vpop.f32.mrf.mxu0 }
 0x3bd   :  { %v4605_v35 = vadd.f32 %v4604_v5, %v4564_v55  ;;  %v4566_v6 = vadd.f32 %v4565_v17, %v4525_v49  ;;  %v4606_v63 = vpop.f32.mrf.mxu1  ;;  %v7688_v55 = vld [vmem:[#allocation11 + $0x308] ss:$16 sps:$4 sm:$0xff]  }
 0x3be   :  { %v4567_v36 = vpop.f32.mrf.mxu0  ;;  %v7703_v17 = vld [vmem:[%s8362_s7 + $0x48] sm:$0xff]  }
 0x3bf   :  { %v4607_v7 = vadd.f32 %v4606_v63, %v4566_v6  ;;  %v4608_v50 = vpop.f32.mrf.mxu1  ;;  %v4613_v24 = vmax.f32 %v4605_v35, 0.0  ;;  %v7704_v35 = vld [vmem:[%s8362_s7 + $0x8] sm:$0xff]   ;;  %6685 = vmatprep.subr.bf16.mxu0 %v7703_v17  ;;  %v7705_v6 = vld [vmem:[%s8362_s7 + $0x40] sm:$0xff]   ;;  %v7707_v36 = vld [vmem:[%s8362_s7 + $0xf8] sm:$0xff]  }
 0x3c0   :  { %v4568_v13 = vpop.f32.mrf.mxu0  ;;  %6686 = vmatpush3.bf16.msra.mxu0 %v7704_v35  ;;  %v7706_v63 = vld [vmem:[%s8362_s7] sm:$0xff]   ;;  %v7709_v50 = vld [vmem:[%s8362_s7 + $0xf0] sm:$0xff]  }
 0x3c1   :  { %v4614_v27 = vmax.f32 %v4607_v7, 0.0  ;;  %v4609_v19 = vpop.f32.mrf.mxu1  ;;  %v8249_v21 = vpack.c.bf16 %v4613_v24, %v4613_v24  ;;  %6687 = vmatprep.subr.bf16.mxu0 %v7705_v6  ;;  %v7708_v7 = vld [vmem:[%s8362_s7 + $0xb8] sm:$0xff]   ;;  %v7710_v24 = vld [vmem:[%s8362_s7 + $0xb0] sm:$0xff]   ;;  %v7711_v13 = vld [vmem:[%s8362_s7 + $0xe8] sm:$0xff]  }
 0x3c2   :  { %v7716_v19 = vld [vmem:[%s8362_s7 + $0x98] sm:$0xff]  }
 0x3c3   :  { %v4618_v41 = vpack.c.bf16 %v4614_v27, %v4614_v27  ;;  %v7715_v27 = vld [vmem:[%s8362_s7 + $0xd8] sm:$0xff]  }
 0x3c4   :  { %6688 = vmatpush3.bf16.msra.mxu0 %v7706_v63 }
 0x3c5   :  { %5499 = vmatprep.mubr.bf16.mxu1 %v4618_v41 }
 0x3c6   :  { %5500 = vmatmul.mubr.bf16.vlgmr.msra.gmra.mxu1 %v8249_v21 }
 0x3c7   :  { %5550 = vmatpush1.bf16.msra.mxu1 %v7643_v44  ;;  %5581 = vmatprep.mubr.bf16.mxu1 %v4618_v41  ;;  %v7717_v41 = vld [vmem:[%s8362_s7 + $0xd0] sm:$0xff]  }
 0x3c8   :  { %5551 = vmatprep.subr.bf16.mxu1 %v7648_v20  ;;  %v7718_v44 = vld [vmem:[%s8362_s7 + $0x90] sm:$0xff]  }
 0x3cb   :  { %5552 = vmatpush1.bf16.msra.mxu1 %v7646_v12  ;;  %v7719_v12 = vld [vmem:[%s8362_s7 + $0xc8] sm:$0xff]  }
 0x3cc   :  { %5553 = vmatprep.subr.bf16.mxu1 %v7651_v26  ;;  %v7720_v26 = vld [vmem:[%s8362_s7 + $0x88] sm:$0xff]   ;;  %s7928_s7 = smov [#allocation16]  }
 0x3cd   :  { %s5948_s30 = sshll.u32 %s7928_s7, 4  ;;  %s5949_s30 = int_to_ptr.vmem [resolvable:$true] %s5948_s30 }
 0x3ce   :  { %s7883_s10 = scalar_lea.vmem %s5949_s30, 32  ;;  %p7888_p13 = scmp.lt.s32.totalorder %s5949_s30, %s5949_s30 }
 0x3cf   :  { %5554 = vmatpush1.bf16.msra.mxu1 %v7649_v30  ;;  %v4747_v30 = vld [vmem:[#allocation13] sm:$0xf]  ;;  %p7884_p12 = scmp.ne.s32.totalorder %s5949_s30, %s7883_s10  ;;  %p7889_p0 = scmp.lt.s32.totalorder %s7883_s10, %s7883_s10 }
 0x3d0   :  { %5555 = vmatprep.subr.bf16.mxu1 %v7654_v32  ;;  %v4748_v32 = vunpack.c.l.bf16 %v4747_v30 }
 0x3d1   :  { %p7890_p1 = por %p7889_p0, %p7888_p13 }
 0x3d2   :  { %v4753_v34 = vrot.slane %v4748_v32, %v8029_v9  ;;  %v4757_v46 = vrot.slane %v4748_v32, %v8033_v0  ;;  %v4761_v0 = vrot.slane %v4748_v32, %v8031_v10 }
 0x3d3   :  { %5556 = vmatpush1.bf16.msra.mxu1 %v7652_v45  ;;  %p7891_p2 = pnand %p7890_p1, %p7884_p12 }
 0x3d4   :  { %5557 = vmatprep.subr.bf16.mxu1 %v7657_v62  ;;  %v4773_v45 = vrot.slane %v4753_v34, %v8029_v9  ;;  %v4777_v62 = vrot.slane %v4757_v46, %v8029_v9 }
 0x3d7   :  { %5558 = vmatpush1.bf16.msra.mxu1 %v7655_v54 }
 0x3d8   :  { %5559 = vmatprep.subr.bf16.mxu1 %v7660_v39 }
 0x3db   :  { %5560 = vmatpush1.bf16.msra.mxu1 %v7658_v4 }
 0x3dc   :  { %5561 = vmatprep.subr.bf16.mxu1 %v7663_v43 }
 0x3df   :  { %5562 = vmatpush1.bf16.msra.mxu1 %v7661_v22 }
 0x3e0   :  { %5563 = vmatprep.subr.bf16.mxu1 %v7666_v31 }
 0x3e3   :  { %5564 = vmatpush1.bf16.msra.mxu1 %v7664_v3 }
 0x3e4   :  { %5565 = vmatprep.subr.bf16.mxu1 %v7669_v33 }
 0x3e7   :  { %5566 = vmatpush2.bf16.msra.mxu1 %v7667_v1 }
 0x3e8   :  { %5567 = vmatprep.subr.bf16.mxu1 %v7672_v59  ;;  %v4765_v59 = vrot.slane %v4748_v32, %v8035_v11 }
 0x3eb   :  { %5568 = vmatpush2.bf16.msra.mxu1 %v7670_v8  ;;  %v4781_v8 = vrot.slane %v4761_v0, %v8029_v9 }
 0x3ec   :  { %5569 = vmatprep.subr.bf16.mxu1 %v7675_v58  ;;  %v4785_v58 = vrot.slane %v4765_v59, %v8029_v9 }
 0x3ef   :  { %5570 = vmatpush2.bf16.msra.mxu1 %v7673_v51 }
 0x3f0   :  { %5571 = vmatprep.subr.bf16.mxu1 %v7678_v18 }
 0x3f3   :  { %5572 = vmatpush2.bf16.msra.mxu1 %v7676_v52 }
 0x3f4   :  { %5573 = vmatprep.subr.bf16.mxu1 %v7681_v53 }
 0x3f7   :  { %5574 = vmatpush2.bf16.msra.mxu1 %v7679_v15 }
 0x3f8   :  { %5575 = vmatprep.subr.bf16.mxu1 %v7684_v56 }
 0x3fa   :  { %v8279_v37 = vpop.f32.mrf.mxu0 }
 0x3fb   :  { %5576 = vmatpush2.bf16.msra.mxu1 %v7682_v57  ;;  %v5461_v40 = vadd.f32 %v8279_v37, %v4773_v45 }
 0x3fc   :  { %v5462_v38 = vpop.f32.mrf.mxu0  ;;  %5577 = vmatprep.subr.bf16.mxu1 %v7687_v60 }
 0x3fd   :  { %v5463_v54 = vadd.f32 %v5462_v38, %v4777_v62 }
 0x3fe   :  { %v5464_v49 = vpop.f32.mrf.mxu0 }
 0x3ff   :  { %5578 = vmatpush2.bf16.msra.mxu1 %v7685_v61 }
 0x400   :  { %v5465_v5 = vpop.f32.mrf.mxu0  ;;  %5579 = vmatprep.subr.bf16.mxu1 %v7690_v42 }
 0x401   :  { %v5662_v5 = vld [vmem:[#allocation14] sm:$0x1] }
 0x402   :  { %v5663_v17 = vunpack.c.l.bf16 %v5662_v5 }
 0x403   :  { %5580 = vmatpush2.bf16.msra.mxu1 %v7688_v55 }
 0x404   :  { %6695 = vmatprep.subr.bf16.mxu1 %v7707_v36  ;;  %v5667_v35 = vrot.slane %v5663_v17, %v8029_v9 }
 0x406   :  { %5582 = vmatmul.mubr.bf16.vlgmr.msra.gmra.mxu1 %v8249_v21 }
 0x407   :  { %6696 = vmatpush3.bf16.msra.mxu1 %v7708_v7 }
 0x408   :  { %6697 = vmatprep.subr.bf16.mxu1 %v7709_v50 }
 0x40b   :  { %6698 = vmatpush3.bf16.msra.mxu1 %v7710_v24 }
 0x40c   :  { %6699 = vmatprep.subr.bf16.mxu1 %v7711_v13 }
 0x40f   :  { %6700 = vmatpush3.bf16.msra.mxu1 %v7712_v47 }
 0x410   :  { %6701 = vmatprep.subr.bf16.mxu1 %v7713_v14 }
 0x413   :  { %6702 = vmatpush3.bf16.msra.mxu1 %v7714_v16 }
 0x414   :  { %6703 = vmatprep.subr.bf16.mxu1 %v7715_v27 }
 0x417   :  { %6704 = vmatpush3.bf16.msra.mxu1 %v7716_v19 }
 0x418   :  { %6705 = vmatprep.subr.bf16.mxu1 %v7717_v41 }
 0x41b   :  { %6706 = vmatpush3.bf16.msra.mxu1 %v7718_v44 }
 0x41c   :  { %6707 = vmatprep.subr.bf16.mxu1 %v7719_v12 }
 0x41f   :  { %6708 = vmatpush3.bf16.msra.mxu1 %v7720_v26 }
 0x420   :  { %6709 = vmatprep.subr.bf16.mxu1 %v7721_v28 }
 0x423   :  { %6710 = vmatpush3.bf16.msra.mxu1 %v7722_v29 }
 0x43a   :  { %v5542_v21 = vpop.f32.mrf.mxu0 }
 0x43b   :  { %v5543_v51 = vadd.f32 %v5542_v21, %v4781_v8 }
 0x43c   :  { %v5544_v20 = vpop.f32.mrf.mxu0 }
 0x43d   :  { %v5545_v52 = vadd.f32 %v5544_v20, %v4785_v58 }
 0x43e   :  { %v5546_v23 = vpop.f32.mrf.mxu0 }
 0x440   :  { %v5547_v25 = vpop.f32.mrf.mxu0 }
 0x486   :  { %v5501_v2 = vpop.f32.mrf.mxu1 }
 0x487   :  { %v5502_v39 = vadd.f32 %v5501_v2, %v5461_v40 }
 0x488   :  { %v5503_v48 = vpop.f32.mrf.mxu1 }
 0x489   :  { %v5504_v4 = vadd.f32 %v5503_v48, %v5463_v54  ;;  %v5590_v43 = vmax.f32 %v5502_v39, 0.0 }
 0x48a   :  { %v5505_v22 = vpop.f32.mrf.mxu1 }
 0x48b   :  { %v5591_v31 = vmax.f32 %v5504_v4, 0.0  ;;  %v5594_v1 = vpack.c.bf16 %v5590_v43, %v5590_v43 }
 0x48c   :  { %v5506_v3 = vpop.f32.mrf.mxu1 }
 0x48d   :  { %v5595_v33 = vpack.c.bf16 %v5591_v31, %v5591_v31 }
 0x48f   :  { %5892 = vmatprep.mubr.bf16.mxu0 %v5595_v33 }
 0x490   :  { %5893 = vmatmul.mubr.bf16.vlgmr.msra.gmra.mxu0 %v5594_v1 }
 0x4c6   :  { %v5583_v18 = vpop.f32.mrf.mxu1 }
 0x4c7   :  { %v5584_v53 = vadd.f32 %v5583_v18, %v5543_v51 }
 0x4c8   :  { %v5585_v15 = vpop.f32.mrf.mxu1 }
 0x4c9   :  { %v5586_v56 = vadd.f32 %v5585_v15, %v5545_v52  ;;  %v5592_v57 = vmax.f32 %v5584_v53, 0.0 }
 0x4ca   :  { %v5587_v60 = vpop.f32.mrf.mxu1 }
 0x4cb   :  { %v5593_v37 = vmax.f32 %v5586_v56, 0.0  ;;  %v5596_v42 = vpack.c.bf16 %v5592_v57, %v5592_v57 }
 0x4cc   :  { %v5588_v61 = vpop.f32.mrf.mxu1 }
 0x4cd   :  { %v5597_v38 = vpack.c.bf16 %v5593_v37, %v5593_v37 }
 0x4cf   :  { %5932 = vmatprep.mubr.bf16.mxu1 %v5597_v38 }
 0x4d0   :  { %5933 = vmatmul.mubr.bf16.vlgmr.msra.gmra.mxu1 %v5596_v42 }
 0x550   :  { %v6689_v10 = vpop.f32.mrf.mxu0 }
 0x552   :  { %v6690_v11 = vpop.f32.mrf.mxu0 }
 0x553   :  { %v6691_v6 = vadd.f32 %v6690_v11, %v6689_v10 }
 0x554   :  { %v6692_v49 = vpop.f32.mrf.mxu0 }
 0x555   :  { %v5895_v7 = vadd.f32 %v6691_v6, %v5667_v35 }
 0x556   :  { %v6693_v55 = vpop.f32.mrf.mxu0 }
 0x590   :  { %v6711_v63 = vpop.f32.mrf.mxu1 }
 0x592   :  { %v6712_v36 = vpop.f32.mrf.mxu1 }
 0x593   :  { %v6713_v50 = vadd.f32 %v6712_v36, %v6711_v63 }
 0x594   :  { %v6714_v24 = vpop.f32.mrf.mxu1 }
 0x595   :  { %v5935_v13 = vadd.f32 %v6713_v50, %v5895_v7 }
 0x596   :  { %v6715_v47 = vpop.f32.mrf.mxu1 }
 0x597   :  { %5941 = vst.msk [vmem:[#allocation16] sm:$0x3] %vm5940_vm1, %v5935_v13 }
 0x598   :  { %7894 = shalt.err (!%p7891_p2)
}
 0x599   :  { %5951 = dma.vmem_to_hbm [thread:$0]  %s5949_s30, 32, %s8364_s9, [#allocation4]  }
 0x59a   :  { %7913 = dma.done.wait [#allocation4], 32  }
 0x59b   :  { %7914 = vsyncadd [#allocation4], 4294967264 }
 0x59c   :  { %5955 = vsyncpa [#allocation3], 1 }
 0x59d   :  { %5956 = vsyncpa [#allocation6], 1 }
 0x59e   :  { %5957 = vsyncpa [#allocation9], 1 }
 0x59f   :  { %5958 = vsyncpa [#allocation12], 1 }
 0x5a0   :  { %5959 = vsyncpa [#allocation15], 1 }
 0x5a1   :  { %5960 = vsyncpa [#allocation4], 1 }

// kernel: tpu_custom_call.1
= control target key start
LH: loop header
LB: loop body
LE: loop exit
PB: predicated region body
PF: predicated region fallthrough
CT: control target
= control target key end

     0   :  { %14 = vsyncpa [#allocation3], 0  ;;  %s8355_s0 = inlined_call_operand.hbm [shape: bf16[2,32], index: 0, kind: input, shape index: {}]   ;;  %s8356_s1 = inlined_call_operand.hbm [shape: bf16[32,2048], index: 1, kind: input, shape index: {}]   ;;  %s8357_s2 = inlined_call_operand.hbm [shape: bf16[1,2048], index: 2, kind: input, shape index: {}]   ;;  %s8358_s3 = inlined_call_operand.hbm [shape: bf16[2048,512], index: 3, kind: input, shape index: {}]   ;;  %s8359_s4 = inlined_call_operand.hbm [shape: bf16[1,512], index: 4, kind: input, shape index: {}]   ;;  %s8360_s5 = inlined_call_operand.hbm [shape: bf16[512,512], index: 5, kind: input, shape index: {}]   ;;  %s8361_s6 = inlined_call_operand.hbm [shape: bf16[1,512], index: 6, kind: input, shape index: {}]   ;;  %s8362_s7 = inlined_call_operand.vmem [shape: bf16[512,64], index: 7, kind: input, shape index: {}]   ;;  %s8363_s8 = inlined_call_operand.hbm [shape: bf16[1,64], index: 8, kind: input, shape index: {}]   ;;  %s8364_s9 = inlined_call_operand.hbm [shape: f32[2,64], index: 9, kind: output, shape index: {}]  }
   0x1   :  { %15 = vsyncpa [#allocation6], 0 }
   0x2   :  { %16 = vsyncpa [#allocation9], 0 }
   0x3   :  { %17 = vsyncpa [#allocation12], 0 }
   0x4   :  { %18 = vsyncpa [#allocation15], 0 }
   0x5   :  { %19 = vsyncpa [#allocation4], 0  ;;  %s7915_s30 = smov [#allocation5]  }
   0x6   :  { %s35_s10 = sshll.u32 %s7915_s30, 4  ;;  %s36_s10 = int_to_ptr.vmem [resolvable:$true] %s35_s10 }
   0x7   :  { %s7731_s11 = scalar_lea.vmem %s36_s10, 4096  ;;  %p7736_p1 = scmp.lt.s32.totalorder %s36_s10, %s36_s10 }
   0x8   :  { %p7732_p0 = scmp.ne.s32.totalorder %s36_s10, %s7731_s11  ;;  %p7737_p2 = scmp.lt.s32.totalorder %s7731_s11, %s7731_s11 }
   0xa   :  { %p7738_p3 = por %p7737_p2, %p7736_p1 }
   0xc   :  { %p7739_p4 = pnand %p7738_p3, %p7732_p0 }
   0xe   :  { %7742 = shalt.err (!%p7739_p4)
}
   0xf   :  { %s7916_s12 = smov 1024   ;;  %s7917_s13 = smov 64  }
  0x10   :  { %41 = dma.hbm_to_vmem [thread:$0]  %s8356_s1, 4096, %s36_s10, [#allocation6], %s7916_s12, %s7916_s12, %s7917_s13  }
  0x11   :  { %s7918_s16 = smov [#allocation8]  }
  0x12   :  { %s57_s17 = sshll.u32 %s7918_s16, 4  ;;  %s58_s17 = int_to_ptr.vmem [resolvable:$true] %s57_s17 }
  0x13   :  { %s7751_s18 = scalar_lea.vmem %s58_s17, 65536  ;;  %p7756_p6 = scmp.lt.s32.totalorder %s58_s17, %s58_s17 }
  0x14   :  { %p7752_p5 = scmp.ne.s32.totalorder %s58_s17, %s7751_s18  ;;  %p7757_p7 = scmp.lt.s32.totalorder %s7751_s18, %s7751_s18 }
  0x16   :  { %p7758_p8 = por %p7757_p7, %p7756_p6 }
  0x18   :  { %p7759_p9 = pnand %p7758_p8, %p7752_p5 }
  0x1a   :  { %7762 = shalt.err (!%p7759_p9)
}
  0x1b   :  { %s7919_s19 = smov 256   ;;  %s7920_s20 = smov 16  }
  0x1c   :  { %63 = dma.hbm_to_vmem [thread:$0]  %s8358_s3, 65536, %s58_s17, [#allocation9], %s7919_s19, %s7919_s19, %s7920_s20  }
  0x1d   :  { %s7921_s23 = smov [#allocation11]   ;;  %s7922_s25 = smov [#allocation2]  }
  0x1e   :  { %s79_s24 = sshll.u32 %s7921_s23, 4  ;;  %s26_s1 = sshll.u32 %s7922_s25, 4  ;;  %s80_s24 = int_to_ptr.vmem [resolvable:$true] %s79_s24  ;;  %s27_s1 = int_to_ptr.vmem [resolvable:$true] %s26_s1 }
  0x1f   :  { %s7771_s26 = scalar_lea.vmem %s80_s24, 16384  ;;  %p7776_p11 = scmp.lt.s32.totalorder %s80_s24, %s80_s24 }
  0x20   :  { %p7772_p10 = scmp.ne.s32.totalorder %s80_s24, %s7771_s26  ;;  %p7777_p12 = scmp.lt.s32.totalorder %s7771_s26, %s7771_s26 }
  0x22   :  { %p7778_p13 = por %p7777_p12, %p7776_p11 }
  0x24   :  { %p7779_p0 = pnand %p7778_p13, %p7772_p10 }
  0x26   :  { %7782 = shalt.err (!%p7779_p0)
}
  0x27   :  { %85 = dma.hbm_to_vmem [thread:$0]  %s8360_s5, 16384, %s80_s24, [#allocation12], %s7919_s19, %s7919_s19, %s7920_s20  }
  0x28   :  { %s7791_s29 = scalar_lea.vmem %s27_s1, 16  ;;  %s7795_s3 = scalar_lea.vmem %s27_s1, 32 }
  0x29   :  { %p7792_p1 = scmp.ne.s32.totalorder %s27_s1, %s7791_s29  ;;  %p7796_p2 = scmp.lt.s32.totalorder %s27_s1, %s27_s1 }
  0x2a   :  { %p7797_p3 = scmp.lt.s32.totalorder %s7795_s3, %s7791_s29 }
  0x2c   :  { %p7798_p4 = por %p7797_p3, %p7796_p2 }
  0x2e   :  { %p7799_p5 = pnand %p7798_p4, %p7792_p1 }
  0x30   :  { %7802 = shalt.err (!%p7799_p5)
}
  0x31   :  { %29 = dma.hbm_to_vmem [thread:$0]  %s8355_s0, 16, %s27_s1, [#allocation3]  }
  0x32   :  { %s7923_s11 = smov [#allocation7]   ;;  %s7924_s13 = smov [#allocation10]  }
  0x33   :  { %s48_s12 = sshll.u32 %s7923_s11, 4  ;;  %s70_s14 = sshll.u32 %s7924_s13, 4  ;;  %s49_s12 = int_to_ptr.vmem [resolvable:$true] %s48_s12  ;;  %s71_s14 = int_to_ptr.vmem [resolvable:$true] %s70_s14 }
  0x34   :  { %s7811_s15 = scalar_lea.vmem %s49_s12, 256  ;;  %p7816_p7 = scmp.lt.s32.totalorder %s49_s12, %s49_s12 }
  0x35   :  { %p7812_p6 = scmp.ne.s32.totalorder %s49_s12, %s7811_s15  ;;  %p7817_p8 = scmp.lt.s32.totalorder %s7811_s15, %s7811_s15 }
  0x37   :  { %p7818_p9 = por %p7817_p8, %p7816_p7 }
  0x39   :  { %p7819_p10 = pnand %p7818_p9, %p7812_p6 }
  0x3b   :  { %7822 = shalt.err (!%p7819_p10)
}
  0x3c   :  { %51 = dma.hbm_to_vmem [thread:$0]  %s8357_s2, 256, %s49_s12, [#allocation6]  }
  0x3d   :  { %s7831_s17 = scalar_lea.vmem %s71_s14, 64  ;;  %p7836_p12 = scmp.lt.s32.totalorder %s71_s14, %s71_s14 }
  0x3e   :  { %p7832_p11 = scmp.ne.s32.totalorder %s71_s14, %s7831_s17  ;;  %p7837_p13 = scmp.lt.s32.totalorder %s7831_s17, %s7831_s17 }
  0x40   :  { %p7838_p0 = por %p7837_p13, %p7836_p12 }
  0x42   :  { %p7839_p1 = pnand %p7838_p0, %p7832_p11 }
  0x44   :  { %7842 = shalt.err (!%p7839_p1)
}
  0x45   :  { %73 = dma.hbm_to_vmem [thread:$0]  %s8359_s4, 64, %s71_s14, [#allocation9]  }
  0x46   :  { %s7925_s19 = smov [#allocation13]   ;;  %s7926_s21 = smov [#allocation14]  }
  0x47   :  { %s92_s20 = sshll.u32 %s7925_s19, 4  ;;  %s104_s22 = sshll.u32 %s7926_s21, 4  ;;  %s93_s20 = int_to_ptr.vmem [resolvable:$true] %s92_s20  ;;  %s105_s22 = int_to_ptr.vmem [resolvable:$true] %s104_s22 }
  0x48   :  { %s7851_s23 = scalar_lea.vmem %s93_s20, 64  ;;  %p7856_p3 = scmp.lt.s32.totalorder %s93_s20, %s93_s20 }
  0x49   :  { %p7852_p2 = scmp.ne.s32.totalorder %s93_s20, %s7851_s23  ;;  %p7857_p4 = scmp.lt.s32.totalorder %s7851_s23, %s7851_s23 }
  0x4b   :  { %p7858_p5 = por %p7857_p4, %p7856_p3 }
  0x4d   :  { %p7859_p6 = pnand %p7858_p5, %p7852_p2 }
  0x4f   :  { %7862 = shalt.err (!%p7859_p6)
}
  0x50   :  { %95 = dma.hbm_to_vmem [thread:$0]  %s8361_s6, 64, %s93_s20, [#allocation12]  }
  0x51   :  { %s7871_s25 = scalar_lea.vmem %s105_s22, 16  ;;  %s7875_s4 = scalar_lea.vmem %s105_s22, 32 }
  0x52   :  { %p7872_p7 = scmp.ne.s32.totalorder %s105_s22, %s7871_s25  ;;  %p7876_p8 = scmp.lt.s32.totalorder %s105_s22, %s105_s22 }
  0x53   :  { %p7877_p9 = scmp.lt.s32.totalorder %s7875_s4, %s7871_s25 }
  0x55   :  { %p7878_p10 = por %p7877_p9, %p7876_p8 }
  0x57   :  { %p7879_p11 = pnand %p7878_p10, %p7872_p7 }
  0x59   :  { %7882 = shalt.err (!%p7879_p11)
}
  0x5a   :  { %107 = dma.hbm_to_vmem [thread:$0]  %s8363_s8, 16, %s105_s22, [#allocation15]  }
  0x5b   :  { %7903 = dma.done.wait [#allocation3], 16  }
  0x5c   :  { %7904 = vsyncadd [#allocation3], 4294967280 }
  0x5d   :  { %7905 = dma.done.wait [#allocation6], 4352  }
  0x5e   :  { %7906 = vsyncadd [#allocation6], 4294962944 }
  0x5f   :  { %7907 = dma.done.wait [#allocation9], 65600  }
  0x60   :  { %7908 = vsyncadd [#allocation9], 4294901696 }
  0x61   :  { %7909 = dma.done.wait [#allocation12], 16448  }
  0x62   :  { %7910 = vsyncadd [#allocation12], 4294950848 }
  0x63   :  { %7911 = dma.done.wait [#allocation15], 16  }
  0x64   :  { %7912 = vsyncadd [#allocation15], 4294967280  ;;  %v7927_v0 = vmov 0   ;;  %v150_v1 = vld [vmem:[#allocation5 + $0x80] sm:$0xff]  ;;  %v151_v3 = vld [vmem:[#allocation5 + $0x88] sm:$0xff]  ;;  %vm480_vm0 = vcmask 261120  }
  0x65   :  { %516 = vmatprep.mubr.bf16.mxu0 %v7927_v0  ;;  %557 = vmatprep.mubr.bf16.mxu1 %v7927_v0  ;;  %v158_v2 = vld [vmem:[#allocation5 + $0xc0] sm:$0xff]  ;;  %v159_v5 = vld [vmem:[#allocation5 + $0xc8] sm:$0xff]  ;;  %v152_v15 = vld [vmem:[#allocation5 + $0x90] sm:$0xff]  ;;  %vm5940_vm1 = vcmask 517120  }
  0x66   :  { %v5978_v4 = vcombine.high %v150_v1, %v158_v2  ;;  %v5977_v6 = vcombine.low %v150_v1, %v158_v2  ;;  %v134_v7 = vld [vmem:[#allocation5] sm:$0xff]  ;;  %v5980_v9 = vcombine.high %v151_v3, %v159_v5  ;;  %v5979_v10 = vcombine.low %v151_v3, %v159_v5  ;;  %v135_v12 = vld [vmem:[#allocation5 + $0x8] sm:$0xff]  ;;  %v160_v16 = vld [vmem:[#allocation5 + $0xd0] sm:$0xff] }
  0x67   :  { %v142_v8 = vld [vmem:[#allocation5 + $0x40] sm:$0xff]  ;;  %v143_v13 = vld [vmem:[#allocation5 + $0x48] sm:$0xff]  ;;  %v153_v17 = vld [vmem:[#allocation5 + $0x98] sm:$0xff]  ;;  %v5982_v21 = vcombine.high %v152_v15, %v160_v16  ;;  %v5981_v28 = vcombine.low %v152_v15, %v160_v16 }
  0x68   :  { %v5962_v11 = vcombine.high %v134_v7, %v142_v8  ;;  %496 = vmatprep.subr.bf16.mxu0 %v5978_v4  ;;  %v5964_v14 = vcombine.high %v135_v12, %v143_v13  ;;  %537 = vmatprep.subr.bf16.mxu1 %v5980_v9  ;;  %v5961_v18 = vcombine.low %v134_v7, %v142_v8  ;;  %v161_v19 = vld [vmem:[#allocation5 + $0xd8] sm:$0xff]  ;;  %v136_v23 = vld [vmem:[#allocation5 + $0x10] sm:$0xff]  ;;  %v154_v32 = vld [vmem:[#allocation5 + $0xa0] sm:$0xff] }
  0x69   :  { %497 = vmatpush1.bf16.msra.mxu0 %v5977_v6  ;;  %538 = vmatpush1.bf16.msra.mxu1 %v5979_v10  ;;  %v5963_v20 = vcombine.low %v135_v12, %v143_v13  ;;  %v5984_v22 = vcombine.high %v153_v17, %v161_v19  ;;  %v144_v24 = vld [vmem:[#allocation5 + $0x50] sm:$0xff]  ;;  %v137_v25 = vld [vmem:[#allocation5 + $0x18] sm:$0xff]  ;;  %v5983_v29 = vcombine.low %v153_v17, %v161_v19  ;;  %v162_v33 = vld [vmem:[#allocation5 + $0xe0] sm:$0xff] }
  0x6a   :  { %498 = vmatprep.subr.bf16.mxu0 %v5962_v11  ;;  %539 = vmatprep.subr.bf16.mxu1 %v5964_v14  ;;  %v145_v26 = vld [vmem:[#allocation5 + $0x58] sm:$0xff]  ;;  %v5966_v30 = vcombine.high %v136_v23, %v144_v24  ;;  %v155_v34 = vld [vmem:[#allocation5 + $0xa8] sm:$0xff]  ;;  %v5965_v36 = vcombine.low %v136_v23, %v144_v24  ;;  %v5986_v38 = vcombine.high %v154_v32, %v162_v33  ;;  %v138_v39 = vld [vmem:[#allocation5 + $0x20] sm:$0xff] }
  0x6b   :  { %v8005_v27 = vld [vmem:[#allocation2] sm:$0x1]  ;;  %v5968_v31 = vcombine.high %v137_v25, %v145_v26  ;;  %v163_v35 = vld [vmem:[#allocation5 + $0xe8] sm:$0xff]  ;;  %v5967_v37 = vcombine.low %v137_v25, %v145_v26  ;;  %v146_v41 = vld [vmem:[#allocation5 + $0x60] sm:$0xff]  ;;  %v5985_v44 = vcombine.low %v154_v32, %v162_v33 }
  0x6c   :  { %v5988_v40 = vcombine.high %v155_v34, %v163_v35  ;;  %v139_v42 = vld [vmem:[#allocation5 + $0x28] sm:$0xff]  ;;  %v5987_v45 = vcombine.low %v155_v34, %v163_v35  ;;  %v5970_v46 = vcombine.high %v138_v39, %v146_v41  ;;  %v156_v47 = vld [vmem:[#allocation5 + $0xb0] sm:$0xff]  ;;  %v157_v50 = vld [vmem:[#allocation5 + $0xb8] sm:$0xff]  ;;  %v5969_v52 = vcombine.low %v138_v39, %v146_v41 }
  0x6d   :  { %499 = vmatpush1.bf16.msra.mxu0 %v5961_v18  ;;  %540 = vmatpush1.bf16.msra.mxu1 %v5963_v20  ;;  %v147_v43 = vld [vmem:[#allocation5 + $0x68] sm:$0xff]  ;;  %v164_v49 = vld [vmem:[#allocation5 + $0xf0] sm:$0xff]  ;;  %v165_v51 = vld [vmem:[#allocation5 + $0xf8] sm:$0xff] }
  0x6e   :  { %578 = vmatprep.subr.bf16.mxu0 %v5982_v21  ;;  %619 = vmatprep.subr.bf16.mxu1 %v5984_v22  ;;  %v5972_v48 = vcombine.high %v139_v42, %v147_v43  ;;  %v5971_v53 = vcombine.low %v139_v42, %v147_v43  ;;  %v5990_v54 = vcombine.high %v156_v47, %v164_v49  ;;  %v140_v55 = vld [vmem:[#allocation5 + $0x30] sm:$0xff]  ;;  %v141_v58 = vld [vmem:[#allocation5 + $0x38] sm:$0xff] }
  0x6f   :  { %v5992_v56 = vcombine.high %v157_v50, %v165_v51  ;;  %v148_v57 = vld [vmem:[#allocation5 + $0x70] sm:$0xff]  ;;  %v149_v59 = vld [vmem:[#allocation5 + $0x78] sm:$0xff]  ;;  %v5989_v60 = vcombine.low %v156_v47, %v164_v49  ;;  %v5991_v61 = vcombine.low %v157_v50, %v165_v51 }
  0x70   :  { %5993 = vmatmul.mubr.msk.bf16.vlgmr.msra.gmra.mxu0 %vm480_vm0, %v8005_v27  ;;  %5994 = vmatmul.mubr.msk.bf16.vlgmr.msra.gmra.mxu1 %vm480_vm0, %v8005_v27  ;;  %v5974_v62 = vcombine.high %v140_v55, %v148_v57  ;;  %v5976_v63 = vcombine.high %v141_v58, %v149_v59  ;;  %v5973_v1 = vcombine.low %v140_v55, %v148_v57  ;;  %v6733_v3 = vld [vmem:[#allocation8 + $0xe4] ss:$16 sps:$4 sm:$0xff]   ;;  %v6731_v5 = vld [vmem:[#allocation8 + $0xe0] ss:$16 sps:$4 sm:$0xff]  }
  0x71   :  { %579 = vmatpush1.bf16.msra.mxu0 %v5981_v28  ;;  %620 = vmatpush1.bf16.msra.mxu1 %v5983_v29  ;;  %v5975_v2 = vcombine.low %v141_v58, %v149_v59  ;;  %v6736_v4 = vld [vmem:[#allocation8 + $0x2e4] ss:$16 sps:$4 sm:$0xff]   ;;  %v6734_v6 = vld [vmem:[#allocation8 + $0x2e0] ss:$16 sps:$4 sm:$0xff]  }
  0x72   :  { %580 = vmatprep.subr.bf16.mxu0 %v5966_v30  ;;  %621 = vmatprep.subr.bf16.mxu1 %v5968_v31  ;;  %v6739_v7 = vld [vmem:[#allocation8 + $0xc4] ss:$16 sps:$4 sm:$0xff]   ;;  %v6737_v9 = vld [vmem:[#allocation8 + $0xc0] ss:$16 sps:$4 sm:$0xff]  }
  0x73   :  { %598 = vmatprep.mubr.bf16.mxu0 %v7927_v0  ;;  %639 = vmatprep.mubr.bf16.mxu1 %v7927_v0  ;;  %v6742_v8 = vld [vmem:[#allocation8 + $0x2c4] ss:$16 sps:$4 sm:$0xff]   ;;  %v6740_v10 = vld [vmem:[#allocation8 + $0x2c0] ss:$16 sps:$4 sm:$0xff]  }
  0x74   :  { %v6748_v11 = vld [vmem:[#allocation8 + $0x2a4] ss:$16 sps:$4 sm:$0xff]   ;;  %v6743_v12 = vld [vmem:[#allocation8 + $0xa0] ss:$16 sps:$4 sm:$0xff]  }
  0x75   :  { %581 = vmatpush1.bf16.msra.mxu0 %v5965_v36  ;;  %622 = vmatpush1.bf16.msra.mxu1 %v5967_v37  ;;  %v6746_v13 = vld [vmem:[#allocation8 + $0x2a0] ss:$16 sps:$4 sm:$0xff]   ;;  %v6751_v14 = vld [vmem:[#allocation8 + $0x84] ss:$16 sps:$4 sm:$0xff]  }
  0x76   :  { %660 = vmatprep.subr.bf16.mxu0 %v5986_v38  ;;  %701 = vmatprep.subr.bf16.mxu1 %v5988_v40  ;;  %v6754_v15 = vld [vmem:[#allocation8 + $0x284] ss:$16 sps:$4 sm:$0xff]   ;;  %v6749_v16 = vld [vmem:[#allocation8 + $0x80] ss:$16 sps:$4 sm:$0xff]  }
  0x77   :  { %v6752_v17 = vld [vmem:[#allocation8 + $0x280] ss:$16 sps:$4 sm:$0xff]   ;;  %v6757_v18 = vld [vmem:[#allocation8 + $0x64] ss:$16 sps:$4 sm:$0xff]  }
  0x78   :  { %5995 = vmatmul.mubr.msk.bf16.vlgmr.msra.gmra.mxu0 %vm480_vm0, %v8005_v27  ;;  %5996 = vmatmul.mubr.msk.bf16.vlgmr.msra.gmra.mxu1 %vm480_vm0, %v8005_v27  ;;  %v6755_v19 = vld [vmem:[#allocation8 + $0x60] ss:$16 sps:$4 sm:$0xff]   ;;  %v6760_v20 = vld [vmem:[#allocation8 + $0x264] ss:$16 sps:$4 sm:$0xff]  }
  0x79   :  { %661 = vmatpush1.bf16.msra.mxu0 %v5985_v44  ;;  %702 = vmatpush1.bf16.msra.mxu1 %v5987_v45  ;;  %v6758_v21 = vld [vmem:[#allocation8 + $0x260] ss:$16 sps:$4 sm:$0xff]   ;;  %v6763_v22 = vld [vmem:[#allocation8 + $0x44] ss:$16 sps:$4 sm:$0xff]  }
  0x7a   :  { %662 = vmatprep.subr.bf16.mxu0 %v5970_v46  ;;  %703 = vmatprep.subr.bf16.mxu1 %v5972_v48  ;;  %v6766_v23 = vld [vmem:[#allocation8 + $0x244] ss:$16 sps:$4 sm:$0xff]   ;;  %v6761_v24 = vld [vmem:[#allocation8 + $0x40] ss:$16 sps:$4 sm:$0xff]  }
  0x7b   :  { %680 = vmatprep.mubr.bf16.mxu0 %v7927_v0  ;;  %721 = vmatprep.mubr.bf16.mxu1 %v7927_v0  ;;  %v6764_v25 = vld [vmem:[#allocation8 + $0x240] ss:$16 sps:$4 sm:$0xff]   ;;  %v6769_v26 = vld [vmem:[#allocation8 + $0x24] ss:$16 sps:$4 sm:$0xff]  }
  0x7c   :  { %v6767_v28 = vld [vmem:[#allocation8 + $0x20] ss:$16 sps:$4 sm:$0xff]   ;;  %v6775_v30 = vld [vmem:[#allocation8 + $0x4] ss:$16 sps:$4 sm:$0xff]  }
  0x7d   :  { %663 = vmatpush1.bf16.msra.mxu0 %v5969_v52  ;;  %704 = vmatpush1.bf16.msra.mxu1 %v5971_v53  ;;  %v6770_v29 = vld [vmem:[#allocation8 + $0x220] ss:$16 sps:$4 sm:$0xff]   ;;  %v6778_v31 = vld [vmem:[#allocation8 + $0x204] ss:$16 sps:$4 sm:$0xff]  }
  0x7e   :  { %742 = vmatprep.subr.bf16.mxu0 %v5990_v54  ;;  %783 = vmatprep.subr.bf16.mxu1 %v5992_v56  ;;  %v6773_v32 = vld [vmem:[#allocation8] ss:$16 sps:$4 sm:$0xff]   ;;  %v6781_v34 = vld [vmem:[#allocation8 + $0x1e4] ss:$16 sps:$4 sm:$0xff]  }
  0x7f   :  { %v6776_v33 = vld [vmem:[#allocation8 + $0x200] ss:$16 sps:$4 sm:$0xff]   ;;  %v6784_v35 = vld [vmem:[#allocation8 + $0x3e4] ss:$16 sps:$4 sm:$0xff]  }
  0x80   :  { %5997 = vmatmul.mubr.msk.bf16.vlgmr.msra.gmra.mxu0 %vm480_vm0, %v8005_v27  ;;  %5998 = vmatmul.mubr.msk.bf16.vlgmr.msra.gmra.mxu1 %vm480_vm0, %v8005_v27  ;;  %v6779_v36 = vld [vmem:[#allocation8 + $0x1e0] ss:$16 sps:$4 sm:$0xff]   ;;  %v6787_v38 = vld [vmem:[#allocation8 + $0x1c4] ss:$16 sps:$4 sm:$0xff]  }
  0x81   :  { %743 = vmatpush1.bf16.msra.mxu0 %v5989_v60  ;;  %784 = vmatpush1.bf16.msra.mxu1 %v5991_v61  ;;  %v6782_v37 = vld [vmem:[#allocation8 + $0x3e0] ss:$16 sps:$4 sm:$0xff]   ;;  %v6790_v39 = vld [vmem:[#allocation8 + $0x3c4] ss:$16 sps:$4 sm:$0xff]  }
  0x82   :  { %744 = vmatprep.subr.bf16.mxu0 %v5974_v62  ;;  %785 = vmatprep.subr.bf16.mxu1 %v5976_v63  ;;  %v6785_v40 = vld [vmem:[#allocation8 + $0x1c0] ss:$16 sps:$4 sm:$0xff]   ;;  %v6793_v42 = vld [vmem:[#allocation8 + $0x1a4] ss:$16 sps:$4 sm:$0xff]  }
  0x83   :  { %762 = vmatprep.mubr.bf16.mxu0 %v7927_v0  ;;  %803 = vmatprep.mubr.bf16.mxu1 %v7927_v0  ;;  %v6745_v0 = vld [vmem:[#allocation8 + $0xa4] ss:$16 sps:$4 sm:$0xff]   ;;  %v6788_v41 = vld [vmem:[#allocation8 + $0x3c0] ss:$16 sps:$4 sm:$0xff]  }
  0x84   :  { %v6796_v43 = vld [vmem:[#allocation8 + $0x3a4] ss:$16 sps:$4 sm:$0xff]   ;;  %v6791_v44 = vld [vmem:[#allocation8 + $0x1a0] ss:$16 sps:$4 sm:$0xff]  }
  0x85   :  { %745 = vmatpush1.bf16.msra.mxu0 %v5973_v1  ;;  %786 = vmatpush1.bf16.msra.mxu1 %v5975_v2  ;;  %v6794_v45 = vld [vmem:[#allocation8 + $0x3a0] ss:$16 sps:$4 sm:$0xff]   ;;  %v6799_v46 = vld [vmem:[#allocation8 + $0x184] ss:$16 sps:$4 sm:$0xff]  }
  0x86   :  { %3955 = vmatprep.subr.bf16.mxu0 %v6733_v3  ;;  %3996 = vmatprep.subr.bf16.mxu1 %v6736_v4  ;;  %v6802_v47 = vld [vmem:[#allocation8 + $0x384] ss:$16 sps:$4 sm:$0xff]   ;;  %v6797_v48 = vld [vmem:[#allocation8 + $0x180] ss:$16 sps:$4 sm:$0xff]  }
  0x87   :  { %v6800_v49 = vld [vmem:[#allocation8 + $0x380] ss:$16 sps:$4 sm:$0xff]   ;;  %v6805_v50 = vld [vmem:[#allocation8 + $0x164] ss:$16 sps:$4 sm:$0xff]  }
  0x88   :  { %5999 = vmatmul.mubr.msk.bf16.vlgmr.msra.gmra.mxu0 %vm480_vm0, %v8005_v27  ;;  %6000 = vmatmul.mubr.msk.bf16.vlgmr.msra.gmra.mxu1 %vm480_vm0, %v8005_v27  ;;  %v6772_v27 = vld [vmem:[#allocation8 + $0x224] ss:$16 sps:$4 sm:$0xff]   ;;  %v6803_v52 = vld [vmem:[#allocation8 + $0x160] ss:$16 sps:$4 sm:$0xff]  }
  0x89   :  { %3956 = vmatpush1.bf16.msra.mxu0 %v6731_v5  ;;  %3997 = vmatpush1.bf16.msra.mxu1 %v6734_v6  ;;  %v6808_v51 = vld [vmem:[#allocation8 + $0x364] ss:$16 sps:$4 sm:$0xff]   ;;  %v6806_v53 = vld [vmem:[#allocation8 + $0x360] ss:$16 sps:$4 sm:$0xff]   ;;  %v176_v5 = vlaneseq }
  0x8a   :  { %3957 = vmatprep.subr.bf16.mxu0 %v6739_v7  ;;  %3998 = vmatprep.subr.bf16.mxu1 %v6742_v8  ;;  %v6811_v54 = vld [vmem:[#allocation8 + $0x144] ss:$16 sps:$4 sm:$0xff]   ;;  %v6809_v56 = vld [vmem:[#allocation8 + $0x140] ss:$16 sps:$4 sm:$0xff]  }
  0x8b   :  { %v6814_v55 = vld [vmem:[#allocation8 + $0x344] ss:$16 sps:$4 sm:$0xff]   ;;  %v6812_v57 = vld [vmem:[#allocation8 + $0x340] ss:$16 sps:$4 sm:$0xff]   ;;  %v177_v7 = vshrl.u32 %v176_v5, 7 }
  0x8c   :  { %v6817_v58 = vld [vmem:[#allocation8 + $0x124] ss:$16 sps:$4 sm:$0xff]   ;;  %v6815_v60 = vld [vmem:[#allocation8 + $0x120] ss:$16 sps:$4 sm:$0xff]  }
  0x8d   :  { %3958 = vmatpush1.bf16.msra.mxu0 %v6737_v9  ;;  %3999 = vmatpush1.bf16.msra.mxu1 %v6740_v10  ;;  %v6820_v59 = vld [vmem:[#allocation8 + $0x324] ss:$16 sps:$4 sm:$0xff]   ;;  %v6818_v61 = vld [vmem:[#allocation8 + $0x320] ss:$16 sps:$4 sm:$0xff]   ;;  %v8029_v9 = vsub.s32 0, %v177_v7  ;;  %v8031_v10 = vsub.s32 4, %v177_v7 }
  0x8e   :  { %3959 = vmatprep.subr.bf16.mxu0 %v6745_v0  ;;  %4000 = vmatprep.subr.bf16.mxu1 %v6748_v11  ;;  %v6823_v62 = vld [vmem:[#allocation8 + $0x104] ss:$16 sps:$4 sm:$0xff]   ;;  %v6821_v1 = vld [vmem:[#allocation8 + $0x100] ss:$16 sps:$4 sm:$0xff]   ;;  %v8033_v0 = vsub.s32 2, %v177_v7  ;;  %v8035_v11 = vsub.s32 6, %v177_v7 }
  0x8f   :  { %v6826_v63 = vld [vmem:[#allocation8 + $0x304] ss:$16 sps:$4 sm:$0xff]   ;;  %v6824_v2 = vld [vmem:[#allocation8 + $0x300] ss:$16 sps:$4 sm:$0xff]  }
  0x90   :  { %v6829_v3 = vld [vmem:[#allocation8 + $0x4e4] ss:$16 sps:$4 sm:$0xff]  }
  0x91   :  { %3960 = vmatpush1.bf16.msra.mxu0 %v6743_v12  ;;  %4001 = vmatpush1.bf16.msra.mxu1 %v6746_v13  ;;  %v6832_v4 = vld [vmem:[#allocation8 + $0x6e4] ss:$16 sps:$4 sm:$0xff]  }
  0x92   :  { %3961 = vmatprep.subr.bf16.mxu0 %v6751_v14  ;;  %4002 = vmatprep.subr.bf16.mxu1 %v6754_v15  ;;  %v166_v6 = vld [vmem:[#allocation7] sm:$0xff] }
  0x93   :  { %v168_v8 = vunpack.c.l.bf16 %v166_v6  ;;  %v6847_v7 = vld [vmem:[#allocation8 + $0x484] ss:$16 sps:$4 sm:$0xff]  }
  0x95   :  { %3962 = vmatpush1.bf16.msra.mxu0 %v6749_v16  ;;  %4003 = vmatpush1.bf16.msra.mxu1 %v6752_v17  ;;  %v179_v12 = vrot.slane %v168_v8, %v8029_v9  ;;  %v187_v13 = vrot.slane %v168_v8, %v8031_v10  ;;  %v183_v14 = vrot.slane %v168_v8, %v8033_v0 }
  0x96   :  { %3963 = vmatprep.subr.bf16.mxu0 %v6757_v18  ;;  %4004 = vmatprep.subr.bf16.mxu1 %v6760_v20  ;;  %v191_v15 = vrot.slane %v168_v8, %v8035_v11 }
  0x97   :  { %v259_v16 = vrot.slane %v179_v12, %v8029_v9  ;;  %v267_v17 = vrot.slane %v187_v13, %v8029_v9  ;;  %v263_v18 = vrot.slane %v183_v14, %v8029_v9  ;;  %v6845_v13 = vld [vmem:[#allocation8 + $0x480] ss:$16 sps:$4 sm:$0xff]   ;;  %v6850_v14 = vld [vmem:[#allocation8 + $0x684] ss:$16 sps:$4 sm:$0xff]  }
  0x99   :  { %3964 = vmatpush1.bf16.msra.mxu0 %v6755_v19  ;;  %4005 = vmatpush1.bf16.msra.mxu1 %v6758_v21  ;;  %v8044_v19 = vunpack.c.h.bf16 %v166_v6  ;;  %v271_v21 = vrot.slane %v191_v15, %v8029_v9  ;;  %v6842_v6 = vld [vmem:[#allocation8 + $0x6a0] ss:$16 sps:$4 sm:$0xff]  }
  0x9a   :  { %3965 = vmatprep.subr.bf16.mxu0 %v6763_v22  ;;  %4006 = vmatprep.subr.bf16.mxu1 %v6766_v23 }
  0x9d   :  { %3966 = vmatpush1.bf16.msra.mxu0 %v6761_v24  ;;  %4007 = vmatpush1.bf16.msra.mxu1 %v6764_v25 }
  0x9e   :  { %3967 = vmatprep.subr.bf16.mxu0 %v6769_v26  ;;  %4008 = vmatprep.subr.bf16.mxu1 %v6772_v27 }
  0xa1   :  { %3968 = vmatpush1.bf16.msra.mxu0 %v6767_v28  ;;  %4009 = vmatpush1.bf16.msra.mxu1 %v6770_v29  ;;  %v199_v28 = vrot.slane %v8044_v19, %v8033_v0 }
  0xa2   :  { %3969 = vmatprep.subr.bf16.mxu0 %v6775_v30  ;;  %4010 = vmatprep.subr.bf16.mxu1 %v6778_v31 }
  0xa5   :  { %3970 = vmatpush1.bf16.msra.mxu0 %v6773_v32  ;;  %4011 = vmatpush1.bf16.msra.mxu1 %v6776_v33  ;;  %v207_v33 = vrot.slane %v8044_v19, %v8035_v11 }
  0xa6   :  { %3971 = vmatprep.subr.bf16.mxu0 %v6781_v34  ;;  %4012 = vmatprep.subr.bf16.mxu1 %v6784_v35 }
  0xa9   :  { %3972 = vmatpush2.bf16.msra.mxu0 %v6779_v36  ;;  %4013 = vmatpush2.bf16.msra.mxu1 %v6782_v37  ;;  %v6827_v36 = vld [vmem:[#allocation8 + $0x4e0] ss:$16 sps:$4 sm:$0xff]  }
  0xaa   :  { %3973 = vmatprep.subr.bf16.mxu0 %v6787_v38  ;;  %4014 = vmatprep.subr.bf16.mxu1 %v6790_v39  ;;  %v6830_v39 = vld [vmem:[#allocation8 + $0x6e0] ss:$16 sps:$4 sm:$0xff]  }
  0xad   :  { %3974 = vmatpush2.bf16.msra.mxu0 %v6785_v40  ;;  %4015 = vmatpush2.bf16.msra.mxu1 %v6788_v41  ;;  %v6835_v40 = vld [vmem:[#allocation8 + $0x4c4] ss:$16 sps:$4 sm:$0xff]  }
  0xae   :  { %3975 = vmatprep.subr.bf16.mxu0 %v6793_v42  ;;  %4016 = vmatprep.subr.bf16.mxu1 %v6796_v43 }
  0xb1   :  { %3976 = vmatpush2.bf16.msra.mxu0 %v6791_v44  ;;  %4017 = vmatpush2.bf16.msra.mxu1 %v6794_v45  ;;  %v279_v44 = vrot.slane %v199_v28, %v8029_v9 }
  0xb2   :  { %3977 = vmatprep.subr.bf16.mxu0 %v6799_v46  ;;  %4018 = vmatprep.subr.bf16.mxu1 %v6802_v47 }
  0xb5   :  { %3978 = vmatpush2.bf16.msra.mxu0 %v6797_v48  ;;  %4019 = vmatpush2.bf16.msra.mxu1 %v6800_v49  ;;  %v287_v48 = vrot.slane %v207_v33, %v8029_v9  ;;  %v6838_v49 = vld [vmem:[#allocation8 + $0x6c4] ss:$16 sps:$4 sm:$0xff]  }
  0xb6   :  { %3979 = vmatprep.subr.bf16.mxu0 %v6805_v50  ;;  %4020 = vmatprep.subr.bf16.mxu1 %v6808_v51  ;;  %v6833_v51 = vld [vmem:[#allocation8 + $0x4c0] ss:$16 sps:$4 sm:$0xff]  }
  0xb9   :  { %3980 = vmatpush2.bf16.msra.mxu0 %v6803_v52  ;;  %4021 = vmatpush2.bf16.msra.mxu1 %v6806_v53  ;;  %v6836_v52 = vld [vmem:[#allocation8 + $0x6c0] ss:$16 sps:$4 sm:$0xff]  }
  0xba   :  { %3981 = vmatprep.subr.bf16.mxu0 %v6811_v54  ;;  %4022 = vmatprep.subr.bf16.mxu1 %v6814_v55 }
  0xbd   :  { %3982 = vmatpush2.bf16.msra.mxu0 %v6809_v56  ;;  %4023 = vmatpush2.bf16.msra.mxu1 %v6812_v57  ;;  %v6841_v56 = vld [vmem:[#allocation8 + $0x4a4] ss:$16 sps:$4 sm:$0xff]  }
  0xbe   :  { %3983 = vmatprep.subr.bf16.mxu0 %v6817_v58  ;;  %4024 = vmatprep.subr.bf16.mxu1 %v6820_v59  ;;  %v8069_v59 = vld [vmem:[#allocation7 + $0x8] sm:$0xff] }
  0xc1   :  { %3984 = vmatpush2.bf16.msra.mxu0 %v6815_v60  ;;  %4025 = vmatpush2.bf16.msra.mxu1 %v6818_v61  ;;  %v6839_v60 = vld [vmem:[#allocation8 + $0x4a0] ss:$16 sps:$4 sm:$0xff]   ;;  %v6844_v61 = vld [vmem:[#allocation8 + $0x6a4] ss:$16 sps:$4 sm:$0xff]  }
  0xc2   :  { %3985 = vmatprep.subr.bf16.mxu0 %v6823_v62  ;;  %4026 = vmatprep.subr.bf16.mxu1 %v6826_v63 }
  0xc5   :  { %3986 = vmatpush2.bf16.msra.mxu0 %v6821_v1  ;;  %4027 = vmatpush2.bf16.msra.mxu1 %v6824_v2  ;;  %v171_v1 = vunpack.c.h.bf16 %v8069_v59 }
  0xc6   :  { %4037 = vmatprep.subr.bf16.mxu0 %v6829_v3  ;;  %4078 = vmatprep.subr.bf16.mxu1 %v6832_v4 }
 0x130   :  { %v518_v20 = vpop.f32.mrf.mxu0  ;;  %v559_v23 = vpop.f32.mrf.mxu1 }
 0x131   :  { %v519_v22 = vadd.f32 %v518_v20, %v259_v16  ;;  %v560_v24 = vadd.f32 %v559_v23, %v267_v17  ;;  %v227_v16 = vrot.slane %v171_v1, %v8029_v9  ;;  %v6853_v23 = vld [vmem:[#allocation8 + $0x464] ss:$16 sps:$4 sm:$0xff]  }
 0x132   :  { %v520_v25 = vpop.f32.mrf.mxu0  ;;  %v561_v27 = vpop.f32.mrf.mxu1 }
 0x133   :  { %v521_v26 = vadd.f32 %v520_v25, %v263_v18  ;;  %v812_v29 = vmax.f32 %v519_v22, 0.0  ;;  %v814_v30 = vmax.f32 %v560_v24, 0.0  ;;  %v562_v31 = vadd.f32 %v561_v27, %v271_v21  ;;  %v6848_v22 = vld [vmem:[#allocation8 + $0x680] ss:$16 sps:$4 sm:$0xff]   ;;  %v6856_v27 = vld [vmem:[#allocation8 + $0x664] ss:$16 sps:$4 sm:$0xff]  }
 0x134   :  { %v522_v32 = vpop.f32.mrf.mxu0  ;;  %v563_v35 = vpop.f32.mrf.mxu1  ;;  %v235_v18 = vrot.slane %v171_v1, %v8031_v10  ;;  %v231_v21 = vrot.slane %v171_v1, %v8033_v0  ;;  %v239_v25 = vrot.slane %v171_v1, %v8035_v11  ;;  %v6869_v1 = vld [vmem:[#allocation8 + $0x400] ss:$16 sps:$4 sm:$0xff]  }
 0x135   :  { %v813_v34 = vmax.f32 %v521_v26, 0.0  ;;  %v815_v37 = vmax.f32 %v562_v31, 0.0  ;;  %v8051_v41 = vpack.c.bf16 %v814_v30, %v814_v30  ;;  %v8056_v45 = vpack.c.bf16 %v812_v29, %v812_v29  ;;  %v6851_v26 = vld [vmem:[#allocation8 + $0x460] ss:$16 sps:$4 sm:$0xff]   ;;  %v6859_v35 = vld [vmem:[#allocation8 + $0x444] ss:$16 sps:$4 sm:$0xff]  }
 0x136   :  { %v523_v38 = vpop.f32.mrf.mxu0  ;;  %v564_v43 = vpop.f32.mrf.mxu1  ;;  %v307_v29 = vrot.slane %v227_v16, %v8029_v9  ;;  %v315_v31 = vrot.slane %v235_v18, %v8029_v9  ;;  %v311_v33 = vrot.slane %v231_v21, %v8029_v9  ;;  %v6881_v16 = vld [vmem:[#allocation8 + $0x5c0] ss:$16 sps:$4 sm:$0xff]   ;;  %v6886_v18 = vld [vmem:[#allocation8 + $0x7c4] ss:$16 sps:$4 sm:$0xff]  }
 0x137   :  { %v8053_v42 = vpack.c.bf16 %v813_v34, %v813_v34  ;;  %v8058_v46 = vpack.c.bf16 %v815_v37, %v815_v37  ;;  %v6854_v34 = vld [vmem:[#allocation8 + $0x660] ss:$16 sps:$4 sm:$0xff]   ;;  %v319_v37 = vrot.slane %v239_v25, %v8029_v9 }
 0x138   :  { %v8060_v47 = vpop.f32.mrf.mxu0  ;;  %v8064_v50 = vpop.f32.mrf.mxu1  ;;  %v6857_v38 = vld [vmem:[#allocation8 + $0x440] ss:$16 sps:$4 sm:$0xff]  }
 0x139   :  { %3987 = vmatprep.mubr.bf16.mxu0 %v8053_v42  ;;  %4028 = vmatprep.mubr.bf16.mxu1 %v8058_v46  ;;  %v6884_v21 = vld [vmem:[#allocation8 + $0x7c0] ss:$16 sps:$4 sm:$0xff]  }
 0x13a   :  { %3988 = vmatmul.mubr.bf16.vlgmr.msra.gmra.mxu0 %v8056_v45  ;;  %v602_v53 = vpop.f32.mrf.mxu0  ;;  %4029 = vmatmul.mubr.bf16.vlgmr.msra.gmra.mxu1 %v8051_v41  ;;  %v643_v55 = vpop.f32.mrf.mxu1  ;;  %v6890_v25 = vld [vmem:[#allocation8 + $0x7a0] ss:$16 sps:$4 sm:$0xff]  }
 0x13b   :  { %4038 = vmatpush1.bf16.msra.mxu0 %v6827_v36  ;;  %v603_v54 = vadd.f32 %v602_v53, %v279_v44  ;;  %4079 = vmatpush1.bf16.msra.mxu1 %v6830_v39  ;;  %v644_v58 = vadd.f32 %v643_v55, %v287_v48  ;;  %v6862_v39 = vld [vmem:[#allocation8 + $0x644] ss:$16 sps:$4 sm:$0xff]  }
 0x13c   :  { %4039 = vmatprep.subr.bf16.mxu0 %v6835_v40  ;;  %v604_v57 = vpop.f32.mrf.mxu0  ;;  %4080 = vmatprep.subr.bf16.mxu1 %v6838_v49  ;;  %v645_v63 = vpop.f32.mrf.mxu1  ;;  %v6865_v53 = vld [vmem:[#allocation8 + $0x424] ss:$16 sps:$4 sm:$0xff]  }
 0x13d   :  { %v817_v62 = vmax.f32 %v603_v54, 0.0  ;;  %v819_v2 = vmax.f32 %v644_v58, 0.0  ;;  %v6868_v57 = vld [vmem:[#allocation8 + $0x624] ss:$16 sps:$4 sm:$0xff]  }
 0x13e   :  { %v605_v3 = vpop.f32.mrf.mxu0  ;;  %v646_v5 = vpop.f32.mrf.mxu1  ;;  %v6871_v63 = vld [vmem:[#allocation8 + $0x404] ss:$16 sps:$4 sm:$0xff]  }
 0x13f   :  { %4040 = vmatpush1.bf16.msra.mxu0 %v6833_v51  ;;  %v8072_v4 = vpack.c.bf16 %v817_v62, %v817_v62  ;;  %4081 = vmatpush1.bf16.msra.mxu1 %v6836_v52  ;;  %v8074_v8 = vpack.c.bf16 %v819_v2, %v819_v2  ;;  %v6860_v52 = vld [vmem:[#allocation8 + $0x640] ss:$16 sps:$4 sm:$0xff]   ;;  %v6874_v2 = vld [vmem:[#allocation8 + $0x604] ss:$16 sps:$4 sm:$0xff]  }
 0x140   :  { %4041 = vmatprep.subr.bf16.mxu0 %v6841_v56  ;;  %v8076_v12 = vpop.f32.mrf.mxu0  ;;  %4082 = vmatprep.subr.bf16.mxu1 %v6844_v61  ;;  %v8079_v15 = vpop.f32.mrf.mxu1  ;;  %v6863_v56 = vld [vmem:[#allocation8 + $0x420] ss:$16 sps:$4 sm:$0xff]   ;;  %v6877_v5 = vld [vmem:[#allocation8 + $0x5e4] ss:$16 sps:$4 sm:$0xff]  }
 0x141   :  { %4069 = vmatprep.mubr.bf16.mxu0 %v8072_v4  ;;  %4110 = vmatprep.mubr.bf16.mxu1 %v8074_v8  ;;  %v6866_v62 = vld [vmem:[#allocation8 + $0x620] ss:$16 sps:$4 sm:$0xff]  }
 0x142   :  { %v8083_v17 = vpop.f32.mrf.mxu0  ;;  %v8086_v20 = vpop.f32.mrf.mxu1  ;;  %v6872_v3 = vld [vmem:[#allocation8 + $0x600] ss:$16 sps:$4 sm:$0xff]  }
 0x143   :  { %4042 = vmatpush1.bf16.msra.mxu0 %v6839_v60  ;;  %4083 = vmatpush1.bf16.msra.mxu1 %v6842_v6  ;;  %v6875_v6 = vld [vmem:[#allocation8 + $0x5e0] ss:$16 sps:$4 sm:$0xff]  }
 0x144   :  { %4043 = vmatprep.subr.bf16.mxu0 %v6847_v7  ;;  %v686_v24 = vpop.f32.mrf.mxu0  ;;  %4084 = vmatprep.subr.bf16.mxu1 %v6850_v14  ;;  %v727_v28 = vpop.f32.mrf.mxu1  ;;  %v6880_v7 = vld [vmem:[#allocation8 + $0x7e4] ss:$16 sps:$4 sm:$0xff]  }
 0x145   :  { %v6883_v14 = vld [vmem:[#allocation8 + $0x5c4] ss:$16 sps:$4 sm:$0xff]  }
 0x146   :  { %v687_v30 = vpop.f32.mrf.mxu0  ;;  %v728_v32 = vpop.f32.mrf.mxu1  ;;  %v6892_v24 = vld [vmem:[#allocation8 + $0x7a4] ss:$16 sps:$4 sm:$0xff]  }
 0x147   :  { %4044 = vmatpush1.bf16.msra.mxu0 %v6845_v13  ;;  %4085 = vmatpush1.bf16.msra.mxu1 %v6848_v22  ;;  %v6878_v13 = vld [vmem:[#allocation8 + $0x7e0] ss:$16 sps:$4 sm:$0xff]   ;;  %v6889_v22 = vld [vmem:[#allocation8 + $0x5a4] ss:$16 sps:$4 sm:$0xff]  }
 0x148   :  { %4045 = vmatprep.subr.bf16.mxu0 %v6853_v23  ;;  %v764_v36 = vpop.f32.mrf.mxu0  ;;  %4086 = vmatprep.subr.bf16.mxu1 %v6856_v27  ;;  %v805_v43 = vpop.f32.mrf.mxu1  ;;  %v6887_v23 = vld [vmem:[#allocation8 + $0x5a0] ss:$16 sps:$4 sm:$0xff]   ;;  %v6898_v28 = vld [vmem:[#allocation8 + $0x784] ss:$16 sps:$4 sm:$0xff]  }
 0x149   :  { %v8094_v40 = vadd.f32 %v764_v36, %v307_v29  ;;  %v8096_v48 = vadd.f32 %v805_v43, %v315_v31  ;;  %v6893_v27 = vld [vmem:[#allocation8 + $0x580] ss:$16 sps:$4 sm:$0xff]   ;;  %v6901_v30 = vld [vmem:[#allocation8 + $0x564] ss:$16 sps:$4 sm:$0xff]   ;;  %v195_v36 = vrot.slane %v8044_v19, %v8029_v9 }
 0x14a   :  { %v766_v44 = vpop.f32.mrf.mxu0  ;;  %v807_v51 = vpop.f32.mrf.mxu1  ;;  %v6896_v29 = vld [vmem:[#allocation8 + $0x780] ss:$16 sps:$4 sm:$0xff]   ;;  %v6904_v32 = vld [vmem:[#allocation8 + $0x764] ss:$16 sps:$4 sm:$0xff]  }
 0x14b   :  { %4046 = vmatpush1.bf16.msra.mxu0 %v6851_v26  ;;  %v8098_v49 = vadd.f32 %v766_v44, %v311_v33  ;;  %4087 = vmatpush1.bf16.msra.mxu1 %v6854_v34  ;;  %v8100_v55 = vadd.f32 %v807_v51, %v319_v37  ;;  %v6895_v26 = vld [vmem:[#allocation8 + $0x584] ss:$16 sps:$4 sm:$0xff]   ;;  %v6899_v31 = vld [vmem:[#allocation8 + $0x560] ss:$16 sps:$4 sm:$0xff]   ;;  %v8103_v33 = vunpack.c.l.bf16 %v8069_v59  ;;  %v203_v34 = vrot.slane %v8044_v19, %v8031_v10 }
 0x14c   :  { %4047 = vmatprep.subr.bf16.mxu0 %v6859_v35  ;;  %v768_v54 = vpop.f32.mrf.mxu0  ;;  %4088 = vmatprep.subr.bf16.mxu1 %v6862_v39  ;;  %v809_v58 = vpop.f32.mrf.mxu1  ;;  %v6902_v35 = vld [vmem:[#allocation8 + $0x760] ss:$16 sps:$4 sm:$0xff]   ;;  %v6907_v37 = vld [vmem:[#allocation8 + $0x544] ss:$16 sps:$4 sm:$0xff]   ;;  %v275_v51 = vrot.slane %v195_v36, %v8029_v9 }
 0x14d   :  { %v6910_v39 = vld [vmem:[#allocation8 + $0x744] ss:$16 sps:$4 sm:$0xff]   ;;  %v215_v43 = vrot.slane %v8103_v33, %v8033_v0  ;;  %v223_v59 = vrot.slane %v8103_v33, %v8035_v11  ;;  %v283_v44 = vrot.slane %v203_v34, %v8029_v9  ;;  %v6911_v19 = vld [vmem:[#allocation8 + $0x520] ss:$16 sps:$4 sm:$0xff]  }
 0x14e   :  { %v769_v60 = vpop.f32.mrf.mxu0  ;;  %v810_v61 = vpop.f32.mrf.mxu1  ;;  %v6916_v54 = vld [vmem:[#allocation8 + $0x724] ss:$16 sps:$4 sm:$0xff]   ;;  %v6941_v34 = vld [vmem:[#allocation8 + $0x880] ss:$16 sps:$4 sm:$0xff]  }
 0x14f   :  { %4048 = vmatpush1.bf16.msra.mxu0 %v6857_v38  ;;  %4089 = vmatpush1.bf16.msra.mxu1 %v6860_v52  ;;  %v6905_v38 = vld [vmem:[#allocation8 + $0x540] ss:$16 sps:$4 sm:$0xff]   ;;  %v642_v58 = vadd.f32 %v8064_v50, %v283_v44  ;;  %v601_v60 = vadd.f32 %v8060_v47, %v275_v51  ;;  %v6925_v50 = vld [vmem:[#allocation8 + $0x8e4] ss:$16 sps:$4 sm:$0xff]  }
 0x150   :  { %4049 = vmatprep.subr.bf16.mxu0 %v6865_v53  ;;  %4090 = vmatprep.subr.bf16.mxu1 %v6868_v57  ;;  %v6908_v52 = vld [vmem:[#allocation8 + $0x740] ss:$16 sps:$4 sm:$0xff]   ;;  %v6913_v53 = vld [vmem:[#allocation8 + $0x524] ss:$16 sps:$4 sm:$0xff]   ;;  %v303_v57 = vrot.slane %v223_v59, %v8029_v9 }
 0x151   :  { %v6914_v61 = vld [vmem:[#allocation8 + $0x720] ss:$16 sps:$4 sm:$0xff]   ;;  %v6949_v36 = vld [vmem:[#allocation8 + $0x864] ss:$16 sps:$4 sm:$0xff]  }
 0x152   :  { %v6923_v47 = vld [vmem:[#allocation8 + $0x8e0] ss:$16 sps:$4 sm:$0xff]   ;;  %v6958_v44 = vld [vmem:[#allocation8 + $0xa44] ss:$16 sps:$4 sm:$0xff]  }
 0x153   :  { %4050 = vmatpush1.bf16.msra.mxu0 %v6863_v56  ;;  %4091 = vmatpush1.bf16.msra.mxu1 %v6866_v62  ;;  %v295_v56 = vrot.slane %v215_v43, %v8029_v9  ;;  %v6919_v62 = vld [vmem:[#allocation8 + $0x504] ss:$16 sps:$4 sm:$0xff]   ;;  %v6953_v59 = vld [vmem:[#allocation8 + $0x840] ss:$16 sps:$4 sm:$0xff]  }
 0x154   :  { %4051 = vmatprep.subr.bf16.mxu0 %v6871_v63  ;;  %4092 = vmatprep.subr.bf16.mxu1 %v6874_v2  ;;  %v6917_v63 = vld [vmem:[#allocation8 + $0x500] ss:$16 sps:$4 sm:$0xff]   ;;  %v6955_v43 = vld [vmem:[#allocation8 + $0x844] ss:$16 sps:$4 sm:$0xff]  }
 0x155   :  { %v685_v2 = vadd.f32 %v8083_v17, %v295_v56  ;;  %v6956_v51 = vld [vmem:[#allocation8 + $0xa40] ss:$16 sps:$4 sm:$0xff]   ;;  %v6967_v56 = vld [vmem:[#allocation8 + $0x804] ss:$16 sps:$4 sm:$0xff]  }
 0x157   :  { %4052 = vmatpush1.bf16.msra.mxu0 %v6869_v1  ;;  %4093 = vmatpush1.bf16.msra.mxu1 %v6872_v3  ;;  %v6922_v1 = vld [vmem:[#allocation8 + $0x704] ss:$16 sps:$4 sm:$0xff]   ;;  %v6920_v3 = vld [vmem:[#allocation8 + $0x700] ss:$16 sps:$4 sm:$0xff]  }
 0x158   :  { %4053 = vmatprep.subr.bf16.mxu0 %v6877_v5  ;;  %4094 = vmatprep.subr.bf16.mxu1 %v6880_v7  ;;  %v726_v5 = vadd.f32 %v8086_v20, %v303_v57  ;;  %v816_v7 = vmax.f32 %v601_v60, 0.0  ;;  %v6929_v20 = vld [vmem:[#allocation8 + $0x8c0] ss:$16 sps:$4 sm:$0xff]  }
 0x159   :  { %v6965_v57 = vld [vmem:[#allocation8 + $0x800] ss:$16 sps:$4 sm:$0xff]  }
 0x15a   :  { %v8123_v17 = vpack.c.bf16 %v816_v7, %v816_v7  ;;  %v6968_v60 = vld [vmem:[#allocation8 + $0xa00] ss:$16 sps:$4 sm:$0xff]   ;;  %v6985_v7 = vld [vmem:[#allocation8 + $0x9a4] ss:$16 sps:$4 sm:$0xff]  }
 0x15b   :  { %4054 = vmatpush2.bf16.msra.mxu0 %v6875_v6  ;;  %4095 = vmatpush2.bf16.msra.mxu1 %v6878_v13  ;;  %v818_v6 = vmax.f32 %v642_v58, 0.0  ;;  %v6928_v13 = vld [vmem:[#allocation8 + $0xae4] ss:$16 sps:$4 sm:$0xff]  }
 0x15c   :  { %4055 = vmatprep.subr.bf16.mxu0 %v6883_v14  ;;  %4096 = vmatprep.subr.bf16.mxu1 %v6886_v18  ;;  %v821_v14 = vmax.f32 %v685_v2, 0.0  ;;  %v6931_v18 = vld [vmem:[#allocation8 + $0x8c4] ss:$16 sps:$4 sm:$0xff]  }
 0x15d   :  { %v6970_v58 = vld [vmem:[#allocation8 + $0xa04] ss:$16 sps:$4 sm:$0xff]  }
 0x15e   :  { %v6979_v2 = vld [vmem:[#allocation8 + $0x9c4] ss:$16 sps:$4 sm:$0xff]  }
 0x15f   :  { %4056 = vmatpush2.bf16.msra.mxu0 %v6881_v16  ;;  %4097 = vmatpush2.bf16.msra.mxu1 %v6884_v21  ;;  %v6926_v16 = vld [vmem:[#allocation8 + $0xae0] ss:$16 sps:$4 sm:$0xff]   ;;  %v823_v21 = vmax.f32 %v726_v5, 0.0  ;;  %v6982_v5 = vld [vmem:[#allocation8 + $0xbc4] ss:$16 sps:$4 sm:$0xff]  }
 0x160   :  { %4057 = vmatprep.subr.bf16.mxu0 %v6889_v22  ;;  %4098 = vmatprep.subr.bf16.mxu1 %v6892_v24  ;;  %v8121_v22 = vpack.c.bf16 %v818_v6, %v818_v6  ;;  %v8125_v24 = vpack.c.bf16 %v821_v14, %v821_v14  ;;  %v6980_v6 = vld [vmem:[#allocation8 + $0xbc0] ss:$16 sps:$4 sm:$0xff]   ;;  %v6991_v14 = vld [vmem:[#allocation8 + $0x984] ss:$16 sps:$4 sm:$0xff]  }
 0x163   :  { %4058 = vmatpush2.bf16.msra.mxu0 %v6887_v23  ;;  %4099 = vmatpush2.bf16.msra.mxu1 %v6890_v25  ;;  %v6934_v23 = vld [vmem:[#allocation8 + $0xac4] ss:$16 sps:$4 sm:$0xff]   ;;  %v6932_v25 = vld [vmem:[#allocation8 + $0xac0] ss:$16 sps:$4 sm:$0xff]  }
 0x164   :  { %4059 = vmatprep.subr.bf16.mxu0 %v6895_v26  ;;  %4100 = vmatprep.subr.bf16.mxu1 %v6898_v28  ;;  %v6937_v26 = vld [vmem:[#allocation8 + $0x8a4] ss:$16 sps:$4 sm:$0xff]  }
 0x165   :  { %v6940_v28 = vld [vmem:[#allocation8 + $0xaa4] ss:$16 sps:$4 sm:$0xff]  }
 0x167   :  { %4060 = vmatpush2.bf16.msra.mxu0 %v6893_v27  ;;  %4101 = vmatpush2.bf16.msra.mxu1 %v6896_v29  ;;  %v8128_v27 = vpack.c.bf16 %v823_v21, %v823_v21  ;;  %v6935_v29 = vld [vmem:[#allocation8 + $0x8a0] ss:$16 sps:$4 sm:$0xff]  }
 0x168   :  { %4061 = vmatprep.subr.bf16.mxu0 %v6901_v30  ;;  %4102 = vmatprep.subr.bf16.mxu1 %v6904_v32  ;;  %v6938_v30 = vld [vmem:[#allocation8 + $0xaa0] ss:$16 sps:$4 sm:$0xff]   ;;  %v6946_v32 = vld [vmem:[#allocation8 + $0xa84] ss:$16 sps:$4 sm:$0xff]  }
 0x169   :  { %v6992_v21 = vld [vmem:[#allocation8 + $0xb80] ss:$16 sps:$4 sm:$0xff]  }
 0x16b   :  { %4062 = vmatpush2.bf16.msra.mxu0 %v6899_v31  ;;  %4103 = vmatpush2.bf16.msra.mxu1 %v6902_v35  ;;  %v6943_v31 = vld [vmem:[#allocation8 + $0x884] ss:$16 sps:$4 sm:$0xff]   ;;  %v6944_v35 = vld [vmem:[#allocation8 + $0xa80] ss:$16 sps:$4 sm:$0xff]  }
 0x16c   :  { %4063 = vmatprep.subr.bf16.mxu0 %v6907_v37  ;;  %4104 = vmatprep.subr.bf16.mxu1 %v6910_v39  ;;  %v6947_v37 = vld [vmem:[#allocation8 + $0x860] ss:$16 sps:$4 sm:$0xff]  }
 0x16d   :  { %v6950_v39 = vld [vmem:[#allocation8 + $0xa60] ss:$16 sps:$4 sm:$0xff]  }
 0x16f   :  { %4064 = vmatpush2.bf16.msra.mxu0 %v6905_v38  ;;  %4105 = vmatpush2.bf16.msra.mxu1 %v6908_v52  ;;  %v6952_v38 = vld [vmem:[#allocation8 + $0xa64] ss:$16 sps:$4 sm:$0xff]  }
 0x170   :  { %4065 = vmatprep.subr.bf16.mxu0 %v6913_v53  ;;  %4106 = vmatprep.subr.bf16.mxu1 %v6916_v54  ;;  %v6961_v52 = vld [vmem:[#allocation8 + $0x824] ss:$16 sps:$4 sm:$0xff]   ;;  %v6959_v53 = vld [vmem:[#allocation8 + $0x820] ss:$16 sps:$4 sm:$0xff]  }
 0x171   :  { %v6962_v54 = vld [vmem:[#allocation8 + $0xa20] ss:$16 sps:$4 sm:$0xff]  }
 0x173   :  { %4066 = vmatpush2.bf16.msra.mxu0 %v6911_v19  ;;  %4107 = vmatpush2.bf16.msra.mxu1 %v6914_v61  ;;  %v6964_v19 = vld [vmem:[#allocation8 + $0xa24] ss:$16 sps:$4 sm:$0xff]  }
 0x174   :  { %4067 = vmatprep.subr.bf16.mxu0 %v6919_v62  ;;  %4108 = vmatprep.subr.bf16.mxu1 %v6922_v1  ;;  %v6973_v61 = vld [vmem:[#allocation8 + $0x9e4] ss:$16 sps:$4 sm:$0xff]   ;;  %v6971_v62 = vld [vmem:[#allocation8 + $0x9e0] ss:$16 sps:$4 sm:$0xff]  }
 0x175   :  { %v6974_v1 = vld [vmem:[#allocation8 + $0xbe0] ss:$16 sps:$4 sm:$0xff]  }
 0x177   :  { %4068 = vmatpush2.bf16.msra.mxu0 %v6917_v63  ;;  %4109 = vmatpush2.bf16.msra.mxu1 %v6920_v3  ;;  %v6976_v63 = vld [vmem:[#allocation8 + $0xbe4] ss:$16 sps:$4 sm:$0xff]   ;;  %v6977_v3 = vld [vmem:[#allocation8 + $0x9c0] ss:$16 sps:$4 sm:$0xff]  }
 0x178   :  { %4119 = vmatprep.subr.bf16.mxu0 %v6925_v50  ;;  %4160 = vmatprep.subr.bf16.mxu1 %v6928_v13  ;;  %v6983_v50 = vld [vmem:[#allocation8 + $0x9a0] ss:$16 sps:$4 sm:$0xff]   ;;  %v6988_v13 = vld [vmem:[#allocation8 + $0xba4] ss:$16 sps:$4 sm:$0xff]  }
 0x17a   :  { %4070 = vmatmul.mubr.bf16.vlgmr.msra.gmra.mxu0 %v8123_v17  ;;  %4111 = vmatmul.mubr.bf16.vlgmr.msra.gmra.mxu1 %v8121_v22 }
 0x17b   :  { %4120 = vmatpush1.bf16.msra.mxu0 %v6923_v47  ;;  %4161 = vmatpush1.bf16.msra.mxu1 %v6926_v16  ;;  %v6986_v47 = vld [vmem:[#allocation8 + $0xba0] ss:$16 sps:$4 sm:$0xff]  }
 0x17c   :  { %4121 = vmatprep.subr.bf16.mxu0 %v6931_v18  ;;  %4162 = vmatprep.subr.bf16.mxu1 %v6934_v23  ;;  %v6989_v16 = vld [vmem:[#allocation8 + $0x980] ss:$16 sps:$4 sm:$0xff]   ;;  %v6994_v18 = vld [vmem:[#allocation8 + $0xb84] ss:$16 sps:$4 sm:$0xff]  }
 0x17d   :  { %4151 = vmatprep.mubr.bf16.mxu0 %v8125_v24  ;;  %4192 = vmatprep.mubr.bf16.mxu1 %v8128_v27  ;;  %v6995_v23 = vld [vmem:[#allocation8 + $0x960] ss:$16 sps:$4 sm:$0xff]  }
 0x17f   :  { %4122 = vmatpush1.bf16.msra.mxu0 %v6929_v20  ;;  %4163 = vmatpush1.bf16.msra.mxu1 %v6932_v25  ;;  %v6997_v20 = vld [vmem:[#allocation8 + $0x964] ss:$16 sps:$4 sm:$0xff]  }
 0x180   :  { %4123 = vmatprep.subr.bf16.mxu0 %v6937_v26  ;;  %4164 = vmatprep.subr.bf16.mxu1 %v6940_v28  ;;  %v7000_v25 = vld [vmem:[#allocation8 + $0xb64] ss:$16 sps:$4 sm:$0xff]   ;;  %v219_v26 = vrot.slane %v8103_v33, %v8031_v10  ;;  %v6998_v28 = vld [vmem:[#allocation8 + $0xb60] ss:$16 sps:$4 sm:$0xff]  }
 0x183   :  { %4124 = vmatpush1.bf16.msra.mxu0 %v6935_v29  ;;  %4165 = vmatpush1.bf16.msra.mxu1 %v6938_v30  ;;  %v211_v29 = vrot.slane %v8103_v33, %v8029_v9  ;;  %v7003_v30 = vld [vmem:[#allocation8 + $0x944] ss:$16 sps:$4 sm:$0xff]  }
 0x184   :  { %4125 = vmatprep.subr.bf16.mxu0 %v6943_v31  ;;  %4166 = vmatprep.subr.bf16.mxu1 %v6946_v32  ;;  %v299_v31 = vrot.slane %v219_v26, %v8029_v9  ;;  %v7001_v32 = vld [vmem:[#allocation8 + $0x940] ss:$16 sps:$4 sm:$0xff]  }
 0x185   :  { %v7049_v26 = vld [vmem:[#allocation8 + $0xc40] ss:$16 sps:$4 sm:$0xff]  }
 0x187   :  { %4126 = vmatpush1.bf16.msra.mxu0 %v6941_v34  ;;  %4167 = vmatpush1.bf16.msra.mxu1 %v6944_v35  ;;  %v7006_v34 = vld [vmem:[#allocation8 + $0xb44] ss:$16 sps:$4 sm:$0xff]   ;;  %v291_v35 = vrot.slane %v211_v29, %v8029_v9  ;;  %v7052_v29 = vld [vmem:[#allocation8 + $0xe40] ss:$16 sps:$4 sm:$0xff]  }
 0x188   :  { %4127 = vmatprep.subr.bf16.mxu0 %v6949_v36  ;;  %4168 = vmatprep.subr.bf16.mxu1 %v6952_v38  ;;  %v7004_v36 = vld [vmem:[#allocation8 + $0xb40] ss:$16 sps:$4 sm:$0xff]   ;;  %v724_v38 = vadd.f32 %v8079_v15, %v299_v31  ;;  %v7021_v15 = vld [vmem:[#allocation8 + $0xce4] ss:$16 sps:$4 sm:$0xff]  }
 0x189   :  { %v683_v33 = vadd.f32 %v8076_v12, %v291_v35  ;;  %v827_v12 = vmax.f32 %v8100_v55, 0.0  ;;  %v7028_v55 = vld [vmem:[#allocation8 + $0xec0] ss:$16 sps:$4 sm:$0xff]   ;;  %v7060_v31 = vld [vmem:[#allocation8 + $0xe24] ss:$16 sps:$4 sm:$0xff]  }
 0x18a   :  { %v7063_v35 = vld [vmem:[#allocation8 + $0xc04] ss:$16 sps:$4 sm:$0xff]  }
 0x18b   :  { %4128 = vmatpush1.bf16.msra.mxu0 %v6947_v37  ;;  %4169 = vmatpush1.bf16.msra.mxu1 %v6950_v39  ;;  %v7009_v37 = vld [vmem:[#allocation8 + $0x924] ss:$16 sps:$4 sm:$0xff]   ;;  %v7007_v39 = vld [vmem:[#allocation8 + $0x920] ss:$16 sps:$4 sm:$0xff]  }
 0x18c   :  { %4129 = vmatprep.subr.bf16.mxu0 %v6955_v43  ;;  %4170 = vmatprep.subr.bf16.mxu1 %v6958_v44  ;;  %v7012_v43 = vld [vmem:[#allocation8 + $0xb24] ss:$16 sps:$4 sm:$0xff]  }
 0x18d   :  { %v7015_v44 = vld [vmem:[#allocation8 + $0x904] ss:$16 sps:$4 sm:$0xff]  }
 0x18f   :  { %4130 = vmatpush1.bf16.msra.mxu0 %v6953_v59  ;;  %4171 = vmatpush1.bf16.msra.mxu1 %v6956_v51  ;;  %v7010_v59 = vld [vmem:[#allocation8 + $0xb20] ss:$16 sps:$4 sm:$0xff]   ;;  %v7018_v51 = vld [vmem:[#allocation8 + $0xb04] ss:$16 sps:$4 sm:$0xff]  }
 0x190   :  { %4131 = vmatprep.subr.bf16.mxu0 %v6961_v52  ;;  %4172 = vmatprep.subr.bf16.mxu1 %v6964_v19  ;;  %v822_v52 = vmax.f32 %v724_v38, 0.0  ;;  %v7016_v19 = vld [vmem:[#allocation8 + $0xb00] ss:$16 sps:$4 sm:$0xff]  }
 0x191   :  { %v7064_v38 = vld [vmem:[#allocation8 + $0xe00] ss:$16 sps:$4 sm:$0xff]  }
 0x193   :  { %4132 = vmatpush1.bf16.msra.mxu0 %v6959_v53  ;;  %4173 = vmatpush1.bf16.msra.mxu1 %v6962_v54  ;;  %v7013_v53 = vld [vmem:[#allocation8 + $0x900] ss:$16 sps:$4 sm:$0xff]   ;;  %v820_v54 = vmax.f32 %v683_v33, 0.0 }
 0x194   :  { %4133 = vmatprep.subr.bf16.mxu0 %v6967_v56  ;;  %4174 = vmatprep.subr.bf16.mxu1 %v6970_v58  ;;  %v7024_v56 = vld [vmem:[#allocation8 + $0xee4] ss:$16 sps:$4 sm:$0xff]   ;;  %v7019_v58 = vld [vmem:[#allocation8 + $0xce0] ss:$16 sps:$4 sm:$0xff]  }
 0x195   :  { %v7067_v33 = vld [vmem:[#allocation8 + $0xde0] ss:$16 sps:$4 sm:$0xff]  }
 0x197   :  { %4134 = vmatpush1.bf16.msra.mxu0 %v6965_v57  ;;  %4175 = vmatpush1.bf16.msra.mxu1 %v6968_v60  ;;  %v825_v57 = vmax.f32 %v8098_v49, 0.0  ;;  %v7022_v60 = vld [vmem:[#allocation8 + $0xee0] ss:$16 sps:$4 sm:$0xff]  }
 0x198   :  { %4135 = vmatprep.subr.bf16.mxu0 %v6973_v61  ;;  %4176 = vmatprep.subr.bf16.mxu1 %v6976_v63  ;;  %v7027_v61 = vld [vmem:[#allocation8 + $0xcc4] ss:$16 sps:$4 sm:$0xff]   ;;  %v7025_v49 = vld [vmem:[#allocation8 + $0xcc0] ss:$16 sps:$4 sm:$0xff]  }
 0x199   :  { %v7030_v63 = vld [vmem:[#allocation8 + $0xec4] ss:$16 sps:$4 sm:$0xff]  }
 0x19b   :  { %4136 = vmatpush2.bf16.msra.mxu0 %v6971_v62  ;;  %4177 = vmatpush2.bf16.msra.mxu1 %v6974_v1  ;;  %v8143_v62 = vpack.c.bf16 %v822_v52, %v822_v52  ;;  %v8145_v1 = vpack.c.bf16 %v820_v54, %v820_v54  ;;  %v7073_v52 = vld [vmem:[#allocation8 + $0xdc0] ss:$16 sps:$4 sm:$0xff]   ;;  %v7084_v54 = vld [vmem:[#allocation8 + $0xfa4] ss:$16 sps:$4 sm:$0xff]  }
 0x19c   :  { %4137 = vmatprep.subr.bf16.mxu0 %v6979_v2  ;;  %4178 = vmatprep.subr.bf16.mxu1 %v6982_v5  ;;  %v8147_v2 = vpack.c.bf16 %v825_v57, %v825_v57  ;;  %v7033_v5 = vld [vmem:[#allocation8 + $0xca4] ss:$16 sps:$4 sm:$0xff]  }
 0x19d   :  { %v7087_v57 = vld [vmem:[#allocation8 + $0xd84] ss:$16 sps:$4 sm:$0xff]  }
 0x19f   :  { %4138 = vmatpush2.bf16.msra.mxu0 %v6977_v3  ;;  %4179 = vmatpush2.bf16.msra.mxu1 %v6980_v6  ;;  %v8149_v3 = vpack.c.bf16 %v827_v12, %v827_v12  ;;  %v7036_v6 = vld [vmem:[#allocation8 + $0xea4] ss:$16 sps:$4 sm:$0xff]  }
 0x1a0   :  { %4139 = vmatprep.subr.bf16.mxu0 %v6985_v7  ;;  %4180 = vmatprep.subr.bf16.mxu1 %v6988_v13  ;;  %v7031_v7 = vld [vmem:[#allocation8 + $0xca0] ss:$16 sps:$4 sm:$0xff]   ;;  %v7039_v13 = vld [vmem:[#allocation8 + $0xc84] ss:$16 sps:$4 sm:$0xff]  }
 0x1a1   :  { %v7090_v12 = vld [vmem:[#allocation8 + $0xf84] ss:$16 sps:$4 sm:$0xff]  }
 0x1a3   :  { %4140 = vmatpush2.bf16.msra.mxu0 %v6983_v50  ;;  %4181 = vmatpush2.bf16.msra.mxu1 %v6986_v47  ;;  %v7034_v50 = vld [vmem:[#allocation8 + $0xea0] ss:$16 sps:$4 sm:$0xff]   ;;  %v7042_v47 = vld [vmem:[#allocation8 + $0xe84] ss:$16 sps:$4 sm:$0xff]  }
 0x1a4   :  { %4141 = vmatprep.subr.bf16.mxu0 %v6991_v14  ;;  %4182 = vmatprep.subr.bf16.mxu1 %v6994_v18  ;;  %v7037_v14 = vld [vmem:[#allocation8 + $0xc80] ss:$16 sps:$4 sm:$0xff]   ;;  %v7045_v18 = vld [vmem:[#allocation8 + $0xc64] ss:$16 sps:$4 sm:$0xff]  }
 0x1a7   :  { %4142 = vmatpush2.bf16.msra.mxu0 %v6989_v16  ;;  %4183 = vmatpush2.bf16.msra.mxu1 %v6992_v21  ;;  %v7040_v16 = vld [vmem:[#allocation8 + $0xe80] ss:$16 sps:$4 sm:$0xff]  }
 0x1a8   :  { %4143 = vmatprep.subr.bf16.mxu0 %v6997_v20  ;;  %4184 = vmatprep.subr.bf16.mxu1 %v7000_v25  ;;  %v7043_v21 = vld [vmem:[#allocation8 + $0xc60] ss:$16 sps:$4 sm:$0xff]   ;;  %v7048_v20 = vld [vmem:[#allocation8 + $0xe64] ss:$16 sps:$4 sm:$0xff]  }
 0x1a9   :  { %v7051_v25 = vld [vmem:[#allocation8 + $0xc44] ss:$16 sps:$4 sm:$0xff]  }
 0x1ab   :  { %4144 = vmatpush2.bf16.msra.mxu0 %v6995_v23  ;;  %4185 = vmatpush2.bf16.msra.mxu1 %v6998_v28  ;;  %v7046_v23 = vld [vmem:[#allocation8 + $0xe60] ss:$16 sps:$4 sm:$0xff]   ;;  %v7054_v28 = vld [vmem:[#allocation8 + $0xe44] ss:$16 sps:$4 sm:$0xff]  }
 0x1ac   :  { %4145 = vmatprep.subr.bf16.mxu0 %v7003_v30  ;;  %4186 = vmatprep.subr.bf16.mxu1 %v7006_v34  ;;  %v7057_v30 = vld [vmem:[#allocation8 + $0xc24] ss:$16 sps:$4 sm:$0xff]   ;;  %v7058_v34 = vld [vmem:[#allocation8 + $0xe20] ss:$16 sps:$4 sm:$0xff]  }
 0x1af   :  { %4146 = vmatpush2.bf16.msra.mxu0 %v7001_v32  ;;  %4187 = vmatpush2.bf16.msra.mxu1 %v7004_v36  ;;  %v7055_v32 = vld [vmem:[#allocation8 + $0xc20] ss:$16 sps:$4 sm:$0xff]   ;;  %v7066_v36 = vld [vmem:[#allocation8 + $0xe04] ss:$16 sps:$4 sm:$0xff]  }
 0x1b0   :  { %4147 = vmatprep.subr.bf16.mxu0 %v7009_v37  ;;  %4188 = vmatprep.subr.bf16.mxu1 %v7012_v43  ;;  %v7061_v37 = vld [vmem:[#allocation8 + $0xc00] ss:$16 sps:$4 sm:$0xff]   ;;  %v7072_v43 = vld [vmem:[#allocation8 + $0xfe4] ss:$16 sps:$4 sm:$0xff]  }
 0x1b3   :  { %4148 = vmatpush2.bf16.msra.mxu0 %v7007_v39  ;;  %4189 = vmatpush2.bf16.msra.mxu1 %v7010_v59  ;;  %v7069_v39 = vld [vmem:[#allocation8 + $0xde4] ss:$16 sps:$4 sm:$0xff]   ;;  %v7070_v59 = vld [vmem:[#allocation8 + $0xfe0] ss:$16 sps:$4 sm:$0xff]  }
 0x1b4   :  { %4149 = vmatprep.subr.bf16.mxu0 %v7015_v44  ;;  %4190 = vmatprep.subr.bf16.mxu1 %v7018_v51  ;;  %v7075_v44 = vld [vmem:[#allocation8 + $0xdc4] ss:$16 sps:$4 sm:$0xff]  }
 0x1b5   :  { %v7078_v51 = vld [vmem:[#allocation8 + $0xfc4] ss:$16 sps:$4 sm:$0xff]  }
 0x1b7   :  { %4150 = vmatpush2.bf16.msra.mxu0 %v7013_v53  ;;  %4191 = vmatpush2.bf16.msra.mxu1 %v7016_v19  ;;  %v7076_v53 = vld [vmem:[#allocation8 + $0xfc0] ss:$16 sps:$4 sm:$0xff]   ;;  %v7081_v19 = vld [vmem:[#allocation8 + $0xda4] ss:$16 sps:$4 sm:$0xff]  }
 0x1b8   :  { %4201 = vmatprep.subr.bf16.mxu0 %v7021_v15  ;;  %4242 = vmatprep.subr.bf16.mxu1 %v7024_v56  ;;  %v7079_v15 = vld [vmem:[#allocation8 + $0xda0] ss:$16 sps:$4 sm:$0xff]  }
 0x1b9   :  { %v7082_v56 = vld [vmem:[#allocation8 + $0xfa0] ss:$16 sps:$4 sm:$0xff]  }
 0x1ba   :  { %4152 = vmatmul.mubr.bf16.vlgmr.msra.gmra.mxu0 %v8145_v1  ;;  %4193 = vmatmul.mubr.bf16.vlgmr.msra.gmra.mxu1 %v8143_v62 }
 0x1bb   :  { %4202 = vmatpush1.bf16.msra.mxu0 %v7019_v58  ;;  %4243 = vmatpush1.bf16.msra.mxu1 %v7022_v60  ;;  %v7085_v58 = vld [vmem:[#allocation8 + $0xd80] ss:$16 sps:$4 sm:$0xff]  }
 0x1bc   :  { %4203 = vmatprep.subr.bf16.mxu0 %v7027_v61  ;;  %4244 = vmatprep.subr.bf16.mxu1 %v7030_v63  ;;  %v7088_v60 = vld [vmem:[#allocation8 + $0xf80] ss:$16 sps:$4 sm:$0xff]   ;;  %v7093_v61 = vld [vmem:[#allocation8 + $0xd64] ss:$16 sps:$4 sm:$0xff]  }
 0x1bd   :  { %4233 = vmatprep.mubr.bf16.mxu0 %v8147_v2  ;;  %4274 = vmatprep.mubr.bf16.mxu1 %v8149_v3  ;;  %v7096_v63 = vld [vmem:[#allocation8 + $0xf64] ss:$16 sps:$4 sm:$0xff]  }
 0x1bf   :  { %4204 = vmatpush1.bf16.msra.mxu0 %v7025_v49  ;;  %4245 = vmatpush1.bf16.msra.mxu1 %v7028_v55  ;;  %v7091_v49 = vld [vmem:[#allocation8 + $0xd60] ss:$16 sps:$4 sm:$0xff]  }
 0x1c0   :  { %4205 = vmatprep.subr.bf16.mxu0 %v7033_v5  ;;  %4246 = vmatprep.subr.bf16.mxu1 %v7036_v6  ;;  %v7094_v55 = vld [vmem:[#allocation8 + $0xf60] ss:$16 sps:$4 sm:$0xff]   ;;  %v7099_v5 = vld [vmem:[#allocation8 + $0xd44] ss:$16 sps:$4 sm:$0xff]  }
 0x1c1   :  { %v7102_v6 = vld [vmem:[#allocation8 + $0xf44] ss:$16 sps:$4 sm:$0xff]  }
 0x1c3   :  { %4206 = vmatpush1.bf16.msra.mxu0 %v7031_v7  ;;  %4247 = vmatpush1.bf16.msra.mxu1 %v7034_v50  ;;  %v7097_v7 = vld [vmem:[#allocation8 + $0xd40] ss:$16 sps:$4 sm:$0xff]  }
 0x1c4   :  { %4207 = vmatprep.subr.bf16.mxu0 %v7039_v13  ;;  %4248 = vmatprep.subr.bf16.mxu1 %v7042_v47  ;;  %v7100_v50 = vld [vmem:[#allocation8 + $0xf40] ss:$16 sps:$4 sm:$0xff]   ;;  %v7105_v13 = vld [vmem:[#allocation8 + $0xd24] ss:$16 sps:$4 sm:$0xff]  }
 0x1c5   :  { %v1356_v47 = vld [vmem:[#allocation10] sm:$0xf] }
 0x1c7   :  { %4208 = vmatpush1.bf16.msra.mxu0 %v7037_v14  ;;  %4249 = vmatpush1.bf16.msra.mxu1 %v7040_v16  ;;  %v7108_v14 = vld [vmem:[#allocation8 + $0xf24] ss:$16 sps:$4 sm:$0xff]   ;;  %v7103_v16 = vld [vmem:[#allocation8 + $0xd20] ss:$16 sps:$4 sm:$0xff]  }
 0x1c8   :  { %4209 = vmatprep.subr.bf16.mxu0 %v7045_v18  ;;  %4250 = vmatprep.subr.bf16.mxu1 %v7048_v20  ;;  %v8155_v18 = vunpack.c.l.bf16 %v1356_v47  ;;  %v7111_v20 = vld [vmem:[#allocation8 + $0xd04] ss:$16 sps:$4 sm:$0xff]   ;;  %v7142_v47 = vld [vmem:[#allocation8 + $0x268] ss:$16 sps:$4 sm:$0xff]  }
 0x1cb   :  { %4210 = vmatpush1.bf16.msra.mxu0 %v7043_v21  ;;  %4251 = vmatpush1.bf16.msra.mxu1 %v7046_v23  ;;  %v7106_v21 = vld [vmem:[#allocation8 + $0xf20] ss:$16 sps:$4 sm:$0xff]   ;;  %v7114_v23 = vld [vmem:[#allocation8 + $0xf04] ss:$16 sps:$4 sm:$0xff]  }
 0x1cc   :  { %4211 = vmatprep.subr.bf16.mxu0 %v7051_v25  ;;  %4252 = vmatprep.subr.bf16.mxu1 %v7054_v28  ;;  %v7109_v25 = vld [vmem:[#allocation8 + $0xd00] ss:$16 sps:$4 sm:$0xff]   ;;  %v824_v28 = vmax.f32 %v8094_v40, 0.0  ;;  %v7118_v40 = vld [vmem:[#allocation8 + $0x2e8] ss:$16 sps:$4 sm:$0xff]  }
 0x1cf   :  { %4212 = vmatpush1.bf16.msra.mxu0 %v7049_v26  ;;  %4253 = vmatpush1.bf16.msra.mxu1 %v7052_v29  ;;  %v1362_v26 = vrot.slane %v8155_v18, %v8029_v9  ;;  %v7112_v29 = vld [vmem:[#allocation8 + $0xf00] ss:$16 sps:$4 sm:$0xff]  }
 0x1d0   :  { %4213 = vmatprep.subr.bf16.mxu0 %v7057_v30  ;;  %4254 = vmatprep.subr.bf16.mxu1 %v7060_v31  ;;  %v7117_v30 = vld [vmem:[#allocation8 + $0xec] ss:$16 sps:$4 sm:$0xff]   ;;  %v826_v31 = vmax.f32 %v8096_v48, 0.0 }
 0x1d1   :  { %v7123_v48 = vld [vmem:[#allocation8 + $0xcc] ss:$16 sps:$4 sm:$0xff]  }
 0x1d3   :  { %4214 = vmatpush1.bf16.msra.mxu0 %v7055_v32  ;;  %4255 = vmatpush1.bf16.msra.mxu1 %v7058_v34  ;;  %v7120_v32 = vld [vmem:[#allocation8 + $0x2ec] ss:$16 sps:$4 sm:$0xff]   ;;  %v1366_v34 = vrot.slane %v8155_v18, %v8033_v0 }
 0x1d4   :  { %4215 = vmatprep.subr.bf16.mxu0 %v7063_v35  ;;  %4256 = vmatprep.subr.bf16.mxu1 %v7066_v36  ;;  %v7115_v35 = vld [vmem:[#allocation8 + $0xe8] ss:$16 sps:$4 sm:$0xff]   ;;  %v1382_v36 = vrot.slane %v1362_v26, %v8029_v9 }
 0x1d5   :  { %v7151_v26 = vld [vmem:[#allocation8 + $0x28] ss:$16 sps:$4 sm:$0xff]  }
 0x1d7   :  { %4216 = vmatpush1.bf16.msra.mxu0 %v7061_v37  ;;  %4257 = vmatpush1.bf16.msra.mxu1 %v7064_v38  ;;  %v8164_v37 = vpack.c.bf16 %v824_v28, %v824_v28  ;;  %v8166_v38 = vpack.c.bf16 %v826_v31, %v826_v31  ;;  %v7154_v28 = vld [vmem:[#allocation8 + $0x228] ss:$16 sps:$4 sm:$0xff]  }
 0x1d8   :  { %4217 = vmatprep.subr.bf16.mxu0 %v7069_v39  ;;  %4258 = vmatprep.subr.bf16.mxu1 %v7072_v43  ;;  %v1386_v39 = vrot.slane %v1366_v34, %v8029_v9  ;;  %v7157_v31 = vld [vmem:[#allocation8 + $0x8] ss:$16 sps:$4 sm:$0xff]   ;;  %v7165_v34 = vld [vmem:[#allocation8 + $0x1ec] ss:$16 sps:$4 sm:$0xff]  }
 0x1db   :  { %4218 = vmatpush2.bf16.msra.mxu0 %v7067_v33  ;;  %4259 = vmatpush2.bf16.msra.mxu1 %v7070_v59  ;;  %v7126_v33 = vld [vmem:[#allocation8 + $0x2cc] ss:$16 sps:$4 sm:$0xff]  }
 0x1dc   :  { %4219 = vmatprep.subr.bf16.mxu0 %v7075_v44  ;;  %4260 = vmatprep.subr.bf16.mxu1 %v7078_v51  ;;  %v7121_v51 = vld [vmem:[#allocation8 + $0xc8] ss:$16 sps:$4 sm:$0xff]  }
 0x1df   :  { %4220 = vmatpush2.bf16.msra.mxu0 %v7073_v52  ;;  %4261 = vmatpush2.bf16.msra.mxu1 %v7076_v53  ;;  %v7124_v53 = vld [vmem:[#allocation8 + $0x2c8] ss:$16 sps:$4 sm:$0xff]  }
 0x1e0   :  { %4221 = vmatprep.subr.bf16.mxu0 %v7081_v19  ;;  %4262 = vmatprep.subr.bf16.mxu1 %v7084_v54  ;;  %v7129_v19 = vld [vmem:[#allocation8 + $0xac] ss:$16 sps:$4 sm:$0xff]  }
 0x1e3   :  { %4222 = vmatpush2.bf16.msra.mxu0 %v7079_v15  ;;  %4263 = vmatpush2.bf16.msra.mxu1 %v7082_v56 }
 0x1e4   :  { %4223 = vmatprep.subr.bf16.mxu0 %v7087_v57  ;;  %4264 = vmatprep.subr.bf16.mxu1 %v7090_v12  ;;  %v7132_v57 = vld [vmem:[#allocation8 + $0x2ac] ss:$16 sps:$4 sm:$0xff]  }
 0x1e7   :  { %4224 = vmatpush2.bf16.msra.mxu0 %v7085_v58  ;;  %4265 = vmatpush2.bf16.msra.mxu1 %v7088_v60 }
 0x1e8   :  { %4225 = vmatprep.subr.bf16.mxu0 %v7093_v61  ;;  %4266 = vmatprep.subr.bf16.mxu1 %v7096_v63  ;;  %v7127_v61 = vld [vmem:[#allocation8 + $0xa8] ss:$16 sps:$4 sm:$0xff]  }
 0x1e9   :  { %v7130_v63 = vld [vmem:[#allocation8 + $0x2a8] ss:$16 sps:$4 sm:$0xff]  }
 0x1eb   :  { %4226 = vmatpush2.bf16.msra.mxu0 %v7091_v49  ;;  %4267 = vmatpush2.bf16.msra.mxu1 %v7094_v55  ;;  %v7135_v49 = vld [vmem:[#allocation8 + $0x8c] ss:$16 sps:$4 sm:$0xff]  }
 0x1ec   :  { %4227 = vmatprep.subr.bf16.mxu0 %v7099_v5  ;;  %4268 = vmatprep.subr.bf16.mxu1 %v7102_v6  ;;  %v7138_v5 = vld [vmem:[#allocation8 + $0x28c] ss:$16 sps:$4 sm:$0xff]   ;;  %v7136_v6 = vld [vmem:[#allocation8 + $0x288] ss:$16 sps:$4 sm:$0xff]  }
 0x1ef   :  { %4228 = vmatpush2.bf16.msra.mxu0 %v7097_v7  ;;  %4269 = vmatpush2.bf16.msra.mxu1 %v7100_v50  ;;  %v7141_v7 = vld [vmem:[#allocation8 + $0x6c] ss:$16 sps:$4 sm:$0xff]  }
 0x1f0   :  { %4229 = vmatprep.subr.bf16.mxu0 %v7105_v13  ;;  %4270 = vmatprep.subr.bf16.mxu1 %v7108_v14  ;;  %v7144_v50 = vld [vmem:[#allocation8 + $0x26c] ss:$16 sps:$4 sm:$0xff]   ;;  %v7139_v13 = vld [vmem:[#allocation8 + $0x68] ss:$16 sps:$4 sm:$0xff]  }
 0x1f1   :  { %v7147_v14 = vld [vmem:[#allocation8 + $0x4c] ss:$16 sps:$4 sm:$0xff]  }
 0x1f3   :  { %4230 = vmatpush2.bf16.msra.mxu0 %v7103_v16  ;;  %4271 = vmatpush2.bf16.msra.mxu1 %v7106_v21  ;;  %v7150_v16 = vld [vmem:[#allocation8 + $0x24c] ss:$16 sps:$4 sm:$0xff]   ;;  %v7145_v21 = vld [vmem:[#allocation8 + $0x48] ss:$16 sps:$4 sm:$0xff]  }
 0x1f4   :  { %4231 = vmatprep.subr.bf16.mxu0 %v7111_v20  ;;  %4272 = vmatprep.subr.bf16.mxu1 %v7114_v23  ;;  %v7148_v20 = vld [vmem:[#allocation8 + $0x248] ss:$16 sps:$4 sm:$0xff]   ;;  %v7153_v23 = vld [vmem:[#allocation8 + $0x2c] ss:$16 sps:$4 sm:$0xff]  }
 0x1f7   :  { %4232 = vmatpush2.bf16.msra.mxu0 %v7109_v25  ;;  %4273 = vmatpush2.bf16.msra.mxu1 %v7112_v29  ;;  %v7156_v25 = vld [vmem:[#allocation8 + $0x22c] ss:$16 sps:$4 sm:$0xff]  }
 0x1f8   :  { %4283 = vmatprep.subr.bf16.mxu0 %v7117_v30  ;;  %4324 = vmatprep.subr.bf16.mxu1 %v7120_v32  ;;  %v7159_v29 = vld [vmem:[#allocation8 + $0xc] ss:$16 sps:$4 sm:$0xff]   ;;  %v7160_v32 = vld [vmem:[#allocation8 + $0x208] ss:$16 sps:$4 sm:$0xff]  }
 0x1f9   :  { %v7162_v30 = vld [vmem:[#allocation8 + $0x20c] ss:$16 sps:$4 sm:$0xff]  }
 0x1fa   :  { %4234 = vmatmul.mubr.bf16.vlgmr.msra.gmra.mxu0 %v8164_v37  ;;  %v3989_v43 = vpop.f32.mrf.mxu0  ;;  %4275 = vmatmul.mubr.bf16.vlgmr.msra.gmra.mxu1 %v8166_v38  ;;  %v4030_v44 = vpop.f32.mrf.mxu1 }
 0x1fb   :  { %v3990_v59 = vadd.f32 %v3989_v43, %v1382_v36  ;;  %4284 = vmatpush1.bf16.msra.mxu0 %v7115_v35  ;;  %4315 = vmatprep.mubr.bf16.mxu0 %v8053_v42  ;;  %v7168_v35 = vld [vmem:[#allocation8 + $0x3ec] ss:$16 sps:$4 sm:$0xff]   ;;  %v7163_v36 = vld [vmem:[#allocation8 + $0x1e8] ss:$16 sps:$4 sm:$0xff]  }
 0x1fc   :  { %4325 = vmatpush1.bf16.msra.mxu1 %v7118_v40  ;;  %v3991_v52 = vpop.f32.mrf.mxu0  ;;  %4356 = vmatprep.mubr.bf16.mxu1 %v8058_v46  ;;  %v4032_v56 = vpop.f32.mrf.mxu1  ;;  %v7133_v46 = vld [vmem:[#allocation8 + $0x88] ss:$16 sps:$4 sm:$0xff]  }
 0x1fd   :  { %v8172_v54 = vadd.f32 %v4030_v44, %v3990_v59  ;;  %v3992_v15 = vadd.f32 %v3991_v52, %v1386_v39  ;;  %4285 = vmatprep.subr.bf16.mxu0 %v7123_v48  ;;  %4326 = vmatprep.subr.bf16.mxu1 %v7126_v33  ;;  %v7166_v40 = vld [vmem:[#allocation8 + $0x3e8] ss:$16 sps:$4 sm:$0xff]   ;;  %v7171_v39 = vld [vmem:[#allocation8 + $0x1cc] ss:$16 sps:$4 sm:$0xff]  }
 0x1fe   :  { %v3993_v12 = vpop.f32.mrf.mxu0  ;;  %v4034_v60 = vpop.f32.mrf.mxu1  ;;  %v7174_v48 = vld [vmem:[#allocation8 + $0x3cc] ss:$16 sps:$4 sm:$0xff]   ;;  %v7169_v43 = vld [vmem:[#allocation8 + $0x1c8] ss:$16 sps:$4 sm:$0xff]  }
 0x1ff   :  { %v8175_v58 = vadd.f32 %v4032_v56, %v3992_v15  ;;  %4286 = vmatpush1.bf16.msra.mxu0 %v7121_v51  ;;  %v7172_v33 = vld [vmem:[#allocation8 + $0x3c8] ss:$16 sps:$4 sm:$0xff]   ;;  %v7177_v59 = vld [vmem:[#allocation8 + $0x1ac] ss:$16 sps:$4 sm:$0xff]  }
 0x200   :  { %4327 = vmatpush1.bf16.msra.mxu1 %v7124_v53  ;;  %v3994_v42 = vpop.f32.mrf.mxu0  ;;  %4287 = vmatprep.subr.bf16.mxu0 %v7129_v19  ;;  %v4035_v55 = vpop.f32.mrf.mxu1  ;;  %v7180_v44 = vld [vmem:[#allocation8 + $0x3ac] ss:$16 sps:$4 sm:$0xff]   ;;  %v7175_v51 = vld [vmem:[#allocation8 + $0x1a8] ss:$16 sps:$4 sm:$0xff]  }
 0x201   :  { %4328 = vmatprep.subr.bf16.mxu1 %v7132_v57  ;;  %v7178_v52 = vld [vmem:[#allocation8 + $0x3a8] ss:$16 sps:$4 sm:$0xff]   ;;  %v7183_v53 = vld [vmem:[#allocation8 + $0x18c] ss:$16 sps:$4 sm:$0xff]  }
 0x202   :  { %v7186_v19 = vld [vmem:[#allocation8 + $0x38c] ss:$16 sps:$4 sm:$0xff]   ;;  %v7181_v15 = vld [vmem:[#allocation8 + $0x188] ss:$16 sps:$4 sm:$0xff]  }
 0x203   :  { %4288 = vmatpush1.bf16.msra.mxu0 %v7127_v61  ;;  %v7184_v56 = vld [vmem:[#allocation8 + $0x388] ss:$16 sps:$4 sm:$0xff]   ;;  %v7189_v57 = vld [vmem:[#allocation8 + $0x16c] ss:$16 sps:$4 sm:$0xff]  }
 0x204   :  { %4329 = vmatpush1.bf16.msra.mxu1 %v7130_v63  ;;  %4289 = vmatprep.subr.bf16.mxu0 %v7135_v49  ;;  %v7192_v12 = vld [vmem:[#allocation8 + $0x36c] ss:$16 sps:$4 sm:$0xff]   ;;  %v7187_v60 = vld [vmem:[#allocation8 + $0x168] ss:$16 sps:$4 sm:$0xff]  }
 0x205   :  { %4330 = vmatprep.subr.bf16.mxu1 %v7138_v5  ;;  %v7190_v61 = vld [vmem:[#allocation8 + $0x368] ss:$16 sps:$4 sm:$0xff]   ;;  %v7195_v42 = vld [vmem:[#allocation8 + $0x14c] ss:$16 sps:$4 sm:$0xff]  }
 0x206   :  { %v7198_v63 = vld [vmem:[#allocation8 + $0x34c] ss:$16 sps:$4 sm:$0xff]   ;;  %v7193_v49 = vld [vmem:[#allocation8 + $0x148] ss:$16 sps:$4 sm:$0xff]  }
 0x207   :  { %4290 = vmatpush1.bf16.msra.mxu0 %v7133_v46  ;;  %v7196_v55 = vld [vmem:[#allocation8 + $0x348] ss:$16 sps:$4 sm:$0xff]   ;;  %v7201_v5 = vld [vmem:[#allocation8 + $0x12c] ss:$16 sps:$4 sm:$0xff]  }
 0x208   :  { %4331 = vmatpush1.bf16.msra.mxu1 %v7136_v6  ;;  %4291 = vmatprep.subr.bf16.mxu0 %v7141_v7  ;;  %v7204_v46 = vld [vmem:[#allocation8 + $0x32c] ss:$16 sps:$4 sm:$0xff]   ;;  %v7199_v6 = vld [vmem:[#allocation8 + $0x128] ss:$16 sps:$4 sm:$0xff]  }
 0x209   :  { %4332 = vmatprep.subr.bf16.mxu1 %v7144_v50  ;;  %v7202_v7 = vld [vmem:[#allocation8 + $0x328] ss:$16 sps:$4 sm:$0xff]   ;;  %v7207_v50 = vld [vmem:[#allocation8 + $0x10c] ss:$16 sps:$4 sm:$0xff]  }
 0x20b   :  { %4292 = vmatpush1.bf16.msra.mxu0 %v7139_v13  ;;  %v7210_v13 = vld [vmem:[#allocation8 + $0x30c] ss:$16 sps:$4 sm:$0xff]  }
 0x20c   :  { %4333 = vmatpush1.bf16.msra.mxu1 %v7142_v47  ;;  %4293 = vmatprep.subr.bf16.mxu0 %v7147_v14  ;;  %v7205_v47 = vld [vmem:[#allocation8 + $0x108] ss:$16 sps:$4 sm:$0xff]  }
 0x20d   :  { %4334 = vmatprep.subr.bf16.mxu1 %v7150_v16  ;;  %v7208_v14 = vld [vmem:[#allocation8 + $0x308] ss:$16 sps:$4 sm:$0xff]   ;;  %v7213_v16 = vld [vmem:[#allocation8 + $0x4ec] ss:$16 sps:$4 sm:$0xff]  }
 0x20f   :  { %4294 = vmatpush1.bf16.msra.mxu0 %v7145_v21  ;;  %v7216_v21 = vld [vmem:[#allocation8 + $0x6ec] ss:$16 sps:$4 sm:$0xff]  }
 0x210   :  { %4335 = vmatpush1.bf16.msra.mxu1 %v7148_v20  ;;  %4295 = vmatprep.subr.bf16.mxu0 %v7153_v23  ;;  %v7211_v20 = vld [vmem:[#allocation8 + $0x4e8] ss:$16 sps:$4 sm:$0xff]  }
 0x211   :  { %4336 = vmatprep.subr.bf16.mxu1 %v7156_v25  ;;  %v7214_v23 = vld [vmem:[#allocation8 + $0x6e8] ss:$16 sps:$4 sm:$0xff]   ;;  %v7219_v25 = vld [vmem:[#allocation8 + $0x4cc] ss:$16 sps:$4 sm:$0xff]  }
 0x213   :  { %4296 = vmatpush1.bf16.msra.mxu0 %v7151_v26 }
 0x214   :  { %4337 = vmatpush1.bf16.msra.mxu1 %v7154_v28  ;;  %4297 = vmatprep.subr.bf16.mxu0 %v7159_v29  ;;  %v7222_v28 = vld [vmem:[#allocation8 + $0x6cc] ss:$16 sps:$4 sm:$0xff]  }
 0x215   :  { %4338 = vmatprep.subr.bf16.mxu1 %v7162_v30 }
 0x217   :  { %4298 = vmatpush1.bf16.msra.mxu0 %v7157_v31  ;;  %v7217_v31 = vld [vmem:[#allocation8 + $0x4c8] ss:$16 sps:$4 sm:$0xff]  }
 0x218   :  { %4339 = vmatpush1.bf16.msra.mxu1 %v7160_v32  ;;  %4299 = vmatprep.subr.bf16.mxu0 %v7165_v34  ;;  %v7220_v34 = vld [vmem:[#allocation8 + $0x6c8] ss:$16 sps:$4 sm:$0xff]  }
 0x219   :  { %4340 = vmatprep.subr.bf16.mxu1 %v7168_v35  ;;  %v7225_v35 = vld [vmem:[#allocation8 + $0x4ac] ss:$16 sps:$4 sm:$0xff]  }
 0x21b   :  { %4300 = vmatpush2.bf16.msra.mxu0 %v7163_v36 }
 0x21c   :  { %4341 = vmatpush2.bf16.msra.mxu1 %v7166_v40  ;;  %4301 = vmatprep.subr.bf16.mxu0 %v7171_v39 }
 0x21d   :  { %4342 = vmatprep.subr.bf16.mxu1 %v7174_v48 }
 0x21f   :  { %4302 = vmatpush2.bf16.msra.mxu0 %v7169_v43 }
 0x220   :  { %4343 = vmatpush2.bf16.msra.mxu1 %v7172_v33  ;;  %4303 = vmatprep.subr.bf16.mxu0 %v7177_v59  ;;  %v7226_v33 = vld [vmem:[#allocation8 + $0x6a8] ss:$16 sps:$4 sm:$0xff]   ;;  %v7231_v59 = vld [vmem:[#allocation8 + $0x48c] ss:$16 sps:$4 sm:$0xff]  }
 0x221   :  { %4344 = vmatprep.subr.bf16.mxu1 %v7180_v44 }
 0x223   :  { %4304 = vmatpush2.bf16.msra.mxu0 %v7175_v51  ;;  %v7232_v51 = vld [vmem:[#allocation8 + $0x688] ss:$16 sps:$4 sm:$0xff]  }
 0x224   :  { %4345 = vmatpush2.bf16.msra.mxu1 %v7178_v52  ;;  %4305 = vmatprep.subr.bf16.mxu0 %v7183_v53  ;;  %v7237_v52 = vld [vmem:[#allocation8 + $0x46c] ss:$16 sps:$4 sm:$0xff]  }
 0x225   :  { %4346 = vmatprep.subr.bf16.mxu1 %v7186_v19  ;;  %v7240_v53 = vld [vmem:[#allocation8 + $0x66c] ss:$16 sps:$4 sm:$0xff]   ;;  %v7235_v19 = vld [vmem:[#allocation8 + $0x468] ss:$16 sps:$4 sm:$0xff]  }
 0x227   :  { %4306 = vmatpush2.bf16.msra.mxu0 %v7181_v15  ;;  %v7238_v15 = vld [vmem:[#allocation8 + $0x668] ss:$16 sps:$4 sm:$0xff]  }
 0x228   :  { %4347 = vmatpush2.bf16.msra.mxu1 %v7184_v56  ;;  %4307 = vmatprep.subr.bf16.mxu0 %v7189_v57  ;;  %v7243_v56 = vld [vmem:[#allocation8 + $0x44c] ss:$16 sps:$4 sm:$0xff]  }
 0x229   :  { %4348 = vmatprep.subr.bf16.mxu1 %v7192_v12  ;;  %v7246_v57 = vld [vmem:[#allocation8 + $0x64c] ss:$16 sps:$4 sm:$0xff]   ;;  %v7241_v12 = vld [vmem:[#allocation8 + $0x448] ss:$16 sps:$4 sm:$0xff]  }
 0x22b   :  { %4308 = vmatpush2.bf16.msra.mxu0 %v7187_v60  ;;  %v7244_v60 = vld [vmem:[#allocation8 + $0x648] ss:$16 sps:$4 sm:$0xff]  }
 0x22c   :  { %4349 = vmatpush2.bf16.msra.mxu1 %v7190_v61  ;;  %4309 = vmatprep.subr.bf16.mxu0 %v7195_v42  ;;  %v7249_v61 = vld [vmem:[#allocation8 + $0x42c] ss:$16 sps:$4 sm:$0xff]  }
 0x22d   :  { %4350 = vmatprep.subr.bf16.mxu1 %v7198_v63  ;;  %v7252_v42 = vld [vmem:[#allocation8 + $0x62c] ss:$16 sps:$4 sm:$0xff]   ;;  %v7247_v63 = vld [vmem:[#allocation8 + $0x428] ss:$16 sps:$4 sm:$0xff]  }
 0x22f   :  { %4310 = vmatpush2.bf16.msra.mxu0 %v7193_v49  ;;  %v7250_v49 = vld [vmem:[#allocation8 + $0x628] ss:$16 sps:$4 sm:$0xff]  }
 0x230   :  { %4351 = vmatpush2.bf16.msra.mxu1 %v7196_v55  ;;  %4311 = vmatprep.subr.bf16.mxu0 %v7201_v5  ;;  %v7255_v55 = vld [vmem:[#allocation8 + $0x40c] ss:$16 sps:$4 sm:$0xff]  }
 0x231   :  { %4352 = vmatprep.subr.bf16.mxu1 %v7204_v46  ;;  %v7258_v5 = vld [vmem:[#allocation8 + $0x60c] ss:$16 sps:$4 sm:$0xff]   ;;  %v7253_v46 = vld [vmem:[#allocation8 + $0x408] ss:$16 sps:$4 sm:$0xff]  }
 0x233   :  { %4312 = vmatpush2.bf16.msra.mxu0 %v7199_v6  ;;  %v7256_v6 = vld [vmem:[#allocation8 + $0x608] ss:$16 sps:$4 sm:$0xff]  }
 0x234   :  { %4353 = vmatpush2.bf16.msra.mxu1 %v7202_v7  ;;  %4313 = vmatprep.subr.bf16.mxu0 %v7207_v50  ;;  %v7261_v7 = vld [vmem:[#allocation8 + $0x5ec] ss:$16 sps:$4 sm:$0xff]  }
 0x235   :  { %4354 = vmatprep.subr.bf16.mxu1 %v7210_v13  ;;  %v7264_v50 = vld [vmem:[#allocation8 + $0x7ec] ss:$16 sps:$4 sm:$0xff]   ;;  %v7259_v13 = vld [vmem:[#allocation8 + $0x5e8] ss:$16 sps:$4 sm:$0xff]  }
 0x237   :  { %4314 = vmatpush2.bf16.msra.mxu0 %v7205_v47  ;;  %v7262_v47 = vld [vmem:[#allocation8 + $0x7e8] ss:$16 sps:$4 sm:$0xff]  }
 0x238   :  { %4355 = vmatpush2.bf16.msra.mxu1 %v7208_v14  ;;  %4365 = vmatprep.subr.bf16.mxu0 %v7213_v16  ;;  %v7267_v14 = vld [vmem:[#allocation8 + $0x5cc] ss:$16 sps:$4 sm:$0xff]  }
 0x239   :  { %4406 = vmatprep.subr.bf16.mxu1 %v7216_v21  ;;  %v7270_v16 = vld [vmem:[#allocation8 + $0x7cc] ss:$16 sps:$4 sm:$0xff]   ;;  %v7265_v21 = vld [vmem:[#allocation8 + $0x5c8] ss:$16 sps:$4 sm:$0xff]  }
 0x23a   :  { %v4071_v26 = vpop.f32.mrf.mxu0  ;;  %4316 = vmatmul.mubr.bf16.vlgmr.msra.gmra.mxu0 %v8056_v45  ;;  %v4112_v30 = vpop.f32.mrf.mxu1 }
 0x23b   :  { %v4072_v29 = vadd.f32 %v4071_v26, %v8172_v54  ;;  %4357 = vmatmul.mubr.bf16.vlgmr.msra.gmra.mxu1 %v8051_v41  ;;  %4366 = vmatpush1.bf16.msra.mxu0 %v7211_v20  ;;  %v7228_v54 = vld [vmem:[#allocation8 + $0x6ac] ss:$16 sps:$4 sm:$0xff]   ;;  %v7268_v20 = vld [vmem:[#allocation8 + $0x7c8] ss:$16 sps:$4 sm:$0xff]  }
 0x23c   :  { %4397 = vmatprep.mubr.bf16.mxu0 %v8072_v4  ;;  %4407 = vmatpush1.bf16.msra.mxu1 %v7214_v23  ;;  %v4073_v32 = vpop.f32.mrf.mxu0  ;;  %v4114_v40 = vpop.f32.mrf.mxu1  ;;  %v7223_v4 = vld [vmem:[#allocation8 + $0x4a8] ss:$16 sps:$4 sm:$0xff]   ;;  %v7273_v23 = vld [vmem:[#allocation8 + $0x5ac] ss:$16 sps:$4 sm:$0xff]  }
 0x23d   :  { %v8181_v36 = vadd.f32 %v4112_v30, %v4072_v29  ;;  %4438 = vmatprep.mubr.bf16.mxu1 %v8074_v8  ;;  %v4074_v45 = vadd.f32 %v4073_v32, %v8175_v58  ;;  %4367 = vmatprep.subr.bf16.mxu0 %v7219_v25  ;;  %v7234_v8 = vld [vmem:[#allocation8 + $0x68c] ss:$16 sps:$4 sm:$0xff]   ;;  %v7229_v58 = vld [vmem:[#allocation8 + $0x488] ss:$16 sps:$4 sm:$0xff]  }
 0x23e   :  { %v4075_v39 = vpop.f32.mrf.mxu0  ;;  %4408 = vmatprep.subr.bf16.mxu1 %v7222_v28  ;;  %v4116_v48 = vpop.f32.mrf.mxu1  ;;  %v7276_v25 = vld [vmem:[#allocation8 + $0x7ac] ss:$16 sps:$4 sm:$0xff]   ;;  %v7271_v26 = vld [vmem:[#allocation8 + $0x5a8] ss:$16 sps:$4 sm:$0xff]  }
 0x23f   :  { %v8185_v41 = vadd.f32 %v4114_v40, %v4074_v45  ;;  %4368 = vmatpush1.bf16.msra.mxu0 %v7217_v31  ;;  %v7274_v28 = vld [vmem:[#allocation8 + $0x7a8] ss:$16 sps:$4 sm:$0xff]   ;;  %v7279_v29 = vld [vmem:[#allocation8 + $0x58c] ss:$16 sps:$4 sm:$0xff]  }
 0x240   :  { %4409 = vmatpush1.bf16.msra.mxu1 %v7220_v34  ;;  %v4076_v43 = vpop.f32.mrf.mxu0  ;;  %4369 = vmatprep.subr.bf16.mxu0 %v7225_v35  ;;  %v4117_v44 = vpop.f32.mrf.mxu1  ;;  %v7282_v30 = vld [vmem:[#allocation8 + $0x78c] ss:$16 sps:$4 sm:$0xff]   ;;  %v7277_v31 = vld [vmem:[#allocation8 + $0x588] ss:$16 sps:$4 sm:$0xff]  }
 0x241   :  { %4410 = vmatprep.subr.bf16.mxu1 %v7228_v54  ;;  %v7280_v32 = vld [vmem:[#allocation8 + $0x788] ss:$16 sps:$4 sm:$0xff]   ;;  %v7285_v34 = vld [vmem:[#allocation8 + $0x56c] ss:$16 sps:$4 sm:$0xff]  }
 0x242   :  { %v7288_v35 = vld [vmem:[#allocation8 + $0x76c] ss:$16 sps:$4 sm:$0xff]   ;;  %v7283_v45 = vld [vmem:[#allocation8 + $0x568] ss:$16 sps:$4 sm:$0xff]  }
 0x243   :  { %4370 = vmatpush1.bf16.msra.mxu0 %v7223_v4  ;;  %v7286_v40 = vld [vmem:[#allocation8 + $0x768] ss:$16 sps:$4 sm:$0xff]   ;;  %v7291_v54 = vld [vmem:[#allocation8 + $0x54c] ss:$16 sps:$4 sm:$0xff]  }
 0x244   :  { %4411 = vmatpush1.bf16.msra.mxu1 %v7226_v33  ;;  %4371 = vmatprep.subr.bf16.mxu0 %v7231_v59  ;;  %v7294_v39 = vld [vmem:[#allocation8 + $0x74c] ss:$16 sps:$4 sm:$0xff]   ;;  %v7289_v48 = vld [vmem:[#allocation8 + $0x548] ss:$16 sps:$4 sm:$0xff]  }
 0x245   :  { %4412 = vmatprep.subr.bf16.mxu1 %v7234_v8  ;;  %v7292_v4 = vld [vmem:[#allocation8 + $0x748] ss:$16 sps:$4 sm:$0xff]   ;;  %v7297_v43 = vld [vmem:[#allocation8 + $0x52c] ss:$16 sps:$4 sm:$0xff]  }
 0x246   :  { %v7300_v33 = vld [vmem:[#allocation8 + $0x72c] ss:$16 sps:$4 sm:$0xff]   ;;  %v7295_v59 = vld [vmem:[#allocation8 + $0x528] ss:$16 sps:$4 sm:$0xff]  }
 0x247   :  { %4372 = vmatpush1.bf16.msra.mxu0 %v7229_v58  ;;  %v7298_v44 = vld [vmem:[#allocation8 + $0x728] ss:$16 sps:$4 sm:$0xff]   ;;  %v7303_v8 = vld [vmem:[#allocation8 + $0x50c] ss:$16 sps:$4 sm:$0xff]  }
 0x248   :  { %4413 = vmatpush1.bf16.msra.mxu1 %v7232_v51  ;;  %4373 = vmatprep.subr.bf16.mxu0 %v7237_v52  ;;  %v7306_v58 = vld [vmem:[#allocation8 + $0x70c] ss:$16 sps:$4 sm:$0xff]   ;;  %v7301_v51 = vld [vmem:[#allocation8 + $0x508] ss:$16 sps:$4 sm:$0xff]  }
 0x249   :  { %4414 = vmatprep.subr.bf16.mxu1 %v7240_v53  ;;  %v7304_v52 = vld [vmem:[#allocation8 + $0x708] ss:$16 sps:$4 sm:$0xff]   ;;  %v7309_v53 = vld [vmem:[#allocation8 + $0x8ec] ss:$16 sps:$4 sm:$0xff]  }
 0x24b   :  { %4374 = vmatpush1.bf16.msra.mxu0 %v7235_v19  ;;  %v7312_v19 = vld [vmem:[#allocation8 + $0xaec] ss:$16 sps:$4 sm:$0xff]  }
 0x24c   :  { %4415 = vmatpush1.bf16.msra.mxu1 %v7238_v15  ;;  %4375 = vmatprep.subr.bf16.mxu0 %v7243_v56  ;;  %v7307_v15 = vld [vmem:[#allocation8 + $0x8e8] ss:$16 sps:$4 sm:$0xff]  }
 0x24d   :  { %4416 = vmatprep.subr.bf16.mxu1 %v7246_v57  ;;  %v7310_v56 = vld [vmem:[#allocation8 + $0xae8] ss:$16 sps:$4 sm:$0xff]   ;;  %v7315_v57 = vld [vmem:[#allocation8 + $0x8cc] ss:$16 sps:$4 sm:$0xff]  }
 0x24f   :  { %4376 = vmatpush1.bf16.msra.mxu0 %v7241_v12 }
 0x250   :  { %4417 = vmatpush1.bf16.msra.mxu1 %v7244_v60  ;;  %4377 = vmatprep.subr.bf16.mxu0 %v7249_v61  ;;  %v7318_v60 = vld [vmem:[#allocation8 + $0xacc] ss:$16 sps:$4 sm:$0xff]  }
 0x251   :  { %4418 = vmatprep.subr.bf16.mxu1 %v7252_v42 }
 0x253   :  { %4378 = vmatpush1.bf16.msra.mxu0 %v7247_v63  ;;  %v7313_v63 = vld [vmem:[#allocation8 + $0x8c8] ss:$16 sps:$4 sm:$0xff]  }
 0x254   :  { %4419 = vmatpush1.bf16.msra.mxu1 %v7250_v49  ;;  %4379 = vmatprep.subr.bf16.mxu0 %v7255_v55  ;;  %v7316_v55 = vld [vmem:[#allocation8 + $0xac8] ss:$16 sps:$4 sm:$0xff]  }
 0x255   :  { %4420 = vmatprep.subr.bf16.mxu1 %v7258_v5  ;;  %v7321_v5 = vld [vmem:[#allocation8 + $0x8ac] ss:$16 sps:$4 sm:$0xff]  }
 0x257   :  { %4380 = vmatpush1.bf16.msra.mxu0 %v7253_v46 }
 0x258   :  { %4421 = vmatpush1.bf16.msra.mxu1 %v7256_v6  ;;  %4381 = vmatprep.subr.bf16.mxu0 %v7261_v7 }
 0x259   :  { %4422 = vmatprep.subr.bf16.mxu1 %v7264_v50 }
 0x25b   :  { %4382 = vmatpush2.bf16.msra.mxu0 %v7259_v13 }
 0x25c   :  { %4423 = vmatpush2.bf16.msra.mxu1 %v7262_v47  ;;  %4383 = vmatprep.subr.bf16.mxu0 %v7267_v14  ;;  %v7322_v47 = vld [vmem:[#allocation8 + $0xaa8] ss:$16 sps:$4 sm:$0xff]   ;;  %v7327_v14 = vld [vmem:[#allocation8 + $0x88c] ss:$16 sps:$4 sm:$0xff]  }
 0x25d   :  { %4424 = vmatprep.subr.bf16.mxu1 %v7270_v16 }
 0x25f   :  { %4384 = vmatpush2.bf16.msra.mxu0 %v7265_v21  ;;  %v7328_v21 = vld [vmem:[#allocation8 + $0xa88] ss:$16 sps:$4 sm:$0xff]  }
 0x260   :  { %4425 = vmatpush2.bf16.msra.mxu1 %v7268_v20  ;;  %4385 = vmatprep.subr.bf16.mxu0 %v7273_v23  ;;  %v7333_v20 = vld [vmem:[#allocation8 + $0x86c] ss:$16 sps:$4 sm:$0xff]  }
 0x261   :  { %4426 = vmatprep.subr.bf16.mxu1 %v7276_v25  ;;  %v7336_v23 = vld [vmem:[#allocation8 + $0xa6c] ss:$16 sps:$4 sm:$0xff]   ;;  %v7331_v25 = vld [vmem:[#allocation8 + $0x868] ss:$16 sps:$4 sm:$0xff]  }
 0x263   :  { %4386 = vmatpush2.bf16.msra.mxu0 %v7271_v26  ;;  %v7334_v26 = vld [vmem:[#allocation8 + $0xa68] ss:$16 sps:$4 sm:$0xff]  }
 0x264   :  { %4427 = vmatpush2.bf16.msra.mxu1 %v7274_v28  ;;  %4387 = vmatprep.subr.bf16.mxu0 %v7279_v29  ;;  %v7339_v28 = vld [vmem:[#allocation8 + $0x84c] ss:$16 sps:$4 sm:$0xff]  }
 0x265   :  { %4428 = vmatprep.subr.bf16.mxu1 %v7282_v30  ;;  %v7342_v29 = vld [vmem:[#allocation8 + $0xa4c] ss:$16 sps:$4 sm:$0xff]   ;;  %v7337_v30 = vld [vmem:[#allocation8 + $0x848] ss:$16 sps:$4 sm:$0xff]  }
 0x267   :  { %4388 = vmatpush2.bf16.msra.mxu0 %v7277_v31  ;;  %v7340_v31 = vld [vmem:[#allocation8 + $0xa48] ss:$16 sps:$4 sm:$0xff]  }
 0x268   :  { %4429 = vmatpush2.bf16.msra.mxu1 %v7280_v32  ;;  %4389 = vmatprep.subr.bf16.mxu0 %v7285_v34  ;;  %v7345_v32 = vld [vmem:[#allocation8 + $0x82c] ss:$16 sps:$4 sm:$0xff]  }
 0x269   :  { %4430 = vmatprep.subr.bf16.mxu1 %v7288_v35  ;;  %v7348_v34 = vld [vmem:[#allocation8 + $0xa2c] ss:$16 sps:$4 sm:$0xff]   ;;  %v7343_v35 = vld [vmem:[#allocation8 + $0x828] ss:$16 sps:$4 sm:$0xff]  }
 0x26b   :  { %4390 = vmatpush2.bf16.msra.mxu0 %v7283_v45  ;;  %v7346_v45 = vld [vmem:[#allocation8 + $0xa28] ss:$16 sps:$4 sm:$0xff]  }
 0x26c   :  { %4431 = vmatpush2.bf16.msra.mxu1 %v7286_v40  ;;  %4391 = vmatprep.subr.bf16.mxu0 %v7291_v54  ;;  %v7351_v40 = vld [vmem:[#allocation8 + $0x80c] ss:$16 sps:$4 sm:$0xff]  }
 0x26d   :  { %4432 = vmatprep.subr.bf16.mxu1 %v7294_v39  ;;  %v7354_v54 = vld [vmem:[#allocation8 + $0xa0c] ss:$16 sps:$4 sm:$0xff]   ;;  %v7349_v39 = vld [vmem:[#allocation8 + $0x808] ss:$16 sps:$4 sm:$0xff]  }
 0x26f   :  { %4392 = vmatpush2.bf16.msra.mxu0 %v7289_v48  ;;  %v7352_v48 = vld [vmem:[#allocation8 + $0xa08] ss:$16 sps:$4 sm:$0xff]  }
 0x270   :  { %4433 = vmatpush2.bf16.msra.mxu1 %v7292_v4  ;;  %4393 = vmatprep.subr.bf16.mxu0 %v7297_v43  ;;  %v7357_v4 = vld [vmem:[#allocation8 + $0x9ec] ss:$16 sps:$4 sm:$0xff]  }
 0x271   :  { %4434 = vmatprep.subr.bf16.mxu1 %v7300_v33  ;;  %v7360_v43 = vld [vmem:[#allocation8 + $0xbec] ss:$16 sps:$4 sm:$0xff]   ;;  %v7355_v33 = vld [vmem:[#allocation8 + $0x9e8] ss:$16 sps:$4 sm:$0xff]  }
 0x273   :  { %4394 = vmatpush2.bf16.msra.mxu0 %v7295_v59  ;;  %v7358_v59 = vld [vmem:[#allocation8 + $0xbe8] ss:$16 sps:$4 sm:$0xff]  }
 0x274   :  { %4435 = vmatpush2.bf16.msra.mxu1 %v7298_v44  ;;  %4395 = vmatprep.subr.bf16.mxu0 %v7303_v8  ;;  %v7363_v44 = vld [vmem:[#allocation8 + $0x9cc] ss:$16 sps:$4 sm:$0xff]  }
 0x275   :  { %4436 = vmatprep.subr.bf16.mxu1 %v7306_v58  ;;  %v7366_v8 = vld [vmem:[#allocation8 + $0xbcc] ss:$16 sps:$4 sm:$0xff]   ;;  %v7361_v58 = vld [vmem:[#allocation8 + $0x9c8] ss:$16 sps:$4 sm:$0xff]  }
 0x277   :  { %4396 = vmatpush2.bf16.msra.mxu0 %v7301_v51  ;;  %v7364_v51 = vld [vmem:[#allocation8 + $0xbc8] ss:$16 sps:$4 sm:$0xff]  }
 0x278   :  { %4437 = vmatpush2.bf16.msra.mxu1 %v7304_v52  ;;  %4447 = vmatprep.subr.bf16.mxu0 %v7309_v53  ;;  %v7369_v52 = vld [vmem:[#allocation8 + $0x9ac] ss:$16 sps:$4 sm:$0xff]  }
 0x279   :  { %4488 = vmatprep.subr.bf16.mxu1 %v7312_v19  ;;  %v7372_v53 = vld [vmem:[#allocation8 + $0xbac] ss:$16 sps:$4 sm:$0xff]   ;;  %v7367_v19 = vld [vmem:[#allocation8 + $0x9a8] ss:$16 sps:$4 sm:$0xff]  }
 0x27a   :  { %v4153_v12 = vpop.f32.mrf.mxu0  ;;  %4398 = vmatmul.mubr.bf16.vlgmr.msra.gmra.mxu0 %v8123_v17  ;;  %v4194_v42 = vpop.f32.mrf.mxu1 }
 0x27b   :  { %v4154_v61 = vadd.f32 %v4153_v12, %v8181_v36  ;;  %4439 = vmatmul.mubr.bf16.vlgmr.msra.gmra.mxu1 %v8121_v22  ;;  %4448 = vmatpush1.bf16.msra.mxu0 %v7307_v15  ;;  %v7324_v36 = vld [vmem:[#allocation8 + $0xaac] ss:$16 sps:$4 sm:$0xff]   ;;  %v7370_v15 = vld [vmem:[#allocation8 + $0xba8] ss:$16 sps:$4 sm:$0xff]  }
 0x27c   :  { %4479 = vmatprep.mubr.bf16.mxu0 %v8125_v24  ;;  %4489 = vmatpush1.bf16.msra.mxu1 %v7310_v56  ;;  %v4155_v49 = vpop.f32.mrf.mxu0  ;;  %v4196_v6 = vpop.f32.mrf.mxu1  ;;  %v7319_v24 = vld [vmem:[#allocation8 + $0x8a8] ss:$16 sps:$4 sm:$0xff]   ;;  %v7375_v56 = vld [vmem:[#allocation8 + $0x98c] ss:$16 sps:$4 sm:$0xff]  }
 0x27d   :  { %v8191_v46 = vadd.f32 %v4194_v42, %v4154_v61  ;;  %4520 = vmatprep.mubr.bf16.mxu1 %v8128_v27  ;;  %v4156_v17 = vadd.f32 %v4155_v49, %v8185_v41  ;;  %4449 = vmatprep.subr.bf16.mxu0 %v7315_v57  ;;  %v7330_v27 = vld [vmem:[#allocation8 + $0xa8c] ss:$16 sps:$4 sm:$0xff]   ;;  %v7325_v41 = vld [vmem:[#allocation8 + $0x888] ss:$16 sps:$4 sm:$0xff]  }
 0x27e   :  { %v4157_v7 = vpop.f32.mrf.mxu0  ;;  %4490 = vmatprep.subr.bf16.mxu1 %v7318_v60  ;;  %v4198_v50 = vpop.f32.mrf.mxu1  ;;  %v7378_v57 = vld [vmem:[#allocation8 + $0xb8c] ss:$16 sps:$4 sm:$0xff]   ;;  %v7373_v12 = vld [vmem:[#allocation8 + $0x988] ss:$16 sps:$4 sm:$0xff]  }
 0x27f   :  { %v8195_v22 = vadd.f32 %v4196_v6, %v4156_v17  ;;  %4450 = vmatpush1.bf16.msra.mxu0 %v7313_v63  ;;  %v7376_v60 = vld [vmem:[#allocation8 + $0xb88] ss:$16 sps:$4 sm:$0xff]   ;;  %v7381_v61 = vld [vmem:[#allocation8 + $0x96c] ss:$16 sps:$4 sm:$0xff]  }
 0x280   :  { %4491 = vmatpush1.bf16.msra.mxu1 %v7316_v55  ;;  %v4158_v13 = vpop.f32.mrf.mxu0  ;;  %4451 = vmatprep.subr.bf16.mxu0 %v7321_v5  ;;  %v4199_v16 = vpop.f32.mrf.mxu1  ;;  %v7384_v42 = vld [vmem:[#allocation8 + $0xb6c] ss:$16 sps:$4 sm:$0xff]   ;;  %v7379_v63 = vld [vmem:[#allocation8 + $0x968] ss:$16 sps:$4 sm:$0xff]  }
 0x281   :  { %4492 = vmatprep.subr.bf16.mxu1 %v7324_v36  ;;  %v7382_v49 = vld [vmem:[#allocation8 + $0xb68] ss:$16 sps:$4 sm:$0xff]   ;;  %v7387_v55 = vld [vmem:[#allocation8 + $0x94c] ss:$16 sps:$4 sm:$0xff]  }
 0x282   :  { %v7390_v5 = vld [vmem:[#allocation8 + $0xb4c] ss:$16 sps:$4 sm:$0xff]   ;;  %v7385_v17 = vld [vmem:[#allocation8 + $0x948] ss:$16 sps:$4 sm:$0xff]  }
 0x283   :  { %4452 = vmatpush1.bf16.msra.mxu0 %v7319_v24  ;;  %v7388_v6 = vld [vmem:[#allocation8 + $0xb48] ss:$16 sps:$4 sm:$0xff]   ;;  %v7393_v36 = vld [vmem:[#allocation8 + $0x92c] ss:$16 sps:$4 sm:$0xff]  }
 0x284   :  { %4493 = vmatpush1.bf16.msra.mxu1 %v7322_v47  ;;  %4453 = vmatprep.subr.bf16.mxu0 %v7327_v14  ;;  %v7396_v7 = vld [vmem:[#allocation8 + $0xb2c] ss:$16 sps:$4 sm:$0xff]   ;;  %v7391_v50 = vld [vmem:[#allocation8 + $0x928] ss:$16 sps:$4 sm:$0xff]  }
 0x285   :  { %4494 = vmatprep.subr.bf16.mxu1 %v7330_v27  ;;  %v7394_v24 = vld [vmem:[#allocation8 + $0xb28] ss:$16 sps:$4 sm:$0xff]   ;;  %v7399_v13 = vld [vmem:[#allocation8 + $0x90c] ss:$16 sps:$4 sm:$0xff]  }
 0x286   :  { %v7402_v47 = vld [vmem:[#allocation8 + $0xb0c] ss:$16 sps:$4 sm:$0xff]   ;;  %v7397_v14 = vld [vmem:[#allocation8 + $0x908] ss:$16 sps:$4 sm:$0xff]  }
 0x287   :  { %4454 = vmatpush1.bf16.msra.mxu0 %v7325_v41  ;;  %v7400_v16 = vld [vmem:[#allocation8 + $0xb08] ss:$16 sps:$4 sm:$0xff]   ;;  %v7405_v27 = vld [vmem:[#allocation8 + $0xcec] ss:$16 sps:$4 sm:$0xff]  }
 0x288   :  { %4495 = vmatpush1.bf16.msra.mxu1 %v7328_v21  ;;  %4455 = vmatprep.subr.bf16.mxu0 %v7333_v20  ;;  %v7408_v41 = vld [vmem:[#allocation8 + $0xeec] ss:$16 sps:$4 sm:$0xff]   ;;  %v7403_v21 = vld [vmem:[#allocation8 + $0xce8] ss:$16 sps:$4 sm:$0xff]  }
 0x289   :  { %4496 = vmatprep.subr.bf16.mxu1 %v7336_v23  ;;  %v7406_v20 = vld [vmem:[#allocation8 + $0xee8] ss:$16 sps:$4 sm:$0xff]   ;;  %v7411_v23 = vld [vmem:[#allocation8 + $0xccc] ss:$16 sps:$4 sm:$0xff]  }
 0x28b   :  { %4456 = vmatpush1.bf16.msra.mxu0 %v7331_v25 }
 0x28c   :  { %4497 = vmatpush1.bf16.msra.mxu1 %v7334_v26  ;;  %4457 = vmatprep.subr.bf16.mxu0 %v7339_v28  ;;  %v7414_v26 = vld [vmem:[#allocation8 + $0xecc] ss:$16 sps:$4 sm:$0xff]  }
 0x28d   :  { %4498 = vmatprep.subr.bf16.mxu1 %v7342_v29 }
 0x28f   :  { %4458 = vmatpush1.bf16.msra.mxu0 %v7337_v30  ;;  %v7409_v30 = vld [vmem:[#allocation8 + $0xcc8] ss:$16 sps:$4 sm:$0xff]  }
 0x290   :  { %4499 = vmatpush1.bf16.msra.mxu1 %v7340_v31  ;;  %4459 = vmatprep.subr.bf16.mxu0 %v7345_v32  ;;  %v7412_v32 = vld [vmem:[#allocation8 + $0xec8] ss:$16 sps:$4 sm:$0xff]  }
 0x291   :  { %4500 = vmatprep.subr.bf16.mxu1 %v7348_v34  ;;  %v7417_v34 = vld [vmem:[#allocation8 + $0xcac] ss:$16 sps:$4 sm:$0xff]  }
 0x293   :  { %4460 = vmatpush1.bf16.msra.mxu0 %v7343_v35 }
 0x294   :  { %4501 = vmatpush1.bf16.msra.mxu1 %v7346_v45  ;;  %4461 = vmatprep.subr.bf16.mxu0 %v7351_v40  ;;  %v7415_v40 = vld [vmem:[#allocation8 + $0xca8] ss:$16 sps:$4 sm:$0xff]  }
 0x295   :  { %4502 = vmatprep.subr.bf16.mxu1 %v7354_v54  ;;  %v7418_v54 = vld [vmem:[#allocation8 + $0xea8] ss:$16 sps:$4 sm:$0xff]  }
 0x297   :  { %4462 = vmatpush1.bf16.msra.mxu0 %v7349_v39  ;;  %v7423_v39 = vld [vmem:[#allocation8 + $0xc8c] ss:$16 sps:$4 sm:$0xff]  }
 0x298   :  { %4503 = vmatpush1.bf16.msra.mxu1 %v7352_v48  ;;  %4463 = vmatprep.subr.bf16.mxu0 %v7357_v4  ;;  %v7426_v4 = vld [vmem:[#allocation8 + $0xe8c] ss:$16 sps:$4 sm:$0xff]  }
 0x299   :  { %4504 = vmatprep.subr.bf16.mxu1 %v7360_v43  ;;  %v7421_v43 = vld [vmem:[#allocation8 + $0xc88] ss:$16 sps:$4 sm:$0xff]  }
 0x29b   :  { %4464 = vmatpush2.bf16.msra.mxu0 %v7355_v33  ;;  %v7429_v33 = vld [vmem:[#allocation8 + $0xc6c] ss:$16 sps:$4 sm:$0xff]  }
 0x29c   :  { %4505 = vmatpush2.bf16.msra.mxu1 %v7358_v59  ;;  %4465 = vmatprep.subr.bf16.mxu0 %v7363_v44  ;;  %v7432_v59 = vld [vmem:[#allocation8 + $0xe6c] ss:$16 sps:$4 sm:$0xff]   ;;  %v7427_v44 = vld [vmem:[#allocation8 + $0xc68] ss:$16 sps:$4 sm:$0xff]  }
 0x29d   :  { %4506 = vmatprep.subr.bf16.mxu1 %v7366_v8  ;;  %v7430_v8 = vld [vmem:[#allocation8 + $0xe68] ss:$16 sps:$4 sm:$0xff]  }
 0x29f   :  { %4466 = vmatpush2.bf16.msra.mxu0 %v7361_v58  ;;  %v7435_v58 = vld [vmem:[#allocation8 + $0xc4c] ss:$16 sps:$4 sm:$0xff]  }
 0x2a0   :  { %4507 = vmatpush2.bf16.msra.mxu1 %v7364_v51  ;;  %4467 = vmatprep.subr.bf16.mxu0 %v7369_v52  ;;  %v7438_v51 = vld [vmem:[#allocation8 + $0xe4c] ss:$16 sps:$4 sm:$0xff]   ;;  %v7433_v52 = vld [vmem:[#allocation8 + $0xc48] ss:$16 sps:$4 sm:$0xff]  }
 0x2a1   :  { %4508 = vmatprep.subr.bf16.mxu1 %v7372_v53  ;;  %v7436_v53 = vld [vmem:[#allocation8 + $0xe48] ss:$16 sps:$4 sm:$0xff]  }
 0x2a3   :  { %4468 = vmatpush2.bf16.msra.mxu0 %v7367_v19  ;;  %v7441_v19 = vld [vmem:[#allocation8 + $0xc2c] ss:$16 sps:$4 sm:$0xff]  }
 0x2a4   :  { %4509 = vmatpush2.bf16.msra.mxu1 %v7370_v15  ;;  %4469 = vmatprep.subr.bf16.mxu0 %v7375_v56  ;;  %v7444_v15 = vld [vmem:[#allocation8 + $0xe2c] ss:$16 sps:$4 sm:$0xff]   ;;  %v7439_v56 = vld [vmem:[#allocation8 + $0xc28] ss:$16 sps:$4 sm:$0xff]  }
 0x2a5   :  { %4510 = vmatprep.subr.bf16.mxu1 %v7378_v57  ;;  %v7442_v57 = vld [vmem:[#allocation8 + $0xe28] ss:$16 sps:$4 sm:$0xff]  }
 0x2a7   :  { %4470 = vmatpush2.bf16.msra.mxu0 %v7373_v12  ;;  %v7447_v12 = vld [vmem:[#allocation8 + $0xc0c] ss:$16 sps:$4 sm:$0xff]  }
 0x2a8   :  { %4511 = vmatpush2.bf16.msra.mxu1 %v7376_v60  ;;  %4471 = vmatprep.subr.bf16.mxu0 %v7381_v61  ;;  %v7450_v60 = vld [vmem:[#allocation8 + $0xe0c] ss:$16 sps:$4 sm:$0xff]   ;;  %v7445_v61 = vld [vmem:[#allocation8 + $0xc08] ss:$16 sps:$4 sm:$0xff]  }
 0x2a9   :  { %4512 = vmatprep.subr.bf16.mxu1 %v7384_v42  ;;  %v7448_v42 = vld [vmem:[#allocation8 + $0xe08] ss:$16 sps:$4 sm:$0xff]  }
 0x2ab   :  { %4472 = vmatpush2.bf16.msra.mxu0 %v7379_v63  ;;  %v7453_v63 = vld [vmem:[#allocation8 + $0xdec] ss:$16 sps:$4 sm:$0xff]  }
 0x2ac   :  { %4513 = vmatpush2.bf16.msra.mxu1 %v7382_v49  ;;  %4473 = vmatprep.subr.bf16.mxu0 %v7387_v55  ;;  %v7456_v49 = vld [vmem:[#allocation8 + $0xfec] ss:$16 sps:$4 sm:$0xff]   ;;  %v7451_v55 = vld [vmem:[#allocation8 + $0xde8] ss:$16 sps:$4 sm:$0xff]  }
 0x2ad   :  { %4514 = vmatprep.subr.bf16.mxu1 %v7390_v5  ;;  %v7454_v5 = vld [vmem:[#allocation8 + $0xfe8] ss:$16 sps:$4 sm:$0xff]  }
 0x2af   :  { %4474 = vmatpush2.bf16.msra.mxu0 %v7385_v17  ;;  %v7459_v17 = vld [vmem:[#allocation8 + $0xdcc] ss:$16 sps:$4 sm:$0xff]  }
 0x2b0   :  { %4515 = vmatpush2.bf16.msra.mxu1 %v7388_v6  ;;  %4475 = vmatprep.subr.bf16.mxu0 %v7393_v36  ;;  %v7462_v6 = vld [vmem:[#allocation8 + $0xfcc] ss:$16 sps:$4 sm:$0xff]   ;;  %v7457_v36 = vld [vmem:[#allocation8 + $0xdc8] ss:$16 sps:$4 sm:$0xff]  }
 0x2b1   :  { %4516 = vmatprep.subr.bf16.mxu1 %v7396_v7  ;;  %v7460_v7 = vld [vmem:[#allocation8 + $0xfc8] ss:$16 sps:$4 sm:$0xff]  }
 0x2b3   :  { %4476 = vmatpush2.bf16.msra.mxu0 %v7391_v50  ;;  %v7465_v50 = vld [vmem:[#allocation8 + $0xdac] ss:$16 sps:$4 sm:$0xff]  }
 0x2b4   :  { %4517 = vmatpush2.bf16.msra.mxu1 %v7394_v24  ;;  %4477 = vmatprep.subr.bf16.mxu0 %v7399_v13  ;;  %v7468_v24 = vld [vmem:[#allocation8 + $0xfac] ss:$16 sps:$4 sm:$0xff]   ;;  %v7463_v13 = vld [vmem:[#allocation8 + $0xda8] ss:$16 sps:$4 sm:$0xff]  }
 0x2b5   :  { %4518 = vmatprep.subr.bf16.mxu1 %v7402_v47  ;;  %v7466_v47 = vld [vmem:[#allocation8 + $0xfa8] ss:$16 sps:$4 sm:$0xff]  }
 0x2b7   :  { %4478 = vmatpush2.bf16.msra.mxu0 %v7397_v14  ;;  %v7471_v14 = vld [vmem:[#allocation8 + $0xd8c] ss:$16 sps:$4 sm:$0xff]  }
 0x2b8   :  { %4519 = vmatpush2.bf16.msra.mxu1 %v7400_v16  ;;  %4529 = vmatprep.subr.bf16.mxu0 %v7405_v27  ;;  %v7474_v16 = vld [vmem:[#allocation8 + $0xf8c] ss:$16 sps:$4 sm:$0xff]   ;;  %v7469_v27 = vld [vmem:[#allocation8 + $0xd88] ss:$16 sps:$4 sm:$0xff]  }
 0x2b9   :  { %4570 = vmatprep.subr.bf16.mxu1 %v7408_v41  ;;  %v7472_v41 = vld [vmem:[#allocation8 + $0xf88] ss:$16 sps:$4 sm:$0xff]  }
 0x2ba   :  { %v4235_v25 = vpop.f32.mrf.mxu0  ;;  %4480 = vmatmul.mubr.bf16.vlgmr.msra.gmra.mxu0 %v8145_v1  ;;  %v4276_v29 = vpop.f32.mrf.mxu1 }
 0x2bb   :  { %v4236_v28 = vadd.f32 %v4235_v25, %v8191_v46  ;;  %4521 = vmatmul.mubr.bf16.vlgmr.msra.gmra.mxu1 %v8143_v62  ;;  %4530 = vmatpush1.bf16.msra.mxu0 %v7403_v21  ;;  %v7420_v46 = vld [vmem:[#allocation8 + $0xeac] ss:$16 sps:$4 sm:$0xff]   ;;  %v7478_v25 = vld [vmem:[#allocation8 + $0xf68] ss:$16 sps:$4 sm:$0xff]  }
 0x2bc   :  { %4561 = vmatprep.mubr.bf16.mxu0 %v8147_v2  ;;  %4571 = vmatpush1.bf16.msra.mxu1 %v7406_v20  ;;  %v8201_v31 = vpop.f32.mrf.mxu0  ;;  %v8206_v1 = vpop.f32.mrf.mxu1  ;;  %v7477_v21 = vld [vmem:[#allocation8 + $0xd6c] ss:$16 sps:$4 sm:$0xff]  }
 0x2bd   :  { %v8203_v35 = vadd.f32 %v4276_v29, %v4236_v28  ;;  %4602 = vmatprep.mubr.bf16.mxu1 %v8149_v3  ;;  %4531 = vmatprep.subr.bf16.mxu0 %v7411_v23  ;;  %v7424_v3 = vld [vmem:[#allocation8 + $0xe88] ss:$16 sps:$4 sm:$0xff]   ;;  %v7480_v20 = vld [vmem:[#allocation8 + $0xf6c] ss:$16 sps:$4 sm:$0xff]  }
 0x2be   :  { %v4239_v45 = vpop.f32.mrf.mxu0  ;;  %4572 = vmatprep.subr.bf16.mxu1 %v7414_v26  ;;  %v4280_v62 = vpop.f32.mrf.mxu1  ;;  %v7475_v23 = vld [vmem:[#allocation8 + $0xd68] ss:$16 sps:$4 sm:$0xff]   ;;  %v7483_v26 = vld [vmem:[#allocation8 + $0xd4c] ss:$16 sps:$4 sm:$0xff]  }
 0x2bf   :  { %4532 = vmatpush1.bf16.msra.mxu0 %v7409_v30  ;;  %v7486_v28 = vld [vmem:[#allocation8 + $0xf4c] ss:$16 sps:$4 sm:$0xff]   ;;  %v7481_v29 = vld [vmem:[#allocation8 + $0xd48] ss:$16 sps:$4 sm:$0xff]  }
 0x2c0   :  { %4573 = vmatpush1.bf16.msra.mxu1 %v7412_v32  ;;  %v4240_v2 = vpop.f32.mrf.mxu0  ;;  %4533 = vmatprep.subr.bf16.mxu0 %v7417_v34  ;;  %v4281_v48 = vpop.f32.mrf.mxu1  ;;  %v7484_v30 = vld [vmem:[#allocation8 + $0xf48] ss:$16 sps:$4 sm:$0xff]   ;;  %v7489_v32 = vld [vmem:[#allocation8 + $0xd2c] ss:$16 sps:$4 sm:$0xff]  }
 0x2c1   :  { %4574 = vmatprep.subr.bf16.mxu1 %v7420_v46  ;;  %v7492_v34 = vld [vmem:[#allocation8 + $0xf2c] ss:$16 sps:$4 sm:$0xff]   ;;  %v4238_v46 = vadd.f32 %v8201_v31, %v8195_v22  ;;  %v7487_v45 = vld [vmem:[#allocation8 + $0xd28] ss:$16 sps:$4 sm:$0xff]   ;;  %v1370_v48 = vrot.slane %v8155_v18, %v8031_v10  ;;  %v1374_v22 = vrot.slane %v8155_v18, %v8035_v11  ;;  %v7502_v18 = vld [vmem:[#allocation11 + $0xc0] ss:$16 sps:$4 sm:$0xff]  }
 0x2c2   :  { %v7490_v62 = vld [vmem:[#allocation8 + $0xf28] ss:$16 sps:$4 sm:$0xff]   ;;  %v7498_v2 = vld [vmem:[#allocation8 + $0xf0c] ss:$16 sps:$4 sm:$0xff]  }
 0x2c3   :  { %4534 = vmatpush1.bf16.msra.mxu0 %v7415_v40  ;;  %v7495_v40 = vld [vmem:[#allocation8 + $0xd0c] ss:$16 sps:$4 sm:$0xff]  }
 0x2c4   :  { %4575 = vmatpush1.bf16.msra.mxu1 %v7418_v54  ;;  %4535 = vmatprep.subr.bf16.mxu0 %v7423_v39  ;;  %v4279_v54 = vadd.f32 %v8206_v1, %v4238_v46  ;;  %v7493_v39 = vld [vmem:[#allocation8 + $0xd08] ss:$16 sps:$4 sm:$0xff]  }
 0x2c5   :  { %4576 = vmatprep.subr.bf16.mxu1 %v7426_v4  ;;  %v7496_v4 = vld [vmem:[#allocation8 + $0xf08] ss:$16 sps:$4 sm:$0xff]  }
 0x2c6   :  { %v4612_v31 = vmax.f32 %v4279_v54, 0.0  ;;  %v7504_v1 = vld [vmem:[#allocation11 + $0xc4] ss:$16 sps:$4 sm:$0xff]   ;;  %v7529_v54 = vld [vmem:[#allocation11 + $0x1a0] ss:$16 sps:$4 sm:$0xff]  }
 0x2c7   :  { %4536 = vmatpush1.bf16.msra.mxu0 %v7421_v43  ;;  %v7501_v43 = vld [vmem:[#allocation11 + $0xe4] ss:$16 sps:$4 sm:$0xff]  }
 0x2c8   :  { %4577 = vmatpush1.bf16.msra.mxu1 %v7424_v3  ;;  %4537 = vmatprep.subr.bf16.mxu0 %v7429_v33  ;;  %v1390_v3 = vrot.slane %v1370_v48, %v8029_v9  ;;  %v7499_v33 = vld [vmem:[#allocation11 + $0xe0] ss:$16 sps:$4 sm:$0xff]   ;;  %v7618_v46 = vld [vmem:[#allocation11 + $0x204] ss:$16 sps:$4 sm:$0xff]  }
 0x2c9   :  { %4578 = vmatprep.subr.bf16.mxu1 %v7432_v59  ;;  %v1394_v59 = vrot.slane %v1374_v22, %v8029_v9  ;;  %v7619_v48 = vld [vmem:[#allocation11 + $0x3e0] ss:$16 sps:$4 sm:$0xff]   ;;  %v7537_v22 = vld [vmem:[#allocation11 + $0x164] ss:$16 sps:$4 sm:$0xff]  }
 0x2cb   :  { %4538 = vmatpush1.bf16.msra.mxu0 %v7427_v44  ;;  %v8217_v44 = vpack.c.bf16 %v4612_v31, %v4612_v31  ;;  %v7622_v31 = vld [vmem:[#allocation11 + $0x3c0] ss:$16 sps:$4 sm:$0xff]  }
 0x2cc   :  { %4579 = vmatpush1.bf16.msra.mxu1 %v7430_v8  ;;  %4539 = vmatprep.subr.bf16.mxu0 %v7435_v58 }
 0x2cd   :  { %4580 = vmatprep.subr.bf16.mxu1 %v7438_v51 }
 0x2cf   :  { %4540 = vmatpush1.bf16.msra.mxu0 %v7433_v52 }
 0x2d0   :  { %4581 = vmatpush1.bf16.msra.mxu1 %v7436_v53  ;;  %4541 = vmatprep.subr.bf16.mxu0 %v7441_v19  ;;  %v7507_v53 = vld [vmem:[#allocation11 + $0xa4] ss:$16 sps:$4 sm:$0xff]  }
 0x2d1   :  { %4582 = vmatprep.subr.bf16.mxu1 %v7444_v15 }
 0x2d3   :  { %4542 = vmatpush1.bf16.msra.mxu0 %v7439_v56 }
 0x2d4   :  { %4583 = vmatpush1.bf16.msra.mxu1 %v7442_v57  ;;  %4543 = vmatprep.subr.bf16.mxu0 %v7447_v12 }
 0x2d5   :  { %4584 = vmatprep.subr.bf16.mxu1 %v7450_v60 }
 0x2d7   :  { %4544 = vmatpush1.bf16.msra.mxu0 %v7445_v61 }
 0x2d8   :  { %4585 = vmatpush1.bf16.msra.mxu1 %v7448_v42  ;;  %4545 = vmatprep.subr.bf16.mxu0 %v7453_v63  ;;  %v7595_v63 = vld [vmem:[#allocation11 + $0x2e0] ss:$16 sps:$4 sm:$0xff]  }
 0x2d9   :  { %4586 = vmatprep.subr.bf16.mxu1 %v7456_v49  ;;  %v7597_v49 = vld [vmem:[#allocation11 + $0x2e4] ss:$16 sps:$4 sm:$0xff]  }
 0x2db   :  { %4546 = vmatpush2.bf16.msra.mxu0 %v7451_v55  ;;  %v7600_v55 = vld [vmem:[#allocation11 + $0x2c4] ss:$16 sps:$4 sm:$0xff]  }
 0x2dc   :  { %4587 = vmatpush2.bf16.msra.mxu1 %v7454_v5  ;;  %4547 = vmatprep.subr.bf16.mxu0 %v7459_v17  ;;  %v7508_v5 = vld [vmem:[#allocation11 + $0x80] ss:$16 sps:$4 sm:$0xff]   ;;  %v7513_v17 = vld [vmem:[#allocation11 + $0x64] ss:$16 sps:$4 sm:$0xff]  }
 0x2dd   :  { %4588 = vmatprep.subr.bf16.mxu1 %v7462_v6  ;;  %v7598_v6 = vld [vmem:[#allocation11 + $0x2c0] ss:$16 sps:$4 sm:$0xff]  }
 0x2df   :  { %4548 = vmatpush2.bf16.msra.mxu0 %v7457_v36  ;;  %v7603_v36 = vld [vmem:[#allocation11 + $0x2a4] ss:$16 sps:$4 sm:$0xff]  }
 0x2e0   :  { %4589 = vmatpush2.bf16.msra.mxu1 %v7460_v7  ;;  %4549 = vmatprep.subr.bf16.mxu0 %v7465_v50  ;;  %v7511_v7 = vld [vmem:[#allocation11 + $0x60] ss:$16 sps:$4 sm:$0xff]   ;;  %v7516_v50 = vld [vmem:[#allocation11 + $0x44] ss:$16 sps:$4 sm:$0xff]  }
 0x2e1   :  { %4590 = vmatprep.subr.bf16.mxu1 %v7468_v24  ;;  %v7601_v24 = vld [vmem:[#allocation11 + $0x2a0] ss:$16 sps:$4 sm:$0xff]  }
 0x2e3   :  { %4550 = vmatpush2.bf16.msra.mxu0 %v7463_v13  ;;  %v7606_v13 = vld [vmem:[#allocation11 + $0x284] ss:$16 sps:$4 sm:$0xff]  }
 0x2e4   :  { %4591 = vmatpush2.bf16.msra.mxu1 %v7466_v47  ;;  %4551 = vmatprep.subr.bf16.mxu0 %v7471_v14  ;;  %v7514_v47 = vld [vmem:[#allocation11 + $0x40] ss:$16 sps:$4 sm:$0xff]   ;;  %v7519_v14 = vld [vmem:[#allocation11 + $0x24] ss:$16 sps:$4 sm:$0xff]  }
 0x2e5   :  { %4592 = vmatprep.subr.bf16.mxu1 %v7474_v16  ;;  %v7604_v16 = vld [vmem:[#allocation11 + $0x280] ss:$16 sps:$4 sm:$0xff]  }
 0x2e7   :  { %4552 = vmatpush2.bf16.msra.mxu0 %v7469_v27  ;;  %v7609_v27 = vld [vmem:[#allocation11 + $0x264] ss:$16 sps:$4 sm:$0xff]  }
 0x2e8   :  { %4593 = vmatpush2.bf16.msra.mxu1 %v7472_v41  ;;  %4553 = vmatprep.subr.bf16.mxu0 %v7477_v21  ;;  %v7517_v41 = vld [vmem:[#allocation11 + $0x20] ss:$16 sps:$4 sm:$0xff]   ;;  %v7522_v21 = vld [vmem:[#allocation11 + $0x4] ss:$16 sps:$4 sm:$0xff]  }
 0x2e9   :  { %4594 = vmatprep.subr.bf16.mxu1 %v7480_v20  ;;  %v7607_v20 = vld [vmem:[#allocation11 + $0x260] ss:$16 sps:$4 sm:$0xff]  }
 0x2eb   :  { %4554 = vmatpush2.bf16.msra.mxu0 %v7475_v23  ;;  %v7612_v23 = vld [vmem:[#allocation11 + $0x244] ss:$16 sps:$4 sm:$0xff]  }
 0x2ec   :  { %4595 = vmatpush2.bf16.msra.mxu1 %v7478_v25  ;;  %4555 = vmatprep.subr.bf16.mxu0 %v7483_v26  ;;  %v7520_v25 = vld [vmem:[#allocation11] ss:$16 sps:$4 sm:$0xff]   ;;  %v7525_v26 = vld [vmem:[#allocation11 + $0x1e4] ss:$16 sps:$4 sm:$0xff]  }
 0x2ed   :  { %4596 = vmatprep.subr.bf16.mxu1 %v7486_v28  ;;  %v7610_v28 = vld [vmem:[#allocation11 + $0x240] ss:$16 sps:$4 sm:$0xff]  }
 0x2ef   :  { %4556 = vmatpush2.bf16.msra.mxu0 %v7481_v29  ;;  %v7615_v29 = vld [vmem:[#allocation11 + $0x224] ss:$16 sps:$4 sm:$0xff]  }
 0x2f0   :  { %4597 = vmatpush2.bf16.msra.mxu1 %v7484_v30  ;;  %4557 = vmatprep.subr.bf16.mxu0 %v7489_v32  ;;  %v7523_v30 = vld [vmem:[#allocation11 + $0x1e0] ss:$16 sps:$4 sm:$0xff]   ;;  %v7528_v32 = vld [vmem:[#allocation11 + $0x1c4] ss:$16 sps:$4 sm:$0xff]  }
 0x2f1   :  { %4598 = vmatprep.subr.bf16.mxu1 %v7492_v34  ;;  %v7613_v34 = vld [vmem:[#allocation11 + $0x220] ss:$16 sps:$4 sm:$0xff]  }
 0x2f3   :  { %4558 = vmatpush2.bf16.msra.mxu0 %v7487_v45  ;;  %v7526_v45 = vld [vmem:[#allocation11 + $0x1c0] ss:$16 sps:$4 sm:$0xff]  }
 0x2f4   :  { %4599 = vmatpush2.bf16.msra.mxu1 %v7490_v62  ;;  %4559 = vmatprep.subr.bf16.mxu0 %v7495_v40  ;;  %v7531_v62 = vld [vmem:[#allocation11 + $0x1a4] ss:$16 sps:$4 sm:$0xff]   ;;  %v7616_v40 = vld [vmem:[#allocation11 + $0x200] ss:$16 sps:$4 sm:$0xff]  }
 0x2f5   :  { %4600 = vmatprep.subr.bf16.mxu1 %v7498_v2  ;;  %v7621_v2 = vld [vmem:[#allocation11 + $0x3e4] ss:$16 sps:$4 sm:$0xff]  }
 0x2f7   :  { %4560 = vmatpush2.bf16.msra.mxu0 %v7493_v39  ;;  %v7534_v39 = vld [vmem:[#allocation11 + $0x184] ss:$16 sps:$4 sm:$0xff]  }
 0x2f8   :  { %4601 = vmatpush2.bf16.msra.mxu1 %v7496_v4  ;;  %5426 = vmatprep.subr.bf16.mxu0 %v7501_v43  ;;  %v7624_v4 = vld [vmem:[#allocation11 + $0x3c4] ss:$16 sps:$4 sm:$0xff]   ;;  %v7532_v43 = vld [vmem:[#allocation11 + $0x180] ss:$16 sps:$4 sm:$0xff]  }
 0x2f9   :  { %5467 = vmatprep.subr.bf16.mxu1 %v7597_v49  ;;  %v7552_v49 = vld [vmem:[#allocation11 + $0xcc] ss:$16 sps:$4 sm:$0xff]  }
 0x2fa   :  { %v4317_v8 = vpop.f32.mrf.mxu0  ;;  %4562 = vmatmul.mubr.bf16.vlgmr.msra.gmra.mxu0 %v8164_v37  ;;  %v7505_v37 = vld [vmem:[#allocation11 + $0xa0] ss:$16 sps:$4 sm:$0xff]  }
 0x2fb   :  { %v4318_v58 = vadd.f32 %v4317_v8, %v1390_v3  ;;  %v4358_v51 = vpop.f32.mrf.mxu1  ;;  %4603 = vmatmul.mubr.bf16.vlgmr.msra.gmra.mxu1 %v8166_v38  ;;  %5427 = vmatpush1.bf16.msra.mxu0 %v7499_v33  ;;  %v7510_v38 = vld [vmem:[#allocation11 + $0x84] ss:$16 sps:$4 sm:$0xff]   ;;  %v7535_v33 = vld [vmem:[#allocation11 + $0x160] ss:$16 sps:$4 sm:$0xff]  }
 0x2fc   :  { %5458 = vmatprep.mubr.bf16.mxu0 %v8217_v44  ;;  %v4319_v52 = vpop.f32.mrf.mxu0  ;;  %5428 = vmatprep.subr.bf16.mxu0 %v7504_v1  ;;  %v7627_v3 = vld [vmem:[#allocation11 + $0x3a4] ss:$16 sps:$4 sm:$0xff]  }
 0x2fd   :  { %v8222_v19 = vadd.f32 %v4358_v51, %v4318_v58  ;;  %v4320_v15 = vadd.f32 %v4319_v52, %v1394_v59  ;;  %v4360_v56 = vpop.f32.mrf.mxu1  ;;  %5468 = vmatpush1.bf16.msra.mxu1 %v7595_v63  ;;  %v7540_v1 = vld [vmem:[#allocation11 + $0x144] ss:$16 sps:$4 sm:$0xff]   ;;  %v7625_v59 = vld [vmem:[#allocation11 + $0x3a0] ss:$16 sps:$4 sm:$0xff]  }
 0x2fe   :  { %v4321_v57 = vpop.f32.mrf.mxu0  ;;  %5469 = vmatprep.subr.bf16.mxu1 %v7600_v55  ;;  %v7630_v8 = vld [vmem:[#allocation11 + $0x384] ss:$16 sps:$4 sm:$0xff]   ;;  %v7538_v58 = vld [vmem:[#allocation11 + $0x140] ss:$16 sps:$4 sm:$0xff]  }
 0x2ff   :  { %v8224_v12 = vadd.f32 %v4360_v56, %v4320_v15  ;;  %v4362_v60 = vpop.f32.mrf.mxu1  ;;  %5429 = vmatpush1.bf16.msra.mxu0 %v7502_v18  ;;  %v7543_v51 = vld [vmem:[#allocation11 + $0x124] ss:$16 sps:$4 sm:$0xff]   ;;  %v7628_v18 = vld [vmem:[#allocation11 + $0x380] ss:$16 sps:$4 sm:$0xff]  }
 0x300   :  { %v4322_v61 = vpop.f32.mrf.mxu0  ;;  %5430 = vmatprep.subr.bf16.mxu0 %v7507_v53  ;;  %v7633_v52 = vld [vmem:[#allocation11 + $0x364] ss:$16 sps:$4 sm:$0xff]   ;;  %v7541_v53 = vld [vmem:[#allocation11 + $0x120] ss:$16 sps:$4 sm:$0xff]  }
 0x301   :  { %v4363_v42 = vpop.f32.mrf.mxu1  ;;  %5470 = vmatpush1.bf16.msra.mxu1 %v7598_v6  ;;  %v7546_v15 = vld [vmem:[#allocation11 + $0x104] ss:$16 sps:$4 sm:$0xff]   ;;  %v7631_v56 = vld [vmem:[#allocation11 + $0x360] ss:$16 sps:$4 sm:$0xff]   ;;  %v7549_v61 = vld [vmem:[#allocation11 + $0xec] ss:$16 sps:$4 sm:$0xff]  }
 0x302   :  { %5471 = vmatprep.subr.bf16.mxu1 %v7603_v36  ;;  %v7636_v57 = vld [vmem:[#allocation11 + $0x344] ss:$16 sps:$4 sm:$0xff]   ;;  %v7544_v60 = vld [vmem:[#allocation11 + $0x100] ss:$16 sps:$4 sm:$0xff]   ;;  %v7547_v42 = vld [vmem:[#allocation11 + $0xe8] ss:$16 sps:$4 sm:$0xff]  }
 0x303   :  { %5431 = vmatpush1.bf16.msra.mxu0 %v7505_v37  ;;  %v4611_v37 = vmax.f32 %v8203_v35, 0.0  ;;  %v7550_v35 = vld [vmem:[#allocation11 + $0xc8] ss:$16 sps:$4 sm:$0xff]   ;;  %v7555_v36 = vld [vmem:[#allocation11 + $0xac] ss:$16 sps:$4 sm:$0xff]  }
 0x304   :  { %5432 = vmatprep.subr.bf16.mxu0 %v7510_v38  ;;  %v7634_v38 = vld [vmem:[#allocation11 + $0x340] ss:$16 sps:$4 sm:$0xff]  }
 0x305   :  { %5472 = vmatpush1.bf16.msra.mxu1 %v7601_v24  ;;  %v8227_v63 = vpack.c.bf16 %v4611_v37, %v4611_v37 }
 0x306   :  { %5473 = vmatprep.subr.bf16.mxu1 %v7606_v13  ;;  %v7639_v13 = vld [vmem:[#allocation11 + $0x324] ss:$16 sps:$4 sm:$0xff]  }
 0x307   :  { %5433 = vmatpush1.bf16.msra.mxu0 %v7508_v5 }
 0x308   :  { %5434 = vmatprep.subr.bf16.mxu0 %v7513_v17 }
 0x309   :  { %5474 = vmatpush1.bf16.msra.mxu1 %v7604_v16 }
 0x30a   :  { %5475 = vmatprep.subr.bf16.mxu1 %v7609_v27 }
 0x30b   :  { %5435 = vmatpush1.bf16.msra.mxu0 %v7511_v7 }
 0x30c   :  { %5436 = vmatprep.subr.bf16.mxu0 %v7516_v50 }
 0x30d   :  { %5476 = vmatpush1.bf16.msra.mxu1 %v7607_v20  ;;  %v7642_v20 = vld [vmem:[#allocation11 + $0x304] ss:$16 sps:$4 sm:$0xff]  }
 0x30e   :  { %5477 = vmatprep.subr.bf16.mxu1 %v7612_v23  ;;  %v7640_v23 = vld [vmem:[#allocation11 + $0x300] ss:$16 sps:$4 sm:$0xff]  }
 0x30f   :  { %5437 = vmatpush1.bf16.msra.mxu0 %v7514_v47 }
 0x310   :  { %5438 = vmatprep.subr.bf16.mxu0 %v7519_v14  ;;  %v7637_v14 = vld [vmem:[#allocation11 + $0x320] ss:$16 sps:$4 sm:$0xff]  }
 0x311   :  { %5478 = vmatpush1.bf16.msra.mxu1 %v7610_v28  ;;  %v7559_v28 = vld [vmem:[#allocation11 + $0x68] ss:$16 sps:$4 sm:$0xff]  }
 0x312   :  { %5479 = vmatprep.subr.bf16.mxu1 %v7615_v29  ;;  %v7564_v29 = vld [vmem:[#allocation11 + $0x4c] ss:$16 sps:$4 sm:$0xff]  }
 0x313   :  { %5439 = vmatpush1.bf16.msra.mxu0 %v7517_v41 }
 0x314   :  { %5440 = vmatprep.subr.bf16.mxu0 %v7522_v21 }
 0x315   :  { %5480 = vmatpush1.bf16.msra.mxu1 %v7613_v34  ;;  %v7565_v34 = vld [vmem:[#allocation11 + $0x28] ss:$16 sps:$4 sm:$0xff]  }
 0x316   :  { %5481 = vmatprep.subr.bf16.mxu1 %v7618_v46  ;;  %v7570_v46 = vld [vmem:[#allocation11 + $0xc] ss:$16 sps:$4 sm:$0xff]  }
 0x317   :  { %5441 = vmatpush1.bf16.msra.mxu0 %v7520_v25  ;;  %v7556_v25 = vld [vmem:[#allocation11 + $0x88] ss:$16 sps:$4 sm:$0xff]  }
 0x318   :  { %5442 = vmatprep.subr.bf16.mxu0 %v7525_v26  ;;  %v7645_v26 = vld [vmem:[#allocation11 + $0x2ec] ss:$16 sps:$4 sm:$0xff]  }
 0x319   :  { %5482 = vmatpush1.bf16.msra.mxu1 %v7616_v40  ;;  %v7571_v40 = vld [vmem:[#allocation11 + $0x1e8] ss:$16 sps:$4 sm:$0xff]  }
 0x31a   :  { %5483 = vmatprep.subr.bf16.mxu1 %v7621_v2  ;;  %v7576_v2 = vld [vmem:[#allocation11 + $0x1cc] ss:$16 sps:$4 sm:$0xff]  }
 0x31b   :  { %5443 = vmatpush2.bf16.msra.mxu0 %v7523_v30  ;;  %v7562_v30 = vld [vmem:[#allocation11 + $0x48] ss:$16 sps:$4 sm:$0xff]  }
 0x31c   :  { %5444 = vmatprep.subr.bf16.mxu0 %v7528_v32  ;;  %v7567_v32 = vld [vmem:[#allocation11 + $0x2c] ss:$16 sps:$4 sm:$0xff]  }
 0x31d   :  { %5484 = vmatpush2.bf16.msra.mxu1 %v7619_v48  ;;  %v7577_v48 = vld [vmem:[#allocation11 + $0x1a8] ss:$16 sps:$4 sm:$0xff]  }
 0x31e   :  { %5485 = vmatprep.subr.bf16.mxu1 %v7624_v4  ;;  %v7582_v4 = vld [vmem:[#allocation11 + $0x18c] ss:$16 sps:$4 sm:$0xff]  }
 0x31f   :  { %5445 = vmatpush2.bf16.msra.mxu0 %v7526_v45  ;;  %v7568_v45 = vld [vmem:[#allocation11 + $0x8] ss:$16 sps:$4 sm:$0xff]  }
 0x320   :  { %5446 = vmatprep.subr.bf16.mxu0 %v7531_v62  ;;  %v7573_v62 = vld [vmem:[#allocation11 + $0x1ec] ss:$16 sps:$4 sm:$0xff]  }
 0x321   :  { %5486 = vmatpush2.bf16.msra.mxu1 %v7622_v31  ;;  %v7583_v31 = vld [vmem:[#allocation11 + $0x168] ss:$16 sps:$4 sm:$0xff]  }
 0x322   :  { %5487 = vmatprep.subr.bf16.mxu1 %v7627_v3  ;;  %v7588_v3 = vld [vmem:[#allocation11 + $0x14c] ss:$16 sps:$4 sm:$0xff]  }
 0x323   :  { %5447 = vmatpush2.bf16.msra.mxu0 %v7529_v54  ;;  %v7574_v54 = vld [vmem:[#allocation11 + $0x1c8] ss:$16 sps:$4 sm:$0xff]  }
 0x324   :  { %5448 = vmatprep.subr.bf16.mxu0 %v7534_v39  ;;  %v7579_v39 = vld [vmem:[#allocation11 + $0x1ac] ss:$16 sps:$4 sm:$0xff]  }
 0x325   :  { %5488 = vmatpush2.bf16.msra.mxu1 %v7625_v59  ;;  %v7589_v59 = vld [vmem:[#allocation11 + $0x128] ss:$16 sps:$4 sm:$0xff]  }
 0x326   :  { %5489 = vmatprep.subr.bf16.mxu1 %v7630_v8  ;;  %v7594_v8 = vld [vmem:[#allocation11 + $0x10c] ss:$16 sps:$4 sm:$0xff]  }
 0x327   :  { %5449 = vmatpush2.bf16.msra.mxu0 %v7532_v43  ;;  %v7580_v43 = vld [vmem:[#allocation11 + $0x188] ss:$16 sps:$4 sm:$0xff]  }
 0x328   :  { %5450 = vmatprep.subr.bf16.mxu0 %v7537_v22  ;;  %v7585_v22 = vld [vmem:[#allocation11 + $0x16c] ss:$16 sps:$4 sm:$0xff]  }
 0x329   :  { %5490 = vmatpush2.bf16.msra.mxu1 %v7628_v18 }
 0x32a   :  { %5491 = vmatprep.subr.bf16.mxu1 %v7633_v52 }
 0x32b   :  { %5451 = vmatpush2.bf16.msra.mxu0 %v7535_v33  ;;  %v7586_v33 = vld [vmem:[#allocation11 + $0x148] ss:$16 sps:$4 sm:$0xff]  }
 0x32c   :  { %5452 = vmatprep.subr.bf16.mxu0 %v7540_v1  ;;  %v7591_v1 = vld [vmem:[#allocation11 + $0x12c] ss:$16 sps:$4 sm:$0xff]  }
 0x32d   :  { %5492 = vmatpush2.bf16.msra.mxu1 %v7631_v56 }
 0x32e   :  { %5493 = vmatprep.subr.bf16.mxu1 %v7636_v57 }
 0x32f   :  { %5453 = vmatpush2.bf16.msra.mxu0 %v7538_v58  ;;  %v7592_v58 = vld [vmem:[#allocation11 + $0x108] ss:$16 sps:$4 sm:$0xff]  }
 0x330   :  { %5454 = vmatprep.subr.bf16.mxu0 %v7543_v51 }
 0x331   :  { %5494 = vmatpush2.bf16.msra.mxu1 %v7634_v38 }
 0x332   :  { %5495 = vmatprep.subr.bf16.mxu1 %v7639_v13 }
 0x333   :  { %5455 = vmatpush2.bf16.msra.mxu0 %v7541_v53 }
 0x334   :  { %5456 = vmatprep.subr.bf16.mxu0 %v7546_v15 }
 0x335   :  { %5496 = vmatpush2.bf16.msra.mxu1 %v7637_v14  ;;  %v7692_v14 = vld [vmem:[%s8362_s7 + $0x38] sm:$0xff]  }
 0x336   :  { %5497 = vmatprep.subr.bf16.mxu1 %v7642_v20  ;;  %v7648_v20 = vld [vmem:[#allocation11 + $0x2cc] ss:$16 sps:$4 sm:$0xff]  }
 0x337   :  { %5457 = vmatpush2.bf16.msra.mxu0 %v7544_v60 }
 0x338   :  { %5508 = vmatprep.subr.bf16.mxu0 %v7549_v61 }
 0x339   :  { %5498 = vmatpush2.bf16.msra.mxu1 %v7640_v23  ;;  %v7694_v23 = vld [vmem:[%s8362_s7 + $0x30] sm:$0xff]  }
 0x33a   :  { %v4399_v55 = vpop.f32.mrf.mxu0  ;;  %5459 = vmatmul.mubr.bf16.vlgmr.msra.gmra.mxu0 %v8227_v63  ;;  %5549 = vmatprep.subr.bf16.mxu1 %v7645_v26  ;;  %v7651_v26 = vld [vmem:[#allocation11 + $0x2ac] ss:$16 sps:$4 sm:$0xff]  }
 0x33b   :  { %v4400_v5 = vadd.f32 %v4399_v55, %v8222_v19  ;;  %v4440_v17 = vpop.f32.mrf.mxu1  ;;  %5509 = vmatpush1.bf16.msra.mxu0 %v7547_v42  ;;  %5540 = vmatprep.mubr.bf16.mxu0 %v8217_v44  ;;  %v7553_v19 = vld [vmem:[#allocation11 + $0xa8] ss:$16 sps:$4 sm:$0xff]   ;;  %v7558_v44 = vld [vmem:[#allocation11 + $0x8c] ss:$16 sps:$4 sm:$0xff]  }
 0x33c   :  { %v4401_v6 = vpop.f32.mrf.mxu0  ;;  %5510 = vmatprep.subr.bf16.mxu0 %v7552_v49 }
 0x33d   :  { %v8232_v7 = vadd.f32 %v4440_v17, %v4400_v5  ;;  %v4402_v50 = vadd.f32 %v4401_v6, %v8224_v12  ;;  %v4442_v24 = vpop.f32.mrf.mxu1  ;;  %v7561_v12 = vld [vmem:[#allocation11 + $0x6c] ss:$16 sps:$4 sm:$0xff]  }
 0x33e   :  { %v4403_v47 = vpop.f32.mrf.mxu0 }
 0x33f   :  { %v8235_v16 = vadd.f32 %v4442_v24, %v4402_v50  ;;  %v4444_v27 = vpop.f32.mrf.mxu1  ;;  %5511 = vmatpush1.bf16.msra.mxu0 %v7550_v35  ;;  %v7691_v47 = vld [vmem:[%s8362_s7 + $0x78] sm:$0xff]  }
 0x340   :  { %v4404_v41 = vpop.f32.mrf.mxu0  ;;  %5512 = vmatprep.subr.bf16.mxu0 %v7555_v36 }
 0x341   :  { %v4445_v21 = vpop.f32.mrf.mxu1 }
 0x343   :  { %5513 = vmatpush1.bf16.msra.mxu0 %v7553_v19 }
 0x344   :  { %5514 = vmatprep.subr.bf16.mxu0 %v7558_v44  ;;  %v7643_v44 = vld [vmem:[#allocation11 + $0x2e8] ss:$16 sps:$4 sm:$0xff]  }
 0x347   :  { %5515 = vmatpush1.bf16.msra.mxu0 %v7556_v25  ;;  %v7695_v25 = vld [vmem:[%s8362_s7 + $0x68] sm:$0xff]  }
 0x348   :  { %5516 = vmatprep.subr.bf16.mxu0 %v7561_v12  ;;  %v7646_v12 = vld [vmem:[#allocation11 + $0x2c8] ss:$16 sps:$4 sm:$0xff]  }
 0x34b   :  { %5517 = vmatpush1.bf16.msra.mxu0 %v7559_v28  ;;  %v7696_v28 = vld [vmem:[%s8362_s7 + $0x28] sm:$0xff]  }
 0x34c   :  { %5518 = vmatprep.subr.bf16.mxu0 %v7564_v29  ;;  %v7697_v29 = vld [vmem:[%s8362_s7 + $0x60] sm:$0xff]  }
 0x34f   :  { %5519 = vmatpush1.bf16.msra.mxu0 %v7562_v30  ;;  %v7649_v30 = vld [vmem:[#allocation11 + $0x2a8] ss:$16 sps:$4 sm:$0xff]  }
 0x350   :  { %5520 = vmatprep.subr.bf16.mxu0 %v7567_v32  ;;  %v7654_v32 = vld [vmem:[#allocation11 + $0x28c] ss:$16 sps:$4 sm:$0xff]  }
 0x353   :  { %5521 = vmatpush1.bf16.msra.mxu0 %v7565_v34  ;;  %v7698_v34 = vld [vmem:[%s8362_s7 + $0x20] sm:$0xff]  }
 0x354   :  { %5522 = vmatprep.subr.bf16.mxu0 %v7570_v46  ;;  %v7699_v46 = vld [vmem:[%s8362_s7 + $0x58] sm:$0xff]  }
 0x357   :  { %5523 = vmatpush1.bf16.msra.mxu0 %v7568_v45  ;;  %v7652_v45 = vld [vmem:[#allocation11 + $0x288] ss:$16 sps:$4 sm:$0xff]  }
 0x358   :  { %5524 = vmatprep.subr.bf16.mxu0 %v7573_v62  ;;  %v7657_v62 = vld [vmem:[#allocation11 + $0x26c] ss:$16 sps:$4 sm:$0xff]  }
 0x35b   :  { %5525 = vmatpush2.bf16.msra.mxu0 %v7571_v40  ;;  %v7700_v40 = vld [vmem:[%s8362_s7 + $0x18] sm:$0xff]  }
 0x35c   :  { %5526 = vmatprep.subr.bf16.mxu0 %v7576_v2  ;;  %v7701_v2 = vld [vmem:[%s8362_s7 + $0x50] sm:$0xff]  }
 0x35f   :  { %5527 = vmatpush2.bf16.msra.mxu0 %v7574_v54  ;;  %v7655_v54 = vld [vmem:[#allocation11 + $0x268] ss:$16 sps:$4 sm:$0xff]  }
 0x360   :  { %5528 = vmatprep.subr.bf16.mxu0 %v7579_v39  ;;  %v7660_v39 = vld [vmem:[#allocation11 + $0x24c] ss:$16 sps:$4 sm:$0xff]  }
 0x363   :  { %5529 = vmatpush2.bf16.msra.mxu0 %v7577_v48  ;;  %v7702_v48 = vld [vmem:[%s8362_s7 + $0x10] sm:$0xff]  }
 0x364   :  { %5530 = vmatprep.subr.bf16.mxu0 %v7582_v4  ;;  %v7658_v4 = vld [vmem:[#allocation11 + $0x248] ss:$16 sps:$4 sm:$0xff]  }
 0x367   :  { %5531 = vmatpush2.bf16.msra.mxu0 %v7580_v43  ;;  %v7663_v43 = vld [vmem:[#allocation11 + $0x22c] ss:$16 sps:$4 sm:$0xff]  }
 0x368   :  { %5532 = vmatprep.subr.bf16.mxu0 %v7585_v22  ;;  %v7661_v22 = vld [vmem:[#allocation11 + $0x228] ss:$16 sps:$4 sm:$0xff]  }
 0x36b   :  { %5533 = vmatpush2.bf16.msra.mxu0 %v7583_v31  ;;  %v7666_v31 = vld [vmem:[#allocation11 + $0x20c] ss:$16 sps:$4 sm:$0xff]  }
 0x36c   :  { %5534 = vmatprep.subr.bf16.mxu0 %v7588_v3  ;;  %v7664_v3 = vld [vmem:[#allocation11 + $0x208] ss:$16 sps:$4 sm:$0xff]  }
 0x36f   :  { %5535 = vmatpush2.bf16.msra.mxu0 %v7586_v33  ;;  %v7669_v33 = vld [vmem:[#allocation11 + $0x3ec] ss:$16 sps:$4 sm:$0xff]  }
 0x370   :  { %5536 = vmatprep.subr.bf16.mxu0 %v7591_v1  ;;  %v7667_v1 = vld [vmem:[#allocation11 + $0x3e8] ss:$16 sps:$4 sm:$0xff]  }
 0x373   :  { %5537 = vmatpush2.bf16.msra.mxu0 %v7589_v59  ;;  %v7672_v59 = vld [vmem:[#allocation11 + $0x3cc] ss:$16 sps:$4 sm:$0xff]  }
 0x374   :  { %5538 = vmatprep.subr.bf16.mxu0 %v7594_v8  ;;  %v7670_v8 = vld [vmem:[#allocation11 + $0x3c8] ss:$16 sps:$4 sm:$0xff]  }
 0x377   :  { %5539 = vmatpush2.bf16.msra.mxu0 %v7592_v58  ;;  %v7675_v58 = vld [vmem:[#allocation11 + $0x3ac] ss:$16 sps:$4 sm:$0xff]  }
 0x378   :  { %6673 = vmatprep.subr.bf16.mxu0 %v7691_v47  ;;  %v7712_v47 = vld [vmem:[%s8362_s7 + $0xa8] sm:$0xff]  }
 0x37a   :  { %v4481_v51 = vpop.f32.mrf.mxu0  ;;  %5541 = vmatmul.mubr.bf16.vlgmr.msra.gmra.mxu0 %v8227_v63 }
 0x37b   :  { %v4482_v18 = vadd.f32 %v4481_v51, %v8232_v7  ;;  %v4522_v52 = vpop.f32.mrf.mxu1  ;;  %6674 = vmatpush3.bf16.msra.mxu0 %v7692_v14  ;;  %v7673_v51 = vld [vmem:[#allocation11 + $0x3a8] ss:$16 sps:$4 sm:$0xff]  }
 0x37c   :  { %v4483_v53 = vpop.f32.mrf.mxu0  ;;  %v7713_v14 = vld [vmem:[%s8362_s7 + $0xe0] sm:$0xff]  }
 0x37d   :  { %v4523_v15 = vadd.f32 %v4522_v52, %v4482_v18  ;;  %v4524_v56 = vpop.f32.mrf.mxu1  ;;  %v4484_v38 = vadd.f32 %v4483_v53, %v8235_v16  ;;  %v7693_v16 = vld [vmem:[%s8362_s7 + $0x70] sm:$0xff]  }
 0x37e   :  { %v4485_v57 = vpop.f32.mrf.mxu0  ;;  %6675 = vmatprep.subr.bf16.mxu0 %v7693_v16  ;;  %v7678_v18 = vld [vmem:[#allocation11 + $0x38c] ss:$16 sps:$4 sm:$0xff]   ;;  %v7676_v52 = vld [vmem:[#allocation11 + $0x388] ss:$16 sps:$4 sm:$0xff]  }
 0x37f   :  { %v4526_v60 = vpop.f32.mrf.mxu1  ;;  %v4525_v49 = vadd.f32 %v4524_v56, %v4484_v38  ;;  %6676 = vmatpush3.bf16.msra.mxu0 %v7694_v23  ;;  %v7681_v53 = vld [vmem:[#allocation11 + $0x36c] ss:$16 sps:$4 sm:$0xff]   ;;  %v7682_v57 = vld [vmem:[#allocation11 + $0x348] ss:$16 sps:$4 sm:$0xff]  }
 0x380   :  { %v4486_v37 = vpop.f32.mrf.mxu0  ;;  %6677 = vmatprep.subr.bf16.mxu0 %v7695_v25  ;;  %v7684_v56 = vld [vmem:[#allocation11 + $0x34c] ss:$16 sps:$4 sm:$0xff]  }
 0x381   :  { %v4527_v61 = vpop.f32.mrf.mxu1  ;;  %v7687_v60 = vld [vmem:[#allocation11 + $0x32c] ss:$16 sps:$4 sm:$0xff]  }
 0x382   :  { %v7685_v61 = vld [vmem:[#allocation11 + $0x328] ss:$16 sps:$4 sm:$0xff]  }
 0x383   :  { %6678 = vmatpush3.bf16.msra.mxu0 %v7696_v28  ;;  %v7714_v16 = vld [vmem:[%s8362_s7 + $0xa0] sm:$0xff]  }
 0x384   :  { %6679 = vmatprep.subr.bf16.mxu0 %v7697_v29  ;;  %v7721_v28 = vld [vmem:[%s8362_s7 + $0xc0] sm:$0xff]  }
 0x385   :  { %v7722_v29 = vld [vmem:[%s8362_s7 + $0x80] sm:$0xff]  }
 0x387   :  { %6680 = vmatpush3.bf16.msra.mxu0 %v7698_v34 }
 0x388   :  { %6681 = vmatprep.subr.bf16.mxu0 %v7699_v46 }
 0x38b   :  { %6682 = vmatpush3.bf16.msra.mxu0 %v7700_v40 }
 0x38c   :  { %6683 = vmatprep.subr.bf16.mxu0 %v7701_v2 }
 0x38f   :  { %6684 = vmatpush3.bf16.msra.mxu0 %v7702_v48 }
 0x3ba   :  { %v4563_v42 = vpop.f32.mrf.mxu0 }
 0x3bb   :  { %v4564_v55 = vadd.f32 %v4563_v42, %v4523_v15  ;;  %v4604_v5 = vpop.f32.mrf.mxu1  ;;  %v7679_v15 = vld [vmem:[#allocation11 + $0x368] ss:$16 sps:$4 sm:$0xff]   ;;  %v7690_v42 = vld [vmem:[#allocation11 + $0x30c] ss:$16 sps:$4 sm:$0xff]  }
 0x3bc   :  { %v4565_v17 = vpop.f32.mrf.mxu0 }
 0x3bd   :  { %v4605_v35 = vadd.f32 %v4604_v5, %v4564_v55  ;;  %v4566_v6 = vadd.f32 %v4565_v17, %v4525_v49  ;;  %v4606_v63 = vpop.f32.mrf.mxu1  ;;  %v7688_v55 = vld [vmem:[#allocation11 + $0x308] ss:$16 sps:$4 sm:$0xff]  }
 0x3be   :  { %v4567_v36 = vpop.f32.mrf.mxu0  ;;  %v7703_v17 = vld [vmem:[%s8362_s7 + $0x48] sm:$0xff]  }
 0x3bf   :  { %v4607_v7 = vadd.f32 %v4606_v63, %v4566_v6  ;;  %v4608_v50 = vpop.f32.mrf.mxu1  ;;  %v4613_v24 = vmax.f32 %v4605_v35, 0.0  ;;  %v7704_v35 = vld [vmem:[%s8362_s7 + $0x8] sm:$0xff]   ;;  %6685 = vmatprep.subr.bf16.mxu0 %v7703_v17  ;;  %v7705_v6 = vld [vmem:[%s8362_s7 + $0x40] sm:$0xff]   ;;  %v7707_v36 = vld [vmem:[%s8362_s7 + $0xf8] sm:$0xff]  }
 0x3c0   :  { %v4568_v13 = vpop.f32.mrf.mxu0  ;;  %6686 = vmatpush3.bf16.msra.mxu0 %v7704_v35  ;;  %v7706_v63 = vld [vmem:[%s8362_s7] sm:$0xff]   ;;  %v7709_v50 = vld [vmem:[%s8362_s7 + $0xf0] sm:$0xff]  }
 0x3c1   :  { %v4614_v27 = vmax.f32 %v4607_v7, 0.0  ;;  %v4609_v19 = vpop.f32.mrf.mxu1  ;;  %v8249_v21 = vpack.c.bf16 %v4613_v24, %v4613_v24  ;;  %6687 = vmatprep.subr.bf16.mxu0 %v7705_v6  ;;  %v7708_v7 = vld [vmem:[%s8362_s7 + $0xb8] sm:$0xff]   ;;  %v7710_v24 = vld [vmem:[%s8362_s7 + $0xb0] sm:$0xff]   ;;  %v7711_v13 = vld [vmem:[%s8362_s7 + $0xe8] sm:$0xff]  }
 0x3c2   :  { %v7716_v19 = vld [vmem:[%s8362_s7 + $0x98] sm:$0xff]  }
 0x3c3   :  { %v4618_v41 = vpack.c.bf16 %v4614_v27, %v4614_v27  ;;  %v7715_v27 = vld [vmem:[%s8362_s7 + $0xd8] sm:$0xff]  }
 0x3c4   :  { %6688 = vmatpush3.bf16.msra.mxu0 %v7706_v63 }
 0x3c5   :  { %5499 = vmatprep.mubr.bf16.mxu1 %v4618_v41 }
 0x3c6   :  { %5500 = vmatmul.mubr.bf16.vlgmr.msra.gmra.mxu1 %v8249_v21 }
 0x3c7   :  { %5550 = vmatpush1.bf16.msra.mxu1 %v7643_v44  ;;  %5581 = vmatprep.mubr.bf16.mxu1 %v4618_v41  ;;  %v7717_v41 = vld [vmem:[%s8362_s7 + $0xd0] sm:$0xff]  }
 0x3c8   :  { %5551 = vmatprep.subr.bf16.mxu1 %v7648_v20  ;;  %v7718_v44 = vld [vmem:[%s8362_s7 + $0x90] sm:$0xff]  }
 0x3cb   :  { %5552 = vmatpush1.bf16.msra.mxu1 %v7646_v12  ;;  %v7719_v12 = vld [vmem:[%s8362_s7 + $0xc8] sm:$0xff]  }
 0x3cc   :  { %5553 = vmatprep.subr.bf16.mxu1 %v7651_v26  ;;  %v7720_v26 = vld [vmem:[%s8362_s7 + $0x88] sm:$0xff]   ;;  %s7928_s7 = smov [#allocation16]  }
 0x3cd   :  { %s5948_s30 = sshll.u32 %s7928_s7, 4  ;;  %s5949_s30 = int_to_ptr.vmem [resolvable:$true] %s5948_s30 }
 0x3ce   :  { %s7883_s10 = scalar_lea.vmem %s5949_s30, 32  ;;  %p7888_p13 = scmp.lt.s32.totalorder %s5949_s30, %s5949_s30 }
 0x3cf   :  { %5554 = vmatpush1.bf16.msra.mxu1 %v7649_v30  ;;  %v4747_v30 = vld [vmem:[#allocation13] sm:$0xf]  ;;  %p7884_p12 = scmp.ne.s32.totalorder %s5949_s30, %s7883_s10  ;;  %p7889_p0 = scmp.lt.s32.totalorder %s7883_s10, %s7883_s10 }
 0x3d0   :  { %5555 = vmatprep.subr.bf16.mxu1 %v7654_v32  ;;  %v4748_v32 = vunpack.c.l.bf16 %v4747_v30 }
 0x3d1   :  { %p7890_p1 = por %p7889_p0, %p7888_p13 }
 0x3d2   :  { %v4753_v34 = vrot.slane %v4748_v32, %v8029_v9  ;;  %v4757_v46 = vrot.slane %v4748_v32, %v8033_v0  ;;  %v4761_v0 = vrot.slane %v4748_v32, %v8031_v10 }
 0x3d3   :  { %5556 = vmatpush1.bf16.msra.mxu1 %v7652_v45  ;;  %p7891_p2 = pnand %p7890_p1, %p7884_p12 }
 0x3d4   :  { %5557 = vmatprep.subr.bf16.mxu1 %v7657_v62  ;;  %v4773_v45 = vrot.slane %v4753_v34, %v8029_v9  ;;  %v4777_v62 = vrot.slane %v4757_v46, %v8029_v9 }
 0x3d7   :  { %5558 = vmatpush1.bf16.msra.mxu1 %v7655_v54 }
 0x3d8   :  { %5559 = vmatprep.subr.bf16.mxu1 %v7660_v39 }
 0x3db   :  { %5560 = vmatpush1.bf16.msra.mxu1 %v7658_v4 }
 0x3dc   :  { %5561 = vmatprep.subr.bf16.mxu1 %v7663_v43 }
 0x3df   :  { %5562 = vmatpush1.bf16.msra.mxu1 %v7661_v22 }
 0x3e0   :  { %5563 = vmatprep.subr.bf16.mxu1 %v7666_v31 }
 0x3e3   :  { %5564 = vmatpush1.bf16.msra.mxu1 %v7664_v3 }
 0x3e4   :  { %5565 = vmatprep.subr.bf16.mxu1 %v7669_v33 }
 0x3e7   :  { %5566 = vmatpush2.bf16.msra.mxu1 %v7667_v1 }
 0x3e8   :  { %5567 = vmatprep.subr.bf16.mxu1 %v7672_v59  ;;  %v4765_v59 = vrot.slane %v4748_v32, %v8035_v11 }
 0x3eb   :  { %5568 = vmatpush2.bf16.msra.mxu1 %v7670_v8  ;;  %v4781_v8 = vrot.slane %v4761_v0, %v8029_v9 }
 0x3ec   :  { %5569 = vmatprep.subr.bf16.mxu1 %v7675_v58  ;;  %v4785_v58 = vrot.slane %v4765_v59, %v8029_v9 }
 0x3ef   :  { %5570 = vmatpush2.bf16.msra.mxu1 %v7673_v51 }
 0x3f0   :  { %5571 = vmatprep.subr.bf16.mxu1 %v7678_v18 }
 0x3f3   :  { %5572 = vmatpush2.bf16.msra.mxu1 %v7676_v52 }
 0x3f4   :  { %5573 = vmatprep.subr.bf16.mxu1 %v7681_v53 }
 0x3f7   :  { %5574 = vmatpush2.bf16.msra.mxu1 %v7679_v15 }
 0x3f8   :  { %5575 = vmatprep.subr.bf16.mxu1 %v7684_v56 }
 0x3fa   :  { %v8279_v37 = vpop.f32.mrf.mxu0 }
 0x3fb   :  { %5576 = vmatpush2.bf16.msra.mxu1 %v7682_v57  ;;  %v5461_v40 = vadd.f32 %v8279_v37, %v4773_v45 }
 0x3fc   :  { %v5462_v38 = vpop.f32.mrf.mxu0  ;;  %5577 = vmatprep.subr.bf16.mxu1 %v7687_v60 }
 0x3fd   :  { %v5463_v54 = vadd.f32 %v5462_v38, %v4777_v62 }
 0x3fe   :  { %v5464_v49 = vpop.f32.mrf.mxu0 }
 0x3ff   :  { %5578 = vmatpush2.bf16.msra.mxu1 %v7685_v61 }
 0x400   :  { %v5465_v5 = vpop.f32.mrf.mxu0  ;;  %5579 = vmatprep.subr.bf16.mxu1 %v7690_v42 }
 0x401   :  { %v5662_v5 = vld [vmem:[#allocation14] sm:$0x1] }
 0x402   :  { %v5663_v17 = vunpack.c.l.bf16 %v5662_v5 }
 0x403   :  { %5580 = vmatpush2.bf16.msra.mxu1 %v7688_v55 }
 0x404   :  { %6695 = vmatprep.subr.bf16.mxu1 %v7707_v36  ;;  %v5667_v35 = vrot.slane %v5663_v17, %v8029_v9 }
 0x406   :  { %5582 = vmatmul.mubr.bf16.vlgmr.msra.gmra.mxu1 %v8249_v21 }
 0x407   :  { %6696 = vmatpush3.bf16.msra.mxu1 %v7708_v7 }
 0x408   :  { %6697 = vmatprep.subr.bf16.mxu1 %v7709_v50 }
 0x40b   :  { %6698 = vmatpush3.bf16.msra.mxu1 %v7710_v24 }
 0x40c   :  { %6699 = vmatprep.subr.bf16.mxu1 %v7711_v13 }
 0x40f   :  { %6700 = vmatpush3.bf16.msra.mxu1 %v7712_v47 }
 0x410   :  { %6701 = vmatprep.subr.bf16.mxu1 %v7713_v14 }
 0x413   :  { %6702 = vmatpush3.bf16.msra.mxu1 %v7714_v16 }
 0x414   :  { %6703 = vmatprep.subr.bf16.mxu1 %v7715_v27 }
 0x417   :  { %6704 = vmatpush3.bf16.msra.mxu1 %v7716_v19 }
 0x418   :  { %6705 = vmatprep.subr.bf16.mxu1 %v7717_v41 }
 0x41b   :  { %6706 = vmatpush3.bf16.msra.mxu1 %v7718_v44 }
 0x41c   :  { %6707 = vmatprep.subr.bf16.mxu1 %v7719_v12 }
 0x41f   :  { %6708 = vmatpush3.bf16.msra.mxu1 %v7720_v26 }
 0x420   :  { %6709 = vmatprep.subr.bf16.mxu1 %v7721_v28 }
 0x423   :  { %6710 = vmatpush3.bf16.msra.mxu1 %v7722_v29 }
 0x43a   :  { %v5542_v21 = vpop.f32.mrf.mxu0 }
 0x43b   :  { %v5543_v51 = vadd.f32 %v5542_v21, %v4781_v8 }
 0x43c   :  { %v5544_v20 = vpop.f32.mrf.mxu0 }
 0x43d   :  { %v5545_v52 = vadd.f32 %v5544_v20, %v4785_v58 }
 0x43e   :  { %v5546_v23 = vpop.f32.mrf.mxu0 }
 0x440   :  { %v5547_v25 = vpop.f32.mrf.mxu0 }
 0x486   :  { %v5501_v2 = vpop.f32.mrf.mxu1 }
 0x487   :  { %v5502_v39 = vadd.f32 %v5501_v2, %v5461_v40 }
 0x488   :  { %v5503_v48 = vpop.f32.mrf.mxu1 }
 0x489   :  { %v5504_v4 = vadd.f32 %v5503_v48, %v5463_v54  ;;  %v5590_v43 = vmax.f32 %v5502_v39, 0.0 }
 0x48a   :  { %v5505_v22 = vpop.f32.mrf.mxu1 }
 0x48b   :  { %v5591_v31 = vmax.f32 %v5504_v4, 0.0  ;;  %v5594_v1 = vpack.c.bf16 %v5590_v43, %v5590_v43 }
 0x48c   :  { %v5506_v3 = vpop.f32.mrf.mxu1 }
 0x48d   :  { %v5595_v33 = vpack.c.bf16 %v5591_v31, %v5591_v31 }
 0x48f   :  { %5892 = vmatprep.mubr.bf16.mxu0 %v5595_v33 }
 0x490   :  { %5893 = vmatmul.mubr.bf16.vlgmr.msra.gmra.mxu0 %v5594_v1 }
 0x4c6   :  { %v5583_v18 = vpop.f32.mrf.mxu1 }
 0x4c7   :  { %v5584_v53 = vadd.f32 %v5583_v18, %v5543_v51 }
 0x4c8   :  { %v5585_v15 = vpop.f32.mrf.mxu1 }
 0x4c9   :  { %v5586_v56 = vadd.f32 %v5585_v15, %v5545_v52  ;;  %v5592_v57 = vmax.f32 %v5584_v53, 0.0 }
 0x4ca   :  { %v5587_v60 = vpop.f32.mrf.mxu1 }
 0x4cb   :  { %v5593_v37 = vmax.f32 %v5586_v56, 0.0  ;;  %v5596_v42 = vpack.c.bf16 %v5592_v57, %v5592_v57 }
 0x4cc   :  { %v5588_v61 = vpop.f32.mrf.mxu1 }
 0x4cd   :  { %v5597_v38 = vpack.c.bf16 %v5593_v37, %v5593_v37 }
 0x4cf   :  { %5932 = vmatprep.mubr.bf16.mxu1 %v5597_v38 }
 0x4d0   :  { %5933 = vmatmul.mubr.bf16.vlgmr.msra.gmra.mxu1 %v5596_v42 }
 0x550   :  { %v6689_v10 = vpop.f32.mrf.mxu0 }
 0x552   :  { %v6690_v11 = vpop.f32.mrf.mxu0 }
 0x553   :  { %v6691_v6 = vadd.f32 %v6690_v11, %v6689_v10 }
 0x554   :  { %v6692_v49 = vpop.f32.mrf.mxu0 }
 0x555   :  { %v5895_v7 = vadd.f32 %v6691_v6, %v5667_v35 }
 0x556   :  { %v6693_v55 = vpop.f32.mrf.mxu0 }
 0x590   :  { %v6711_v63 = vpop.f32.mrf.mxu1 }
 0x592   :  { %v6712_v36 = vpop.f32.mrf.mxu1 }
 0x593   :  { %v6713_v50 = vadd.f32 %v6712_v36, %v6711_v63 }
 0x594   :  { %v6714_v24 = vpop.f32.mrf.mxu1 }
 0x595   :  { %v5935_v13 = vadd.f32 %v6713_v50, %v5895_v7 }
 0x596   :  { %v6715_v47 = vpop.f32.mrf.mxu1 }
 0x597   :  { %5941 = vst.msk [vmem:[#allocation16] sm:$0x3] %vm5940_vm1, %v5935_v13 }
 0x598   :  { %7894 = shalt.err (!%p7891_p2)
}
 0x599   :  { %5951 = dma.vmem_to_hbm [thread:$0]  %s5949_s30, 32, %s8364_s9, [#allocation4]  }
 0x59a   :  { %7913 = dma.done.wait [#allocation4], 32  }
 0x59b   :  { %7914 = vsyncadd [#allocation4], 4294967264 }
 0x59c   :  { %5955 = vsyncpa [#allocation3], 1 }
 0x59d   :  { %5956 = vsyncpa [#allocation6], 1 }
 0x59e   :  { %5957 = vsyncpa [#allocation9], 1 }
 0x59f   :  { %5958 = vsyncpa [#allocation12], 1 }
 0x5a0   :  { %5959 = vsyncpa [#allocation15], 1 }
 0x5a1   :  { %5960 = vsyncpa [#allocation4], 1 }

</bundles_post_ra>
